<compile_context>
chip_gen: v7x
topology: tpu7x:2x2x1
jax: 0.10.0
libtpu: 0.0.40
codegen_flags: <defaults>
</compile_context>

<pallas_src>
import functools

import jax
import jax.numpy as jnp
from jax.experimental import pallas as pl
from jax.experimental.pallas import tpu as pltpu

EPS = 1e-5      # nn.BatchNorm2d default
LANES = 128     # channel dims are zero-padded to the TPU lane width
HALO_L = 8      # left W halo -> sublane-aligned interior offset; right halo = 1


def down_kernel(x_ref, w1_ref, g1_ref, be1_ref, w2_ref, g2_ref, be2_ref,
                out_ref, pad_ref, acc_ref, stat_ref,
                *, n, hp, wp, cp, tr):
    p = pl.program_id(0)          # phase: 0 pool+conv1, 1 bn1+conv2, 2 bn2+out
    t = pl.program_id(1)          # row tile index
    nt = pl.num_programs(1)
    mt = n * tr * wp              # rows of one tile's (m, C) activation matrix
    inv_cnt = 1.0 / float(n * hp * wp)   # BN reduction count = N*H*W
    wpad = HALO_L + wp + 1

    # ---- one-time init (first grid step only): zero the halo border of the
    # shared padded scratch and the BN sum/sumsq accumulators.  The halo is
    # never written again; both convs reuse the same buffer.
    @pl.when(jnp.logical_and(p == 0, t == 0))
    def _init():
        stat_ref[...] = jnp.zeros_like(stat_ref)
        pad_ref[:, 0:1, :, :] = jnp.zeros((n, 1, wpad, cp), jnp.bfloat16)
        pad_ref[:, hp + 1:hp + 2, :, :] = jnp.zeros((n, 1, wpad, cp), jnp.bfloat16)
        pad_ref[:, :, 0:HALO_L, :] = jnp.zeros((n, hp + 2, HALO_L, cp), jnp.bfloat16)
        pad_ref[:, :, HALO_L + wp:wpad, :] = jnp.zeros((n, hp + 2, 1, cp), jnp.bfloat16)

    def conv3x3_tile(tile, w_ref, srow):
        # 3x3 conv (pad=1) of one row tile as 9 accumulated K=128 MXU matmuls
        # (bf16 operands, f32 accumulator); no im2col slab / concat.
        acc = jnp.zeros((mt, cp), jnp.float32)
        for dy in range(3):
            for dx in range(3):
                k = dy * 3 + dx
                tap = pad_ref[:, pl.ds(tile * tr + dy, tr),
                              HALO_L - 1 + dx:HALO_L - 1 + dx + wp, :]
                acc = acc + jnp.dot(tap.reshape(mt, cp),
                                    w_ref[k * cp:(k + 1) * cp, :],
                                    preferred_element_type=jnp.float32)
        # Stash pre-BN activations and accumulate batch stats in one pass
        # (sum and sum-of-squares together, f32).
        acc_ref[:, pl.ds(tile * tr, tr), :, :] = acc.reshape(n, tr, wp, cp)
        stat_ref[srow:srow + 1, :] = (stat_ref[srow:srow + 1, :]
                                      + jnp.sum(acc, axis=0, keepdims=True))
        stat_ref[srow + 1:srow + 2, :] = (stat_ref[srow + 1:srow + 2, :]
                                          + jnp.sum(acc * acc, axis=0, keepdims=True))

    def bn_relu_tile(tile, srow, g_ref, be_ref):
        # Training-mode BatchNorm over (N,H,W) folded into one scale/shift FMA
        # + ReLU.  var = E[x^2] - mu^2 (f32).  The conv bias is omitted: it
        # cancels exactly against the batch mean, so it never reaches the
        # output.
        mu = stat_ref[srow:srow + 1, :] * inv_cnt
        var = stat_ref[srow + 1:srow + 2, :] * inv_cnt - mu * mu
        scale = g_ref[...] * jax.lax.rsqrt(var + EPS)        # EUP rsqrt
        shift = be_ref[...] - mu * scale
        a = acc_ref[:, pl.ds(tile * tr, tr), :, :].reshape(mt, cp)
        return jnp.maximum(a * scale + shift, 0.0)           # FMA + ReLU

    # ---- phase 0: maxpool tile t into the scratch interior; run conv1 on the
    # tile whose 1-row bottom halo just became available (lag-by-one keeps the
    # next tile's HBM->VMEM DMA overlapped with the MXU work).
    @pl.when(p == 0)
    def _phase0():
        x = x_ref[...]                                        # (n,tr,2,wp,2cp) bf16
        hmax = jnp.maximum(x[:, :, 0], x[:, :, 1])            # pool the H pairs
        pooled = jnp.maximum(hmax[..., :cp], hmax[..., cp:])  # pool W (lane halves)
        pad_ref[:, pl.ds(1 + t * tr, tr), HALO_L:HALO_L + wp, :] = pooled

        @pl.when(t >= 1)
        def _():
            conv3x3_tile(t - 1, w1_ref, 0)

        @pl.when(t == nt - 1)                 # last step: finish the final tile
        def _():
            conv3x3_tile(t, w1_ref, 0)

    # ---- phase 1: BN1+ReLU tile t back into the scratch interior (single bf16
    # cast); conv2 lag-by-one (its halo rows were normalized earlier in program
    # order or at earlier steps — BN1 stats are complete after phase 0).
    @pl.when(p == 1)
    def _phase1():
        y1 = bn_relu_tile(t, 0, g1_ref, be1_ref).astype(jnp.bfloat16)
        pad_ref[:, pl.ds(1 + t * tr, tr), HALO_L:HALO_L + wp, :] = \
            y1.reshape(n, tr, wp, cp)

        @pl.when(t >= 1)
        def _():
            conv3x3_tile(t - 1, w2_ref, 2)

        @pl.when(t == nt - 1)
        def _():
            conv3x3_tile(t, w2_ref, 2)

    # ---- phase 2: BN2+ReLU tile t -> lane-dense (last dim = 128) output block.
    @pl.when(p == 2)
    def _phase2():
        out_ref[...] = bn_relu_tile(t, 2, g2_ref, be2_ref).reshape(n, tr, wp, cp)


def _vmem_limit_bytes():
    # v5e/v6e have 128 MiB of VMEM per TensorCore, v7x only 64 MiB: derive the
    # scoped limit from the device instead of hard-coding one number.
    try:
        cap = int(pltpu.get_tpu_info().vmem_capacity_bytes)
        if cap > 0:
            return min(cap // 2, 32 * 1024 * 1024)
    except Exception:
        pass
    return 32 * 1024 * 1024


@jax.jit
def down_pallas(x, params):
    """x: (N, C, H, W) float32 (PyTorch NCHW). Returns (N, Cout, H//2, W//2)."""
    N, C, H, W = x.shape
    Hp, Wp = H // 2, W // 2
    Cmid = params["w1"].shape[-1]
    Cout = params["w2"].shape[-1]
    CP = LANES
    assert C <= CP and Cmid <= CP and Cout <= CP  # TODO(synk): tile channels > 128

    # Row-block tile.  Real UNet shapes should size TR from the per-generation
    # VMEM budget (~ N*TR*Wp*128*(4 f32 acc + bf16 tap copies) bytes); the toy
    # shapes use a fixed 4-row tile so the multi-tile halo/pipeline path runs.
    TR = 4 if Hp % 4 == 0 else (2 if Hp % 2 == 0 else Hp)
    NT = Hp // TR

    # PyTorch MaxPool2d(2) floors odd extents: crop to even H/W.
    x = x[:, :, :2 * Hp, :2 * Wp]

    # One NCHW->NHWC transpose + channel zero-pad + single bf16 cast, fused into
    # this jit with the pallas_call (no extra HBM round trip); the reshape that
    # exposes the 2x2 pool window is a pure row-major reshape.
    x_nhwc = jnp.transpose(x, (0, 2, 3, 1))
    x_nhwc = jnp.pad(x_nhwc, ((0, 0), (0, 0), (0, 0), (0, CP - C)))
    x5 = x_nhwc.astype(jnp.bfloat16).reshape(N, Hp, 2, Wp, 2 * CP)

    def pad_w(w, cin, cout):   # (3,3,cin,cout) -> (9*CP, CP) bf16, tap-major
        w = jnp.pad(w.astype(jnp.float32),
                    ((0, 0), (0, 0), (0, CP - cin), (0, CP - cout)))
        return w.reshape(9 * CP, CP).astype(jnp.bfloat16)

    def pad_v(v, c):           # (1, c) -> (1, CP) f32 (zeros in padded channels)
        return jnp.pad(v.reshape(1, -1).astype(jnp.float32),
                       ((0, 0), (0, CP - c)))

    w1 = pad_w(params["w1"], C, Cmid)
    w2 = pad_w(params["w2"], Cmid, Cout)
    g1, be1 = pad_v(params["g1"], Cmid), pad_v(params["be1"], Cmid)
    g2, be2 = pad_v(params["g2"], Cout), pad_v(params["be2"], Cout)
    # Conv biases are NOT passed to the kernel: training-mode BN subtracts the
    # batch mean, so a per-channel bias cancels exactly.

    kernel = functools.partial(down_kernel, n=N, hp=Hp, wp=Wp, cp=CP, tr=TR)
    const_idx = lambda p, t: (0, 0)

    grid_spec = pltpu.PrefetchScalarGridSpec(
        num_scalar_prefetch=0,
        grid=(3, NT),                                 # (phase, row tile)
        in_specs=[
            # The input row tile is only consumed in phase 0; afterwards the
            # index collapses to block 0 so no further HBM fetches are issued.
            pl.BlockSpec((N, TR, 2, Wp, 2 * CP),
                         lambda p, t: (0, jnp.where(p == 0, t, 0), 0, 0, 0)),
            pl.BlockSpec((9 * CP, CP), const_idx),    # w1
            pl.BlockSpec((1, CP), const_idx),         # gamma1
            pl.BlockSpec((1, CP), const_idx),         # beta1
            pl.BlockSpec((9 * CP, CP), const_idx),    # w2
            pl.BlockSpec((1, CP), const_idx),         # gamma2
            pl.BlockSpec((1, CP), const_idx),         # beta2
        ],
        # Output blocks are written only in the last phase; earlier phases pin
        # the index to block 0 so nothing is written back prematurely.
        out_specs=pl.BlockSpec((N, TR, Wp, CP),
                               lambda p, t: (0, jnp.where(p == 2, t, 0), 0, 0)),
        scratch_shapes=[
            pltpu.VMEM((N, Hp + 2, HALO_L + Wp + 1, CP), jnp.bfloat16),  # shared padded conv input
            pltpu.VMEM((N, Hp, Wp, CP), jnp.float32),   # pre-BN acts (reused by both convs)
            pltpu.VMEM((4, CP), jnp.float32),           # BN1/BN2 sum + sumsq
        ],
    )

    out_nhwc = pl.pallas_call(
        kernel,
        out_shape=jax.ShapeDtypeStruct((N, Hp, Wp, CP), jnp.float32),
        grid_spec=grid_spec,
        compiler_params=pltpu.CompilerParams(
            # Phases + in-kernel global BN-stat accumulation are sequential.
            dimension_semantics=("arbitrary", "arbitrary"),
            vmem_limit_bytes=_vmem_limit_bytes(),
        ),
    )(x5, w1, g1, be1, w2, g2, be2)

    return out_nhwc[..., :Cout].transpose(0, 3, 1, 2)   # back to NCHW


def ref_forward(x, p):
    """Pure-JAX reference mirroring the PyTorch training-mode forward.
    Conv operands are rounded to bf16 (f32 accumulation) to match the kernel's
    MXU precision; pooling, BN and ReLU stay f32."""
    N, C, H, W = x.shape
    h = x.reshape(N, C, H // 2, 2, W // 2, 2).max(axis=(3, 5))

    def conv_bn_relu(h, w, b, g, be):
        wt = jnp.transpose(w, (3, 2, 0, 1))  # (kh,kw,Cin,Cout) -> OIHW
        y = jax.lax.conv_general_dilated(
            h.astype(jnp.bfloat16), wt.astype(jnp.bfloat16), (1, 1), "SAME",
            dimension_numbers=("NCHW", "OIHW", "NCHW"),
            preferred_element_type=jnp.float32)
        y = y + b.reshape(1, -1, 1, 1)
        mean = y.mean(axis=(0, 2, 3), keepdims=True)
        var = ((y - mean) ** 2).mean(axis=(0, 2, 3), keepdims=True)
        y = (y - mean) * jax.lax.rsqrt(var + EPS) * g.reshape(1, -1, 1, 1) \
            + be.reshape(1, -1, 1, 1)
        return jnp.maximum(y, 0.0)

    h = conv_bn_relu(h, p["w1"], p["b1"][0], p["g1"][0], p["be1"][0])
    h = conv_bn_relu(h, p["w2"], p["b2"][0], p["g2"][0], p["be2"][0])
    return h


if __name__ == "__main__":
    N, Cin, H, W = 2, 4, 16, 16
    Cout = 8
    Cmid = Cout  # Doubleconv: mid_channels defaults to out_channels

    key = jax.random.PRNGKey(0)
    kx, k1, k2, k3, k4 = jax.random.split(key, 5)

    x = jax.random.normal(kx, (N, Cin, H, W), jnp.float32)

    params = {
        # conv weights stored as (kh, kw, Cin, Cout)
        "w1": jax.random.normal(k1, (3, 3, Cin, Cmid), jnp.float32) * 0.1,
        "b1": jax.random.normal(k2, (1, Cmid), jnp.float32) * 0.01,
        "g1": jnp.ones((1, Cmid), jnp.float32),      # BatchNorm weight init
        "be1": jnp.zeros((1, Cmid), jnp.float32),    # BatchNorm bias init
        "w2": jax.random.normal(k3, (3, 3, Cmid, Cout), jnp.float32) * 0.1,
        "b2": jax.random.normal(k4, (1, Cout), jnp.float32) * 0.01,
        "g2": jnp.ones((1, Cout), jnp.float32),
        "be2": jnp.zeros((1, Cout), jnp.float32),
    }

    out = jax.block_until_ready(down_pallas(x, params))
    ref = jax.block_until_ready(ref_forward(x, params))

    assert out.shape == (N, Cout, H // 2, W // 2), out.shape
    assert jnp.allclose(out, ref, rtol=1e-2, atol=1e-2), (
        "max abs err = " + str(float(jnp.max(jnp.abs(out - ref)))))

    print("KERNEL_OK")
</pallas_src>

<mosaic_0001>
module attributes {stable_mosaic.version = 11 : i64} {
  func.func @down_kernel(%arg0: i32, %arg1: i32, %arg2: memref<2x4x2x8x256xbf16, #tpu.memory_space<vmem>>, %arg3: memref<1152x128xbf16, #tpu.memory_space<vmem>>, %arg4: memref<1x128xf32, #tpu.memory_space<vmem>>, %arg5: memref<1x128xf32, #tpu.memory_space<vmem>>, %arg6: memref<1152x128xbf16, #tpu.memory_space<vmem>>, %arg7: memref<1x128xf32, #tpu.memory_space<vmem>>, %arg8: memref<1x128xf32, #tpu.memory_space<vmem>>, %arg9: memref<2x4x8x128xf32, #tpu.memory_space<vmem>>, %arg10: memref<2x10x17x128xbf16, #tpu.memory_space<vmem>>, %arg11: memref<2x8x8x128xf32, #tpu.memory_space<vmem>>, %arg12: memref<4x128xf32, #tpu.memory_space<vmem>>) attributes {dimension_semantics = [#tpu.dimension_semantics<arbitrary>, #tpu.dimension_semantics<arbitrary>], iteration_bounds = array<i64: 3, 2>, scalar_prefetch = 0 : i64, scratch_operands = 3 : i64, tpu.core_type = #tpu.core_type<tc>, window_params = [{transform_indices = @transform_0, window_bounds = array<i64: 2, 4, 2, 8, 256>}, {pipeline_mode = #tpu.pipeline_mode<synchronous>, transform_indices = @transform_1, window_bounds = array<i64: 1152, 128>}, {pipeline_mode = #tpu.pipeline_mode<synchronous>, transform_indices = @transform_2, window_bounds = array<i64: 1, 128>}, {pipeline_mode = #tpu.pipeline_mode<synchronous>, transform_indices = @transform_3, window_bounds = array<i64: 1, 128>}, {pipeline_mode = #tpu.pipeline_mode<synchronous>, transform_indices = @transform_4, window_bounds = array<i64: 1152, 128>}, {pipeline_mode = #tpu.pipeline_mode<synchronous>, transform_indices = @transform_5, window_bounds = array<i64: 1, 128>}, {pipeline_mode = #tpu.pipeline_mode<synchronous>, transform_indices = @transform_6, window_bounds = array<i64: 1, 128>}, {transform_indices = @transform_7, window_bounds = array<i64: 2, 4, 8, 128>}]} {
    %c0_i32 = arith.constant 0 : i32
    %0 = arith.cmpi eq, %arg0, %c0_i32 : i32
    %c0_i32_0 = arith.constant 0 : i32
    %1 = arith.cmpi eq, %arg1, %c0_i32_0 : i32
    %2 = arith.andi %0, %1 : i1
    %3 = arith.extui %2 : i1 to i32
    %c0_i32_1 = arith.constant 0 : i32
    %4 = arith.cmpi ne, %3, %c0_i32_1 : i32
    scf.if %4 {
      %cst = arith.constant 0.000000e+00 : f32
      %14 = vector.broadcast %cst : f32 to vector<4x128xf32>
      %c0 = arith.constant 0 : index
      %c0_6 = arith.constant 0 : index
      %15 = vector.load %arg12[%c0, %c0_6] : memref<4x128xf32, #tpu.memory_space<vmem>>, vector<4x128xf32>
      tpu.vector_store %arg12[%c0, %c0_6], %14 {strides = array<i32>} : memref<4x128xf32, #tpu.memory_space<vmem>>, vector<4x128xf32>,
      %cst_7 = arith.constant 0.000000e+00 : bf16
      %16 = vector.broadcast %cst_7 : bf16 to vector<2x1x17x128xbf16>
      %c0_8 = arith.constant 0 : index
      %c0_9 = arith.constant 0 : index
      %c0_10 = arith.constant 0 : index
      %c0_11 = arith.constant 0 : index
      %17 = vector.load %arg10[%c0_8, %c0_9, %c0_10, %c0_11] : memref<2x10x17x128xbf16, #tpu.memory_space<vmem>>, vector<2x1x17x128xbf16>
      tpu.vector_store %arg10[%c0_8, %c0_9, %c0_10, %c0_11], %16 {strides = array<i32>} : memref<2x10x17x128xbf16, #tpu.memory_space<vmem>>, vector<2x1x17x128xbf16>,
      %cst_12 = arith.constant 0.000000e+00 : bf16
      %18 = vector.broadcast %cst_12 : bf16 to vector<2x1x17x128xbf16>
      %c0_13 = arith.constant 0 : index
      %c9 = arith.constant 9 : index
      %c0_14 = arith.constant 0 : index
      %c0_15 = arith.constant 0 : index
      %19 = vector.load %arg10[%c0_13, %c9, %c0_14, %c0_15] : memref<2x10x17x128xbf16, #tpu.memory_space<vmem>>, vector<2x1x17x128xbf16>
      tpu.vector_store %arg10[%c0_13, %c9, %c0_14, %c0_15], %18 {strides = array<i32>} : memref<2x10x17x128xbf16, #tpu.memory_space<vmem>>, vector<2x1x17x128xbf16>,
      %cst_16 = arith.constant 0.000000e+00 : bf16
      %20 = vector.broadcast %cst_16 : bf16 to vector<2x10x8x128xbf16>
      %c0_17 = arith.constant 0 : index
      %c0_18 = arith.constant 0 : index
      %c0_19 = arith.constant 0 : index
      %c0_20 = arith.constant 0 : index
      %21 = vector.load %arg10[%c0_17, %c0_18, %c0_19, %c0_20] : memref<2x10x17x128xbf16, #tpu.memory_space<vmem>>, vector<2x10x8x128xbf16>
      tpu.vector_store %arg10[%c0_17, %c0_18, %c0_19, %c0_20], %20 {strides = array<i32>} : memref<2x10x17x128xbf16, #tpu.memory_space<vmem>>, vector<2x10x8x128xbf16>,
      %cst_21 = arith.constant 0.000000e+00 : bf16
      %22 = vector.broadcast %cst_21 : bf16 to vector<2x10x1x128xbf16>
      %c0_22 = arith.constant 0 : index
      %c0_23 = arith.constant 0 : index
      %c16 = arith.constant 16 : index
      %c0_24 = arith.constant 0 : index
      %23 = vector.load %arg10[%c0_22, %c0_23, %c16, %c0_24] : memref<2x10x17x128xbf16, #tpu.memory_space<vmem>>, vector<2x10x1x128xbf16>
      tpu.vector_store %arg10[%c0_22, %c0_23, %c16, %c0_24], %22 {strides = array<i32>} : memref<2x10x17x128xbf16, #tpu.memory_space<vmem>>, vector<2x10x1x128xbf16>,
    } else {
    }
    %c0_i32_2 = arith.constant 0 : i32
    %5 = arith.cmpi eq, %arg0, %c0_i32_2 : i32
    %6 = arith.extui %5 : i1 to i32
    %c0_i32_3 = arith.constant 0 : i32
    %7 = arith.cmpi ne, %6, %c0_i32_3 : i32
    scf.if %7 {
      %c0 = arith.constant 0 : index
      %c0_6 = arith.constant 0 : index
      %c0_7 = arith.constant 0 : index
      %c0_8 = arith.constant 0 : index
      %c0_9 = arith.constant 0 : index
      %14 = vector.load %arg2[%c0, %c0_6, %c0_7, %c0_8, %c0_9] : memref<2x4x2x8x256xbf16, #tpu.memory_space<vmem>>, vector<2x4x2x8x256xbf16>
      %15 = vector.extract_strided_slice %14 {offsets = [0, 0, 0, 0, 0], sizes = [2, 4, 1, 8, 256], strides = [1, 1, 1, 1, 1]} : vector<2x4x2x8x256xbf16> to vector<2x4x1x8x256xbf16>
      %16 = vector.shape_cast %15 : vector<2x4x1x8x256xbf16> to vector<2x4x8x256xbf16>
      %17 = vector.extract_strided_slice %14 {offsets = [0, 0, 1, 0, 0], sizes = [2, 4, 1, 8, 256], strides = [1, 1, 1, 1, 1]} : vector<2x4x2x8x256xbf16> to vector<2x4x1x8x256xbf16>
      %18 = vector.shape_cast %17 : vector<2x4x1x8x256xbf16> to vector<2x4x8x256xbf16>
      %19 = arith.maximumf %16, %18 : vector<2x4x8x256xbf16>
      %20 = vector.extract_strided_slice %19 {offsets = [0, 0, 0, 0], sizes = [2, 4, 8, 128], strides = [1, 1, 1, 1]} : vector<2x4x8x256xbf16> to vector<2x4x8x128xbf16>
      %21 = vector.extract_strided_slice %19 {offsets = [0, 0, 0, 128], sizes = [2, 4, 8, 128], strides = [1, 1, 1, 1]} : vector<2x4x8x256xbf16> to vector<2x4x8x128xbf16>
      %22 = arith.maximumf %20, %21 : vector<2x4x8x128xbf16>
      %c4_i32 = arith.constant 4 : i32
      %23 = arith.muli %arg1, %c4_i32 : i32
      %c1_i32_10 = arith.constant 1 : i32
      %24 = arith.addi %c1_i32_10, %23 : i32
      %c0_11 = arith.constant 0 : index
      %25 = arith.index_cast %24 : i32 to index
      %c8 = arith.constant 8 : index
      %c0_12 = arith.constant 0 : index
      %26 = vector.load %arg10[%c0_11, %25, %c8, %c0_12] : memref<2x10x17x128xbf16, #tpu.memory_space<vmem>>, vector<2x4x8x128xbf16>
      tpu.vector_store %arg10[%c0_11, %25, %c8, %c0_12], %22 {strides = array<i32>} : memref<2x10x17x128xbf16, #tpu.memory_space<vmem>>, vector<2x4x8x128xbf16>,
      %c1_i32_13 = arith.constant 1 : i32
      %27 = arith.cmpi sge, %arg1, %c1_i32_13 : i32
      %28 = arith.extui %27 : i1 to i32
      %c0_i32_14 = arith.constant 0 : i32
      %29 = arith.cmpi ne, %28, %c0_i32_14 : i32
      scf.if %29 {
        %c1_i32_17 = arith.constant 1 : i32
        %33 = arith.subi %arg1, %c1_i32_17 : i32
        %cst = arith.constant 0.000000e+00 : f32
        %34 = vector.broadcast %cst : f32 to vector<64x128xf32>
        %c4_i32_18 = arith.constant 4 : i32
        %35 = arith.muli %33, %c4_i32_18 : i32
        %c0_i32_19 = arith.constant 0 : i32
        %36 = arith.addi %35, %c0_i32_19 : i32
        %c0_20 = arith.constant 0 : index
        %37 = arith.index_cast %36 : i32 to index
        %c7 = arith.constant 7 : index
        %c0_21 = arith.constant 0 : index
        %38 = vector.load %arg10[%c0_20, %37, %c7, %c0_21] : memref<2x10x17x128xbf16, #tpu.memory_space<vmem>>, vector<2x4x8x128xbf16>
        %39 = vector.shape_cast %38 : vector<2x4x8x128xbf16> to vector<64x128xbf16>
        %c0_22 = arith.constant 0 : index
        %c0_23 = arith.constant 0 : index
        %40 = vector.load %arg3[%c0_22, %c0_23] : memref<1152x128xbf16, #tpu.memory_space<vmem>>, vector<128x128xbf16>
        %cst_24 = arith.constant dense<0.000000e+00> : vector<64x128xf32>
        %41 = tpu.matmul %39, %40, %cst_24 {dimension_numbers = #tpu.dot_dimension_numbers<[1], [0], [0], [1], [0, 0, 1, 1], [], []>} : vector<64x128xbf16>, vector<128x128xbf16>, vector<64x128xf32> -> vector<64x128xf32>
        %42 = arith.addf %34, %41 : vector<64x128xf32>
        %c4_i32_25 = arith.constant 4 : i32
        %43 = arith.muli %33, %c4_i32_25 : i32
        %c0_i32_26 = arith.constant 0 : i32
        %44 = arith.addi %43, %c0_i32_26 : i32
        %c0_27 = arith.constant 0 : index
        %45 = arith.index_cast %44 : i32 to index
        %c8_28 = arith.constant 8 : index
        %c0_29 = arith.constant 0 : index
        %46 = vector.load %arg10[%c0_27, %45, %c8_28, %c0_29] : memref<2x10x17x128xbf16, #tpu.memory_space<vmem>>, vector<2x4x8x128xbf16>
        %47 = vector.shape_cast %46 : vector<2x4x8x128xbf16> to vector<64x128xbf16>
        %c128 = arith.constant 128 : index
        %c0_30 = arith.constant 0 : index
        %48 = vector.load %arg3[%c128, %c0_30] : memref<1152x128xbf16, #tpu.memory_space<vmem>>, vector<128x128xbf16>
        %cst_31 = arith.constant dense<0.000000e+00> : vector<64x128xf32>
        %49 = tpu.matmul %47, %48, %cst_31 {dimension_numbers = #tpu.dot_dimension_numbers<[1], [0], [0], [1], [0, 0, 1, 1], [], []>} : vector<64x128xbf16>, vector<128x128xbf16>, vector<64x128xf32> -> vector<64x128xf32>
        %50 = arith.addf %42, %49 : vector<64x128xf32>
        %c4_i32_32 = arith.constant 4 : i32
        %51 = arith.muli %33, %c4_i32_32 : i32
        %c0_i32_33 = arith.constant 0 : i32
        %52 = arith.addi %51, %c0_i32_33 : i32
        %c0_34 = arith.constant 0 : index
        %53 = arith.index_cast %52 : i32 to index
        %c9 = arith.constant 9 : index
        %c0_35 = arith.constant 0 : index
        %54 = vector.load %arg10[%c0_34, %53, %c9, %c0_35] : memref<2x10x17x128xbf16, #tpu.memory_space<vmem>>, vector<2x4x8x128xbf16>
        %55 = vector.shape_cast %54 : vector<2x4x8x128xbf16> to vector<64x128xbf16>
        %c256 = arith.constant 256 : index
        %c0_36 = arith.constant 0 : index
        %56 = vector.load %arg3[%c256, %c0_36] : memref<1152x128xbf16, #tpu.memory_space<vmem>>, vector<128x128xbf16>
        %cst_37 = arith.constant dense<0.000000e+00> : vector<64x128xf32>
        %57 = tpu.matmul %55, %56, %cst_37 {dimension_numbers = #tpu.dot_dimension_numbers<[1], [0], [0], [1], [0, 0, 1, 1], [], []>} : vector<64x128xbf16>, vector<128x128xbf16>, vector<64x128xf32> -> vector<64x128xf32>
        %58 = arith.addf %50, %57 : vector<64x128xf32>
        %c4_i32_38 = arith.constant 4 : i32
        %59 = arith.muli %33, %c4_i32_38 : i32
        %c1_i32_39 = arith.constant 1 : i32
        %60 = arith.addi %59, %c1_i32_39 : i32
        %c0_40 = arith.constant 0 : index
        %61 = arith.index_cast %60 : i32 to index
        %c7_41 = arith.constant 7 : index
        %c0_42 = arith.constant 0 : index
        %62 = vector.load %arg10[%c0_40, %61, %c7_41, %c0_42] : memref<2x10x17x128xbf16, #tpu.memory_space<vmem>>, vector<2x4x8x128xbf16>
        %63 = vector.shape_cast %62 : vector<2x4x8x128xbf16> to vector<64x128xbf16>
        %c384 = arith.constant 384 : index
        %c0_43 = arith.constant 0 : index
        %64 = vector.load %arg3[%c384, %c0_43] : memref<1152x128xbf16, #tpu.memory_space<vmem>>, vector<128x128xbf16>
        %cst_44 = arith.constant dense<0.000000e+00> : vector<64x128xf32>
        %65 = tpu.matmul %63, %64, %cst_44 {dimension_numbers = #tpu.dot_dimension_numbers<[1], [0], [0], [1], [0, 0, 1, 1], [], []>} : vector<64x128xbf16>, vector<128x128xbf16>, vector<64x128xf32> -> vector<64x128xf32>
        %66 = arith.addf %58, %65 : vector<64x128xf32>
        %c4_i32_45 = arith.constant 4 : i32
        %67 = arith.muli %33, %c4_i32_45 : i32
        %c1_i32_46 = arith.constant 1 : i32
        %68 = arith.addi %67, %c1_i32_46 : i32
        %c0_47 = arith.constant 0 : index
        %69 = arith.index_cast %68 : i32 to index
        %c8_48 = arith.constant 8 : index
        %c0_49 = arith.constant 0 : index
        %70 = vector.load %arg10[%c0_47, %69, %c8_48, %c0_49] : memref<2x10x17x128xbf16, #tpu.memory_space<vmem>>, vector<2x4x8x128xbf16>
        %71 = vector.shape_cast %70 : vector<2x4x8x128xbf16> to vector<64x128xbf16>
        %c512 = arith.constant 512 : index
        %c0_50 = arith.constant 0 : index
        %72 = vector.load %arg3[%c512, %c0_50] : memref<1152x128xbf16, #tpu.memory_space<vmem>>, vector<128x128xbf16>
        %cst_51 = arith.constant dense<0.000000e+00> : vector<64x128xf32>
        %73 = tpu.matmul %71, %72, %cst_51 {dimension_numbers = #tpu.dot_dimension_numbers<[1], [0], [0], [1], [0, 0, 1, 1], [], []>} : vector<64x128xbf16>, vector<128x128xbf16>, vector<64x128xf32> -> vector<64x128xf32>
        %74 = arith.addf %66, %73 : vector<64x128xf32>
        %c4_i32_52 = arith.constant 4 : i32
        %75 = arith.muli %33, %c4_i32_52 : i32
        %c1_i32_53 = arith.constant 1 : i32
        %76 = arith.addi %75, %c1_i32_53 : i32
        %c0_54 = arith.constant 0 : index
        %77 = arith.index_cast %76 : i32 to index
        %c9_55 = arith.constant 9 : index
        %c0_56 = arith.constant 0 : index
        %78 = vector.load %arg10[%c0_54, %77, %c9_55, %c0_56] : memref<2x10x17x128xbf16, #tpu.memory_space<vmem>>, vector<2x4x8x128xbf16>
        %79 = vector.shape_cast %78 : vector<2x4x8x128xbf16> to vector<64x128xbf16>
        %c640 = arith.constant 640 : index
        %c0_57 = arith.constant 0 : index
        %80 = vector.load %arg3[%c640, %c0_57] : memref<1152x128xbf16, #tpu.memory_space<vmem>>, vector<128x128xbf16>
        %cst_58 = arith.constant dense<0.000000e+00> : vector<64x128xf32>
        %81 = tpu.matmul %79, %80, %cst_58 {dimension_numbers = #tpu.dot_dimension_numbers<[1], [0], [0], [1], [0, 0, 1, 1], [], []>} : vector<64x128xbf16>, vector<128x128xbf16>, vector<64x128xf32> -> vector<64x128xf32>
        %82 = arith.addf %74, %81 : vector<64x128xf32>
        %c4_i32_59 = arith.constant 4 : i32
        %83 = arith.muli %33, %c4_i32_59 : i32
        %c2_i32_60 = arith.constant 2 : i32
        %84 = arith.addi %83, %c2_i32_60 : i32
        %c0_61 = arith.constant 0 : index
        %85 = arith.index_cast %84 : i32 to index
        %c7_62 = arith.constant 7 : index
        %c0_63 = arith.constant 0 : index
        %86 = vector.load %arg10[%c0_61, %85, %c7_62, %c0_63] : memref<2x10x17x128xbf16, #tpu.memory_space<vmem>>, vector<2x4x8x128xbf16>
        %87 = vector.shape_cast %86 : vector<2x4x8x128xbf16> to vector<64x128xbf16>
        %c768 = arith.constant 768 : index
        %c0_64 = arith.constant 0 : index
        %88 = vector.load %arg3[%c768, %c0_64] : memref<1152x128xbf16, #tpu.memory_space<vmem>>, vector<128x128xbf16>
        %cst_65 = arith.constant dense<0.000000e+00> : vector<64x128xf32>
        %89 = tpu.matmul %87, %88, %cst_65 {dimension_numbers = #tpu.dot_dimension_numbers<[1], [0], [0], [1], [0, 0, 1, 1], [], []>} : vector<64x128xbf16>, vector<128x128xbf16>, vector<64x128xf32> -> vector<64x128xf32>
        %90 = arith.addf %82, %89 : vector<64x128xf32>
        %c4_i32_66 = arith.constant 4 : i32
        %91 = arith.muli %33, %c4_i32_66 : i32
        %c2_i32_67 = arith.constant 2 : i32
        %92 = arith.addi %91, %c2_i32_67 : i32
        %c0_68 = arith.constant 0 : index
        %93 = arith.index_cast %92 : i32 to index
        %c8_69 = arith.constant 8 : index
        %c0_70 = arith.constant 0 : index
        %94 = vector.load %arg10[%c0_68, %93, %c8_69, %c0_70] : memref<2x10x17x128xbf16, #tpu.memory_space<vmem>>, vector<2x4x8x128xbf16>
        %95 = vector.shape_cast %94 : vector<2x4x8x128xbf16> to vector<64x128xbf16>
        %c896 = arith.constant 896 : index
        %c0_71 = arith.constant 0 : index
        %96 = vector.load %arg3[%c896, %c0_71] : memref<1152x128xbf16, #tpu.memory_space<vmem>>, vector<128x128xbf16>
        %cst_72 = arith.constant dense<0.000000e+00> : vector<64x128xf32>
        %97 = tpu.matmul %95, %96, %cst_72 {dimension_numbers = #tpu.dot_dimension_numbers<[1], [0], [0], [1], [0, 0, 1, 1], [], []>} : vector<64x128xbf16>, vector<128x128xbf16>, vector<64x128xf32> -> vector<64x128xf32>
        %98 = arith.addf %90, %97 : vector<64x128xf32>
        %c4_i32_73 = arith.constant 4 : i32
        %99 = arith.muli %33, %c4_i32_73 : i32
        %c2_i32_74 = arith.constant 2 : i32
        %100 = arith.addi %99, %c2_i32_74 : i32
        %c0_75 = arith.constant 0 : index
        %101 = arith.index_cast %100 : i32 to index
        %c9_76 = arith.constant 9 : index
        %c0_77 = arith.constant 0 : index
        %102 = vector.load %arg10[%c0_75, %101, %c9_76, %c0_77] : memref<2x10x17x128xbf16, #tpu.memory_space<vmem>>, vector<2x4x8x128xbf16>
        %103 = vector.shape_cast %102 : vector<2x4x8x128xbf16> to vector<64x128xbf16>
        %c1024 = arith.constant 1024 : index
        %c0_78 = arith.constant 0 : index
        %104 = vector.load %arg3[%c1024, %c0_78] : memref<1152x128xbf16, #tpu.memory_space<vmem>>, vector<128x128xbf16>
        %cst_79 = arith.constant dense<0.000000e+00> : vector<64x128xf32>
        %105 = tpu.matmul %103, %104, %cst_79 {dimension_numbers = #tpu.dot_dimension_numbers<[1], [0], [0], [1], [0, 0, 1, 1], [], []>} : vector<64x128xbf16>, vector<128x128xbf16>, vector<64x128xf32> -> vector<64x128xf32>
        %106 = arith.addf %98, %105 : vector<64x128xf32>
        %107 = vector.shape_cast %106 : vector<64x128xf32> to vector<2x4x8x128xf32>
        %c4_i32_80 = arith.constant 4 : i32
        %108 = arith.muli %33, %c4_i32_80 : i32
        %c0_81 = arith.constant 0 : index
        %109 = arith.index_cast %108 : i32 to index
        %c0_82 = arith.constant 0 : index
        %c0_83 = arith.constant 0 : index
        %110 = vector.load %arg11[%c0_81, %109, %c0_82, %c0_83] : memref<2x8x8x128xf32, #tpu.memory_space<vmem>>, vector<2x4x8x128xf32>
        tpu.vector_store %arg11[%c0_81, %109, %c0_82, %c0_83], %107 {strides = array<i32>} : memref<2x8x8x128xf32, #tpu.memory_space<vmem>>, vector<2x4x8x128xf32>,
        %c0_84 = arith.constant 0 : index
        %c0_85 = arith.constant 0 : index
        %111 = vector.load %arg12[%c0_84, %c0_85] : memref<4x128xf32, #tpu.memory_space<vmem>>, vector<1x128xf32>
        %cst_86 = arith.constant dense<0.000000e+00> : vector<128xf32>
        %112 = vector.multi_reduction <add>, %106, %cst_86 [0] : vector<64x128xf32> to vector<128xf32>
        %113 = vector.shape_cast %112 : vector<128xf32> to vector<1x128xf32>
        %114 = arith.addf %111, %113 : vector<1x128xf32>
        %c0_87 = arith.constant 0 : index
        %c0_88 = arith.constant 0 : index
        %115 = vector.load %arg12[%c0_87, %c0_88] : memref<4x128xf32, #tpu.memory_space<vmem>>, vector<1x128xf32>
        tpu.vector_store %arg12[%c0_87, %c0_88], %114 {strides = array<i32>} : memref<4x128xf32, #tpu.memory_space<vmem>>, vector<1x128xf32>,
        %c1 = arith.constant 1 : index
        %c0_89 = arith.constant 0 : index
        %116 = vector.load %arg12[%c1, %c0_89] : memref<4x128xf32, #tpu.memory_space<vmem>>, vector<1x128xf32>
        %117 = arith.mulf %106, %106 : vector<64x128xf32>
        %cst_90 = arith.constant dense<0.000000e+00> : vector<128xf32>
        %118 = vector.multi_reduction <add>, %117, %cst_90 [0] : vector<64x128xf32> to vector<128xf32>
        %119 = vector.shape_cast %118 : vector<128xf32> to vector<1x128xf32>
        %120 = arith.addf %116, %119 : vector<1x128xf32>
        %c1_91 = arith.constant 1 : index
        %c0_92 = arith.constant 0 : index
        %121 = vector.load %arg12[%c1_91, %c0_92] : memref<4x128xf32, #tpu.memory_space<vmem>>, vector<1x128xf32>
        tpu.vector_store %arg12[%c1_91, %c0_92], %120 {strides = array<i32>} : memref<4x128xf32, #tpu.memory_space<vmem>>, vector<1x128xf32>,
      } else {
      }
      %c1_i32_15 = arith.constant 1 : i32
      %30 = arith.cmpi eq, %arg1, %c1_i32_15 : i32
      %31 = arith.extui %30 : i1 to i32
      %c0_i32_16 = arith.constant 0 : i32
      %32 = arith.cmpi ne, %31, %c0_i32_16 : i32
      scf.if %32 {
        %cst = arith.constant 0.000000e+00 : f32
        %33 = vector.broadcast %cst : f32 to vector<64x128xf32>
        %c4_i32_17 = arith.constant 4 : i32
        %34 = arith.muli %arg1, %c4_i32_17 : i32
        %c0_i32_18 = arith.constant 0 : i32
        %35 = arith.addi %34, %c0_i32_18 : i32
        %c0_19 = arith.constant 0 : index
        %36 = arith.index_cast %35 : i32 to index
        %c7 = arith.constant 7 : index
        %c0_20 = arith.constant 0 : index
        %37 = vector.load %arg10[%c0_19, %36, %c7, %c0_20] : memref<2x10x17x128xbf16, #tpu.memory_space<vmem>>, vector<2x4x8x128xbf16>
        %38 = vector.shape_cast %37 : vector<2x4x8x128xbf16> to vector<64x128xbf16>
        %c0_21 = arith.constant 0 : index
        %c0_22 = arith.constant 0 : index
        %39 = vector.load %arg3[%c0_21, %c0_22] : memref<1152x128xbf16, #tpu.memory_space<vmem>>, vector<128x128xbf16>
        %cst_23 = arith.constant dense<0.000000e+00> : vector<64x128xf32>
        %40 = tpu.matmul %38, %39, %cst_23 {dimension_numbers = #tpu.dot_dimension_numbers<[1], [0], [0], [1], [0, 0, 1, 1], [], []>} : vector<64x128xbf16>, vector<128x128xbf16>, vector<64x128xf32> -> vector<64x128xf32>
        %41 = arith.addf %33, %40 : vector<64x128xf32>
        %c4_i32_24 = arith.constant 4 : i32
        %42 = arith.muli %arg1, %c4_i32_24 : i32
        %c0_i32_25 = arith.constant 0 : i32
        %43 = arith.addi %42, %c0_i32_25 : i32
        %c0_26 = arith.constant 0 : index
        %44 = arith.index_cast %43 : i32 to index
        %c8_27 = arith.constant 8 : index
        %c0_28 = arith.constant 0 : index
        %45 = vector.load %arg10[%c0_26, %44, %c8_27, %c0_28] : memref<2x10x17x128xbf16, #tpu.memory_space<vmem>>, vector<2x4x8x128xbf16>
        %46 = vector.shape_cast %45 : vector<2x4x8x128xbf16> to vector<64x128xbf16>
        %c128 = arith.constant 128 : index
        %c0_29 = arith.constant 0 : index
        %47 = vector.load %arg3[%c128, %c0_29] : memref<1152x128xbf16, #tpu.memory_space<vmem>>, vector<128x128xbf16>
        %cst_30 = arith.constant dense<0.000000e+00> : vector<64x128xf32>
        %48 = tpu.matmul %46, %47, %cst_30 {dimension_numbers = #tpu.dot_dimension_numbers<[1], [0], [0], [1], [0, 0, 1, 1], [], []>} : vector<64x128xbf16>, vector<128x128xbf16>, vector<64x128xf32> -> vector<64x128xf32>
        %49 = arith.addf %41, %48 : vector<64x128xf32>
        %c4_i32_31 = arith.constant 4 : i32
        %50 = arith.muli %arg1, %c4_i32_31 : i32
        %c0_i32_32 = arith.constant 0 : i32
        %51 = arith.addi %50, %c0_i32_32 : i32
        %c0_33 = arith.constant 0 : index
        %52 = arith.index_cast %51 : i32 to index
        %c9 = arith.constant 9 : index
        %c0_34 = arith.constant 0 : index
        %53 = vector.load %arg10[%c0_33, %52, %c9, %c0_34] : memref<2x10x17x128xbf16, #tpu.memory_space<vmem>>, vector<2x4x8x128xbf16>
        %54 = vector.shape_cast %53 : vector<2x4x8x128xbf16> to vector<64x128xbf16>
        %c256 = arith.constant 256 : index
        %c0_35 = arith.constant 0 : index
        %55 = vector.load %arg3[%c256, %c0_35] : memref<1152x128xbf16, #tpu.memory_space<vmem>>, vector<128x128xbf16>
        %cst_36 = arith.constant dense<0.000000e+00> : vector<64x128xf32>
        %56 = tpu.matmul %54, %55, %cst_36 {dimension_numbers = #tpu.dot_dimension_numbers<[1], [0], [0], [1], [0, 0, 1, 1], [], []>} : vector<64x128xbf16>, vector<128x128xbf16>, vector<64x128xf32> -> vector<64x128xf32>
        %57 = arith.addf %49, %56 : vector<64x128xf32>
        %c4_i32_37 = arith.constant 4 : i32
        %58 = arith.muli %arg1, %c4_i32_37 : i32
        %c1_i32_38 = arith.constant 1 : i32
        %59 = arith.addi %58, %c1_i32_38 : i32
        %c0_39 = arith.constant 0 : index
        %60 = arith.index_cast %59 : i32 to index
        %c7_40 = arith.constant 7 : index
        %c0_41 = arith.constant 0 : index
        %61 = vector.load %arg10[%c0_39, %60, %c7_40, %c0_41] : memref<2x10x17x128xbf16, #tpu.memory_space<vmem>>, vector<2x4x8x128xbf16>
        %62 = vector.shape_cast %61 : vector<2x4x8x128xbf16> to vector<64x128xbf16>
        %c384 = arith.constant 384 : index
        %c0_42 = arith.constant 0 : index
        %63 = vector.load %arg3[%c384, %c0_42] : memref<1152x128xbf16, #tpu.memory_space<vmem>>, vector<128x128xbf16>
        %cst_43 = arith.constant dense<0.000000e+00> : vector<64x128xf32>
        %64 = tpu.matmul %62, %63, %cst_43 {dimension_numbers = #tpu.dot_dimension_numbers<[1], [0], [0], [1], [0, 0, 1, 1], [], []>} : vector<64x128xbf16>, vector<128x128xbf16>, vector<64x128xf32> -> vector<64x128xf32>
        %65 = arith.addf %57, %64 : vector<64x128xf32>
        %c4_i32_44 = arith.constant 4 : i32
        %66 = arith.muli %arg1, %c4_i32_44 : i32
        %c1_i32_45 = arith.constant 1 : i32
        %67 = arith.addi %66, %c1_i32_45 : i32
        %c0_46 = arith.constant 0 : index
        %68 = arith.index_cast %67 : i32 to index
        %c8_47 = arith.constant 8 : index
        %c0_48 = arith.constant 0 : index
        %69 = vector.load %arg10[%c0_46, %68, %c8_47, %c0_48] : memref<2x10x17x128xbf16, #tpu.memory_space<vmem>>, vector<2x4x8x128xbf16>
        %70 = vector.shape_cast %69 : vector<2x4x8x128xbf16> to vector<64x128xbf16>
        %c512 = arith.constant 512 : index
        %c0_49 = arith.constant 0 : index
        %71 = vector.load %arg3[%c512, %c0_49] : memref<1152x128xbf16, #tpu.memory_space<vmem>>, vector<128x128xbf16>
        %cst_50 = arith.constant dense<0.000000e+00> : vector<64x128xf32>
        %72 = tpu.matmul %70, %71, %cst_50 {dimension_numbers = #tpu.dot_dimension_numbers<[1], [0], [0], [1], [0, 0, 1, 1], [], []>} : vector<64x128xbf16>, vector<128x128xbf16>, vector<64x128xf32> -> vector<64x128xf32>
        %73 = arith.addf %65, %72 : vector<64x128xf32>
        %c4_i32_51 = arith.constant 4 : i32
        %74 = arith.muli %arg1, %c4_i32_51 : i32
        %c1_i32_52 = arith.constant 1 : i32
        %75 = arith.addi %74, %c1_i32_52 : i32
        %c0_53 = arith.constant 0 : index
        %76 = arith.index_cast %75 : i32 to index
        %c9_54 = arith.constant 9 : index
        %c0_55 = arith.constant 0 : index
        %77 = vector.load %arg10[%c0_53, %76, %c9_54, %c0_55] : memref<2x10x17x128xbf16, #tpu.memory_space<vmem>>, vector<2x4x8x128xbf16>
        %78 = vector.shape_cast %77 : vector<2x4x8x128xbf16> to vector<64x128xbf16>
        %c640 = arith.constant 640 : index
        %c0_56 = arith.constant 0 : index
        %79 = vector.load %arg3[%c640, %c0_56] : memref<1152x128xbf16, #tpu.memory_space<vmem>>, vector<128x128xbf16>
        %cst_57 = arith.constant dense<0.000000e+00> : vector<64x128xf32>
        %80 = tpu.matmul %78, %79, %cst_57 {dimension_numbers = #tpu.dot_dimension_numbers<[1], [0], [0], [1], [0, 0, 1, 1], [], []>} : vector<64x128xbf16>, vector<128x128xbf16>, vector<64x128xf32> -> vector<64x128xf32>
        %81 = arith.addf %73, %80 : vector<64x128xf32>
        %c4_i32_58 = arith.constant 4 : i32
        %82 = arith.muli %arg1, %c4_i32_58 : i32
        %c2_i32_59 = arith.constant 2 : i32
        %83 = arith.addi %82, %c2_i32_59 : i32
        %c0_60 = arith.constant 0 : index
        %84 = arith.index_cast %83 : i32 to index
        %c7_61 = arith.constant 7 : index
        %c0_62 = arith.constant 0 : index
        %85 = vector.load %arg10[%c0_60, %84, %c7_61, %c0_62] : memref<2x10x17x128xbf16, #tpu.memory_space<vmem>>, vector<2x4x8x128xbf16>
        %86 = vector.shape_cast %85 : vector<2x4x8x128xbf16> to vector<64x128xbf16>
        %c768 = arith.constant 768 : index
        %c0_63 = arith.constant 0 : index
        %87 = vector.load %arg3[%c768, %c0_63] : memref<1152x128xbf16, #tpu.memory_space<vmem>>, vector<128x128xbf16>
        %cst_64 = arith.constant dense<0.000000e+00> : vector<64x128xf32>
        %88 = tpu.matmul %86, %87, %cst_64 {dimension_numbers = #tpu.dot_dimension_numbers<[1], [0], [0], [1], [0, 0, 1, 1], [], []>} : vector<64x128xbf16>, vector<128x128xbf16>, vector<64x128xf32> -> vector<64x128xf32>
        %89 = arith.addf %81, %88 : vector<64x128xf32>
        %c4_i32_65 = arith.constant 4 : i32
        %90 = arith.muli %arg1, %c4_i32_65 : i32
        %c2_i32_66 = arith.constant 2 : i32
        %91 = arith.addi %90, %c2_i32_66 : i32
        %c0_67 = arith.constant 0 : index
        %92 = arith.index_cast %91 : i32 to index
        %c8_68 = arith.constant 8 : index
        %c0_69 = arith.constant 0 : index
        %93 = vector.load %arg10[%c0_67, %92, %c8_68, %c0_69] : memref<2x10x17x128xbf16, #tpu.memory_space<vmem>>, vector<2x4x8x128xbf16>
        %94 = vector.shape_cast %93 : vector<2x4x8x128xbf16> to vector<64x128xbf16>
        %c896 = arith.constant 896 : index
        %c0_70 = arith.constant 0 : index
        %95 = vector.load %arg3[%c896, %c0_70] : memref<1152x128xbf16, #tpu.memory_space<vmem>>, vector<128x128xbf16>
        %cst_71 = arith.constant dense<0.000000e+00> : vector<64x128xf32>
        %96 = tpu.matmul %94, %95, %cst_71 {dimension_numbers = #tpu.dot_dimension_numbers<[1], [0], [0], [1], [0, 0, 1, 1], [], []>} : vector<64x128xbf16>, vector<128x128xbf16>, vector<64x128xf32> -> vector<64x128xf32>
        %97 = arith.addf %89, %96 : vector<64x128xf32>
        %c4_i32_72 = arith.constant 4 : i32
        %98 = arith.muli %arg1, %c4_i32_72 : i32
        %c2_i32_73 = arith.constant 2 : i32
        %99 = arith.addi %98, %c2_i32_73 : i32
        %c0_74 = arith.constant 0 : index
        %100 = arith.index_cast %99 : i32 to index
        %c9_75 = arith.constant 9 : index
        %c0_76 = arith.constant 0 : index
        %101 = vector.load %arg10[%c0_74, %100, %c9_75, %c0_76] : memref<2x10x17x128xbf16, #tpu.memory_space<vmem>>, vector<2x4x8x128xbf16>
        %102 = vector.shape_cast %101 : vector<2x4x8x128xbf16> to vector<64x128xbf16>
        %c1024 = arith.constant 1024 : index
        %c0_77 = arith.constant 0 : index
        %103 = vector.load %arg3[%c1024, %c0_77] : memref<1152x128xbf16, #tpu.memory_space<vmem>>, vector<128x128xbf16>
        %cst_78 = arith.constant dense<0.000000e+00> : vector<64x128xf32>
        %104 = tpu.matmul %102, %103, %cst_78 {dimension_numbers = #tpu.dot_dimension_numbers<[1], [0], [0], [1], [0, 0, 1, 1], [], []>} : vector<64x128xbf16>, vector<128x128xbf16>, vector<64x128xf32> -> vector<64x128xf32>
        %105 = arith.addf %97, %104 : vector<64x128xf32>
        %106 = vector.shape_cast %105 : vector<64x128xf32> to vector<2x4x8x128xf32>
        %c4_i32_79 = arith.constant 4 : i32
        %107 = arith.muli %arg1, %c4_i32_79 : i32
        %c0_80 = arith.constant 0 : index
        %108 = arith.index_cast %107 : i32 to index
        %c0_81 = arith.constant 0 : index
        %c0_82 = arith.constant 0 : index
        %109 = vector.load %arg11[%c0_80, %108, %c0_81, %c0_82] : memref<2x8x8x128xf32, #tpu.memory_space<vmem>>, vector<2x4x8x128xf32>
        tpu.vector_store %arg11[%c0_80, %108, %c0_81, %c0_82], %106 {strides = array<i32>} : memref<2x8x8x128xf32, #tpu.memory_space<vmem>>, vector<2x4x8x128xf32>,
        %c0_83 = arith.constant 0 : index
        %c0_84 = arith.constant 0 : index
        %110 = vector.load %arg12[%c0_83, %c0_84] : memref<4x128xf32, #tpu.memory_space<vmem>>, vector<1x128xf32>
        %cst_85 = arith.constant dense<0.000000e+00> : vector<128xf32>
        %111 = vector.multi_reduction <add>, %105, %cst_85 [0] : vector<64x128xf32> to vector<128xf32>
        %112 = vector.shape_cast %111 : vector<128xf32> to vector<1x128xf32>
        %113 = arith.addf %110, %112 : vector<1x128xf32>
        %c0_86 = arith.constant 0 : index
        %c0_87 = arith.constant 0 : index
        %114 = vector.load %arg12[%c0_86, %c0_87] : memref<4x128xf32, #tpu.memory_space<vmem>>, vector<1x128xf32>
        tpu.vector_store %arg12[%c0_86, %c0_87], %113 {strides = array<i32>} : memref<4x128xf32, #tpu.memory_space<vmem>>, vector<1x128xf32>,
        %c1 = arith.constant 1 : index
        %c0_88 = arith.constant 0 : index
        %115 = vector.load %arg12[%c1, %c0_88] : memref<4x128xf32, #tpu.memory_space<vmem>>, vector<1x128xf32>
        %116 = arith.mulf %105, %105 : vector<64x128xf32>
        %cst_89 = arith.constant dense<0.000000e+00> : vector<128xf32>
        %117 = vector.multi_reduction <add>, %116, %cst_89 [0] : vector<64x128xf32> to vector<128xf32>
        %118 = vector.shape_cast %117 : vector<128xf32> to vector<1x128xf32>
        %119 = arith.addf %115, %118 : vector<1x128xf32>
        %c1_90 = arith.constant 1 : index
        %c0_91 = arith.constant 0 : index
        %120 = vector.load %arg12[%c1_90, %c0_91] : memref<4x128xf32, #tpu.memory_space<vmem>>, vector<1x128xf32>
        tpu.vector_store %arg12[%c1_90, %c0_91], %119 {strides = array<i32>} : memref<4x128xf32, #tpu.memory_space<vmem>>, vector<1x128xf32>,
      } else {
      }
    } else {
    }
    %c1_i32 = arith.constant 1 : i32
    %8 = arith.cmpi eq, %arg0, %c1_i32 : i32
    %9 = arith.extui %8 : i1 to i32
    %c0_i32_4 = arith.constant 0 : i32
    %10 = arith.cmpi ne, %9, %c0_i32_4 : i32
    scf.if %10 {
      %c0 = arith.constant 0 : index
      %c0_6 = arith.constant 0 : index
      %14 = vector.load %arg12[%c0, %c0_6] : memref<4x128xf32, #tpu.memory_space<vmem>>, vector<1x128xf32>
      %cst = arith.constant 7.812500e-03 : f32
      %15 = vector.broadcast %cst : f32 to vector<1x128xf32>
      %16 = arith.mulf %14, %15 : vector<1x128xf32>
      %c1 = arith.constant 1 : index
      %c0_7 = arith.constant 0 : index
      %17 = vector.load %arg12[%c1, %c0_7] : memref<4x128xf32, #tpu.memory_space<vmem>>, vector<1x128xf32>
      %cst_8 = arith.constant 7.812500e-03 : f32
      %18 = vector.broadcast %cst_8 : f32 to vector<1x128xf32>
      %19 = arith.mulf %17, %18 : vector<1x128xf32>
      %20 = arith.mulf %16, %16 : vector<1x128xf32>
      %21 = arith.subf %19, %20 : vector<1x128xf32>
      %c0_9 = arith.constant 0 : index
      %c0_10 = arith.constant 0 : index
      %22 = vector.load %arg4[%c0_9, %c0_10] : memref<1x128xf32, #tpu.memory_space<vmem>>, vector<1x128xf32>
      %cst_11 = arith.constant 9.99999974E-6 : f32
      %23 = vector.broadcast %cst_11 : f32 to vector<1x128xf32>
      %24 = arith.addf %21, %23 : vector<1x128xf32>
      %25 = math.rsqrt %24 : vector<1x128xf32>
      %26 = arith.mulf %22, %25 : vector<1x128xf32>
      %c0_12 = arith.constant 0 : index
      %c0_13 = arith.constant 0 : index
      %27 = vector.load %arg5[%c0_12, %c0_13] : memref<1x128xf32, #tpu.memory_space<vmem>>, vector<1x128xf32>
      %28 = arith.mulf %16, %26 : vector<1x128xf32>
      %29 = arith.subf %27, %28 : vector<1x128xf32>
      %c4_i32 = arith.constant 4 : i32
      %30 = arith.muli %arg1, %c4_i32 : i32
      %c0_14 = arith.constant 0 : index
      %31 = arith.index_cast %30 : i32 to index
      %c0_15 = arith.constant 0 : index
      %c0_16 = arith.constant 0 : index
      %32 = vector.load %arg11[%c0_14, %31, %c0_15, %c0_16] : memref<2x8x8x128xf32, #tpu.memory_space<vmem>>, vector<2x4x8x128xf32>
      %33 = vector.shape_cast %32 : vector<2x4x8x128xf32> to vector<64x128xf32>
      %34 = vector.broadcast %26 : vector<1x128xf32> to vector<64x128xf32>
      %35 = arith.mulf %33, %34 : vector<64x128xf32>
      %36 = vector.broadcast %29 : vector<1x128xf32> to vector<64x128xf32>
      %37 = arith.addf %35, %36 : vector<64x128xf32>
      %cst_17 = arith.constant 0.000000e+00 : f32
      %38 = vector.broadcast %cst_17 : f32 to vector<64x128xf32>
      %39 = arith.maximumf %37, %38 : vector<64x128xf32>
      %40 = arith.truncf %39 : vector<64x128xf32> to vector<64x128xbf16>
      %41 = vector.shape_cast %40 : vector<64x128xbf16> to vector<2x4x8x128xbf16>
      %c4_i32_18 = arith.constant 4 : i32
      %42 = arith.muli %arg1, %c4_i32_18 : i32
      %c1_i32_19 = arith.constant 1 : i32
      %43 = arith.addi %c1_i32_19, %42 : i32
      %c0_20 = arith.constant 0 : index
      %44 = arith.index_cast %43 : i32 to index
      %c8 = arith.constant 8 : index
      %c0_21 = arith.constant 0 : index
      %45 = vector.load %arg10[%c0_20, %44, %c8, %c0_21] : memref<2x10x17x128xbf16, #tpu.memory_space<vmem>>, vector<2x4x8x128xbf16>
      tpu.vector_store %arg10[%c0_20, %44, %c8, %c0_21], %41 {strides = array<i32>} : memref<2x10x17x128xbf16, #tpu.memory_space<vmem>>, vector<2x4x8x128xbf16>,
      %c1_i32_22 = arith.constant 1 : i32
      %46 = arith.cmpi sge, %arg1, %c1_i32_22 : i32
      %47 = arith.extui %46 : i1 to i32
      %c0_i32_23 = arith.constant 0 : i32
      %48 = arith.cmpi ne, %47, %c0_i32_23 : i32
      scf.if %48 {
        %c1_i32_26 = arith.constant 1 : i32
        %52 = arith.subi %arg1, %c1_i32_26 : i32
        %cst_27 = arith.constant 0.000000e+00 : f32
        %53 = vector.broadcast %cst_27 : f32 to vector<64x128xf32>
        %c4_i32_28 = arith.constant 4 : i32
        %54 = arith.muli %52, %c4_i32_28 : i32
        %c0_i32_29 = arith.constant 0 : i32
        %55 = arith.addi %54, %c0_i32_29 : i32
        %c0_30 = arith.constant 0 : index
        %56 = arith.index_cast %55 : i32 to index
        %c7 = arith.constant 7 : index
        %c0_31 = arith.constant 0 : index
        %57 = vector.load %arg10[%c0_30, %56, %c7, %c0_31] : memref<2x10x17x128xbf16, #tpu.memory_space<vmem>>, vector<2x4x8x128xbf16>
        %58 = vector.shape_cast %57 : vector<2x4x8x128xbf16> to vector<64x128xbf16>
        %c0_32 = arith.constant 0 : index
        %c0_33 = arith.constant 0 : index
        %59 = vector.load %arg6[%c0_32, %c0_33] : memref<1152x128xbf16, #tpu.memory_space<vmem>>, vector<128x128xbf16>
        %cst_34 = arith.constant dense<0.000000e+00> : vector<64x128xf32>
        %60 = tpu.matmul %58, %59, %cst_34 {dimension_numbers = #tpu.dot_dimension_numbers<[1], [0], [0], [1], [0, 0, 1, 1], [], []>} : vector<64x128xbf16>, vector<128x128xbf16>, vector<64x128xf32> -> vector<64x128xf32>
        %61 = arith.addf %53, %60 : vector<64x128xf32>
        %c4_i32_35 = arith.constant 4 : i32
        %62 = arith.muli %52, %c4_i32_35 : i32
        %c0_i32_36 = arith.constant 0 : i32
        %63 = arith.addi %62, %c0_i32_36 : i32
        %c0_37 = arith.constant 0 : index
        %64 = arith.index_cast %63 : i32 to index
        %c8_38 = arith.constant 8 : index
        %c0_39 = arith.constant 0 : index
        %65 = vector.load %arg10[%c0_37, %64, %c8_38, %c0_39] : memref<2x10x17x128xbf16, #tpu.memory_space<vmem>>, vector<2x4x8x128xbf16>
        %66 = vector.shape_cast %65 : vector<2x4x8x128xbf16> to vector<64x128xbf16>
        %c128 = arith.constant 128 : index
        %c0_40 = arith.constant 0 : index
        %67 = vector.load %arg6[%c128, %c0_40] : memref<1152x128xbf16, #tpu.memory_space<vmem>>, vector<128x128xbf16>
        %cst_41 = arith.constant dense<0.000000e+00> : vector<64x128xf32>
        %68 = tpu.matmul %66, %67, %cst_41 {dimension_numbers = #tpu.dot_dimension_numbers<[1], [0], [0], [1], [0, 0, 1, 1], [], []>} : vector<64x128xbf16>, vector<128x128xbf16>, vector<64x128xf32> -> vector<64x128xf32>
        %69 = arith.addf %61, %68 : vector<64x128xf32>
        %c4_i32_42 = arith.constant 4 : i32
        %70 = arith.muli %52, %c4_i32_42 : i32
        %c0_i32_43 = arith.constant 0 : i32
        %71 = arith.addi %70, %c0_i32_43 : i32
        %c0_44 = arith.constant 0 : index
        %72 = arith.index_cast %71 : i32 to index
        %c9 = arith.constant 9 : index
        %c0_45 = arith.constant 0 : index
        %73 = vector.load %arg10[%c0_44, %72, %c9, %c0_45] : memref<2x10x17x128xbf16, #tpu.memory_space<vmem>>, vector<2x4x8x128xbf16>
        %74 = vector.shape_cast %73 : vector<2x4x8x128xbf16> to vector<64x128xbf16>
        %c256 = arith.constant 256 : index
        %c0_46 = arith.constant 0 : index
        %75 = vector.load %arg6[%c256, %c0_46] : memref<1152x128xbf16, #tpu.memory_space<vmem>>, vector<128x128xbf16>
        %cst_47 = arith.constant dense<0.000000e+00> : vector<64x128xf32>
        %76 = tpu.matmul %74, %75, %cst_47 {dimension_numbers = #tpu.dot_dimension_numbers<[1], [0], [0], [1], [0, 0, 1, 1], [], []>} : vector<64x128xbf16>, vector<128x128xbf16>, vector<64x128xf32> -> vector<64x128xf32>
        %77 = arith.addf %69, %76 : vector<64x128xf32>
        %c4_i32_48 = arith.constant 4 : i32
        %78 = arith.muli %52, %c4_i32_48 : i32
        %c1_i32_49 = arith.constant 1 : i32
        %79 = arith.addi %78, %c1_i32_49 : i32
        %c0_50 = arith.constant 0 : index
        %80 = arith.index_cast %79 : i32 to index
        %c7_51 = arith.constant 7 : index
        %c0_52 = arith.constant 0 : index
        %81 = vector.load %arg10[%c0_50, %80, %c7_51, %c0_52] : memref<2x10x17x128xbf16, #tpu.memory_space<vmem>>, vector<2x4x8x128xbf16>
        %82 = vector.shape_cast %81 : vector<2x4x8x128xbf16> to vector<64x128xbf16>
        %c384 = arith.constant 384 : index
        %c0_53 = arith.constant 0 : index
        %83 = vector.load %arg6[%c384, %c0_53] : memref<1152x128xbf16, #tpu.memory_space<vmem>>, vector<128x128xbf16>
        %cst_54 = arith.constant dense<0.000000e+00> : vector<64x128xf32>
        %84 = tpu.matmul %82, %83, %cst_54 {dimension_numbers = #tpu.dot_dimension_numbers<[1], [0], [0], [1], [0, 0, 1, 1], [], []>} : vector<64x128xbf16>, vector<128x128xbf16>, vector<64x128xf32> -> vector<64x128xf32>
        %85 = arith.addf %77, %84 : vector<64x128xf32>
        %c4_i32_55 = arith.constant 4 : i32
        %86 = arith.muli %52, %c4_i32_55 : i32
        %c1_i32_56 = arith.constant 1 : i32
        %87 = arith.addi %86, %c1_i32_56 : i32
        %c0_57 = arith.constant 0 : index
        %88 = arith.index_cast %87 : i32 to index
        %c8_58 = arith.constant 8 : index
        %c0_59 = arith.constant 0 : index
        %89 = vector.load %arg10[%c0_57, %88, %c8_58, %c0_59] : memref<2x10x17x128xbf16, #tpu.memory_space<vmem>>, vector<2x4x8x128xbf16>
        %90 = vector.shape_cast %89 : vector<2x4x8x128xbf16> to vector<64x128xbf16>
        %c512 = arith.constant 512 : index
        %c0_60 = arith.constant 0 : index
        %91 = vector.load %arg6[%c512, %c0_60] : memref<1152x128xbf16, #tpu.memory_space<vmem>>, vector<128x128xbf16>
        %cst_61 = arith.constant dense<0.000000e+00> : vector<64x128xf32>
        %92 = tpu.matmul %90, %91, %cst_61 {dimension_numbers = #tpu.dot_dimension_numbers<[1], [0], [0], [1], [0, 0, 1, 1], [], []>} : vector<64x128xbf16>, vector<128x128xbf16>, vector<64x128xf32> -> vector<64x128xf32>
        %93 = arith.addf %85, %92 : vector<64x128xf32>
        %c4_i32_62 = arith.constant 4 : i32
        %94 = arith.muli %52, %c4_i32_62 : i32
        %c1_i32_63 = arith.constant 1 : i32
        %95 = arith.addi %94, %c1_i32_63 : i32
        %c0_64 = arith.constant 0 : index
        %96 = arith.index_cast %95 : i32 to index
        %c9_65 = arith.constant 9 : index
        %c0_66 = arith.constant 0 : index
        %97 = vector.load %arg10[%c0_64, %96, %c9_65, %c0_66] : memref<2x10x17x128xbf16, #tpu.memory_space<vmem>>, vector<2x4x8x128xbf16>
        %98 = vector.shape_cast %97 : vector<2x4x8x128xbf16> to vector<64x128xbf16>
        %c640 = arith.constant 640 : index
        %c0_67 = arith.constant 0 : index
        %99 = vector.load %arg6[%c640, %c0_67] : memref<1152x128xbf16, #tpu.memory_space<vmem>>, vector<128x128xbf16>
        %cst_68 = arith.constant dense<0.000000e+00> : vector<64x128xf32>
        %100 = tpu.matmul %98, %99, %cst_68 {dimension_numbers = #tpu.dot_dimension_numbers<[1], [0], [0], [1], [0, 0, 1, 1], [], []>} : vector<64x128xbf16>, vector<128x128xbf16>, vector<64x128xf32> -> vector<64x128xf32>
        %101 = arith.addf %93, %100 : vector<64x128xf32>
        %c4_i32_69 = arith.constant 4 : i32
        %102 = arith.muli %52, %c4_i32_69 : i32
        %c2_i32_70 = arith.constant 2 : i32
        %103 = arith.addi %102, %c2_i32_70 : i32
        %c0_71 = arith.constant 0 : index
        %104 = arith.index_cast %103 : i32 to index
        %c7_72 = arith.constant 7 : index
        %c0_73 = arith.constant 0 : index
        %105 = vector.load %arg10[%c0_71, %104, %c7_72, %c0_73] : memref<2x10x17x128xbf16, #tpu.memory_space<vmem>>, vector<2x4x8x128xbf16>
        %106 = vector.shape_cast %105 : vector<2x4x8x128xbf16> to vector<64x128xbf16>
        %c768 = arith.constant 768 : index
        %c0_74 = arith.constant 0 : index
        %107 = vector.load %arg6[%c768, %c0_74] : memref<1152x128xbf16, #tpu.memory_space<vmem>>, vector<128x128xbf16>
        %cst_75 = arith.constant dense<0.000000e+00> : vector<64x128xf32>
        %108 = tpu.matmul %106, %107, %cst_75 {dimension_numbers = #tpu.dot_dimension_numbers<[1], [0], [0], [1], [0, 0, 1, 1], [], []>} : vector<64x128xbf16>, vector<128x128xbf16>, vector<64x128xf32> -> vector<64x128xf32>
        %109 = arith.addf %101, %108 : vector<64x128xf32>
        %c4_i32_76 = arith.constant 4 : i32
        %110 = arith.muli %52, %c4_i32_76 : i32
        %c2_i32_77 = arith.constant 2 : i32
        %111 = arith.addi %110, %c2_i32_77 : i32
        %c0_78 = arith.constant 0 : index
        %112 = arith.index_cast %111 : i32 to index
        %c8_79 = arith.constant 8 : index
        %c0_80 = arith.constant 0 : index
        %113 = vector.load %arg10[%c0_78, %112, %c8_79, %c0_80] : memref<2x10x17x128xbf16, #tpu.memory_space<vmem>>, vector<2x4x8x128xbf16>
        %114 = vector.shape_cast %113 : vector<2x4x8x128xbf16> to vector<64x128xbf16>
        %c896 = arith.constant 896 : index
        %c0_81 = arith.constant 0 : index
        %115 = vector.load %arg6[%c896, %c0_81] : memref<1152x128xbf16, #tpu.memory_space<vmem>>, vector<128x128xbf16>
        %cst_82 = arith.constant dense<0.000000e+00> : vector<64x128xf32>
        %116 = tpu.matmul %114, %115, %cst_82 {dimension_numbers = #tpu.dot_dimension_numbers<[1], [0], [0], [1], [0, 0, 1, 1], [], []>} : vector<64x128xbf16>, vector<128x128xbf16>, vector<64x128xf32> -> vector<64x128xf32>
        %117 = arith.addf %109, %116 : vector<64x128xf32>
        %c4_i32_83 = arith.constant 4 : i32
        %118 = arith.muli %52, %c4_i32_83 : i32
        %c2_i32_84 = arith.constant 2 : i32
        %119 = arith.addi %118, %c2_i32_84 : i32
        %c0_85 = arith.constant 0 : index
        %120 = arith.index_cast %119 : i32 to index
        %c9_86 = arith.constant 9 : index
        %c0_87 = arith.constant 0 : index
        %121 = vector.load %arg10[%c0_85, %120, %c9_86, %c0_87] : memref<2x10x17x128xbf16, #tpu.memory_space<vmem>>, vector<2x4x8x128xbf16>
        %122 = vector.shape_cast %121 : vector<2x4x8x128xbf16> to vector<64x128xbf16>
        %c1024 = arith.constant 1024 : index
        %c0_88 = arith.constant 0 : index
        %123 = vector.load %arg6[%c1024, %c0_88] : memref<1152x128xbf16, #tpu.memory_space<vmem>>, vector<128x128xbf16>
        %cst_89 = arith.constant dense<0.000000e+00> : vector<64x128xf32>
        %124 = tpu.matmul %122, %123, %cst_89 {dimension_numbers = #tpu.dot_dimension_numbers<[1], [0], [0], [1], [0, 0, 1, 1], [], []>} : vector<64x128xbf16>, vector<128x128xbf16>, vector<64x128xf32> -> vector<64x128xf32>
        %125 = arith.addf %117, %124 : vector<64x128xf32>
        %126 = vector.shape_cast %125 : vector<64x128xf32> to vector<2x4x8x128xf32>
        %c4_i32_90 = arith.constant 4 : i32
        %127 = arith.muli %52, %c4_i32_90 : i32
        %c0_91 = arith.constant 0 : index
        %128 = arith.index_cast %127 : i32 to index
        %c0_92 = arith.constant 0 : index
        %c0_93 = arith.constant 0 : index
        %129 = vector.load %arg11[%c0_91, %128, %c0_92, %c0_93] : memref<2x8x8x128xf32, #tpu.memory_space<vmem>>, vector<2x4x8x128xf32>
        tpu.vector_store %arg11[%c0_91, %128, %c0_92, %c0_93], %126 {strides = array<i32>} : memref<2x8x8x128xf32, #tpu.memory_space<vmem>>, vector<2x4x8x128xf32>,
        %c2 = arith.constant 2 : index
        %c0_94 = arith.constant 0 : index
        %130 = vector.load %arg12[%c2, %c0_94] : memref<4x128xf32, #tpu.memory_space<vmem>>, vector<1x128xf32>
        %cst_95 = arith.constant dense<0.000000e+00> : vector<128xf32>
        %131 = vector.multi_reduction <add>, %125, %cst_95 [0] : vector<64x128xf32> to vector<128xf32>
        %132 = vector.shape_cast %131 : vector<128xf32> to vector<1x128xf32>
        %133 = arith.addf %130, %132 : vector<1x128xf32>
        %c2_96 = arith.constant 2 : index
        %c0_97 = arith.constant 0 : index
        %134 = vector.load %arg12[%c2_96, %c0_97] : memref<4x128xf32, #tpu.memory_space<vmem>>, vector<1x128xf32>
        tpu.vector_store %arg12[%c2_96, %c0_97], %133 {strides = array<i32>} : memref<4x128xf32, #tpu.memory_space<vmem>>, vector<1x128xf32>,
        %c3 = arith.constant 3 : index
        %c0_98 = arith.constant 0 : index
        %135 = vector.load %arg12[%c3, %c0_98] : memref<4x128xf32, #tpu.memory_space<vmem>>, vector<1x128xf32>
        %136 = arith.mulf %125, %125 : vector<64x128xf32>
        %cst_99 = arith.constant dense<0.000000e+00> : vector<128xf32>
        %137 = vector.multi_reduction <add>, %136, %cst_99 [0] : vector<64x128xf32> to vector<128xf32>
        %138 = vector.shape_cast %137 : vector<128xf32> to vector<1x128xf32>
        %139 = arith.addf %135, %138 : vector<1x128xf32>
        %c3_100 = arith.constant 3 : index
        %c0_101 = arith.constant 0 : index
        %140 = vector.load %arg12[%c3_100, %c0_101] : memref<4x128xf32, #tpu.memory_space<vmem>>, vector<1x128xf32>
        tpu.vector_store %arg12[%c3_100, %c0_101], %139 {strides = array<i32>} : memref<4x128xf32, #tpu.memory_space<vmem>>, vector<1x128xf32>,
      } else {
      }
      %c1_i32_24 = arith.constant 1 : i32
      %49 = arith.cmpi eq, %arg1, %c1_i32_24 : i32
      %50 = arith.extui %49 : i1 to i32
      %c0_i32_25 = arith.constant 0 : i32
      %51 = arith.cmpi ne, %50, %c0_i32_25 : i32
      scf.if %51 {
        %cst_26 = arith.constant 0.000000e+00 : f32
        %52 = vector.broadcast %cst_26 : f32 to vector<64x128xf32>
        %c4_i32_27 = arith.constant 4 : i32
        %53 = arith.muli %arg1, %c4_i32_27 : i32
        %c0_i32_28 = arith.constant 0 : i32
        %54 = arith.addi %53, %c0_i32_28 : i32
        %c0_29 = arith.constant 0 : index
        %55 = arith.index_cast %54 : i32 to index
        %c7 = arith.constant 7 : index
        %c0_30 = arith.constant 0 : index
        %56 = vector.load %arg10[%c0_29, %55, %c7, %c0_30] : memref<2x10x17x128xbf16, #tpu.memory_space<vmem>>, vector<2x4x8x128xbf16>
        %57 = vector.shape_cast %56 : vector<2x4x8x128xbf16> to vector<64x128xbf16>
        %c0_31 = arith.constant 0 : index
        %c0_32 = arith.constant 0 : index
        %58 = vector.load %arg6[%c0_31, %c0_32] : memref<1152x128xbf16, #tpu.memory_space<vmem>>, vector<128x128xbf16>
        %cst_33 = arith.constant dense<0.000000e+00> : vector<64x128xf32>
        %59 = tpu.matmul %57, %58, %cst_33 {dimension_numbers = #tpu.dot_dimension_numbers<[1], [0], [0], [1], [0, 0, 1, 1], [], []>} : vector<64x128xbf16>, vector<128x128xbf16>, vector<64x128xf32> -> vector<64x128xf32>
        %60 = arith.addf %52, %59 : vector<64x128xf32>
        %c4_i32_34 = arith.constant 4 : i32
        %61 = arith.muli %arg1, %c4_i32_34 : i32
        %c0_i32_35 = arith.constant 0 : i32
        %62 = arith.addi %61, %c0_i32_35 : i32
        %c0_36 = arith.constant 0 : index
        %63 = arith.index_cast %62 : i32 to index
        %c8_37 = arith.constant 8 : index
        %c0_38 = arith.constant 0 : index
        %64 = vector.load %arg10[%c0_36, %63, %c8_37, %c0_38] : memref<2x10x17x128xbf16, #tpu.memory_space<vmem>>, vector<2x4x8x128xbf16>
        %65 = vector.shape_cast %64 : vector<2x4x8x128xbf16> to vector<64x128xbf16>
        %c128 = arith.constant 128 : index
        %c0_39 = arith.constant 0 : index
        %66 = vector.load %arg6[%c128, %c0_39] : memref<1152x128xbf16, #tpu.memory_space<vmem>>, vector<128x128xbf16>
        %cst_40 = arith.constant dense<0.000000e+00> : vector<64x128xf32>
        %67 = tpu.matmul %65, %66, %cst_40 {dimension_numbers = #tpu.dot_dimension_numbers<[1], [0], [0], [1], [0, 0, 1, 1], [], []>} : vector<64x128xbf16>, vector<128x128xbf16>, vector<64x128xf32> -> vector<64x128xf32>
        %68 = arith.addf %60, %67 : vector<64x128xf32>
        %c4_i32_41 = arith.constant 4 : i32
        %69 = arith.muli %arg1, %c4_i32_41 : i32
        %c0_i32_42 = arith.constant 0 : i32
        %70 = arith.addi %69, %c0_i32_42 : i32
        %c0_43 = arith.constant 0 : index
        %71 = arith.index_cast %70 : i32 to index
        %c9 = arith.constant 9 : index
        %c0_44 = arith.constant 0 : index
        %72 = vector.load %arg10[%c0_43, %71, %c9, %c0_44] : memref<2x10x17x128xbf16, #tpu.memory_space<vmem>>, vector<2x4x8x128xbf16>
        %73 = vector.shape_cast %72 : vector<2x4x8x128xbf16> to vector<64x128xbf16>
        %c256 = arith.constant 256 : index
        %c0_45 = arith.constant 0 : index
        %74 = vector.load %arg6[%c256, %c0_45] : memref<1152x128xbf16, #tpu.memory_space<vmem>>, vector<128x128xbf16>
        %cst_46 = arith.constant dense<0.000000e+00> : vector<64x128xf32>
        %75 = tpu.matmul %73, %74, %cst_46 {dimension_numbers = #tpu.dot_dimension_numbers<[1], [0], [0], [1], [0, 0, 1, 1], [], []>} : vector<64x128xbf16>, vector<128x128xbf16>, vector<64x128xf32> -> vector<64x128xf32>
        %76 = arith.addf %68, %75 : vector<64x128xf32>
        %c4_i32_47 = arith.constant 4 : i32
        %77 = arith.muli %arg1, %c4_i32_47 : i32
        %c1_i32_48 = arith.constant 1 : i32
        %78 = arith.addi %77, %c1_i32_48 : i32
        %c0_49 = arith.constant 0 : index
        %79 = arith.index_cast %78 : i32 to index
        %c7_50 = arith.constant 7 : index
        %c0_51 = arith.constant 0 : index
        %80 = vector.load %arg10[%c0_49, %79, %c7_50, %c0_51] : memref<2x10x17x128xbf16, #tpu.memory_space<vmem>>, vector<2x4x8x128xbf16>
        %81 = vector.shape_cast %80 : vector<2x4x8x128xbf16> to vector<64x128xbf16>
        %c384 = arith.constant 384 : index
        %c0_52 = arith.constant 0 : index
        %82 = vector.load %arg6[%c384, %c0_52] : memref<1152x128xbf16, #tpu.memory_space<vmem>>, vector<128x128xbf16>
        %cst_53 = arith.constant dense<0.000000e+00> : vector<64x128xf32>
        %83 = tpu.matmul %81, %82, %cst_53 {dimension_numbers = #tpu.dot_dimension_numbers<[1], [0], [0], [1], [0, 0, 1, 1], [], []>} : vector<64x128xbf16>, vector<128x128xbf16>, vector<64x128xf32> -> vector<64x128xf32>
        %84 = arith.addf %76, %83 : vector<64x128xf32>
        %c4_i32_54 = arith.constant 4 : i32
        %85 = arith.muli %arg1, %c4_i32_54 : i32
        %c1_i32_55 = arith.constant 1 : i32
        %86 = arith.addi %85, %c1_i32_55 : i32
        %c0_56 = arith.constant 0 : index
        %87 = arith.index_cast %86 : i32 to index
        %c8_57 = arith.constant 8 : index
        %c0_58 = arith.constant 0 : index
        %88 = vector.load %arg10[%c0_56, %87, %c8_57, %c0_58] : memref<2x10x17x128xbf16, #tpu.memory_space<vmem>>, vector<2x4x8x128xbf16>
        %89 = vector.shape_cast %88 : vector<2x4x8x128xbf16> to vector<64x128xbf16>
        %c512 = arith.constant 512 : index
        %c0_59 = arith.constant 0 : index
        %90 = vector.load %arg6[%c512, %c0_59] : memref<1152x128xbf16, #tpu.memory_space<vmem>>, vector<128x128xbf16>
        %cst_60 = arith.constant dense<0.000000e+00> : vector<64x128xf32>
        %91 = tpu.matmul %89, %90, %cst_60 {dimension_numbers = #tpu.dot_dimension_numbers<[1], [0], [0], [1], [0, 0, 1, 1], [], []>} : vector<64x128xbf16>, vector<128x128xbf16>, vector<64x128xf32> -> vector<64x128xf32>
        %92 = arith.addf %84, %91 : vector<64x128xf32>
        %c4_i32_61 = arith.constant 4 : i32
        %93 = arith.muli %arg1, %c4_i32_61 : i32
        %c1_i32_62 = arith.constant 1 : i32
        %94 = arith.addi %93, %c1_i32_62 : i32
        %c0_63 = arith.constant 0 : index
        %95 = arith.index_cast %94 : i32 to index
        %c9_64 = arith.constant 9 : index
        %c0_65 = arith.constant 0 : index
        %96 = vector.load %arg10[%c0_63, %95, %c9_64, %c0_65] : memref<2x10x17x128xbf16, #tpu.memory_space<vmem>>, vector<2x4x8x128xbf16>
        %97 = vector.shape_cast %96 : vector<2x4x8x128xbf16> to vector<64x128xbf16>
        %c640 = arith.constant 640 : index
        %c0_66 = arith.constant 0 : index
        %98 = vector.load %arg6[%c640, %c0_66] : memref<1152x128xbf16, #tpu.memory_space<vmem>>, vector<128x128xbf16>
        %cst_67 = arith.constant dense<0.000000e+00> : vector<64x128xf32>
        %99 = tpu.matmul %97, %98, %cst_67 {dimension_numbers = #tpu.dot_dimension_numbers<[1], [0], [0], [1], [0, 0, 1, 1], [], []>} : vector<64x128xbf16>, vector<128x128xbf16>, vector<64x128xf32> -> vector<64x128xf32>
        %100 = arith.addf %92, %99 : vector<64x128xf32>
        %c4_i32_68 = arith.constant 4 : i32
        %101 = arith.muli %arg1, %c4_i32_68 : i32
        %c2_i32_69 = arith.constant 2 : i32
        %102 = arith.addi %101, %c2_i32_69 : i32
        %c0_70 = arith.constant 0 : index
        %103 = arith.index_cast %102 : i32 to index
        %c7_71 = arith.constant 7 : index
        %c0_72 = arith.constant 0 : index
        %104 = vector.load %arg10[%c0_70, %103, %c7_71, %c0_72] : memref<2x10x17x128xbf16, #tpu.memory_space<vmem>>, vector<2x4x8x128xbf16>
        %105 = vector.shape_cast %104 : vector<2x4x8x128xbf16> to vector<64x128xbf16>
        %c768 = arith.constant 768 : index
        %c0_73 = arith.constant 0 : index
        %106 = vector.load %arg6[%c768, %c0_73] : memref<1152x128xbf16, #tpu.memory_space<vmem>>, vector<128x128xbf16>
        %cst_74 = arith.constant dense<0.000000e+00> : vector<64x128xf32>
        %107 = tpu.matmul %105, %106, %cst_74 {dimension_numbers = #tpu.dot_dimension_numbers<[1], [0], [0], [1], [0, 0, 1, 1], [], []>} : vector<64x128xbf16>, vector<128x128xbf16>, vector<64x128xf32> -> vector<64x128xf32>
        %108 = arith.addf %100, %107 : vector<64x128xf32>
        %c4_i32_75 = arith.constant 4 : i32
        %109 = arith.muli %arg1, %c4_i32_75 : i32
        %c2_i32_76 = arith.constant 2 : i32
        %110 = arith.addi %109, %c2_i32_76 : i32
        %c0_77 = arith.constant 0 : index
        %111 = arith.index_cast %110 : i32 to index
        %c8_78 = arith.constant 8 : index
        %c0_79 = arith.constant 0 : index
        %112 = vector.load %arg10[%c0_77, %111, %c8_78, %c0_79] : memref<2x10x17x128xbf16, #tpu.memory_space<vmem>>, vector<2x4x8x128xbf16>
        %113 = vector.shape_cast %112 : vector<2x4x8x128xbf16> to vector<64x128xbf16>
        %c896 = arith.constant 896 : index
        %c0_80 = arith.constant 0 : index
        %114 = vector.load %arg6[%c896, %c0_80] : memref<1152x128xbf16, #tpu.memory_space<vmem>>, vector<128x128xbf16>
        %cst_81 = arith.constant dense<0.000000e+00> : vector<64x128xf32>
        %115 = tpu.matmul %113, %114, %cst_81 {dimension_numbers = #tpu.dot_dimension_numbers<[1], [0], [0], [1], [0, 0, 1, 1], [], []>} : vector<64x128xbf16>, vector<128x128xbf16>, vector<64x128xf32> -> vector<64x128xf32>
        %116 = arith.addf %108, %115 : vector<64x128xf32>
        %c4_i32_82 = arith.constant 4 : i32
        %117 = arith.muli %arg1, %c4_i32_82 : i32
        %c2_i32_83 = arith.constant 2 : i32
        %118 = arith.addi %117, %c2_i32_83 : i32
        %c0_84 = arith.constant 0 : index
        %119 = arith.index_cast %118 : i32 to index
        %c9_85 = arith.constant 9 : index
        %c0_86 = arith.constant 0 : index
        %120 = vector.load %arg10[%c0_84, %119, %c9_85, %c0_86] : memref<2x10x17x128xbf16, #tpu.memory_space<vmem>>, vector<2x4x8x128xbf16>
        %121 = vector.shape_cast %120 : vector<2x4x8x128xbf16> to vector<64x128xbf16>
        %c1024 = arith.constant 1024 : index
        %c0_87 = arith.constant 0 : index
        %122 = vector.load %arg6[%c1024, %c0_87] : memref<1152x128xbf16, #tpu.memory_space<vmem>>, vector<128x128xbf16>
        %cst_88 = arith.constant dense<0.000000e+00> : vector<64x128xf32>
        %123 = tpu.matmul %121, %122, %cst_88 {dimension_numbers = #tpu.dot_dimension_numbers<[1], [0], [0], [1], [0, 0, 1, 1], [], []>} : vector<64x128xbf16>, vector<128x128xbf16>, vector<64x128xf32> -> vector<64x128xf32>
        %124 = arith.addf %116, %123 : vector<64x128xf32>
        %125 = vector.shape_cast %124 : vector<64x128xf32> to vector<2x4x8x128xf32>
        %c4_i32_89 = arith.constant 4 : i32
        %126 = arith.muli %arg1, %c4_i32_89 : i32
        %c0_90 = arith.constant 0 : index
        %127 = arith.index_cast %126 : i32 to index
        %c0_91 = arith.constant 0 : index
        %c0_92 = arith.constant 0 : index
        %128 = vector.load %arg11[%c0_90, %127, %c0_91, %c0_92] : memref<2x8x8x128xf32, #tpu.memory_space<vmem>>, vector<2x4x8x128xf32>
        tpu.vector_store %arg11[%c0_90, %127, %c0_91, %c0_92], %125 {strides = array<i32>} : memref<2x8x8x128xf32, #tpu.memory_space<vmem>>, vector<2x4x8x128xf32>,
        %c2 = arith.constant 2 : index
        %c0_93 = arith.constant 0 : index
        %129 = vector.load %arg12[%c2, %c0_93] : memref<4x128xf32, #tpu.memory_space<vmem>>, vector<1x128xf32>
        %cst_94 = arith.constant dense<0.000000e+00> : vector<128xf32>
        %130 = vector.multi_reduction <add>, %124, %cst_94 [0] : vector<64x128xf32> to vector<128xf32>
        %131 = vector.shape_cast %130 : vector<128xf32> to vector<1x128xf32>
        %132 = arith.addf %129, %131 : vector<1x128xf32>
        %c2_95 = arith.constant 2 : index
        %c0_96 = arith.constant 0 : index
        %133 = vector.load %arg12[%c2_95, %c0_96] : memref<4x128xf32, #tpu.memory_space<vmem>>, vector<1x128xf32>
        tpu.vector_store %arg12[%c2_95, %c0_96], %132 {strides = array<i32>} : memref<4x128xf32, #tpu.memory_space<vmem>>, vector<1x128xf32>,
        %c3 = arith.constant 3 : index
        %c0_97 = arith.constant 0 : index
        %134 = vector.load %arg12[%c3, %c0_97] : memref<4x128xf32, #tpu.memory_space<vmem>>, vector<1x128xf32>
        %135 = arith.mulf %124, %124 : vector<64x128xf32>
        %cst_98 = arith.constant dense<0.000000e+00> : vector<128xf32>
        %136 = vector.multi_reduction <add>, %135, %cst_98 [0] : vector<64x128xf32> to vector<128xf32>
        %137 = vector.shape_cast %136 : vector<128xf32> to vector<1x128xf32>
        %138 = arith.addf %134, %137 : vector<1x128xf32>
        %c3_99 = arith.constant 3 : index
        %c0_100 = arith.constant 0 : index
        %139 = vector.load %arg12[%c3_99, %c0_100] : memref<4x128xf32, #tpu.memory_space<vmem>>, vector<1x128xf32>
        tpu.vector_store %arg12[%c3_99, %c0_100], %138 {strides = array<i32>} : memref<4x128xf32, #tpu.memory_space<vmem>>, vector<1x128xf32>,
      } else {
      }
    } else {
    }
    %c2_i32 = arith.constant 2 : i32
    %11 = arith.cmpi eq, %arg0, %c2_i32 : i32
    %12 = arith.extui %11 : i1 to i32
    %c0_i32_5 = arith.constant 0 : i32
    %13 = arith.cmpi ne, %12, %c0_i32_5 : i32
    scf.if %13 {
      %c2 = arith.constant 2 : index
      %c0 = arith.constant 0 : index
      %14 = vector.load %arg12[%c2, %c0] : memref<4x128xf32, #tpu.memory_space<vmem>>, vector<1x128xf32>
      %cst = arith.constant 7.812500e-03 : f32
      %15 = vector.broadcast %cst : f32 to vector<1x128xf32>
      %16 = arith.mulf %14, %15 : vector<1x128xf32>
      %c3 = arith.constant 3 : index
      %c0_6 = arith.constant 0 : index
      %17 = vector.load %arg12[%c3, %c0_6] : memref<4x128xf32, #tpu.memory_space<vmem>>, vector<1x128xf32>
      %cst_7 = arith.constant 7.812500e-03 : f32
      %18 = vector.broadcast %cst_7 : f32 to vector<1x128xf32>
      %19 = arith.mulf %17, %18 : vector<1x128xf32>
      %20 = arith.mulf %16, %16 : vector<1x128xf32>
      %21 = arith.subf %19, %20 : vector<1x128xf32>
      %c0_8 = arith.constant 0 : index
      %c0_9 = arith.constant 0 : index
      %22 = vector.load %arg7[%c0_8, %c0_9] : memref<1x128xf32, #tpu.memory_space<vmem>>, vector<1x128xf32>
      %cst_10 = arith.constant 9.99999974E-6 : f32
      %23 = vector.broadcast %cst_10 : f32 to vector<1x128xf32>
      %24 = arith.addf %21, %23 : vector<1x128xf32>
      %25 = math.rsqrt %24 : vector<1x128xf32>
      %26 = arith.mulf %22, %25 : vector<1x128xf32>
      %c0_11 = arith.constant 0 : index
      %c0_12 = arith.constant 0 : index
      %27 = vector.load %arg8[%c0_11, %c0_12] : memref<1x128xf32, #tpu.memory_space<vmem>>, vector<1x128xf32>
      %28 = arith.mulf %16, %26 : vector<1x128xf32>
      %29 = arith.subf %27, %28 : vector<1x128xf32>
      %c4_i32 = arith.constant 4 : i32
      %30 = arith.muli %arg1, %c4_i32 : i32
      %c0_13 = arith.constant 0 : index
      %31 = arith.index_cast %30 : i32 to index
      %c0_14 = arith.constant 0 : index
      %c0_15 = arith.constant 0 : index
      %32 = vector.load %arg11[%c0_13, %31, %c0_14, %c0_15] : memref<2x8x8x128xf32, #tpu.memory_space<vmem>>, vector<2x4x8x128xf32>
      %33 = vector.shape_cast %32 : vector<2x4x8x128xf32> to vector<64x128xf32>
      %34 = vector.broadcast %26 : vector<1x128xf32> to vector<64x128xf32>
      %35 = arith.mulf %33, %34 : vector<64x128xf32>
      %36 = vector.broadcast %29 : vector<1x128xf32> to vector<64x128xf32>
      %37 = arith.addf %35, %36 : vector<64x128xf32>
      %cst_16 = arith.constant 0.000000e+00 : f32
      %38 = vector.broadcast %cst_16 : f32 to vector<64x128xf32>
      %39 = arith.maximumf %37, %38 : vector<64x128xf32>
      %40 = vector.shape_cast %39 : vector<64x128xf32> to vector<2x4x8x128xf32>
      %c0_17 = arith.constant 0 : index
      %c0_18 = arith.constant 0 : index
      %c0_19 = arith.constant 0 : index
      %c0_20 = arith.constant 0 : index
      %41 = vector.load %arg9[%c0_17, %c0_18, %c0_19, %c0_20] : memref<2x4x8x128xf32, #tpu.memory_space<vmem>>, vector<2x4x8x128xf32>
      tpu.vector_store %arg9[%c0_17, %c0_18, %c0_19, %c0_20], %40 {strides = array<i32>} : memref<2x4x8x128xf32, #tpu.memory_space<vmem>>, vector<2x4x8x128xf32>,
    } else {
    }
    return
  }
  func.func @transform_0(%arg0: i32, %arg1: i32) -> (i32, i32, i32, i32, i32) {
    %c0_i32 = arith.constant 0 : i32
    %0 = arith.cmpi eq, %arg0, %c0_i32 : i32
    %c0_i32_0 = arith.constant 0 : i32
    %1 = arith.select %0, %arg1, %c0_i32_0 : i32
    %c0_i32_1 = arith.constant 0 : i32
    %c0_i32_2 = arith.constant 0 : i32
    %c0_i32_3 = arith.constant 0 : i32
    %c0_i32_4 = arith.constant 0 : i32
    %c0_i32_5 = arith.constant 0 : i32
    return %c0_i32_1, %1, %c0_i32_2, %c0_i32_3, %c0_i32_4 : i32, i32, i32, i32, i32
  }
  func.func @transform_1(%arg0: i32, %arg1: i32) -> (i32, i32) {
    %c0_i32 = arith.constant 0 : i32
    %c0_i32_0 = arith.constant 0 : i32
    %c0_i32_1 = arith.constant 0 : i32
    return %c0_i32, %c0_i32_0 : i32, i32
  }
  func.func @transform_2(%arg0: i32, %arg1: i32) -> (i32, i32) {
    %c0_i32 = arith.constant 0 : i32
    %c0_i32_0 = arith.constant 0 : i32
    %c0_i32_1 = arith.constant 0 : i32
    return %c0_i32, %c0_i32_0 : i32, i32
  }
  func.func @transform_3(%arg0: i32, %arg1: i32) -> (i32, i32) {
    %c0_i32 = arith.constant 0 : i32
    %c0_i32_0 = arith.constant 0 : i32
    %c0_i32_1 = arith.constant 0 : i32
    return %c0_i32, %c0_i32_0 : i32, i32
  }
  func.func @transform_4(%arg0: i32, %arg1: i32) -> (i32, i32) {
    %c0_i32 = arith.constant 0 : i32
    %c0_i32_0 = arith.constant 0 : i32
    %c0_i32_1 = arith.constant 0 : i32
    return %c0_i32, %c0_i32_0 : i32, i32
  }
  func.func @transform_5(%arg0: i32, %arg1: i32) -> (i32, i32) {
    %c0_i32 = arith.constant 0 : i32
    %c0_i32_0 = arith.constant 0 : i32
    %c0_i32_1 = arith.constant 0 : i32
    return %c0_i32, %c0_i32_0 : i32, i32
  }
  func.func @transform_6(%arg0: i32, %arg1: i32) -> (i32, i32) {
    %c0_i32 = arith.constant 0 : i32
    %c0_i32_0 = arith.constant 0 : i32
    %c0_i32_1 = arith.constant 0 : i32
    return %c0_i32, %c0_i32_0 : i32, i32
  }
  func.func @transform_7(%arg0: i32, %arg1: i32) -> (i32, i32, i32, i32) {
    %c2_i32 = arith.constant 2 : i32
    %0 = arith.cmpi eq, %arg0, %c2_i32 : i32
    %c0_i32 = arith.constant 0 : i32
    %1 = arith.select %0, %arg1, %c0_i32 : i32
    %c0_i32_0 = arith.constant 0 : i32
    %c0_i32_1 = arith.constant 0 : i32
    %c0_i32_2 = arith.constant 0 : i32
    %c0_i32_3 = arith.constant 0 : i32
    return %c0_i32_0, %1, %c0_i32_1, %c0_i32_2 : i32, i32, i32, i32
  }
}

</mosaic_0001>

<bundles_post_ra>
// kernel: down_pallas.1
= control target key start
LH: loop header
LB: loop body
LE: loop exit
PB: predicated region body
PF: predicated region fallthrough
CT: control target
= control target key end

     0   :  { %s15593_s0 = inlined_call_operand.vmem [shape: bf16[2,8,2,8,256], index: 0, kind: input, shape index: {}]   ;;  %s15594_s1 = inlined_call_operand.vmem [shape: bf16[1152,128], index: 1, kind: input, shape index: {}]   ;;  %s15595_s2 = inlined_call_operand.vmem [shape: f32[1,128], index: 2, kind: input, shape index: {}]   ;;  %s15596_s3 = inlined_call_operand.vmem [shape: f32[1,128], index: 3, kind: input, shape index: {}]   ;;  %s15597_s4 = inlined_call_operand.vmem [shape: bf16[1152,128], index: 4, kind: input, shape index: {}]   ;;  %s15598_s5 = inlined_call_operand.vmem [shape: f32[1,128], index: 5, kind: input, shape index: {}]   ;;  %s15599_s6 = inlined_call_operand.vmem [shape: f32[1,128], index: 6, kind: input, shape index: {}]   ;;  %s15600_s7 = inlined_call_operand.vmem [shape: f32[2,8,8,128], index: 7, kind: output, shape index: {}]  }
   0x1   :  { %15602 = sst [smem:[#allocation8_spill]] %s15593_s0 }
   0x2   :  { %s12776_s24 = smov 0   ;;  %s12778_s25 = smov 0  }
   0x3   :  { %s12780_s26 = smov 0   ;;  %s12782_s27 = smov 0  }
   0x4   :  { %s12784_s28 = smov 0   ;;  %s12786_s29 = smov 0  }
   0x5   :  { %s12788_s30 = smov 0   ;;  %s12790_s8 = smov 0  }
   0x6   :  { %s12792_s9 = smov 0  }
   0x7 LB: > { %15603 = sst [smem:[#allocation7_spill]] %s12728_s8  ;;  %s9745_s10 = sadd.s32 4294967295, %s12732_s9   ;;  %s12732_s9 = sphi %s12792_s9, %s17_s9   ;;  %s12728_s8 = sphi %s12790_s8, %s15632_s8   ;;  %s12724_s30 = sphi %s12788_s30, %s15631_s30   ;;  %s12720_s29 = sphi %s12786_s29, %s15625_s29   ;;  %s12716_s28 = sphi %s12784_s28, %s15630_s28   ;;  %s12712_s27 = sphi %s12782_s27, %s15629_s27   ;;  %s12708_s26 = sphi %s12780_s26, %s15628_s26   ;;  %s12704_s25 = sphi %s12778_s25, %s15627_s25   ;;  %s12700_s24 = sphi %s12776_s24, %s15626_s24  }
   0x8   : > { %s26_s11 = sadd.s32 1, %s12724_s30  ;;  %s29_s12 = sadd.s32 1, %s12728_s8 }
   0x9   : > { %p27_p0 = scmp.ge.s32.totalorder %s26_s11, 2  ;;  %p33_p1 = scmp.eq.s32.totalorder %s12728_s8, 0 }
   0xa   : > { %s40_s13 = sadd.s32 1, %s12712_s27  ;;  %p47_p3 = scmp.ne.s32.totalorder %s12712_s27, %s12708_s26 }
   0xb   : > { %s15634_s11 = smov (%p27_p0, %s26_s11), 0  ;;  %s15636_s12 = smov (!%p27_p0, %s29_s12), %s12728_s8 }
   0xc   : > { %s12830_s14 = scalar_select %p33_p1, %s12724_s30, 0 }
   0xd   : > { %p31_p2 = scmp.ge.s32.totalorder %s15636_s12, 3  ;;  %p48_p4 = scmp.eq.s32.totalorder %s12732_s9, 0 }
   0xe   : > { %p189_p5 = scmp.eq.s32.totalorder %s12728_s8, 2  ;;  %s196_s16 = sadd.s32 1, %s12704_s25 }
   0xf   : > { %s15638_s12 = smov (%p31_p2, %s15636_s12), 0  ;;  %p12838_p6 = por %p48_p4, %p47_p3 }
  0x10   : > { %p35_p7 = scmp.eq.s32.totalorder %s15638_s12, 0  ;;  %p191_p8 = scmp.eq.s32.totalorder %s15638_s12, 2 }
  0x11   : > { %s190_s17 = scalar_select %p189_p5, %s12724_s30, 0 }
  0x12   : > { %s36_s18 = scalar_select %p35_p7, %s15634_s11, 0 }
  0x13   : > { %s192_s19 = scalar_select %p191_p8, %s15634_s11, 0 }
  0x14   : > { %s37_s20 = ssub.s32 %s12830_s14, %s36_s18  ;;  %p206_p9 = scmp.ne.s32.totalorder %s12704_s25, %s12700_s24 }
  0x15   : > { %p38_p10 = scmp.eq.s32.totalorder %s37_s20, 0  ;;  %s193_s21 = ssub.s32 %s190_s17, %s192_s19 }
  0x16   : > { %p194_p11 = scmp.eq.s32.totalorder %s193_s21, 0  ;;  %p207_p12 = scmp.eq.s32.totalorder %s9745_s10, 5 }
  0x17   : > { %s12852_s22 = scalar_select %p38_p10, %s12712_s27, %s40_s13  }
  0x18   : > { %s12855_s23 = scalar_select %p194_p11, %s12704_s25, %s196_s16  }
  0x19   : > { %p12857_p13 = por %p207_p12, %p206_p9  ;;  %p9748_p0 = scmp.ge.s32.totalorder %s12732_s9, 6 }
  0x1b   : > { %247 = sbr.rel (%p9748_p0) target bundleno = 52 (0x34), region = 40 }
  0x22   : > { %250 = sbr.rel (!%p12838_p6) target bundleno = 52 (0x34), region = 44  ;;  %s252_s18 = sand.u32 (%p12838_p6), 1, %s12712_s27  }
  0x23   : > { %s10613_s17 = sshll.u32 (%p12838_p6), %s12830_s14, 6  ;;  %s9749_s19 = sshll.u32 (%p12838_p6), %s252_s18, 7 }
  0x24   : > { %s15606_s0 = sld [smem:[#allocation8_spill]] (%p12838_p6)  ;;  %s254_s15 = scalar_lea.vmem (%p12838_p6), [#allocation5], %s9749_s19 }
  0x2a   : > { %s12869_s16 = scalar_lea.vmem %s15606_s0, %s10613_s17 }
  0x2b   : > { %v318_v0 = vld [vmem:[%s12869_s16] sm:$0xff]  ;;  %v320_v1 = vld [vmem:[%s12869_s16 + $0x8] sm:$0xff]  ;;  %v322_v2 = vld [vmem:[%s12869_s16 + $0x10] sm:$0xff] }
  0x2c   : > { %319 = vst [vmem:[%s254_s15] sm:$0xff] %v318_v0  ;;  %321 = vst [vmem:[%s254_s15 + $0x8] sm:$0xff] %v320_v1  ;;  %v324_v3 = vld [vmem:[%s12869_s16 + $0x18] sm:$0xff]  ;;  %v326_v4 = vld [vmem:[%s12869_s16 + $0x20] sm:$0xff] }
  0x2d   : > { %323 = vst [vmem:[%s254_s15 + $0x10] sm:$0xff] %v322_v2  ;;  %v328_v5 = vld [vmem:[%s12869_s16 + $0x28] sm:$0xff]  ;;  %325 = vst [vmem:[%s254_s15 + $0x18] sm:$0xff] %v324_v3  ;;  %v330_v6 = vld [vmem:[%s12869_s16 + $0x30] sm:$0xff] }
  0x2e   : > { %327 = vst [vmem:[%s254_s15 + $0x20] sm:$0xff] %v326_v4  ;;  %329 = vst [vmem:[%s254_s15 + $0x28] sm:$0xff] %v328_v5  ;;  %v332_v7 = vld [vmem:[%s12869_s16 + $0x38] sm:$0xff]  ;;  %v334_v8 = vld [vmem:[%s12869_s16 + $0x80] sm:$0xff] }
  0x2f   : > { %331 = vst [vmem:[%s254_s15 + $0x30] sm:$0xff] %v330_v6  ;;  %333 = vst [vmem:[%s254_s15 + $0x38] sm:$0xff] %v332_v7  ;;  %v336_v9 = vld [vmem:[%s12869_s16 + $0x88] sm:$0xff]  ;;  %v338_v10 = vld [vmem:[%s12869_s16 + $0x90] sm:$0xff] }
  0x30   : > { %335 = vst [vmem:[%s254_s15 + $0x40] sm:$0xff] %v334_v8  ;;  %v340_v11 = vld [vmem:[%s12869_s16 + $0x98] sm:$0xff]  ;;  %337 = vst [vmem:[%s254_s15 + $0x48] sm:$0xff] %v336_v9  ;;  %v342_v12 = vld [vmem:[%s12869_s16 + $0xa0] sm:$0xff] }
  0x31   : > { %339 = vst [vmem:[%s254_s15 + $0x50] sm:$0xff] %v338_v10  ;;  %341 = vst [vmem:[%s254_s15 + $0x58] sm:$0xff] %v340_v11  ;;  %v344_v13 = vld [vmem:[%s12869_s16 + $0xa8] sm:$0xff]  ;;  %v346_v14 = vld [vmem:[%s12869_s16 + $0xb0] sm:$0xff] }
  0x32   : > { %343 = vst [vmem:[%s254_s15 + $0x60] sm:$0xff] %v342_v12  ;;  %345 = vst [vmem:[%s254_s15 + $0x68] sm:$0xff] %v344_v13  ;;  %v348_v15 = vld [vmem:[%s12869_s16 + $0xb8] sm:$0xff] }
  0x33   : > { %347 = vst [vmem:[%s254_s15 + $0x70] sm:$0xff] %v346_v14  ;;  %349 = vst [vmem:[%s254_s15 + $0x78] sm:$0xff] %v348_v15 }
  0x34 PF: > { %p9753_p1 = scmp.ge.s32.totalorder %s12732_s9, 1  ;;  %p354_p2 = scmp.lt.s32.totalorder %s12732_s9, 7 }
  0x36   : > { %p355_p3 = pnand %p9753_p1, %p354_p2 }
  0x37   : > { %s361_s14 = sand.u32 (!%p355_p3), 1, %s12708_s26   ;;  %s388_s20 = sand.u32 (!%p355_p3), 1, %s12700_s24  }
  0x38   : > { %358 = sbr.rel (%p355_p3) target bundleno = 1828 (0x724), region = 82  ;;  %s9754_s21 = sshll.u32 (!%p355_p3), %s361_s14, 7 }
  0x39   : > { %s9755_s18 = sshll.u32 (!%p355_p3), %s388_s20, 6  ;;  %p398_p4 = scmp.eq.s32.totalorder (!%p355_p3), %s12720_s29, 0 }
  0x3a   : > { %p399_p5 = scmp.eq.s32.totalorder (!%p355_p3), %s12716_s28, 0  ;;  %s12893_s17 = scalar_lea.vmem (!%p355_p3), [#allocation5], %s9754_s21 }
  0x3b   : > { %s12895_s19 = scalar_lea.vmem (!%p355_p3), [#allocation6], %s9755_s18 }
  0x3c   : > { %p400_p6 = pnand (!%p355_p3), %p399_p5, %p398_p4 }
  0x3f   : > { %403 = sbr.rel (%p400_p6) target bundleno = 95 (0x5f), region = 90  ;;  %vm407_vm0 = vcmask (!%p400_p6), 1040384   ;;  %vm408_vm1 = vsmask.f32 (!%p400_p6), 256  ;;  %v410_v16 = vld [vmem:[#allocation2 + $0x8] sm:$0x1] (!%p400_p6) }
  0x40   : > { %vm12897_vm2 = vmand (!%p400_p6), %vm407_vm0, %vm408_vm1  ;;  %v415_v18 = vld [vmem:[#allocation2 + $0x80] sm:$0x1] (!%p400_p6)  ;;  %v421_v19 = vld [vmem:[#allocation2 + $0x74] sm:$0x1] (!%p400_p6)  ;;  %v12734_v20 = vmov (!%p400_p6), 0   ;;  %v12735_v25 = vmov (!%p400_p6), 0.0  }
  0x41   : > { %405 = vst [vmem:[#allocation2] sm:$0xf] (!%p400_p6), %v12734_v20  ;;  %406 = vst [vmem:[#allocation2 + $0x4] sm:$0xf] (!%p400_p6), %v12734_v20  ;;  %v411_v21 = vsel (!%p400_p6), %vm12897_vm2, 0, %v410_v16  ;;  %v416_v22 = vsel (!%p400_p6), %vm12897_vm2, 0, %v415_v18 }
  0x42   : > { %413 = vst [vmem:[#allocation2 + $0x78] sm:$0xf] (!%p400_p6), %v12734_v20  ;;  %414 = vst [vmem:[#allocation2 + $0x7c] sm:$0xf] (!%p400_p6), %v12734_v20  ;;  %v422_v23 = vsel (!%p400_p6), %vm12897_vm2, 0, %v421_v19 }
  0x43   : > { %419 = vst [vmem:[#allocation2 + $0x6c] sm:$0xf] (!%p400_p6), %v12734_v20  ;;  %420 = vst [vmem:[#allocation2 + $0x70] sm:$0xf] (!%p400_p6), %v12734_v20  ;;  %v426_v24 = vld [vmem:[#allocation2 + $0xec] sm:$0x1] (!%p400_p6) }
  0x44   : > { %424 = vst [vmem:[#allocation2 + $0xe4] sm:$0xf] (!%p400_p6), %v12734_v20  ;;  %425 = vst [vmem:[#allocation2 + $0xe8] sm:$0xf] (!%p400_p6), %v12734_v20  ;;  %v427_v26 = vsel (!%p400_p6), %vm12897_vm2, 0, %v426_v24 }
  0x45   : > { %430 = vst [vmem:[#allocation2 + $0xc] sm:$0xf] (!%p400_p6), %v12734_v20  ;;  %431 = vst [vmem:[#allocation2 + $0x18] sm:$0xf] (!%p400_p6), %v12734_v20  ;;  %v452_v27 = vld [vmem:[#allocation2 + $0x14] sm:$0x1] (!%p400_p6) }
  0x46   : > { %432 = vst [vmem:[#allocation2 + $0x24] sm:$0xf] %v12734_v20  ;;  %433 = vst [vmem:[#allocation2 + $0x30] sm:$0xf] %v12734_v20  ;;  %v455_v28 = vld [vmem:[#allocation2 + $0x20] sm:$0x1] }
  0x47   : > { %434 = vst [vmem:[#allocation2 + $0x3c] sm:$0xf] %v12734_v20  ;;  %435 = vst [vmem:[#allocation2 + $0x48] sm:$0xf] %v12734_v20  ;;  %v453_v29 = vsel %vm12897_vm2, 0, %v452_v27  ;;  %v456_v30 = vsel %vm12897_vm2, 0, %v455_v28 }
  0x48   : > { %436 = vst [vmem:[#allocation2 + $0x54] sm:$0xf] %v12734_v20  ;;  %437 = vst [vmem:[#allocation2 + $0x60] sm:$0xf] %v12734_v20  ;;  %v458_v31 = vld [vmem:[#allocation2 + $0x2c] sm:$0x1] }
  0x49   : > { %440 = vst [vmem:[#allocation2 + $0x84] sm:$0xf] %v12734_v20  ;;  %441 = vst [vmem:[#allocation2 + $0x90] sm:$0xf] %v12734_v20  ;;  %v461_v32 = vld [vmem:[#allocation2 + $0x38] sm:$0x1] }
  0x4a   : > { %442 = vst [vmem:[#allocation2 + $0x9c] sm:$0xf] %v12734_v20  ;;  %443 = vst [vmem:[#allocation2 + $0xa8] sm:$0xf] %v12734_v20  ;;  %v459_v33 = vsel %vm12897_vm2, 0, %v458_v31  ;;  %v462_v34 = vsel %vm12897_vm2, 0, %v461_v32 }
  0x4b   : > { %444 = vst [vmem:[#allocation2 + $0xb4] sm:$0xf] %v12734_v20  ;;  %445 = vst [vmem:[#allocation2 + $0xc0] sm:$0xf] %v12734_v20  ;;  %v464_v35 = vld [vmem:[#allocation2 + $0x44] sm:$0x1] }
  0x4c   : > { %446 = vst [vmem:[#allocation2 + $0xcc] sm:$0xf] %v12734_v20  ;;  %447 = vst [vmem:[#allocation2 + $0xd8] sm:$0xf] %v12734_v20  ;;  %v467_v36 = vld [vmem:[#allocation2 + $0x50] sm:$0x1] }
  0x4d   : > { %429 = vst [vmem:[#allocation2] sm:$0xf] %v12734_v20  ;;  %438 = vst [vmem:[#allocation2 + $0x6c] sm:$0xf] %v12734_v20  ;;  %v465_v37 = vsel %vm12897_vm2, 0, %v464_v35  ;;  %v468_v38 = vsel %vm12897_vm2, 0, %v467_v36 }
  0x4e   : > { %439 = vst [vmem:[#allocation2 + $0x78] sm:$0xf] %v12734_v20  ;;  %448 = vst [vmem:[#allocation2 + $0xe4] sm:$0xf] %v12734_v20  ;;  %v470_v39 = vld [vmem:[#allocation2 + $0x5c] sm:$0x1] }
  0x4f   : > { %404 = vst [vmem:[#allocation4] sm:$0xf] %v12735_v25  ;;  %412 = vst [vmem:[#allocation2 + $0x8] sm:$0x1] %v411_v21  ;;  %v473_v40 = vld [vmem:[#allocation2 + $0x68] sm:$0x1] }
  0x50   : > { %417 = vst [vmem:[#allocation2 + $0x80] sm:$0x1] %v416_v22  ;;  %423 = vst [vmem:[#allocation2 + $0x74] sm:$0x1] %v422_v23  ;;  %v471_v41 = vsel %vm12897_vm2, 0, %v470_v39  ;;  %v474_v42 = vsel %vm12897_vm2, 0, %v473_v40 }
  0x51   : > { %428 = vst [vmem:[#allocation2 + $0xec] sm:$0x1] %v427_v26  ;;  %454 = vst [vmem:[#allocation2 + $0x14] sm:$0x1] %v453_v29  ;;  %v482_v43 = vld [vmem:[#allocation2 + $0x8c] sm:$0x1] }
  0x52   : > { %457 = vst [vmem:[#allocation2 + $0x20] sm:$0x1] %v456_v30  ;;  %460 = vst [vmem:[#allocation2 + $0x2c] sm:$0x1] %v459_v33  ;;  %v485_v44 = vld [vmem:[#allocation2 + $0x98] sm:$0x1] }
  0x53   : > { %463 = vst [vmem:[#allocation2 + $0x38] sm:$0x1] %v462_v34  ;;  %466 = vst [vmem:[#allocation2 + $0x44] sm:$0x1] %v465_v37  ;;  %v483_v45 = vsel %vm12897_vm2, 0, %v482_v43  ;;  %v486_v46 = vsel %vm12897_vm2, 0, %v485_v44 }
  0x54   : > { %469 = vst [vmem:[#allocation2 + $0x50] sm:$0x1] %v468_v38  ;;  %472 = vst [vmem:[#allocation2 + $0x5c] sm:$0x1] %v471_v41  ;;  %v488_v47 = vld [vmem:[#allocation2 + $0xa4] sm:$0x1] }
  0x55   : > { %475 = vst [vmem:[#allocation2 + $0x68] sm:$0x1] %v474_v42  ;;  %v491_v48 = vld [vmem:[#allocation2 + $0xb0] sm:$0x1]  ;;  %484 = vst [vmem:[#allocation2 + $0x8c] sm:$0x1] %v483_v45 }
  0x56   : > { %487 = vst [vmem:[#allocation2 + $0x98] sm:$0x1] %v486_v46  ;;  %v489_v49 = vsel %vm12897_vm2, 0, %v488_v47  ;;  %v492_v50 = vsel %vm12897_vm2, 0, %v491_v48  ;;  %v494_v51 = vld [vmem:[#allocation2 + $0xbc] sm:$0x1] }
  0x57   : > { %v497_v52 = vld [vmem:[#allocation2 + $0xc8] sm:$0x1]  ;;  %v476_v54 = vld [vmem:[#allocation2 + $0x74] sm:$0x1]  ;;  %v479_v55 = vld [vmem:[#allocation2 + $0x80] sm:$0x1] }
  0x58   : > { %v449_v53 = vld [vmem:[#allocation2 + $0x8] sm:$0x1]  ;;  %490 = vst [vmem:[#allocation2 + $0xa4] sm:$0x1] %v489_v49  ;;  %493 = vst [vmem:[#allocation2 + $0xb0] sm:$0x1] %v492_v50 }
  0x59   : > { %v450_v56 = vsel %vm12897_vm2, 0, %v449_v53  ;;  %v477_v57 = vsel %vm12897_vm2, 0, %v476_v54  ;;  %v480_v58 = vsel %vm12897_vm2, 0, %v479_v55  ;;  %v495_v59 = vsel %vm12897_vm2, 0, %v494_v51  ;;  %v500_v60 = vld [vmem:[#allocation2 + $0xd4] sm:$0x1] }
  0x5a   : > { %451 = vst [vmem:[#allocation2 + $0x8] sm:$0x1] %v450_v56  ;;  %478 = vst [vmem:[#allocation2 + $0x74] sm:$0x1] %v477_v57  ;;  %v498_v61 = vsel %vm12897_vm2, 0, %v497_v52  ;;  %v501_v62 = vsel %vm12897_vm2, 0, %v500_v60 }
  0x5b   : > { %481 = vst [vmem:[#allocation2 + $0x80] sm:$0x1] %v480_v58  ;;  %496 = vst [vmem:[#allocation2 + $0xbc] sm:$0x1] %v495_v59  ;;  %v503_v63 = vld [vmem:[#allocation2 + $0xe0] sm:$0x1] }
  0x5c   : > { %v506_v0 = vld [vmem:[#allocation2 + $0xec] sm:$0x1]  ;;  %499 = vst [vmem:[#allocation2 + $0xc8] sm:$0x1] %v498_v61  ;;  %502 = vst [vmem:[#allocation2 + $0xd4] sm:$0x1] %v501_v62 }
  0x5d   : > { %v504_v1 = vsel %vm12897_vm2, 0, %v503_v63  ;;  %v507_v2 = vsel %vm12897_vm2, 0, %v506_v0 }
  0x5e   : > { %505 = vst [vmem:[#allocation2 + $0xe0] sm:$0x1] %v504_v1  ;;  %508 = vst [vmem:[#allocation2 + $0xec] sm:$0x1] %v507_v2 }
  0x5f PF: > { %p9756_p7 = scmp.ne.s32.totalorder %s12720_s29, 0 }
  0x60   : > { %v512_v3 = vld [vmem:[%s12893_s17] sm:$0xff] (!%p9756_p7)  ;;  %v513_v4 = vld [vmem:[%s12893_s17 + $0x8] sm:$0xff] (!%p9756_p7)  ;;  %s9759_s24 = smul.u32 (!%p9756_p7), 48, %s12716_s28  ;;  %v514_v5 = vld [vmem:[%s12893_s17 + $0x10] sm:$0xff] (!%p9756_p7)  ;;  %p9768_p8 = scmp.lt.s32.totalorder (!%p9756_p7), %s12716_s28, 1 }
  0x61   : > { %511 = sbr.rel (%p9756_p7) target bundleno = 929 (0x3a1), region = 94  ;;  %v528_v6 = vmax.bf16 (!%p9756_p7), %v513_v4, %v512_v3  ;;  %v515_v7 = vld [vmem:[%s12893_s17 + $0x18] sm:$0xff] (!%p9756_p7)  ;;  %v516_v8 = vld [vmem:[%s12893_s17 + $0x20] sm:$0xff] (!%p9756_p7)  ;;  %v517_v9 = vld [vmem:[%s12893_s17 + $0x28] sm:$0xff] (!%p9756_p7) }
  0x62   : > { %v529_v10 = vmax.bf16 (!%p9756_p7), %v515_v7, %v514_v5  ;;  %v530_v11 = vmax.bf16 (!%p9756_p7), %v517_v9, %v516_v8  ;;  %v518_v12 = vld [vmem:[%s12893_s17 + $0x30] sm:$0xff] (!%p9756_p7)  ;;  %v519_v13 = vld [vmem:[%s12893_s17 + $0x38] sm:$0xff] (!%p9756_p7)  ;;  %v520_v14 = vld [vmem:[%s12893_s17 + $0x40] sm:$0xff] (!%p9756_p7)  ;;  %s12969_s26 = scalar_lea.vmem (!%p9756_p7), [#allocation2], %s9759_s24 }
  0x63   : > { %v544_v15 = vrot.slane (!%p9756_p7), %v528_v6, 4  ;;  %v531_v16 = vmax.bf16 (!%p9756_p7), %v519_v13, %v518_v12  ;;  %v521_v17 = vld [vmem:[%s12893_s17 + $0x48] sm:$0xff] (!%p9756_p7)  ;;  %v522_v18 = vld [vmem:[%s12893_s17 + $0x50] sm:$0xff] (!%p9756_p7)  ;;  %v523_v19 = vld [vmem:[%s12893_s17 + $0x58] sm:$0xff] (!%p9756_p7) }
  0x64   : > { %v545_v20 = vrot.slane (!%p9756_p7), %v529_v10, 4  ;;  %v546_v21 = vrot.slane (!%p9756_p7), %v530_v11, 4  ;;  %v532_v22 = vmax.bf16 (!%p9756_p7), %v521_v17, %v520_v14  ;;  %v533_v23 = vmax.bf16 (!%p9756_p7), %v523_v19, %v522_v18  ;;  %v524_v24 = vld [vmem:[%s12893_s17 + $0x60] sm:$0xff] (!%p9756_p7)  ;;  %v525_v25 = vld [vmem:[%s12893_s17 + $0x68] sm:$0xff] (!%p9756_p7)  ;;  %v526_v26 = vld [vmem:[%s12893_s17 + $0x70] sm:$0xff] (!%p9756_p7) }
  0x65   : > { %v560_v27 = vmax.bf16 (!%p9756_p7), %v544_v15, %v528_v6  ;;  %v547_v28 = vrot.slane (!%p9756_p7), %v531_v16, 4  ;;  %v534_v29 = vmax.bf16 (!%p9756_p7), %v525_v25, %v524_v24  ;;  %v527_v30 = vld [vmem:[%s12893_s17 + $0x78] sm:$0xff] (!%p9756_p7) }
  0x66   : > { %v561_v31 = vmax.bf16 (!%p9756_p7), %v545_v20, %v529_v10  ;;  %v562_v32 = vmax.bf16 (!%p9756_p7), %v546_v21, %v530_v11  ;;  %v548_v33 = vrot.slane (!%p9756_p7), %v532_v22, 4  ;;  %v549_v34 = vrot.slane (!%p9756_p7), %v533_v23, 4 }
  0x67   : > { %9760 = vst [vmem:[%s12969_s26 + $0x10] sm:$0xf] (!%p9756_p7), %v560_v27  ;;  %v563_v35 = vmax.bf16 (!%p9756_p7), %v547_v28, %v531_v16  ;;  %v550_v36 = vrot.slane (!%p9756_p7), %v534_v29, 4  ;;  %v535_v37 = vmax.bf16 (!%p9756_p7), %v527_v30, %v526_v26 }
  0x68   : > { %9761 = vst [vmem:[%s12969_s26 + $0x1c] sm:$0xf] %v561_v31  ;;  %9762 = vst [vmem:[%s12969_s26 + $0x28] sm:$0xf] %v562_v32  ;;  %v564_v38 = vmax.bf16 %v548_v33, %v532_v22  ;;  %v565_v39 = vmax.bf16 %v549_v34, %v533_v23  ;;  %584 = sbr.rel (%p9768_p8) target bundleno = 516 (0x204), region = 98  ;;  %v12322_v43 = vld [vmem:[%s15594_s1 + $0x40] sm:$0xff] (!%p9768_p8)  }
  0x69   : > { %9763 = vst [vmem:[%s12969_s26 + $0x34] sm:$0xf] %v563_v35  ;;  %v566_v40 = vmax.bf16 %v550_v36, %v534_v29  ;;  %v551_v41 = vrot.slane %v535_v37, 4  ;;  %v12323_v44 = vld [vmem:[%s15594_s1 + $0x100] sm:$0xff] (!%p9768_p8)   ;;  %11064 = vmatprep.subr.bf16.mxu1 (!%p9768_p8), %v12322_v43  ;;  %v12324_v45 = vld [vmem:[%s15594_s1 + $0x48] sm:$0xff] (!%p9768_p8)   ;;  %v12326_v47 = vld [vmem:[%s15594_s1 + $0x50] sm:$0xff] (!%p9768_p8)  }
  0x6a   : > { %9764 = vst [vmem:[%s12969_s26 + $0x88] sm:$0xf] %v564_v38  ;;  %9765 = vst [vmem:[%s12969_s26 + $0x94] sm:$0xf] %v565_v39  ;;  %11160 = vmatprep.subr.bf16.mxu0 (!%p9768_p8), %v12323_v44  ;;  %11065 = vmatpush3.bf16.msra.mxu1 (!%p9768_p8), %v12322_v43  ;;  %v12325_v46 = vld [vmem:[%s15594_s1 + $0x108] sm:$0xff] (!%p9768_p8)   ;;  %v12327_v48 = vld [vmem:[%s15594_s1 + $0x110] sm:$0xff] (!%p9768_p8)  }
  0x6b   : > { %9766 = vst [vmem:[%s12969_s26 + $0xa0] sm:$0xf] %v566_v40  ;;  %v567_v42 = vmax.bf16 %v551_v41, %v535_v37  ;;  %11161 = vmatpush3.bf16.msra.mxu0 (!%p9768_p8), %v12323_v44  ;;  %11066 = vmatprep.subr.bf16.mxu1 (!%p9768_p8), %v12324_v45  ;;  %s9769_s16 = sadd.s32 (!%p9768_p8), 4294967295, %s12716_s28  ;;  %v12328_v49 = vld [vmem:[%s15594_s1 + $0x58] sm:$0xff] (!%p9768_p8)   ;;  %v12330_v51 = vld [vmem:[%s15594_s1 + $0x60] sm:$0xff] (!%p9768_p8)   ;;  %v12332_v53 = vld [vmem:[%s15594_s1 + $0x68] sm:$0xff] (!%p9768_p8)  }
  0x6c   : > { %11162 = vmatprep.subr.bf16.mxu0 (!%p9768_p8), %v12325_v46  ;;  %v12329_v50 = vld [vmem:[%s15594_s1 + $0x118] sm:$0xff] (!%p9768_p8)   ;;  %s10614_s18 = smul.u32 (!%p9768_p8), 48, %s9769_s16  ;;  %v12331_v52 = vld [vmem:[%s15594_s1 + $0x120] sm:$0xff] (!%p9768_p8)   ;;  %v12333_v56 = vld [vmem:[%s15594_s1 + $0x128] sm:$0xff] (!%p9768_p8)   ;;  %vm606_vm3 = vsmask.f32 (!%p9768_p8), 256 }
  0x6d   : > { %9767 = vst [vmem:[%s12969_s26 + $0xac] sm:$0xf] %v567_v42  ;;  %v12334_v60 = vld [vmem:[%s15594_s1 + $0x70] sm:$0xff] (!%p9768_p8)   ;;  %v12336_v1 = vld [vmem:[%s15594_s1 + $0x78] sm:$0xff] (!%p9768_p8)   ;;  %v12339_v10 = vld [vmem:[%s15594_s1] sm:$0xff] (!%p9768_p8)   ;;  %s10615_s17 = sshll.u32 (!%p9768_p8), %s9769_s16, 5 }
  0x6e   : > { %11067 = vmatpush3.bf16.msra.mxu1 (!%p9768_p8), %v12324_v45  ;;  %s13016_s20 = scalar_lea.vmem (!%p9768_p8), [#allocation2], %s10614_s18  ;;  %v12335_v0 = vld [vmem:[%s15594_s1 + $0x130] sm:$0xff] (!%p9768_p8)   ;;  %v12337_v2 = vld [vmem:[%s15594_s1 + $0x138] sm:$0xff] (!%p9768_p8)   ;;  %v12341_v14 = vld [vmem:[%s15594_s1 + $0x140] sm:$0xff] (!%p9768_p8)   ;;  %vm607_vm4 = vsmask.f32 (!%p9768_p8), 4368 }
  0x6f   : > { %11163 = vmatpush3.bf16.msra.mxu0 %v12325_v46  ;;  %11068 = vmatprep.subr.bf16.mxu1 %v12326_v47  ;;  %v12344_v20 = vld [vmem:[%s15594_s1 + $0x8] sm:$0xff]   ;;  %v12346_v34 = vld [vmem:[%s15594_s1 + $0x10] sm:$0xff]   ;;  %vm13189_vm5 = vmor %vm606_vm3, %vm607_vm4  ;;  %vm1027_vm6 = vsmask.f32 3328  ;;  %vm1028_vm7 = vsmask.f32 7440 }
  0x70   : > { %11164 = vmatprep.subr.bf16.mxu0 %v12327_v48  ;;  %v12345_v24 = vld [vmem:[%s15594_s1 + $0x148] sm:$0xff]   ;;  %v12347_v38 = vld [vmem:[%s15594_s1 + $0x150] sm:$0xff]   ;;  %vm13222_vm8 = vmor %vm1027_vm6, %vm1028_vm7  ;;  %s2734_s18 = scalar_lea.vmem [#allocation3], %s10615_s17 }
  0x72   : > { %11069 = vmatpush3.bf16.msra.mxu1 %v12326_v47  ;;  %v12348_v47 = vld [vmem:[%s15594_s1 + $0x18] sm:$0xff]  }
  0x73   : > { %11165 = vmatpush3.bf16.msra.mxu0 %v12327_v48  ;;  %11070 = vmatprep.subr.bf16.mxu1 %v12328_v49 }
  0x74   : > { %11166 = vmatprep.subr.bf16.mxu0 %v12329_v50  ;;  %v13019_v54 = vld [vmem:[%s13016_s20 + $0x4] sm:$0xf]  ;;  %v13022_v55 = vld [vmem:[%s13016_s20 + $0x10] sm:$0xf]  ;;  %v13033_v59 = vld [vmem:[%s13016_s20 + $0x1c] sm:$0xf] }
  0x75   : > { %v9781_v57 = vcombine.low %v13019_v54, %v13022_v55  ;;  %v13030_v58 = vld [vmem:[%s13016_s20 + $0x10] sm:$0xf]  ;;  %v615_v61 = vshrl.u32 %v13019_v54, 16  ;;  %v628_v62 = vshrl.u32 %v13022_v55, 16  ;;  %v618_v3 = vshll.u32 %v13019_v54, 16 }
  0x76   : > { %11071 = vmatpush3.bf16.msra.mxu1 %v12328_v49  ;;  %v9855_v63 = vcombine.low %v13030_v58, %v13033_v59  ;;  %v631_v6 = vshll.u32 %v13022_v55, 16  ;;  %v1321_v7 = vshrl.u32 %v13030_v58, 16  ;;  %v13059_v8 = vld [vmem:[%s13016_s20 + $0x1c] sm:$0xf]  ;;  %v13062_v9 = vld [vmem:[%s13016_s20 + $0x28] sm:$0xf] }
  0x77   : > { %11167 = vmatpush3.bf16.msra.mxu0 %v12329_v50  ;;  %11072 = vmatprep.subr.bf16.mxu1 %v12330_v51  ;;  %v13052_v4 = vrot.slane %v615_v61, 7  ;;  %v13054_v5 = vrot.slane %v628_v62, 7  ;;  %v13068_v11 = vld [vmem:[%s13016_s20 + $0x28] sm:$0xf]  ;;  %v13071_v12 = vld [vmem:[%s13016_s20 + $0x34] sm:$0xf]  ;;  %v9782_v17 = vcombine.low %v13059_v8, %v13062_v9 }
  0x78   : > { %11168 = vmatprep.subr.bf16.mxu0 %v12331_v52  ;;  %11080 = vmatprep.mubr.bf16.mxu1 %v9781_v57  ;;  %v1334_v13 = vshrl.u32 %v13033_v59, 16  ;;  %v1324_v15 = vshll.u32 %v13030_v58, 16  ;;  %v1337_v16 = vshll.u32 %v13033_v59, 16  ;;  %v641_v18 = vshrl.u32 %v13059_v8, 16  ;;  %v13096_v25 = vld [vmem:[%s13016_s20 + $0x7c] sm:$0xf] }
  0x79   : > { %11176 = vmatprep.mubr.bf16.mxu0 %v9855_v63  ;;  %v9856_v19 = vcombine.low %v13068_v11, %v13071_v12  ;;  %v13087_v21 = vrot.slane %v1321_v7, 7  ;;  %v654_v22 = vshrl.u32 %v13062_v9, 16  ;;  %v644_v26 = vshll.u32 %v13059_v8, 16  ;;  %v13101_v28 = vld [vmem:[%s13016_s20 + $0x88] sm:$0xf]  ;;  %v12349_v50 = vld [vmem:[%s15594_s1 + $0x158] sm:$0xff]  }
  0x7a   : > { %11073 = vmatpush3.bf16.msra.mxu1 %v12330_v51  ;;  %v13090_v23 = vrot.slane %v1334_v13, 7  ;;  %v1347_v27 = vshrl.u32 %v13068_v11, 16  ;;  %v13103_v29 = vrot.slane %v641_v18, 7  ;;  %v657_v30 = vshll.u32 %v13062_v9, 16  ;;  %v13115_v35 = vld [vmem:[%s13016_s20 + $0x88] sm:$0xf] }
  0x7b   : > { %11169 = vmatpush3.bf16.msra.mxu0 %v12331_v52  ;;  %11074 = vmatprep.subr.bf16.mxu1 %v12332_v53  ;;  %v1360_v31 = vshrl.u32 %v13071_v12, 16  ;;  %v9783_v32 = vcombine.low %v13096_v25, %v13101_v28  ;;  %v13109_v33 = vrot.slane %v654_v22, 7  ;;  %v13118_v36 = vld [vmem:[%s13016_s20 + $0x94] sm:$0xf]  ;;  %v1350_v37 = vshll.u32 %v13068_v11, 16  ;;  %v12350_v63 = vld [vmem:[%s15594_s1 + $0x20] sm:$0xff]  }
  0x7c   : > { %11170 = vmatprep.subr.bf16.mxu0 %v12333_v56  ;;  %v667_v39 = vshrl.u32 %v13096_v25, 16  ;;  %v680_v40 = vshrl.u32 %v13101_v28, 16  ;;  %v13126_v41 = vrot.slane %v1347_v27, 7  ;;  %v1373_v42 = vshrl.u32 %v13115_v35, 16  ;;  %v13132_v44 = vld [vmem:[%s13016_s20 + $0x94] sm:$0xf] }
  0x7d   : > { %v9857_v43 = vcombine.low %v13115_v35, %v13118_v36  ;;  %v13134_v45 = vrot.slane %v1360_v31, 7  ;;  %v1363_v46 = vshll.u32 %v13071_v12, 16  ;;  %v1386_v48 = vshrl.u32 %v13118_v36, 16  ;;  %v13142_v49 = vld [vmem:[%s13016_s20 + $0xa0] sm:$0xf]  ;;  %v12353_v55 = vld [vmem:[%s15594_s1 + $0x168] sm:$0xff]  }
  0x7e   : > { %11075 = vmatpush3.bf16.msra.mxu1 %v12332_v53  ;;  %v670_v51 = vshll.u32 %v13096_v25, 16  ;;  %v9784_v52 = vcombine.low %v13132_v44, %v13142_v49  ;;  %v13151_v53 = vld [vmem:[%s13016_s20 + $0xa0] sm:$0xf]  ;;  %v13156_v57 = vrot.slane %v667_v39, 7  ;;  %v683_v61 = vshll.u32 %v13101_v28, 16  ;;  %v12366_v25 = vld [vmem:[%s15594_s1 + $0x90] sm:$0xff]  }
  0x7f   : > { %11171 = vmatpush3.bf16.msra.mxu0 %v12333_v56  ;;  %11076 = vmatprep.subr.bf16.mxu1 %v12334_v60  ;;  %v13154_v56 = vld [vmem:[%s13016_s20 + $0xac] sm:$0xf]  ;;  %v1376_v62 = vshll.u32 %v13115_v35, 16  ;;  %v12351_v7 = vld [vmem:[%s15594_s1 + $0x160] sm:$0xff]   ;;  %v693_v13 = vshrl.u32 %v13132_v44, 16  ;;  %v620_v18 = vor.u32 %v618_v3, %v13052_v4  ;;  %v696_v27 = vshll.u32 %v13132_v44, 16 }
  0x80   : > { %11172 = vmatprep.subr.bf16.mxu0 %v12335_v0  ;;  %v706_v54 = vshrl.u32 %v13142_v49, 16  ;;  %v9868_v31 = vld [vmem:[%s13016_s20 + $0x14] sm:$0x1]  ;;  %v12384_v59 = vld [vmem:[%s15594_s1 + $0xd8] sm:$0xff]   ;;  %v1365_v11 = vor.u32 %v1363_v46, %v13134_v45 }
  0x82   : > { %11077 = vmatpush3.bf16.msra.mxu1 %v12334_v60  ;;  %v13158_v60 = vrot.slane %v680_v40, 7 }
  0x83   : > { %11173 = vmatpush3.bf16.msra.mxu0 %v12335_v0  ;;  %11078 = vmatprep.subr.bf16.mxu1 %v12336_v1  ;;  %v13165_v0 = vrot.slane %v1373_v42, 7 }
  0x84   : > { %11174 = vmatprep.subr.bf16.mxu0 %v12337_v2 }
  0x86   : > { %11079 = vmatpush3.bf16.msra.mxu1 %v12336_v1  ;;  %v1389_v1 = vshll.u32 %v13118_v36, 16  ;;  %v12392_v36 = vld [vmem:[%s15594_s1 + $0xf8] sm:$0xff]  }
  0x87   : > { %11175 = vmatpush3.bf16.msra.mxu0 %v12337_v2  ;;  %11088 = vmatprep.subr.bf16.mxu1 %v12339_v10  ;;  %v9858_v2 = vcombine.low %v13151_v53, %v13154_v56 }
  0x88   : > { %11184 = vmatprep.subr.bf16.mxu0 %v12341_v14 }
  0x89   : > { %11081 = vmatmul.mubr.bf16.vlgmr.msra.gmra.mrb[0].mxu1 %v9782_v17  ;;  %v592_v17 = vld [vmem:[%s13016_s20 + $0xc] sm:$0x8] }
  0x8a   : > { %11089 = vmatpush3.bf16.msra.mxu1 %v12339_v10  ;;  %11177 = vmatmul.mubr.bf16.vlgmr.msra.gmra.mrb[0].mxu0 %v9856_v19  ;;  %v13173_v10 = vrot.slane %v1386_v48, 7  ;;  %v633_v19 = vor.u32 %v631_v6, %v13054_v5  ;;  %v623_v22 = vshrl.u32 %v592_v17, 16  ;;  %v9867_v6 = vld [vmem:[%s13016_s20 + $0x10] sm:$0xf]  ;;  %v594_v17 = vld [vmem:[%s13016_s20 + $0x18] sm:$0x8] }
  0x8b   : > { %11185 = vmatpush3.bf16.msra.mxu0 %v12341_v14  ;;  %11090 = vmatprep.subr.bf16.mxu1 %v12344_v20  ;;  %v590_v14 = vld [vmem:[%s13016_s20] sm:$0x8]  ;;  %v1753_v39 = vshll.u32 %v9867_v6, 16  ;;  %v12355_v48 = vld [vmem:[%s15594_s1 + $0x30] sm:$0xff]  }
  0x8c   : > { %11186 = vmatprep.subr.bf16.mxu0 %v12345_v24  ;;  %11084 = vmatprep.mubr.bf16.mxu1 %v9783_v32  ;;  %v9774_v5 = vrot.slane %v623_v22, 11  ;;  %v9869_v32 = vld [vmem:[%s13016_s20 + $0x1c] sm:$0xf] }
  0x8d   : > { %11180 = vmatprep.mubr.bf16.mxu0 %v9857_v43  ;;  %v1759_v43 = vshll.u32 %v9868_v31, 16 }
  0x8e   : > { %11091 = vmatpush3.bf16.msra.mxu1 %v12344_v20  ;;  %v610_v20 = vshrl.u32 %v590_v14, 16  ;;  %v634_v42 = vsel %vm13189_vm5, %v9774_v5, %v633_v19  ;;  %v1767_v14 = vshll.u32 %v9869_v32, 16  ;;  %v636_v5 = vshrl.u32 %v594_v17, 16 }
  0x8f   : > { %11187 = vmatpush3.bf16.msra.mxu0 %v12345_v24  ;;  %11092 = vmatprep.subr.bf16.mxu1 %v12346_v34  ;;  %v12352_v24 = vld [vmem:[%s15594_s1 + $0x28] sm:$0xff]  }
  0x90   : > { %11188 = vmatprep.subr.bf16.mxu0 %v12347_v38  ;;  %v9773_v4 = vrot.slane %v610_v20, 11  ;;  %v1761_v20 = vrot.slane %v1759_v43, 5 }
  0x91   : > { %11085 = vmatmul.mubr.bf16.gmra.mrb[4].mxu1 %v9784_v52 }
  0x92   : > { %11093 = vmatpush3.bf16.msra.mxu1 %v12346_v34  ;;  %11181 = vmatmul.mubr.bf16.gmra.mrb[4].mxu0 %v9858_v2  ;;  %v9870_v34 = vld [vmem:[%s13016_s20 + $0x20] sm:$0x1]  ;;  %v621_v40 = vsel %vm13189_vm5, %v9773_v4, %v620_v18  ;;  %v1755_v2 = vrot.slane %v1753_v39, 5  ;;  %v12357_v18 = vld [vmem:[%s15594_s1 + $0x170] sm:$0xff]   ;;  %v596_v4 = vld [vmem:[%s13016_s20 + $0x24] sm:$0x8] }
  0x93   : > { %11189 = vmatpush3.bf16.msra.mxu0 %v12347_v38  ;;  %11094 = vmatprep.subr.bf16.mxu1 %v12348_v47  ;;  %v1750_v38 = vshrl.u32 %v9867_v6, 16  ;;  %v1773_v22 = vshll.u32 %v9870_v34, 16  ;;  %v646_v6 = vor.u32 %v644_v26, %v13103_v29  ;;  %v9872_v39 = vld [vmem:[%s13016_s20 + $0x2c] sm:$0x1]  ;;  %v709_v34 = vshll.u32 %v13142_v49, 16  ;;  %v12370_v49 = vld [vmem:[%s15594_s1 + $0xa0] sm:$0xff]  }
  0x94   : > { %11190 = vmatprep.subr.bf16.mxu0 %v12349_v50  ;;  %v9775_v29 = vrot.slane %v636_v5, 11 }
  0x95   : > { %v1752_v52 = vrot.slane %v1750_v38, 4  ;;  %v9871_v38 = vld [vmem:[%s13016_s20 + $0x28] sm:$0xf]  ;;  %v1775_v26 = vrot.slane %v1773_v22, 5  ;;  %v1787_v22 = vshll.u32 %v9872_v39, 16 }
  0x96   : > { %11095 = vmatpush3.bf16.msra.mxu1 %v12348_v47  ;;  %v1764_v47 = vshrl.u32 %v9869_v32, 16  ;;  %v1769_v32 = vrot.slane %v1767_v14, 5  ;;  %v1781_v17 = vshll.u32 %v9871_v38, 16  ;;  %v647_v39 = vsel %vm13189_vm5, %v9775_v29, %v646_v6 }
  0x97   : > { %11191 = vmatpush3.bf16.msra.mxu0 %v12349_v50  ;;  %11096 = vmatprep.subr.bf16.mxu1 %v12350_v63  ;;  %v9793_v50 = vcombine.low %v621_v40, %v634_v42  ;;  %v1756_v31 = vor.u32 %v1755_v2, %v1752_v52  ;;  %v13217_v40 = vrot.slane %v693_v13, 7  ;;  %v659_v42 = vor.u32 %v657_v30, %v13109_v33  ;;  %v12360_v13 = vld [vmem:[%s15594_s1 + $0x38] sm:$0xff]  }
  0x98   : > { %11192 = vmatprep.subr.bf16.mxu0 %v12351_v7  ;;  %v1766_v19 = vrot.slane %v1764_v47, 4  ;;  %v1778_v52 = vshrl.u32 %v9871_v38, 16  ;;  %v12361_v2 = vld [vmem:[%s15594_s1 + $0x178] sm:$0xff]   ;;  %v1783_v5 = vrot.slane %v1781_v17, 5 }
  0x99   : > { %11104 = vmatprep.mubr.bf16.mxu1 %v9793_v50  ;;  %v1757_v43 = vrot.slane %v1756_v31, 4  ;;  %v9874_v50 = vld [vmem:[%s13016_s20 + $0x38] sm:$0x1] }
  0x9a   : > { %11097 = vmatpush3.bf16.msra.mxu1 %v12350_v63  ;;  %v649_v63 = vshrl.u32 %v596_v4, 16  ;;  %v1770_v47 = vor.u32 %v1769_v32, %v1766_v19  ;;  %v1780_v33 = vrot.slane %v1778_v52, 4  ;;  %v1399_v19 = vshrl.u32 %v13151_v53, 16 }
  0x9b   : > { %11193 = vmatpush3.bf16.msra.mxu0 %v12351_v7  ;;  %11098 = vmatprep.subr.bf16.mxu1 %v12352_v24  ;;  %v9873_v7 = vld [vmem:[%s13016_s20 + $0x34] sm:$0xf]  ;;  %v1762_v9 = vsel %vm13222_vm8, %v1757_v43, %v1761_v20  ;;  %v1801_v38 = vshll.u32 %v9874_v50, 16  ;;  %v1412_v52 = vshrl.u32 %v13154_v56, 16 }
  0x9c   : > { %11194 = vmatprep.subr.bf16.mxu0 %v12353_v55  ;;  %v9776_v14 = vrot.slane %v649_v63, 11  ;;  %v1792_v4 = vshrl.u32 %v9873_v7, 16  ;;  %v1771_v30 = vrot.slane %v1770_v47, 4  ;;  %v1795_v63 = vshll.u32 %v9873_v7, 16  ;;  %v12362_v47 = vld [vmem:[%s15594_s1 + $0x80] sm:$0xff]  }
  0x9d   : > { %v1784_v43 = vor.u32 %v1783_v5, %v1780_v33  ;;  %v1789_v7 = vrot.slane %v1787_v22, 5  ;;  %v1803_v29 = vrot.slane %v1801_v38, 5  ;;  %v12364_v22 = vld [vmem:[%s15594_s1 + $0x88] sm:$0xff]  }
  0x9e   : > { %11099 = vmatpush3.bf16.msra.mxu1 %v12352_v24  ;;  %v1402_v24 = vshll.u32 %v13151_v53, 16  ;;  %v1794_v31 = vrot.slane %v1792_v4, 4  ;;  %v1776_v32 = vsel %vm13222_vm8, %v1771_v30, %v1775_v26  ;;  %v660_v20 = vsel %vm13189_vm5, %v9776_v14, %v659_v42  ;;  %v12363_v26 = vld [vmem:[%s15594_s1 + $0x180] sm:$0xff]   ;;  %v12393_v53 = vld [vmem:[%s15594_s1 + $0x1f8] sm:$0xff]  }
  0x9f   : > { %11195 = vmatpush3.bf16.msra.mxu0 %v12353_v55  ;;  %11100 = vmatprep.subr.bf16.mxu1 %v12355_v48  ;;  %v9883_v55 = vcombine.low %v1762_v9, %v1776_v32  ;;  %v1785_v6 = vrot.slane %v1784_v43, 4  ;;  %v9794_v42 = vcombine.low %v647_v39, %v660_v20  ;;  %v1415_v4 = vshll.u32 %v13154_v56, 16  ;;  %v9877_v39 = vld [vmem:[%s13016_s20 + $0x94] sm:$0xf]  ;;  %v9878_v20 = vld [vmem:[%s13016_s20 + $0x98] sm:$0x1] }
  0xa0   : > { %11196 = vmatprep.subr.bf16.mxu0 %v12357_v18  ;;  %v672_v9 = vor.u32 %v670_v51, %v13156_v57  ;;  %v13275_v32 = vrot.slane %v1399_v19, 7  ;;  %v9875_v51 = vld [vmem:[%s13016_s20 + $0x88] sm:$0xf]  ;;  %v9876_v57 = vld [vmem:[%s13016_s20 + $0x8c] sm:$0x1] }
  0xa1   : > { %11200 = vmatprep.mubr.bf16.mxu0 %v9883_v55  ;;  %v1790_v14 = vsel %vm13222_vm8, %v1785_v6, %v1789_v7  ;;  %v1806_v43 = vshrl.u32 %v9875_v51, 16  ;;  %v1809_v28 = vshll.u32 %v9875_v51, 16  ;;  %v1823_v7 = vshll.u32 %v9877_v39, 16  ;;  %v12367_v6 = vld [vmem:[%s15594_s1 + $0x190] sm:$0xff]  }
  0xa2   : > { %11101 = vmatpush3.bf16.msra.mxu1 %v12355_v48  ;;  %v1797_v48 = vrot.slane %v1795_v63, 5 }
  0xa3   : > { %11197 = vmatpush3.bf16.msra.mxu0 %v12357_v18  ;;  %11102 = vmatprep.subr.bf16.mxu1 %v12360_v13  ;;  %v708_v18 = vrot.slane %v706_v54, 7  ;;  %v12365_v54 = vld [vmem:[%s15594_s1 + $0x188] sm:$0xff]  }
  0xa4   : > { %11198 = vmatprep.subr.bf16.mxu0 %v12361_v2  ;;  %v1798_v50 = vor.u32 %v1797_v48, %v1794_v31  ;;  %v685_v31 = vor.u32 %v683_v61, %v13158_v60  ;;  %v1815_v60 = vshll.u32 %v9876_v57, 16  ;;  %v1820_v61 = vshrl.u32 %v9877_v39, 16 }
  0xa5   : > { %v1829_v48 = vshll.u32 %v9878_v20, 16  ;;  %v711_v44 = vor.u32 %v709_v34, %v708_v18 }
  0xa6   : > { %11103 = vmatpush3.bf16.msra.mxu1 %v12360_v13  ;;  %v1799_v17 = vrot.slane %v1798_v50, 4  ;;  %v598_v13 = vld [vmem:[%s13016_s20 + $0x78] sm:$0x8]  ;;  %v1811_v50 = vrot.slane %v1809_v28, 5 }
  0xa7   : > { %11199 = vmatpush3.bf16.msra.mxu0 %v12361_v2  ;;  %11112 = vmatprep.subr.bf16.mxu1 %v12362_v47  ;;  %v600_v2 = vld [vmem:[%s13016_s20 + $0x84] sm:$0x8]  ;;  %v662_v33 = vshrl.u32 %v598_v13, 16  ;;  %v1822_v13 = vrot.slane %v1820_v61, 4 }
  0xa8   : > { %11208 = vmatprep.subr.bf16.mxu0 %v12363_v26  ;;  %v1804_v30 = vsel %vm13222_vm8, %v1799_v17, %v1803_v29  ;;  %v675_v5 = vshrl.u32 %v600_v2, 16  ;;  %v12368_v29 = vld [vmem:[%s15594_s1 + $0x98] sm:$0xff]   ;;  %v698_v17 = vor.u32 %v696_v27, %v13217_v40  ;;  %v1825_v2 = vrot.slane %v1823_v7, 5  ;;  %v9879_v27 = vld [vmem:[%s13016_s20 + $0xa0] sm:$0xf] }
  0xa9   : > { %11105 = vmatmul.mubr.bf16.vlgmr.msra.gmra.mrb[0].mxu1 %v9794_v42  ;;  %v9884_v63 = vcombine.low %v1790_v14, %v1804_v30  ;;  %v9777_v38 = vrot.slane %v662_v33, 11  ;;  %v1808_v42 = vrot.slane %v1806_v43, 4  ;;  %v602_v14 = vld [vmem:[%s13016_s20 + $0x90] sm:$0x8]  ;;  %v12369_v33 = vld [vmem:[%s15594_s1 + $0x198] sm:$0xff]   ;;  %v1834_v39 = vshrl.u32 %v9879_v27, 16 }
  0xaa   : > { %11113 = vmatpush3.bf16.msra.mxu1 %v12362_v47  ;;  %v9778_v55 = vrot.slane %v675_v5, 11  ;;  %v688_v30 = vshrl.u32 %v602_v14, 16  ;;  %v9880_v40 = vld [vmem:[%s13016_s20 + $0xa4] sm:$0x1]  ;;  %v1826_v51 = vor.u32 %v1825_v2, %v1822_v13  ;;  %v1837_v28 = vshll.u32 %v9879_v27, 16 }
  0xab   : > { %11114 = vmatprep.subr.bf16.mxu1 %v12364_v22  ;;  %11201 = vmatmul.mubr.bf16.vlgmr.msra.gmra.mrb[0].mxu0 %v9884_v63  ;;  %v673_v19 = vsel %vm13189_vm5, %v9777_v38, %v672_v9  ;;  %v604_v9 = vld [vmem:[%s13016_s20 + $0x9c] sm:$0x8]  ;;  %v1812_v5 = vor.u32 %v1811_v50, %v1808_v42  ;;  %v9881_v38 = vld [vmem:[%s13016_s20 + $0xac] sm:$0xf]  ;;  %v1011_v13 = vld [vmem:[%s13016_s20 + $0x4] sm:$0xf] }
  0xac   : > { %11209 = vmatpush3.bf16.msra.mxu0 %v12363_v26  ;;  %v686_v47 = vsel %vm13189_vm5, %v9778_v55, %v685_v31  ;;  %v1831_v31 = vrot.slane %v1829_v48, 5  ;;  %v701_v63 = vshrl.u32 %v604_v9, 16  ;;  %v9779_v57 = vrot.slane %v688_v30, 11  ;;  %v9882_v55 = vld [vmem:[%s13016_s20 + $0xb0] sm:$0x1] }
  0xad   : > { %11210 = vmatprep.subr.bf16.mxu0 %v12365_v54  ;;  %v9795_v26 = vcombine.low %v673_v19, %v686_v47  ;;  %v1813_v20 = vrot.slane %v1812_v5, 4  ;;  %v1827_v34 = vrot.slane %v1826_v51, 4  ;;  %v1848_v61 = vshrl.u32 %v9881_v38, 16  ;;  %v1013_v5 = vld [vmem:[%s13016_s20 + $0x10] sm:$0xf] }
  0xae   : > { %11115 = vmatpush3.bf16.msra.mxu1 %v12364_v22  ;;  %v1817_v22 = vrot.slane %v1815_v60, 5  ;;  %v9780_v43 = vrot.slane %v701_v63, 11  ;;  %v1843_v60 = vshll.u32 %v9880_v40, 16  ;;  %v699_v18 = vsel %vm13189_vm5, %v9779_v57, %v698_v17  ;;  %v1014_v63 = vld [vmem:[%s13016_s20 + $0x14] sm:$0x1] }
  0xaf   : > { %11116 = vmatprep.subr.bf16.mxu1 %v12366_v25  ;;  %11108 = vmatprep.mubr.bf16.mxu1 %v9795_v26  ;;  %v1839_v7 = vrot.slane %v1837_v28, 5  ;;  %v12372_v26 = vld [vmem:[%s15594_s1 + $0xa8] sm:$0xff]   ;;  %v1832_v42 = vsel %vm13222_vm8, %v1827_v34, %v1831_v31  ;;  %v1850_v14 = vrot.slane %v1848_v61, 4  ;;  %v1851_v17 = vshll.u32 %v9881_v38, 16  ;;  %v13336_v61 = vld [vmem:[%s13016_s20 + $0x1c] sm:$0xf] }
  0xb0   : > { %11211 = vmatpush3.bf16.msra.mxu0 %v12365_v54  ;;  %v1836_v54 = vrot.slane %v1834_v39, 4  ;;  %v1818_v19 = vsel %vm13222_vm8, %v1813_v20, %v1817_v22  ;;  %v712_v47 = vsel %vm13189_vm5, %v9780_v43, %v711_v44  ;;  %v1845_v48 = vrot.slane %v1843_v60, 5  ;;  %v1012_v22 = vld [vmem:[%s13016_s20 + $0x8] sm:$0x1]  ;;  %v9897_v60 = vld [vmem:[%s13016_s20 + $0x18] sm:$0x8] }
  0xb1   : > { %11212 = vmatprep.subr.bf16.mxu0 %v12367_v6  ;;  %v9796_v50 = vcombine.low %v699_v18, %v712_v47  ;;  %v9885_v2 = vcombine.low %v1818_v19, %v1832_v42  ;;  %v1857_v30 = vshll.u32 %v9882_v55, 16  ;;  %v1853_v44 = vrot.slane %v1851_v17, 5  ;;  %v12373_v55 = vld [vmem:[%s15594_s1 + $0x1a8] sm:$0xff]   ;;  %v12374_v19 = vld [vmem:[%s15594_s1 + $0xb0] sm:$0xff]  }
  0xb2   : > { %11117 = vmatpush3.bf16.msra.mxu1 %v12366_v25  ;;  %v12371_v25 = vld [vmem:[%s15594_s1 + $0x1a0] sm:$0xff]   ;;  %v1840_v9 = vor.u32 %v1839_v7, %v1836_v54  ;;  %v1034_v27 = vshll.u32 %v1011_v13, 16  ;;  %v1040_v40 = vshll.u32 %v1012_v22, 16  ;;  %v1045_v31 = vshrl.u32 %v1013_v5, 16  ;;  %v13343_v42 = vld [vmem:[%s13016_s20 + $0x28] sm:$0xf] }
  0xb3   : > { %11118 = vmatprep.subr.bf16.mxu1 %v12368_v29  ;;  %11109 = vmatmul.mubr.bf16.gmra.mrb[4].mxu1 %v9796_v50  ;;  %v1859_v57 = vrot.slane %v1857_v30, 5  ;;  %v1854_v39 = vor.u32 %v1853_v44, %v1850_v14  ;;  %v1054_v54 = vshll.u32 %v1014_v63, 16  ;;  %v2035_v50 = vshrl.u32 %v9897_v60, 16  ;;  %v12375_v22 = vld [vmem:[%s15594_s1 + $0x1b0] sm:$0xff]   ;;  %v1018_v60 = vld [vmem:[%s13016_s20 + $0x2c] sm:$0x1] }
  0xb4   : > { %11213 = vmatpush3.bf16.msra.mxu0 %v12367_v6  ;;  %v1031_v6 = vshrl.u32 %v1011_v13, 16  ;;  %11204 = vmatprep.mubr.bf16.mxu0 %v9885_v2  ;;  %v1841_v51 = vrot.slane %v1840_v9, 4  ;;  %v1036_v20 = vrot.slane %v1034_v27, 5  ;;  %v1042_v43 = vrot.slane %v1040_v40, 5  ;;  %v1015_v40 = vld [vmem:[%s13016_s20 + $0x1c] sm:$0xf] }
  0xb5   : > { %11214 = vmatprep.subr.bf16.mxu0 %v12369_v33  ;;  %v1047_v28 = vrot.slane %v1045_v31, 4  ;;  %v1855_v47 = vrot.slane %v1854_v39, 4  ;;  %v1056_v17 = vrot.slane %v1054_v54, 5  ;;  %v9913_v30 = vrot.slane %v2035_v50, 11  ;;  %v12377_v39 = vld [vmem:[%s15594_s1 + $0x1b8] sm:$0xff]  }
  0xb6   : > { %11119 = vmatpush3.bf16.msra.mxu1 %v12368_v29  ;;  %v1033_v38 = vrot.slane %v1031_v6, 4  ;;  %v1048_v29 = vshll.u32 %v1013_v5, 16  ;;  %v1846_v34 = vsel %vm13222_vm8, %v1841_v51, %v1845_v48  ;;  %v2043_v48 = vshll.u32 %v13336_v61, 16  ;;  %v12376_v6 = vld [vmem:[%s15594_s1 + $0xb8] sm:$0xff]   ;;  %v13372_v50 = vld [vmem:[%s13016_s20 + $0x34] sm:$0xf] }
  0xb7   : > { %11120 = vmatprep.subr.bf16.mxu1 %v12370_v49  ;;  %v1860_v2 = vsel %vm13222_vm8, %v1855_v47, %v1859_v57  ;;  %v2053_v27 = vshrl.u32 %v13343_v42, 16  ;;  %v2056_v57 = vshll.u32 %v13343_v42, 16 }
  0xb8   : > { %11215 = vmatpush3.bf16.msra.mxu0 %v12369_v33  ;;  %v1050_v18 = vrot.slane %v1048_v29, 5  ;;  %v9899_v33 = vld [vmem:[%s13016_s20 + $0x24] sm:$0x8]  ;;  %v1037_v7 = vor.u32 %v1036_v20, %v1033_v38  ;;  %v9886_v63 = vcombine.low %v1846_v34, %v1860_v2  ;;  %v1017_v38 = vld [vmem:[%s13016_s20 + $0x28] sm:$0xf]  ;;  %v1059_v29 = vshrl.u32 %v1015_v40, 16 }
  0xb9   : > { %11216 = vmatprep.subr.bf16.mxu0 %v12371_v25  ;;  %v2048_v13 = vshrl.u32 %v9899_v33, 16  ;;  %v1062_v34 = vshll.u32 %v1015_v40, 16  ;;  %v1073_v47 = vshrl.u32 %v1017_v38, 16  ;;  %v2069_v40 = vshll.u32 %v13372_v50, 16 }
  0xba   : > { %11121 = vmatpush3.bf16.msra.mxu1 %v12370_v49  ;;  %v2040_v49 = vshrl.u32 %v13336_v61, 16  ;;  %v1051_v14 = vor.u32 %v1050_v18, %v1047_v28  ;;  %v1038_v9 = vrot.slane %v1037_v7, 4  ;;  %11205 = vmatmul.mubr.bf16.gmra.mrb[4].mxu0 %v9886_v63  ;;  %v2055_v28 = vrot.slane %v2053_v27, 7  ;;  %v9901_v7 = vld [vmem:[%s13016_s20 + $0x30] sm:$0x8] }
  0xbb   : > { %11122 = vmatprep.subr.bf16.mxu1 %v12372_v26  ;;  %v9914_v44 = vrot.slane %v2048_v13, 11  ;;  %v1061_v33 = vrot.slane %v1059_v29, 4  ;;  %v9903_v13 = vld [vmem:[%s13016_s20 + $0x3c] sm:$0x8]  ;;  %v1075_v2 = vrot.slane %v1073_v47, 4  ;;  %v2066_v63 = vshrl.u32 %v13372_v50, 16 }
  0xbc   : > { %11217 = vmatpush3.bf16.msra.mxu0 %v12371_v25  ;;  %v2042_v5 = vrot.slane %v2040_v49, 7  ;;  %v1052_v25 = vrot.slane %v1051_v14, 4  ;;  %v1043_v31 = vsel %vm13222_vm8, %v1038_v9, %v1042_v43  ;;  %v12378_v49 = vld [vmem:[%s15594_s1 + $0xc0] sm:$0xff]   ;;  %v2058_v14 = vor.u32 %v2056_v57, %v2055_v28 }
  0xbd   : > { %11218 = vmatprep.subr.bf16.mxu0 %v12373_v55  ;;  %v1082_v9 = vshll.u32 %v1018_v60, 16  ;;  %v2074_v28 = vshrl.u32 %v9903_v13, 16  ;;  %v13391_v60 = vrot.slane %v1412_v52, 7  ;;  %v12380_v52 = vld [vmem:[%s15594_s1 + $0xc8] sm:$0xff]   ;;  %v1019_v13 = vld [vmem:[%s13016_s20 + $0x7c] sm:$0xf] }
  0xbe   : > { %11123 = vmatpush3.bf16.msra.mxu1 %v12372_v26  ;;  %v2045_v51 = vor.u32 %v2043_v48, %v2042_v5  ;;  %v1016_v26 = vld [vmem:[%s13016_s20 + $0x20] sm:$0x1]  ;;  %v1057_v20 = vsel %vm13222_vm8, %v1052_v25, %v1056_v17  ;;  %v1064_v17 = vrot.slane %v1062_v34, 5  ;;  %v2061_v5 = vshrl.u32 %v9901_v7, 16 }
  0xbf   : > { %11124 = vmatprep.subr.bf16.mxu1 %v12374_v19  ;;  %v1068_v43 = vshll.u32 %v1016_v26, 16  ;;  %v9805_v18 = vcombine.low %v1043_v31, %v1057_v20  ;;  %v2068_v26 = vrot.slane %v2066_v63, 7  ;;  %v1087_v63 = vshrl.u32 %v1019_v13, 16 }
  0xc0   : > { %11219 = vmatpush3.bf16.msra.mxu0 %v12373_v55  ;;  %v2046_v54 = vsel %vm13189_vm5, %v9913_v30, %v2045_v51  ;;  %v1076_v55 = vshll.u32 %v1017_v38, 16  ;;  %v13379_v30 = vld [vmem:[%s13016_s20 + $0x40] sm:$0xf]  ;;  %v1065_v25 = vor.u32 %v1064_v17, %v1061_v33  ;;  %v1084_v51 = vrot.slane %v1082_v9, 5  ;;  %v12381_v17 = vld [vmem:[%s15594_s1 + $0x1c8] sm:$0xff]  }
  0xc1   : > { %11220 = vmatprep.subr.bf16.mxu0 %v12375_v22  ;;  %v1070_v48 = vrot.slane %v1068_v43, 5  ;;  %11128 = vmatprep.mubr.bf16.mxu1 %v9805_v18  ;;  %v9915_v57 = vrot.slane %v2061_v5, 11  ;;  %v12379_v38 = vld [vmem:[%s15594_s1 + $0x1c0] sm:$0xff]   ;;  %v2082_v34 = vshll.u32 %v13379_v30, 16  ;;  %v9916_v18 = vrot.slane %v2074_v28, 11 }
  0xc2   : > { %11125 = vmatpush3.bf16.msra.mxu1 %v12374_v19  ;;  %v2059_v19 = vsel %vm13189_vm5, %v9914_v44, %v2058_v14  ;;  %v1078_v27 = vrot.slane %v1076_v55, 5  ;;  %v1066_v29 = vrot.slane %v1065_v25, 4  ;;  %v2079_v44 = vshrl.u32 %v13379_v30, 16  ;;  %v12382_v55 = vld [vmem:[%s15594_s1 + $0xd0] sm:$0xff]   ;;  %v1021_v9 = vld [vmem:[%s13016_s20 + $0x88] sm:$0xf] }
  0xc3   : > { %11126 = vmatprep.subr.bf16.mxu1 %v12376_v6  ;;  %v9921_v31 = vcombine.low %v2046_v54, %v2059_v19  ;;  %v1022_v5 = vld [vmem:[%s13016_s20 + $0x8c] sm:$0x1]  ;;  %v1090_v19 = vshll.u32 %v1019_v13, 16  ;;  %v12383_v25 = vld [vmem:[%s15594_s1 + $0x1d0] sm:$0xff]   ;;  %v1025_v13 = vld [vmem:[%s13016_s20 + $0xa0] sm:$0xf] }
  0xc4   : > { %11221 = vmatpush3.bf16.msra.mxu0 %v12375_v22  ;;  %v1079_v20 = vor.u32 %v1078_v27, %v1075_v2  ;;  %v2071_v22 = vor.u32 %v2069_v40, %v2068_v26  ;;  %v2081_v54 = vrot.slane %v2079_v44, 7  ;;  %v1020_v2 = vld [vmem:[%s13016_s20 + $0x80] sm:$0x1]  ;;  %v1101_v40 = vshrl.u32 %v1021_v9, 16  ;;  %v13430_v28 = vld [vmem:[%s13016_s20 + $0x94] sm:$0xf] }
  0xc5   : > { %11222 = vmatprep.subr.bf16.mxu0 %v12377_v39  ;;  %11224 = vmatprep.mubr.bf16.mxu0 %v9921_v31  ;;  %v1096_v27 = vshll.u32 %v1020_v2, 16  ;;  %v1104_v31 = vshll.u32 %v1021_v9, 16  ;;  %v13427_v26 = vor.u32 %v1337_v16, %v13090_v23  ;;  %v9907_v44 = vld [vmem:[%s13016_s20 + $0x9c] sm:$0x8]  ;;  %v2092_v23 = vshrl.u32 %v13430_v28, 16  ;;  %v12386_v9 = vld [vmem:[%s15594_s1 + $0xe0] sm:$0xff]  }
  0xc6   : > { %11127 = vmatpush3.bf16.msra.mxu1 %v12376_v6  ;;  %v1071_v6 = vsel %vm13222_vm8, %v1066_v29, %v1070_v48  ;;  %v1080_v43 = vrot.slane %v1079_v20, 4  ;;  %v2072_v47 = vsel %vm13189_vm5, %v9915_v57, %v2071_v22  ;;  %v2084_v7 = vor.u32 %v2082_v34, %v2081_v54  ;;  %v9905_v57 = vld [vmem:[%s13016_s20 + $0x90] sm:$0x8] }
  0xc7   : > { %11136 = vmatprep.subr.bf16.mxu1 %v12378_v49  ;;  %v1089_v29 = vrot.slane %v1087_v63, 4  ;;  %v1092_v20 = vrot.slane %v1090_v19, 5  ;;  %v1098_v22 = vrot.slane %v1096_v27, 5  ;;  %v1103_v34 = vrot.slane %v1101_v40, 4  ;;  %v1026_v27 = vld [vmem:[%s13016_s20 + $0xa4] sm:$0x1] }
  0xc8   : > { %11223 = vmatpush3.bf16.msra.mxu0 %v12377_v39  ;;  %v1085_v33 = vsel %vm13222_vm8, %v1080_v43, %v1084_v51  ;;  %v2085_v39 = vsel %vm13189_vm5, %v9916_v18, %v2084_v7  ;;  %v1110_v51 = vshll.u32 %v1022_v5, 16  ;;  %v1023_v43 = vld [vmem:[%s13016_s20 + $0x94] sm:$0xf]  ;;  %v12385_v18 = vld [vmem:[%s15594_s1 + $0x1d8] sm:$0xff]  }
  0xc9   : > { %11232 = vmatprep.subr.bf16.mxu0 %v12379_v38  ;;  %v9806_v14 = vcombine.low %v1071_v6, %v1085_v33  ;;  %v9922_v48 = vcombine.low %v2072_v47, %v2085_v39  ;;  %v1106_v6 = vrot.slane %v1104_v31, 5  ;;  %v1093_v16 = vor.u32 %v1092_v20, %v1089_v29  ;;  %v1024_v7 = vld [vmem:[%s13016_s20 + $0x98] sm:$0x1]  ;;  %v12387_v29 = vld [vmem:[%s15594_s1 + $0x1e0] sm:$0xff]  }
  0xca   : > { %v1112_v58 = vrot.slane %v1110_v51, 5  ;;  %v1115_v2 = vshrl.u32 %v1023_v43, 16  ;;  %v1118_v40 = vshll.u32 %v1023_v43, 16  ;;  %v9911_v43 = vld [vmem:[%s13016_s20 + $0xb4] sm:$0x8] }
  0xcb   : > { %11129 = vmatmul.mubr.bf16.vlgmr.msra.gmra.mrb[0].mxu1 %v9806_v14  ;;  %11225 = vmatmul.mubr.bf16.vlgmr.msra.gmra.mrb[0].mxu0 %v9922_v48  ;;  %v1107_v54 = vor.u32 %v1106_v6, %v1103_v34  ;;  %v1094_v14 = vrot.slane %v1093_v16, 4  ;;  %v2094_v48 = vrot.slane %v2092_v23, 7  ;;  %v1129_v6 = vshrl.u32 %v1025_v13, 16  ;;  %v13462_v16 = vld [vmem:[%s13016_s20 + $0xac] sm:$0xf] }
  0xcc   : > { %11137 = vmatpush3.bf16.msra.mxu1 %v12378_v49  ;;  %v13422_v49 = vor.u32 %v1324_v15, %v13087_v21  ;;  %11233 = vmatpush3.bf16.msra.mxu0 %v12379_v38  ;;  %v13434_v15 = vld [vmem:[%s13016_s20 + $0xa0] sm:$0xf]  ;;  %v2087_v21 = vshrl.u32 %v9905_v57, 16  ;;  %v2095_v38 = vshll.u32 %v13430_v28, 16  ;;  %v1117_v51 = vrot.slane %v1115_v2, 4 }
  0xcd   : > { %11138 = vmatprep.subr.bf16.mxu1 %v12380_v52  ;;  %11234 = vmatprep.subr.bf16.mxu0 %v12381_v17  ;;  %v2105_v33 = vshrl.u32 %v13434_v15, 16  ;;  %v2108_v47 = vshll.u32 %v13434_v15, 16  ;;  %v1108_v5 = vrot.slane %v1107_v54, 4  ;;  %v1124_v57 = vshll.u32 %v1024_v7, 16  ;;  %v13468_v54 = vld [vmem:[%s13016_s20 + $0xb8] sm:$0xf] }
  0xce   : > { %v9917_v39 = vrot.slane %v2087_v21, 11  ;;  %v2097_v31 = vor.u32 %v2095_v38, %v2094_v48  ;;  %v1120_v34 = vrot.slane %v1118_v40, 5  ;;  %v1132_v38 = vshll.u32 %v1025_v13, 16 }
  0xcf   : > { %v2107_v19 = vrot.slane %v2105_v33, 7  ;;  %v1113_v20 = vsel %vm13222_vm8, %v1108_v5, %v1112_v58  ;;  %v1126_v23 = vrot.slane %v1124_v57, 5  ;;  %v1131_v33 = vrot.slane %v1129_v6, 4 }
  0xd0   : > { %11139 = vmatpush3.bf16.msra.mxu1 %v12380_v52  ;;  %v2100_v52 = vshrl.u32 %v9907_v44, 16  ;;  %11235 = vmatpush3.bf16.msra.mxu0 %v12381_v17  ;;  %v1099_v17 = vsel %vm13222_vm8, %v1094_v14, %v1098_v22  ;;  %v2098_v21 = vsel %vm13189_vm5, %v9917_v39, %v2097_v31  ;;  %v1134_v14 = vrot.slane %v1132_v38, 5 }
  0xd1   : > { %11140 = vmatprep.subr.bf16.mxu1 %v12382_v55  ;;  %11236 = vmatprep.subr.bf16.mxu0 %v12383_v25  ;;  %v2110_v44 = vor.u32 %v2108_v47, %v2107_v19  ;;  %v9807_v22 = vcombine.low %v1099_v17, %v1113_v20  ;;  %v1138_v47 = vshll.u32 %v1026_v27, 16  ;;  %v2118_v48 = vshrl.u32 %v13462_v16, 16  ;;  %v9819_v20 = vld [vmem:[%s13016_s20 + $0xc] sm:$0x8] }
  0xd2   : > { %v9918_v63 = vrot.slane %v2100_v52, 11  ;;  %v1121_v52 = vor.u32 %v1120_v34, %v1117_v51  ;;  %v2121_v5 = vshll.u32 %v13462_v16, 16  ;;  %v1135_v19 = vor.u32 %v1134_v14, %v1131_v33  ;;  %v9827_v33 = vld [vmem:[%s13016_s20 + $0x84] sm:$0x8] }
  0xd3   : > { %11132 = vmatprep.mubr.bf16.mxu1 %v9807_v22  ;;  %v1140_v2 = vrot.slane %v1138_v47, 5  ;;  %v2120_v40 = vrot.slane %v2118_v48, 7  ;;  %v2131_v17 = vshrl.u32 %v13468_v54, 16  ;;  %v1352_v31 = vor.u32 %v1350_v37, %v13126_v41  ;;  %v12390_v37 = vld [vmem:[%s15594_s1 + $0xf0] sm:$0xff]  }
  0xd4   : > { %11141 = vmatpush3.bf16.msra.mxu1 %v12382_v55  ;;  %v9909_v55 = vld [vmem:[%s13016_s20 + $0xa8] sm:$0x8]  ;;  %11237 = vmatpush3.bf16.msra.mxu0 %v12383_v25  ;;  %v2111_v58 = vsel %vm13189_vm5, %v9918_v63, %v2110_v44  ;;  %v1122_v13 = vrot.slane %v1121_v52, 4  ;;  %v2126_v63 = vshrl.u32 %v9911_v43, 16  ;;  %v2134_v57 = vshll.u32 %v13468_v54, 16  ;;  %v12391_v43 = vld [vmem:[%s15594_s1 + $0x1f0] sm:$0xff]  }
  0xd5   : > { %11142 = vmatprep.subr.bf16.mxu1 %v12384_v59  ;;  %11238 = vmatprep.subr.bf16.mxu0 %v12385_v18  ;;  %v12388_v25 = vld [vmem:[%s15594_s1 + $0xe8] sm:$0xff]   ;;  %v9923_v7 = vcombine.low %v2098_v21, %v2111_v58  ;;  %v2113_v39 = vshrl.u32 %v9909_v55, 16  ;;  %v1136_v44 = vrot.slane %v1135_v19, 4  ;;  %v2123_v34 = vor.u32 %v2121_v5, %v2120_v40  ;;  %v9821_v55 = vld [vmem:[%s13016_s20 + $0x18] sm:$0x8] }
  0xd6   : > { %v9920_v51 = vrot.slane %v2126_v63, 11  ;;  %v2133_v6 = vrot.slane %v2131_v17, 7  ;;  %v1316_v22 = vshrl.u32 %v9819_v20, 16  ;;  %v1329_v41 = vshrl.u32 %v9821_v55, 16  ;;  %v9823_v21 = vld [vmem:[%s13016_s20 + $0x24] sm:$0x8] }
  0xd7   : > { %11228 = vmatprep.mubr.bf16.mxu0 %v9923_v7  ;;  %v9919_v27 = vrot.slane %v2113_v39, 11  ;;  %v1391_v38 = vor.u32 %v1389_v1, %v13173_v10  ;;  %v1141_v12 = vsel %vm13222_vm8, %v1136_v44, %v1140_v2  ;;  %v1342_v1 = vshrl.u32 %v9823_v21, 16  ;;  %v9829_v47 = vld [vmem:[%s13016_s20 + $0x90] sm:$0x8]  ;;  %v12396_v17 = vld [vmem:[%s15594_s1 + $0x200] sm:$0xff]  }
  0xd8   : > { %11143 = vmatpush3.bf16.msra.mxu1 %v12384_v59  ;;  %11239 = vmatpush3.bf16.msra.mxu0 %v12385_v18  ;;  %v12389_v59 = vld [vmem:[%s15594_s1 + $0x1e8] sm:$0xff]   ;;  %v1127_v18 = vsel %vm13222_vm8, %v1122_v13, %v1126_v23  ;;  %v9825_v23 = vld [vmem:[%s13016_s20 + $0x30] sm:$0x8]  ;;  %v2136_v46 = vor.u32 %v2134_v57, %v2133_v6  ;;  %v9835_v35 = vrot.slane %v1316_v22, 11  ;;  %v9933_v52 = vcombine.low %v13336_v61, %v13343_v42  ;;  %v9831_v13 = vld [vmem:[%s13016_s20 + $0x9c] sm:$0x8] }
  0xd9   : > { %11144 = vmatprep.subr.bf16.mxu1 %v12386_v9  ;;  %11240 = vmatprep.subr.bf16.mxu0 %v12387_v29  ;;  %v2124_v45 = vsel %vm13189_vm5, %v9919_v27, %v2123_v34  ;;  %v1355_v10 = vshrl.u32 %v9825_v23, 16  ;;  %v1404_v7 = vor.u32 %v1402_v24, %v13275_v32  ;;  %v9837_v39 = vrot.slane %v1342_v1, 11  ;;  %v9945_v34 = vld [vmem:[%s13016_s20 + $0x1c] sm:$0xf]  ;;  %v9946_v6 = vld [vmem:[%s13016_s20 + $0x20] sm:$0x1] }
  0xda   : > { %v1327_v58 = vsel %vm13189_vm5, %v9835_v35, %v13422_v49  ;;  %v9833_v49 = vld [vmem:[%s13016_s20 + $0xa8] sm:$0x8]  ;;  %v1368_v61 = vshrl.u32 %v9827_v33, 16  ;;  %v1381_v42 = vshrl.u32 %v9829_v47, 16  ;;  %v1394_v5 = vshrl.u32 %v9831_v13, 16 }
  0xdb   : > { %v9838_v48 = vrot.slane %v1355_v10, 11  ;;  %v1353_v24 = vsel %vm13189_vm5, %v9837_v39, %v1352_v31  ;;  %v1417_v63 = vor.u32 %v1415_v4, %v13391_v60  ;;  %v9934_v20 = vcombine.low %v13372_v50, %v13379_v30  ;;  %v9947_v55 = vld [vmem:[%s13016_s20 + $0x28] sm:$0xf]  ;;  %v9948_v22 = vld [vmem:[%s13016_s20 + $0x2c] sm:$0x1] }
  0xdc   : > { %11145 = vmatpush3.bf16.msra.mxu1 %v12386_v9  ;;  %v1378_v9 = vor.u32 %v1376_v62, %v13165_v0  ;;  %11241 = vmatpush3.bf16.msra.mxu0 %v12387_v29  ;;  %v9808_v62 = vcombine.low %v1127_v18, %v1141_v12  ;;  %v9836_v0 = vrot.slane %v1329_v41, 11  ;;  %v2137_v29 = vsel %vm13189_vm5, %v9920_v51, %v2136_v46  ;;  %v12397_v18 = vld [vmem:[%s15594_s1 + $0x208] sm:$0xff]   ;;  %v9953_v50 = vld [vmem:[%s13016_s20 + $0x94] sm:$0xf]  ;;  %v9954_v30 = vld [vmem:[%s13016_s20 + $0x98] sm:$0x1] }
  0xdd   : > { %11146 = vmatprep.subr.bf16.mxu1 %v12388_v25  ;;  %11242 = vmatprep.subr.bf16.mxu0 %v12389_v59  ;;  %v9924_v14 = vcombine.low %v2124_v45, %v2137_v29  ;;  %v1366_v32 = vsel %vm13189_vm5, %v9838_v48, %v1365_v11  ;;  %v9839_v19 = vrot.slane %v1368_v61, 11  ;;  %v9840_v27 = vrot.slane %v1381_v42, 11  ;;  %v12401_v61 = vld [vmem:[%s15594_s1 + $0x218] sm:$0xff]  }
  0xde   : > { %11133 = vmatmul.mubr.bf16.gmra.mrb[4].mxu1 %v9808_v62  ;;  %v9841_v40 = vrot.slane %v1394_v5, 11  ;;  %v2469_v11 = vshrl.u32 %v9945_v34, 16  ;;  %v2478_v41 = vshll.u32 %v9946_v6, 16  ;;  %v2483_v21 = vshrl.u32 %v9947_v55, 16 }
  0xdf   : > { %11229 = vmatmul.mubr.bf16.gmra.mrb[4].mxu0 %v9924_v14  ;;  %v1379_v56 = vsel %vm13189_vm5, %v9839_v19, %v1378_v9  ;;  %v1392_v4 = vsel %vm13189_vm5, %v9840_v27, %v1391_v38  ;;  %v9935_v3 = vcombine.low %v13430_v28, %v13434_v15  ;;  %v2486_v23 = vshll.u32 %v9947_v55, 16  ;;  %v12400_v28 = vld [vmem:[%s15594_s1 + $0x210] sm:$0xff]   ;;  %v9959_v27 = vld [vmem:[%s13016_s20 + $0xb8] sm:$0xf] }
  0xe0   : > { %11147 = vmatpush3.bf16.msra.mxu1 %v12388_v25  ;;  %v1340_v25 = vsel %vm13189_vm5, %v9836_v0, %v13427_v26  ;;  %11243 = vmatpush3.bf16.msra.mxu0 %v12389_v59  ;;  %v1407_v26 = vshrl.u32 %v9833_v49, 16  ;;  %v9844_v59 = vcombine.low %v1353_v24, %v1366_v32  ;;  %v1405_v60 = vsel %vm13189_vm5, %v9841_v40, %v1404_v7  ;;  %v12402_v40 = vld [vmem:[%s15594_s1 + $0x220] sm:$0xff]  }
  0xe1   : > { %11148 = vmatprep.subr.bf16.mxu1 %v12390_v37  ;;  %v9843_v2 = vcombine.low %v1327_v58, %v1340_v25  ;;  %11244 = vmatprep.subr.bf16.mxu0 %v12391_v43  ;;  %v9845_v51 = vcombine.low %v1379_v56, %v1392_v4  ;;  %v2492_v9 = vshll.u32 %v9948_v22, 16  ;;  %v2471_v38 = vrot.slane %v2469_v11, 4  ;;  %v9958_v11 = vld [vmem:[%s13016_s20 + $0xb0] sm:$0x1] }
  0xe2   : > { %11248 = vmatprep.mubr.bf16.mxu0 %v9933_v52  ;;  %v9842_v31 = vrot.slane %v1407_v26, 11  ;;  %v2480_v45 = vrot.slane %v2478_v41, 5  ;;  %v2485_v46 = vrot.slane %v2483_v21, 4  ;;  %v2488_v35 = vrot.slane %v2486_v23, 5  ;;  %v9949_v26 = vld [vmem:[%s13016_s20 + $0x34] sm:$0xf] }
  0xe3   : > { %11152 = vmatprep.mubr.bf16.mxu1 %v9843_v2  ;;  %v2494_v62 = vrot.slane %v2492_v9, 5  ;;  %v2525_v0 = vshrl.u32 %v9953_v50, 16  ;;  %v2528_v1 = vshll.u32 %v9953_v50, 16  ;;  %v2534_v10 = vshll.u32 %v9954_v30, 16  ;;  %v9950_v50 = vld [vmem:[%s13016_s20 + $0x38] sm:$0x1] }
  0xe4   : > { %11149 = vmatpush3.bf16.msra.mxu1 %v12390_v37  ;;  %11245 = vmatpush3.bf16.msra.mxu0 %v12391_v43  ;;  %v1418_v57 = vsel %vm13189_vm5, %v9842_v31, %v1417_v63  ;;  %v2472_v37 = vshll.u32 %v9945_v34, 16  ;;  %v9955_v43 = vld [vmem:[%s13016_s20 + $0xa0] sm:$0xf]  ;;  %v2489_v52 = vor.u32 %v2488_v35, %v2485_v46  ;;  %v9936_v2 = vcombine.low %v13462_v16, %v13468_v54  ;;  %v9957_v63 = vld [vmem:[%s13016_s20 + $0xac] sm:$0xf] }
  0xe5   : > { %11150 = vmatprep.subr.bf16.mxu1 %v12392_v36  ;;  %11246 = vmatprep.subr.bf16.mxu0 %v12393_v53  ;;  %v9846_v44 = vcombine.low %v1405_v60, %v1418_v57  ;;  %v2539_v29 = vshrl.u32 %v9955_v43, 16  ;;  %v2542_v58 = vshll.u32 %v9955_v43, 16  ;;  %v2527_v33 = vrot.slane %v2525_v0, 4  ;;  %v9952_v30 = vld [vmem:[%s13016_s20 + $0x44] sm:$0x1]  ;;  %v12404_v43 = vld [vmem:[%s15594_s1 + $0x230] sm:$0xff]  }
  0xe6   : > { %v2474_v12 = vrot.slane %v2472_v37, 5  ;;  %v2530_v47 = vrot.slane %v2528_v1, 5  ;;  %v2490_v48 = vrot.slane %v2489_v52, 4  ;;  %v2536_v49 = vrot.slane %v2534_v10, 5  ;;  %v9960_v37 = vld [vmem:[%s13016_s20 + $0xbc] sm:$0x1] }
  0xe7   : > { %v2541_v25 = vrot.slane %v2539_v29, 4  ;;  %v2544_v39 = vrot.slane %v2542_v58, 5  ;;  %v2497_v31 = vshrl.u32 %v9949_v26, 16  ;;  %v2553_v56 = vshrl.u32 %v9957_v63, 16  ;;  %v12405_v29 = vld [vmem:[%s15594_s1 + $0x238] sm:$0xff]  }
  0xe8   : > { %11151 = vmatpush3.bf16.msra.mxu1 %v12392_v36  ;;  %11247 = vmatpush3.bf16.msra.mxu0 %v12393_v53  ;;  %v9956_v36 = vld [vmem:[%s13016_s20 + $0xa4] sm:$0x1]  ;;  %v2475_v15 = vor.u32 %v2474_v12, %v2471_v38  ;;  %v2531_v13 = vor.u32 %v2530_v47, %v2527_v33  ;;  %v2495_v24 = vsel %vm13222_vm8, %v2490_v48, %v2494_v62  ;;  %v2556_v4 = vshll.u32 %v9957_v63, 16 }
  0xe9   : > { %11928 = vmatprep.subr.bf16.mxu1 %v12396_v17  ;;  %11256 = vmatprep.subr.bf16.mxu0 %v12396_v17  ;;  %v2548_v7 = vshll.u32 %v9956_v36, 16  ;;  %v2545_v5 = vor.u32 %v2544_v39, %v2541_v25  ;;  %v2555_v34 = vrot.slane %v2553_v56, 4  ;;  %v2570_v55 = vshll.u32 %v9959_v27, 16 }
  0xea   : > { %v2476_v14 = vrot.slane %v2475_v15, 4  ;;  %v2532_v32 = vrot.slane %v2531_v13, 4  ;;  %v2558_v6 = vrot.slane %v2556_v4, 5  ;;  %v2499_v22 = vrot.slane %v2497_v31, 4 }
  0xeb   : > { %11153 = vmatmul.mubr.bf16.vlgmr.msra.gmra.mrb[0].mxu1 %v9844_v59  ;;  %11249 = vmatmul.mubr.bf16.vlgmr.msra.gmra.mrb[0].mxu0 %v9934_v20  ;;  %v2550_v53 = vrot.slane %v2548_v7, 5  ;;  %v2546_v54 = vrot.slane %v2545_v5, 4  ;;  %v9951_v59 = vld [vmem:[%s13016_s20 + $0x40] sm:$0xf]  ;;  %v2567_v20 = vshrl.u32 %v9959_v27, 16  ;;  %v2572_v9 = vrot.slane %v2570_v55, 5 }
  0xec   : > { %11936 = vmatpush3.bf16.msra.mxu1 %v12396_v17  ;;  %11156 = vmatprep.mubr.bf16.mxu1 %v9845_v51  ;;  %v2481_v42 = vsel %vm13222_vm8, %v2476_v14, %v2480_v45  ;;  %v2537_v19 = vsel %vm13222_vm8, %v2532_v32, %v2536_v49  ;;  %v2511_v51 = vshrl.u32 %v9951_v59, 16  ;;  %v2514_v57 = vshll.u32 %v9951_v59, 16 }
  0xed   : > { %11929 = vmatprep.subr.bf16.mxu1 %v12397_v18  ;;  %11257 = vmatpush3.bf16.msra.mxu0 %v12396_v17  ;;  %v9961_v16 = vcombine.low %v2481_v42, %v2495_v24  ;;  %v2551_v17 = vsel %vm13222_vm8, %v2546_v54, %v2550_v53  ;;  %v2569_v41 = vrot.slane %v2567_v20, 4  ;;  %v2559_v38 = vor.u32 %v2558_v6, %v2555_v34 }
  0xee   : > { %11252 = vmatprep.mubr.bf16.mxu0 %v9935_v3  ;;  %11258 = vmatprep.subr.bf16.mxu0 %v12397_v18  ;;  %v9963_v60 = vcombine.low %v2537_v19, %v2551_v17  ;;  %v2513_v3 = vrot.slane %v2511_v51, 4  ;;  %v2516_v23 = vrot.slane %v2514_v57, 5  ;;  %v2562_v12 = vshll.u32 %v9958_v11, 16 }
  0xef   : > { %v2573_v45 = vor.u32 %v2572_v9, %v2569_v41  ;;  %v2576_v46 = vshll.u32 %v9960_v37, 16  ;;  %v2506_v62 = vshll.u32 %v9950_v50, 16  ;;  %v2520_v0 = vshll.u32 %v9952_v30, 16 }
  0xf0   : > { %11937 = vmatpush3.bf16.msra.mxu1 %v12397_v18  ;;  %v2517_v36 = vor.u32 %v2516_v23, %v2513_v3  ;;  %v2560_v1 = vrot.slane %v2559_v38, 4 }
  0xf1   : > { %11930 = vmatprep.subr.bf16.mxu1 %v12400_v28  ;;  %11259 = vmatpush3.bf16.msra.mxu0 %v12397_v18  ;;  %v2500_v18 = vshll.u32 %v9949_v26, 16  ;;  %v2574_v15 = vrot.slane %v2573_v45, 4  ;;  %v2578_v10 = vrot.slane %v2576_v46, 5  ;;  %v2508_v52 = vrot.slane %v2506_v62, 5 }
  0xf2   : > { %11260 = vmatprep.subr.bf16.mxu0 %v12400_v28  ;;  %v2518_v33 = vrot.slane %v2517_v36, 4  ;;  %v2522_v47 = vrot.slane %v2520_v0, 5 }
  0xf3   : > { %11157 = vmatmul.mubr.bf16.gmra.mrb[4].mxu1 %v9846_v44  ;;  %11253 = vmatmul.mubr.bf16.gmra.mrb[4].mxu0 %v9936_v2  ;;  %v12403_v44 = vld [vmem:[%s15594_s1 + $0x228] sm:$0xff]   ;;  %v2502_v21 = vrot.slane %v2500_v18, 5  ;;  %v2579_v14 = vsel %vm13222_vm8, %v2574_v15, %v2578_v10 }
  0xf4   : > { %11938 = vmatpush3.bf16.msra.mxu1 %v12400_v28  ;;  %11272 = vmatprep.mubr.bf16.mxu0 %v9961_v16  ;;  %v2523_v39 = vsel %vm13222_vm8, %v2518_v33, %v2522_v47 }
  0xf5   : > { %11931 = vmatprep.subr.bf16.mxu1 %v12401_v61  ;;  %11261 = vmatpush3.bf16.msra.mxu0 %v12400_v28  ;;  %v2503_v35 = vor.u32 %v2502_v21, %v2499_v22  ;;  %v2564_v28 = vrot.slane %v2562_v12, 5 }
  0xf6   : > { %11262 = vmatprep.subr.bf16.mxu0 %v12401_v61  ;;  %11276 = vmatprep.mubr.bf16.mxu1 %v9963_v60 }
  0xf7   : > { %v2504_v58 = vrot.slane %v2503_v35, 4  ;;  %v2565_v7 = vsel %vm13222_vm8, %v2560_v1, %v2564_v28 }
  0xf8   : > { %11939 = vmatpush3.bf16.msra.mxu1 %v12401_v61  ;;  %v9964_v48 = vcombine.low %v2565_v7, %v2579_v14 }
  0xf9   : > { %11932 = vmatprep.subr.bf16.mxu1 %v12402_v40  ;;  %11263 = vmatpush3.bf16.msra.mxu0 %v12401_v61  ;;  %v2509_v25 = vsel %vm13222_vm8, %v2504_v58, %v2508_v52 }
  0xfa   : > { %11264 = vmatprep.subr.bf16.mxu0 %v12402_v40  ;;  %v9962_v13 = vcombine.low %v2509_v25, %v2523_v39 }
  0xfc   : > { %11940 = vmatpush3.bf16.msra.mxu1 %v12402_v40 }
  0xfd   : > { %11933 = vmatprep.subr.bf16.mxu1 %v12403_v44  ;;  %11265 = vmatpush3.bf16.msra.mxu0 %v12402_v40 }
  0xfe   : > { %11266 = vmatprep.subr.bf16.mxu0 %v12403_v44 }
 0x100   : > { %11941 = vmatpush3.bf16.msra.mxu1 %v12403_v44 }
 0x101   : > { %11934 = vmatprep.subr.bf16.mxu1 %v12404_v43  ;;  %11267 = vmatpush3.bf16.msra.mxu0 %v12403_v44 }
 0x102   : > { %11268 = vmatprep.subr.bf16.mxu0 %v12404_v43 }
 0x104   : > { %11942 = vmatpush3.bf16.msra.mxu1 %v12404_v43 }
 0x105   : > { %11935 = vmatprep.subr.bf16.mxu1 %v12405_v29  ;;  %11269 = vmatpush3.bf16.msra.mxu0 %v12404_v43 }
 0x106   : > { %11270 = vmatprep.subr.bf16.mxu0 %v12405_v29 }
 0x108   : > { %11943 = vmatpush3.bf16.msra.mxu1 %v12405_v29 }
 0x109   : > { %11271 = vmatpush3.bf16.msra.mxu0 %v12405_v29 }
 0x10b   : > { %11277 = vmatmul.mubr.bf16.vlgmr.msra.gmra.mrb[8].mxu1 %v9964_v48 }
 0x10c   : > { %11273 = vmatmul.mubr.bf16.vlgmr.msra.gmra.mrb[0].mxu0 %v9962_v13  ;;  %v2743_v13 = vld [vmem:[#allocation4] sm:$0x1] }
 0x1be   : > { %v11154_v49 = vpop.f32.mrb[0].mxu1 }
 0x1bf   : > { %v1533_v2 = vpop.f32.mrb[1].mxu1 }
 0x1c0   : > { %v11155_v61 = vpop.f32.mrb[2].mxu1 }
 0x1c1   : > { %v1536_v42 = vpop.f32.mrb[3].mxu1 }
 0x1c6   : > { %v11158_v5 = vpop.f32.mrb[4].mxu1  ;;  %v11254_v24 = vpop.f32.mrb[4].mxu0 }
 0x1c7   : > { %v1549_v53 = vpop.f32.mrb[5].mxu1  ;;  %v11948_v26 = vadd.f32 %v11254_v24, %v11158_v5  ;;  %v2429_v63 = vpop.f32.mrb[5].mxu0 }
 0x1c8   : > { %v11159_v32 = vpop.f32.mrb[6].mxu1  ;;  %v11950_v16 = vadd.f32 %v2429_v63, %v1549_v53  ;;  %v11255_v54 = vpop.f32.mrb[6].mxu0 }
 0x1c9   : > { %v1552_v8 = vpop.f32.mrb[7].mxu1  ;;  %v11952_v59 = vadd.f32 %v11255_v54, %v11159_v32  ;;  %v2432_v19 = vpop.f32.mrb[7].mxu0 }
 0x1ca   : > { %v11954_v27 = vadd.f32 %v2432_v19, %v1552_v8 }
 0x1de   : > { %v11278_v40 = vpop.f32.mrb[8].mxu1 }
 0x1df   : > { %v11949_v17 = vadd.f32 %v11948_v26, %v11278_v40  ;;  %v2710_v31 = vpop.f32.mrb[9].mxu1  ;;  %v11274_v56 = vpop.f32.mrb[0].mxu0 }
 0x1e0   : > { %v11951_v4 = vadd.f32 %v11950_v16, %v2710_v31  ;;  %v11279_v60 = vpop.f32.mrb[10].mxu1  ;;  %v11944_v18 = vadd.f32 %v11274_v56, %v11154_v49  ;;  %v2694_v51 = vpop.f32.mrb[1].mxu0 }
 0x1e1   : > { %2741 = vst [vmem:[%s2734_s18 + $0x50] sm:$0xff] %v11949_v17  ;;  %v11953_v57 = vadd.f32 %v11952_v59, %v11279_v60  ;;  %v2713_v20 = vpop.f32.mrb[11].mxu1  ;;  %v11945_v44 = vadd.f32 %v2694_v51, %v1533_v2  ;;  %v11275_v34 = vpop.f32.mrb[2].mxu0  ;;  %v2766_v36 = vmul.f32 %v11949_v17, %v11949_v17 }
 0x1e2   : > { %2739 = vst [vmem:[%s2734_s18 + $0x40] sm:$0xff] %v11951_v4  ;;  %v11955_v6 = vadd.f32 %v11954_v27, %v2713_v20  ;;  %2737 = vst [vmem:[%s2734_s18 + $0x10] sm:$0xff] %v11944_v18  ;;  %v11946_v55 = vadd.f32 %v11275_v34, %v11155_v61  ;;  %v2697_v22 = vpop.f32.mrb[3].mxu0  ;;  %v2762_v3 = vmul.f32 %v11944_v18, %v11944_v18  ;;  %v2759_v61 = vld [vmem:[#allocation4 + $0x1] sm:$0x1] }
 0x1e3   : > { %2742 = vst [vmem:[%s2734_s18 + $0x58] sm:$0xff] %v11953_v57  ;;  %2735 = vst [vmem:[%s2734_s18] sm:$0xff] %v11945_v44  ;;  %v11947_v11 = vadd.f32 %v2697_v22, %v1536_v42  ;;  %v2760_v37 = vmul.f32 %v11945_v44, %v11945_v44  ;;  %v2764_v12 = vmul.f32 %v11951_v4, %v11951_v4 }
 0x1e4   : > { %2740 = vst [vmem:[%s2734_s18 + $0x48] sm:$0xff] %v11955_v6  ;;  %2738 = vst [vmem:[%s2734_s18 + $0x18] sm:$0xff] %v11946_v55  ;;  %v2763_v50 = vmul.f32 %v11946_v55, %v11946_v55  ;;  %v2765_v35 = vmul.f32 %v11955_v6, %v11955_v6  ;;  %v2767_v28 = vmul.f32 %v11953_v57, %v11953_v57 }
 0x1e5   : > { %2736 = vst [vmem:[%s2734_s18 + $0x8] sm:$0xff] %v11947_v11  ;;  %v2744_v41 = vadd.f32 %v11947_v11, %v11945_v44  ;;  %v2761_v21 = vmul.f32 %v11947_v11, %v11947_v11 }
 0x1e7   : > { %v2745_v23 = vadd.f32 %v11944_v18, %v2744_v41  ;;  %v2768_v9 = vadd.f32 %v2761_v21, %v2760_v37 }
 0x1e9   : > { %v2769_v30 = vadd.f32 %v2768_v9, %v2762_v3  ;;  %v2746_v38 = vadd.f32 %v11946_v55, %v2745_v23 }
 0x1eb   : > { %v2747_v45 = vadd.f32 %v11951_v4, %v2746_v38  ;;  %v2770_v46 = vadd.f32 %v2769_v30, %v2763_v50 }
 0x1ed   : > { %v2748_v43 = vadd.f32 %v11955_v6, %v2747_v45  ;;  %v2771_v62 = vadd.f32 %v2770_v46, %v2764_v12 }
 0x1ef   : > { %v2749_v0 = vadd.f32 %v11949_v17, %v2748_v43  ;;  %v2772_v1 = vadd.f32 %v2771_v62, %v2765_v35 }
 0x1f1   : > { %v2750_v15 = vadd.f32 %v11953_v57, %v2749_v0  ;;  %v2773_v10 = vadd.f32 %v2772_v1, %v2766_v36 }
 0x1f3   : > { %v2751_v29 = vrot.slane %v2750_v15, 4  ;;  %v2774_v58 = vadd.f32 %v2773_v10, %v2767_v28 }
 0x1f5   : > { %v2752_v52 = vadd.f32 %v2751_v29, %v2750_v15  ;;  %v2775_v33 = vrot.slane %v2774_v58, 4 }
 0x1f7   : > { %v2753_v47 = vrot.slane %v2752_v52, 2  ;;  %v2776_v7 = vadd.f32 %v2775_v33, %v2774_v58 }
 0x1f9   : > { %v2754_v14 = vadd.f32 %v2753_v47, %v2752_v52  ;;  %v2777_v25 = vrot.slane %v2776_v7, 2 }
 0x1fb   : > { %v2755_v39 = vrot.slane %v2754_v14, 1  ;;  %v2778_v48 = vadd.f32 %v2777_v25, %v2776_v7 }
 0x1fd   : > { %v2756_v49 = vadd.f32 %v2755_v39, %v2754_v14  ;;  %v2779_v2 = vrot.slane %v2778_v48, 1 }
 0x1ff   : > { %v2757_v42 = vadd.f32 %v2756_v49, %v2743_v13  ;;  %v2780_v5 = vadd.f32 %v2779_v2, %v2778_v48 }
 0x201   : > { %2758 = vst [vmem:[#allocation4] sm:$0x1] %v2757_v42  ;;  %v2781_v53 = vadd.f32 %v2780_v5, %v2759_v61 }
 0x203   : > { %2782 = vst [vmem:[#allocation4 + $0x1] sm:$0x1] %v2781_v53 }
 0x204 PF: > { %p9974_p9 = scmp.ne.s32.totalorder %s12716_s28, 1 }
 0x205   : > { %v12406_v24 = vld [vmem:[%s15594_s1 + $0x40] sm:$0xff] (!%p9974_p9)   ;;  %v12408_v26 = vld [vmem:[%s15594_s1 + $0x48] sm:$0xff] (!%p9974_p9)   ;;  %v12410_v8 = vld [vmem:[%s15594_s1 + $0x50] sm:$0xff] (!%p9974_p9)   ;;  %vm2806_vm9 = vsmask.f32 (!%p9974_p9), 256  ;;  %s10617_s13 = sshll.u32 (!%p9974_p9), %s12716_s28, 5 }
 0x206   : > { %2786 = sbr.rel (%p9974_p9) target bundleno = 929 (0x3a1), region = 102  ;;  %v12407_v32 = vld [vmem:[%s15594_s1 + $0x100] sm:$0xff] (!%p9974_p9)   ;;  %11280 = vmatprep.subr.bf16.mxu1 (!%p9974_p9), %v12406_v24  ;;  %v12409_v63 = vld [vmem:[%s15594_s1 + $0x108] sm:$0xff] (!%p9974_p9)   ;;  %v12411_v16 = vld [vmem:[%s15594_s1 + $0x110] sm:$0xff] (!%p9974_p9)   ;;  %vm2807_vm10 = vsmask.f32 (!%p9974_p9), 4368 }
 0x207   : > { %11376 = vmatprep.subr.bf16.mxu0 (!%p9974_p9), %v12407_v32  ;;  %11281 = vmatpush3.bf16.msra.mxu1 (!%p9974_p9), %v12406_v24  ;;  %v12412_v54 = vld [vmem:[%s15594_s1 + $0x58] sm:$0xff] (!%p9974_p9)   ;;  %v12414_v19 = vld [vmem:[%s15594_s1 + $0x60] sm:$0xff] (!%p9974_p9)   ;;  %v12416_v40 = vld [vmem:[%s15594_s1 + $0x68] sm:$0xff] (!%p9974_p9)   ;;  %vm3227_vm12 = vsmask.f32 (!%p9974_p9), 3328  ;;  %s4930_s15 = scalar_lea.vmem (!%p9974_p9), [#allocation3], %s10617_s13 }
 0x208   : > { %11377 = vmatpush3.bf16.msra.mxu0 (!%p9974_p9), %v12407_v32  ;;  %11282 = vmatprep.subr.bf16.mxu1 (!%p9974_p9), %v12408_v26  ;;  %v12413_v59 = vld [vmem:[%s15594_s1 + $0x118] sm:$0xff] (!%p9974_p9)   ;;  %v12415_v27 = vld [vmem:[%s15594_s1 + $0x120] sm:$0xff] (!%p9974_p9)   ;;  %v13650_v31 = vld [vmem:[%s12969_s26 + $0x10] sm:$0xf] (!%p9974_p9)  ;;  %vm3228_vm13 = vsmask.f32 (!%p9974_p9), 7440 }
 0x209   : > { %11378 = vmatprep.subr.bf16.mxu0 (!%p9974_p9), %v12409_v63  ;;  %v13647_v17 = vld [vmem:[%s12969_s26 + $0x4] sm:$0xf] (!%p9974_p9)  ;;  %v12417_v56 = vld [vmem:[%s15594_s1 + $0x128] sm:$0xff] (!%p9974_p9)   ;;  %v13658_v60 = vld [vmem:[%s12969_s26 + $0x10] sm:$0xf] (!%p9974_p9)  ;;  %v2828_v20 = vshrl.u32 (!%p9974_p9), %v13650_v31, 16 }
 0x20a   : > { %v9985_v4 = vcombine.low (!%p9974_p9), %v13647_v17, %v13650_v31  ;;  %v13661_v18 = vld [vmem:[%s12969_s26 + $0x1c] sm:$0xf] (!%p9974_p9)  ;;  %v12418_v51 = vld [vmem:[%s15594_s1 + $0x70] sm:$0xff] (!%p9974_p9)   ;;  %v2815_v57 = vshrl.u32 (!%p9974_p9), %v13647_v17, 16  ;;  %v2818_v22 = vshll.u32 (!%p9974_p9), %v13647_v17, 16  ;;  %v2831_v41 = vshll.u32 (!%p9974_p9), %v13650_v31, 16  ;;  %vm13817_vm11 = vmor (!%p9974_p9), %vm2806_vm9, %vm2807_vm10 }
 0x20b   : > { %11283 = vmatpush3.bf16.msra.mxu1 (!%p9974_p9), %v12408_v26  ;;  %v10057_v44 = vcombine.low (!%p9974_p9), %v13658_v60, %v13661_v18  ;;  %v12419_v34 = vld [vmem:[%s15594_s1 + $0x130] sm:$0xff] (!%p9974_p9)   ;;  %v12420_v6 = vld [vmem:[%s15594_s1 + $0x78] sm:$0xff] (!%p9974_p9)   ;;  %v13682_v37 = vrot.slane (!%p9974_p9), %v2828_v20, 7  ;;  %v3517_v21 = vshrl.u32 (!%p9974_p9), %v13658_v60, 16  ;;  %v13690_v23 = vld [vmem:[%s12969_s26 + $0x28] sm:$0xf] (!%p9974_p9) }
 0x20c   : > { %11379 = vmatpush3.bf16.msra.mxu0 (!%p9974_p9), %v12409_v63  ;;  %11284 = vmatprep.subr.bf16.mxu1 (!%p9974_p9), %v12410_v8  ;;  %v12421_v55 = vld [vmem:[%s15594_s1 + $0x138] sm:$0xff] (!%p9974_p9)   ;;  %v13680_v11 = vrot.slane (!%p9974_p9), %v2815_v57, 7  ;;  %v12423_v9 = vld [vmem:[%s15594_s1] sm:$0xff] (!%p9974_p9)   ;;  %v13696_v50 = vld [vmem:[%s12969_s26 + $0x28] sm:$0xf] (!%p9974_p9)  ;;  %v3530_v38 = vshrl.u32 (!%p9974_p9), %v13661_v18, 16 }
 0x20d   : > { %11380 = vmatprep.subr.bf16.mxu0 %v12411_v16  ;;  %11296 = vmatprep.mubr.bf16.mxu1 %v9985_v4  ;;  %v13687_v3 = vld [vmem:[%s12969_s26 + $0x1c] sm:$0xf]  ;;  %v13699_v30 = vld [vmem:[%s12969_s26 + $0x34] sm:$0xf]  ;;  %v12425_v12 = vld [vmem:[%s15594_s1 + $0x140] sm:$0xff]   ;;  %v3520_v45 = vshll.u32 %v13658_v60, 16 }
 0x20e   : > { %11392 = vmatprep.mubr.bf16.mxu0 %v10057_v44  ;;  %v3533_v46 = vshll.u32 %v13661_v18, 16  ;;  %v9986_v43 = vcombine.low %v13687_v3, %v13690_v23  ;;  %v2841_v35 = vshrl.u32 %v13687_v3, 16  ;;  %v10058_v62 = vcombine.low %v13696_v50, %v13699_v30  ;;  %v12428_v36 = vld [vmem:[%s15594_s1 + $0x8] sm:$0xff]   ;;  %v13724_v10 = vld [vmem:[%s12969_s26 + $0x7c] sm:$0xf]  ;;  %v12430_v39 = vld [vmem:[%s15594_s1 + $0x10] sm:$0xff]  }
 0x20f   : > { %11285 = vmatpush3.bf16.msra.mxu1 %v12410_v8  ;;  %v13715_v0 = vrot.slane %v3517_v21, 7  ;;  %v2854_v1 = vshrl.u32 %v13690_v23, 16  ;;  %v13718_v28 = vrot.slane %v3530_v38, 7  ;;  %v12429_v15 = vld [vmem:[%s15594_s1 + $0x148] sm:$0xff]   ;;  %v2844_v29 = vshll.u32 %v13687_v3, 16  ;;  %v12431_v2 = vld [vmem:[%s15594_s1 + $0x150] sm:$0xff]   ;;  %vm13850_vm14 = vmor %vm3227_vm12, %vm3228_vm13 }
 0x210   : > { %11381 = vmatpush3.bf16.msra.mxu0 %v12411_v16  ;;  %11286 = vmatprep.subr.bf16.mxu1 %v12412_v54  ;;  %v3543_v58 = vshrl.u32 %v13696_v50, 16  ;;  %v13729_v52 = vld [vmem:[%s12969_s26 + $0x88] sm:$0xf]  ;;  %v13731_v33 = vrot.slane %v2841_v35, 7  ;;  %v2857_v47 = vshll.u32 %v13690_v23, 16  ;;  %v3556_v7 = vshrl.u32 %v13699_v30, 16 }
 0x211   : > { %11382 = vmatprep.subr.bf16.mxu0 %v12413_v59  ;;  %v9987_v14 = vcombine.low %v13724_v10, %v13729_v52  ;;  %v13737_v25 = vrot.slane %v2854_v1, 7  ;;  %v13743_v48 = vld [vmem:[%s12969_s26 + $0x88] sm:$0xf]  ;;  %v13746_v13 = vld [vmem:[%s12969_s26 + $0x94] sm:$0xf]  ;;  %v3546_v49 = vshll.u32 %v13696_v50, 16  ;;  %v2820_v35 = vor.u32 %v2818_v22, %v13680_v11 }
 0x212   : > { %v2867_v61 = vshrl.u32 %v13724_v10, 16  ;;  %v2880_v42 = vshrl.u32 %v13729_v52, 16  ;;  %v13754_v5 = vrot.slane %v3543_v58, 7  ;;  %v3569_v53 = vshrl.u32 %v13743_v48, 16  ;;  %v13760_v32 = vld [vmem:[%s12969_s26 + $0x94] sm:$0xf] }
 0x213   : > { %11287 = vmatpush3.bf16.msra.mxu1 %v12412_v54  ;;  %v10059_v24 = vcombine.low %v13743_v48, %v13746_v13  ;;  %v13762_v26 = vrot.slane %v3556_v7, 7  ;;  %v3559_v63 = vshll.u32 %v13699_v30, 16  ;;  %v12432_v8 = vld [vmem:[%s15594_s1 + $0x18] sm:$0xff]   ;;  %v3582_v16 = vshrl.u32 %v13746_v13, 16  ;;  %v13770_v54 = vld [vmem:[%s12969_s26 + $0xa0] sm:$0xf] }
 0x214   : > { %11383 = vmatpush3.bf16.msra.mxu0 %v12413_v59  ;;  %11288 = vmatprep.subr.bf16.mxu1 %v12414_v19  ;;  %v12433_v59 = vld [vmem:[%s15594_s1 + $0x158] sm:$0xff]   ;;  %v13784_v4 = vrot.slane %v2867_v61, 7  ;;  %v2883_v57 = vshll.u32 %v13729_v52, 16  ;;  %v3572_v20 = vshll.u32 %v13743_v48, 16  ;;  %v12434_v44 = vld [vmem:[%s15594_s1 + $0x20] sm:$0xff]   ;;  %v2893_v38 = vshrl.u32 %v13760_v32, 16 }
 0x215   : > { %11384 = vmatprep.subr.bf16.mxu0 %v12415_v27  ;;  %v12435_v21 = vld [vmem:[%s15594_s1 + $0x160] sm:$0xff]   ;;  %v2896_v58 = vshll.u32 %v13760_v32, 16  ;;  %v2906_v17 = vshrl.u32 %v13770_v54, 16  ;;  %v12437_v31 = vld [vmem:[%s15594_s1 + $0x168] sm:$0xff]   ;;  %v10070_v7 = vld [vmem:[%s12969_s26 + $0x14] sm:$0x1]  ;;  %v3561_v50 = vor.u32 %v3559_v63, %v13762_v26 }
 0x216   : > { %v12468_v18 = vld [vmem:[%s15594_s1 + $0xd8] sm:$0xff]  }
 0x217   : > { %11289 = vmatpush3.bf16.msra.mxu1 %v12414_v19  ;;  %v2870_v19 = vshll.u32 %v13724_v10, 16  ;;  %v12450_v10 = vld [vmem:[%s15594_s1 + $0x90] sm:$0xff]  }
 0x218   : > { %11385 = vmatpush3.bf16.msra.mxu0 %v12415_v27  ;;  %11290 = vmatprep.subr.bf16.mxu1 %v12416_v40  ;;  %v9988_v27 = vcombine.low %v13760_v32, %v13770_v54 }
 0x219   : > { %11386 = vmatprep.subr.bf16.mxu0 %v12417_v56 }
 0x21b   : > { %11291 = vmatpush3.bf16.msra.mxu1 %v12416_v40  ;;  %v13779_v40 = vld [vmem:[%s12969_s26 + $0xa0] sm:$0xf] }
 0x21c   : > { %11387 = vmatpush3.bf16.msra.mxu0 %v12417_v56  ;;  %11292 = vmatprep.subr.bf16.mxu1 %v12418_v51  ;;  %v13782_v56 = vld [vmem:[%s12969_s26 + $0xac] sm:$0xf] }
 0x21d   : > { %11388 = vmatprep.subr.bf16.mxu0 %v12419_v34 }
 0x21f   : > { %11293 = vmatpush3.bf16.msra.mxu1 %v12418_v51  ;;  %v13786_v51 = vrot.slane %v2880_v42, 7 }
 0x220   : > { %11389 = vmatpush3.bf16.msra.mxu0 %v12419_v34  ;;  %11294 = vmatprep.subr.bf16.mxu1 %v12420_v6  ;;  %v13793_v34 = vrot.slane %v3569_v53, 7 }
 0x221   : > { %11390 = vmatprep.subr.bf16.mxu0 %v12421_v55 }
 0x223   : > { %11295 = vmatpush3.bf16.msra.mxu1 %v12420_v6  ;;  %v3585_v6 = vshll.u32 %v13746_v13, 16  ;;  %v12476_v13 = vld [vmem:[%s15594_s1 + $0xf8] sm:$0xff]  }
 0x224   : > { %11391 = vmatpush3.bf16.msra.mxu0 %v12421_v55  ;;  %11304 = vmatprep.subr.bf16.mxu1 %v12423_v9  ;;  %v10060_v55 = vcombine.low %v13779_v40, %v13782_v56 }
 0x225   : > { %11400 = vmatprep.subr.bf16.mxu0 %v12425_v12 }
 0x226   : > { %11297 = vmatmul.mubr.bf16.vlgmr.msra.gmra.mrb[0].mxu1 %v9986_v43  ;;  %v2792_v43 = vld [vmem:[%s12969_s26 + $0xc] sm:$0x8] }
 0x227   : > { %11305 = vmatpush3.bf16.msra.mxu1 %v12423_v9  ;;  %11393 = vmatmul.mubr.bf16.vlgmr.msra.gmra.mrb[0].mxu0 %v10058_v62  ;;  %v13801_v9 = vrot.slane %v3582_v16, 7  ;;  %v2833_v62 = vor.u32 %v2831_v41, %v13682_v37  ;;  %v2823_v1 = vshrl.u32 %v2792_v43, 16  ;;  %v10069_v41 = vld [vmem:[%s12969_s26 + $0x10] sm:$0xf]  ;;  %v2794_v43 = vld [vmem:[%s12969_s26 + $0x18] sm:$0x8] }
 0x228   : > { %11401 = vmatpush3.bf16.msra.mxu0 %v12425_v12  ;;  %11306 = vmatprep.subr.bf16.mxu1 %v12428_v36  ;;  %v2790_v12 = vld [vmem:[%s12969_s26] sm:$0x8]  ;;  %v3949_v61 = vshll.u32 %v10069_v41, 16  ;;  %v12439_v16 = vld [vmem:[%s15594_s1 + $0x30] sm:$0xff]  }
 0x229   : > { %11402 = vmatprep.subr.bf16.mxu0 %v12429_v15  ;;  %11300 = vmatprep.mubr.bf16.mxu1 %v9987_v14  ;;  %v9978_v37 = vrot.slane %v2823_v1, 11  ;;  %v10071_v14 = vld [vmem:[%s12969_s26 + $0x1c] sm:$0xf] }
 0x22a   : > { %11396 = vmatprep.mubr.bf16.mxu0 %v10059_v24  ;;  %v3955_v24 = vshll.u32 %v10070_v7, 16 }
 0x22b   : > { %11307 = vmatpush3.bf16.msra.mxu1 %v12428_v36  ;;  %v2810_v36 = vshrl.u32 %v2790_v12, 16  ;;  %v2834_v53 = vsel %vm13817_vm11, %v9978_v37, %v2833_v62  ;;  %v3963_v12 = vshll.u32 %v10071_v14, 16  ;;  %v2836_v37 = vshrl.u32 %v2794_v43, 16 }
 0x22c   : > { %11403 = vmatpush3.bf16.msra.mxu0 %v12429_v15  ;;  %11308 = vmatprep.subr.bf16.mxu1 %v12430_v39  ;;  %v12436_v15 = vld [vmem:[%s15594_s1 + $0x28] sm:$0xff]  }
 0x22d   : > { %11404 = vmatprep.subr.bf16.mxu0 %v12431_v2  ;;  %v9977_v11 = vrot.slane %v2810_v36, 11  ;;  %v3957_v36 = vrot.slane %v3955_v24, 5 }
 0x22e   : > { %11301 = vmatmul.mubr.bf16.gmra.mrb[4].mxu1 %v9988_v27 }
 0x22f   : > { %11309 = vmatpush3.bf16.msra.mxu1 %v12430_v39  ;;  %11397 = vmatmul.mubr.bf16.gmra.mrb[4].mxu0 %v10060_v55  ;;  %v10072_v39 = vld [vmem:[%s12969_s26 + $0x20] sm:$0x1]  ;;  %v2821_v42 = vsel %vm13817_vm11, %v9977_v11, %v2820_v35  ;;  %v3951_v55 = vrot.slane %v3949_v61, 5  ;;  %v12441_v35 = vld [vmem:[%s15594_s1 + $0x170] sm:$0xff]   ;;  %v2796_v11 = vld [vmem:[%s12969_s26 + $0x24] sm:$0x8] }
 0x230   : > { %11405 = vmatpush3.bf16.msra.mxu0 %v12431_v2  ;;  %11310 = vmatprep.subr.bf16.mxu1 %v12432_v8  ;;  %v3946_v2 = vshrl.u32 %v10069_v41, 16  ;;  %v3969_v1 = vshll.u32 %v10072_v39, 16  ;;  %v2846_v41 = vor.u32 %v2844_v29, %v13731_v33  ;;  %v10074_v61 = vld [vmem:[%s12969_s26 + $0x2c] sm:$0x1]  ;;  %v2909_v39 = vshll.u32 %v13770_v54, 16  ;;  %v12454_v54 = vld [vmem:[%s15594_s1 + $0xa0] sm:$0xff]  }
 0x231   : > { %11406 = vmatprep.subr.bf16.mxu0 %v12433_v59  ;;  %v9979_v33 = vrot.slane %v2836_v37, 11 }
 0x232   : > { %v3948_v27 = vrot.slane %v3946_v2, 4  ;;  %v10073_v2 = vld [vmem:[%s12969_s26 + $0x28] sm:$0xf]  ;;  %v3971_v29 = vrot.slane %v3969_v1, 5  ;;  %v3983_v1 = vshll.u32 %v10074_v61, 16 }
 0x233   : > { %11311 = vmatpush3.bf16.msra.mxu1 %v12432_v8  ;;  %v3960_v8 = vshrl.u32 %v10071_v14, 16  ;;  %v3965_v14 = vrot.slane %v3963_v12, 5  ;;  %v3977_v43 = vshll.u32 %v10073_v2, 16  ;;  %v2847_v61 = vsel %vm13817_vm11, %v9979_v33, %v2846_v41 }
 0x234   : > { %11407 = vmatpush3.bf16.msra.mxu0 %v12433_v59  ;;  %11312 = vmatprep.subr.bf16.mxu1 %v12434_v44  ;;  %v9997_v59 = vcombine.low %v2821_v42, %v2834_v53  ;;  %v3952_v7 = vor.u32 %v3951_v55, %v3948_v27  ;;  %v13845_v42 = vrot.slane %v2893_v38, 7  ;;  %v2859_v53 = vor.u32 %v2857_v47, %v13737_v25  ;;  %v12444_v38 = vld [vmem:[%s15594_s1 + $0x38] sm:$0xff]  }
 0x235   : > { %11408 = vmatprep.subr.bf16.mxu0 %v12435_v21  ;;  %v3962_v62 = vrot.slane %v3960_v8, 4  ;;  %v3974_v27 = vshrl.u32 %v10073_v2, 16  ;;  %v12445_v55 = vld [vmem:[%s15594_s1 + $0x178] sm:$0xff]   ;;  %v3979_v37 = vrot.slane %v3977_v43, 5 }
 0x236   : > { %11320 = vmatprep.mubr.bf16.mxu1 %v9997_v59  ;;  %v3953_v24 = vrot.slane %v3952_v7, 4  ;;  %v10076_v59 = vld [vmem:[%s12969_s26 + $0x38] sm:$0x1] }
 0x237   : > { %11313 = vmatpush3.bf16.msra.mxu1 %v12434_v44  ;;  %v2849_v44 = vshrl.u32 %v2796_v11, 16  ;;  %v3966_v8 = vor.u32 %v3965_v14, %v3962_v62  ;;  %v3976_v25 = vrot.slane %v3974_v27, 4  ;;  %v3595_v62 = vshrl.u32 %v13779_v40, 16 }
 0x238   : > { %11409 = vmatpush3.bf16.msra.mxu0 %v12435_v21  ;;  %11314 = vmatprep.subr.bf16.mxu1 %v12436_v15  ;;  %v10075_v21 = vld [vmem:[%s12969_s26 + $0x34] sm:$0xf]  ;;  %v3958_v23 = vsel %vm13850_vm14, %v3953_v24, %v3957_v36  ;;  %v3997_v2 = vshll.u32 %v10076_v59, 16  ;;  %v3608_v27 = vshrl.u32 %v13782_v56, 16 }
 0x239   : > { %11410 = vmatprep.subr.bf16.mxu0 %v12437_v31  ;;  %v9980_v12 = vrot.slane %v2849_v44, 11  ;;  %v3988_v11 = vshrl.u32 %v10075_v21, 16  ;;  %v3967_v47 = vrot.slane %v3966_v8, 4  ;;  %v3991_v44 = vshll.u32 %v10075_v21, 16  ;;  %v12446_v8 = vld [vmem:[%s15594_s1 + $0x80] sm:$0xff]  }
 0x23a   : > { %v3980_v24 = vor.u32 %v3979_v37, %v3976_v25  ;;  %v3985_v21 = vrot.slane %v3983_v1, 5  ;;  %v3999_v33 = vrot.slane %v3997_v2, 5  ;;  %v12448_v1 = vld [vmem:[%s15594_s1 + $0x88] sm:$0xff]  }
 0x23b   : > { %11315 = vmatpush3.bf16.msra.mxu1 %v12436_v15  ;;  %v3598_v15 = vshll.u32 %v13779_v40, 16  ;;  %v3990_v7 = vrot.slane %v3988_v11, 4  ;;  %v3972_v14 = vsel %vm13850_vm14, %v3967_v47, %v3971_v29  ;;  %v2860_v36 = vsel %vm13817_vm11, %v9980_v12, %v2859_v53  ;;  %v12447_v29 = vld [vmem:[%s15594_s1 + $0x180] sm:$0xff]   ;;  %v12477_v40 = vld [vmem:[%s15594_s1 + $0x1f8] sm:$0xff]  }
 0x23c   : > { %11411 = vmatpush3.bf16.msra.mxu0 %v12437_v31  ;;  %11316 = vmatprep.subr.bf16.mxu1 %v12439_v16  ;;  %v10085_v31 = vcombine.low %v3958_v23, %v3972_v14  ;;  %v3981_v41 = vrot.slane %v3980_v24, 4  ;;  %v9998_v53 = vcombine.low %v2847_v61, %v2860_v36  ;;  %v3611_v11 = vshll.u32 %v13782_v56, 16  ;;  %v10079_v61 = vld [vmem:[%s12969_s26 + $0x94] sm:$0xf]  ;;  %v10080_v36 = vld [vmem:[%s12969_s26 + $0x98] sm:$0x1] }
 0x23d   : > { %11412 = vmatprep.subr.bf16.mxu0 %v12441_v35  ;;  %v2872_v23 = vor.u32 %v2870_v19, %v13784_v4  ;;  %v13903_v14 = vrot.slane %v3595_v62, 7  ;;  %v10077_v19 = vld [vmem:[%s12969_s26 + $0x88] sm:$0xf]  ;;  %v10078_v4 = vld [vmem:[%s12969_s26 + $0x8c] sm:$0x1] }
 0x23e   : > { %11416 = vmatprep.mubr.bf16.mxu0 %v10085_v31  ;;  %v3986_v12 = vsel %vm13850_vm14, %v3981_v41, %v3985_v21  ;;  %v4002_v24 = vshrl.u32 %v10077_v19, 16  ;;  %v4005_v52 = vshll.u32 %v10077_v19, 16  ;;  %v4019_v21 = vshll.u32 %v10079_v61, 16  ;;  %v12451_v41 = vld [vmem:[%s15594_s1 + $0x190] sm:$0xff]  }
 0x23f   : > { %11317 = vmatpush3.bf16.msra.mxu1 %v12439_v16  ;;  %v3993_v16 = vrot.slane %v3991_v44, 5 }
 0x240   : > { %11413 = vmatpush3.bf16.msra.mxu0 %v12441_v35  ;;  %11318 = vmatprep.subr.bf16.mxu1 %v12444_v38  ;;  %v2908_v35 = vrot.slane %v2906_v17, 7  ;;  %v12449_v17 = vld [vmem:[%s15594_s1 + $0x188] sm:$0xff]  }
 0x241   : > { %11414 = vmatprep.subr.bf16.mxu0 %v12445_v55  ;;  %v3994_v59 = vor.u32 %v3993_v16, %v3990_v7  ;;  %v2885_v7 = vor.u32 %v2883_v57, %v13786_v51  ;;  %v4011_v51 = vshll.u32 %v10078_v4, 16  ;;  %v4016_v57 = vshrl.u32 %v10079_v61, 16 }
 0x242   : > { %v4025_v16 = vshll.u32 %v10080_v36, 16  ;;  %v2911_v32 = vor.u32 %v2909_v39, %v2908_v35 }
 0x243   : > { %11319 = vmatpush3.bf16.msra.mxu1 %v12444_v38  ;;  %v3995_v43 = vrot.slane %v3994_v59, 4  ;;  %v2798_v38 = vld [vmem:[%s12969_s26 + $0x78] sm:$0x8]  ;;  %v4007_v59 = vrot.slane %v4005_v52, 5 }
 0x244   : > { %11415 = vmatpush3.bf16.msra.mxu0 %v12445_v55  ;;  %11328 = vmatprep.subr.bf16.mxu1 %v12446_v8  ;;  %v2800_v55 = vld [vmem:[%s12969_s26 + $0x84] sm:$0x8]  ;;  %v2862_v25 = vshrl.u32 %v2798_v38, 16  ;;  %v4018_v38 = vrot.slane %v4016_v57, 4 }
 0x245   : > { %11424 = vmatprep.subr.bf16.mxu0 %v12447_v29  ;;  %v4000_v47 = vsel %vm13850_vm14, %v3995_v43, %v3999_v33  ;;  %v2875_v37 = vshrl.u32 %v2800_v55, 16  ;;  %v12452_v33 = vld [vmem:[%s15594_s1 + $0x98] sm:$0xff]   ;;  %v2898_v43 = vor.u32 %v2896_v58, %v13845_v42  ;;  %v4021_v55 = vrot.slane %v4019_v21, 5  ;;  %v10081_v58 = vld [vmem:[%s12969_s26 + $0xa0] sm:$0xf] }
 0x246   : > { %11321 = vmatmul.mubr.bf16.vlgmr.msra.gmra.mrb[0].mxu1 %v9998_v53  ;;  %v10086_v44 = vcombine.low %v3986_v12, %v4000_v47  ;;  %v9981_v2 = vrot.slane %v2862_v25, 11  ;;  %v4004_v53 = vrot.slane %v4002_v24, 4  ;;  %v2802_v12 = vld [vmem:[%s12969_s26 + $0x90] sm:$0x8]  ;;  %v12453_v25 = vld [vmem:[%s15594_s1 + $0x198] sm:$0xff]   ;;  %v4030_v61 = vshrl.u32 %v10081_v58, 16 }
 0x247   : > { %11329 = vmatpush3.bf16.msra.mxu1 %v12446_v8  ;;  %v9982_v31 = vrot.slane %v2875_v37, 11  ;;  %v2888_v47 = vshrl.u32 %v2802_v12, 16  ;;  %v10082_v42 = vld [vmem:[%s12969_s26 + $0xa4] sm:$0x1]  ;;  %v4022_v19 = vor.u32 %v4021_v55, %v4018_v38  ;;  %v4033_v52 = vshll.u32 %v10081_v58, 16 }
 0x248   : > { %11330 = vmatprep.subr.bf16.mxu1 %v12448_v1  ;;  %11417 = vmatmul.mubr.bf16.vlgmr.msra.gmra.mrb[0].mxu0 %v10086_v44  ;;  %v2873_v62 = vsel %vm13817_vm11, %v9981_v2, %v2872_v23  ;;  %v2804_v23 = vld [vmem:[%s12969_s26 + $0x9c] sm:$0x8]  ;;  %v4008_v37 = vor.u32 %v4007_v59, %v4004_v53  ;;  %v10083_v2 = vld [vmem:[%s12969_s26 + $0xac] sm:$0xf]  ;;  %v3211_v38 = vld [vmem:[%s12969_s26 + $0x4] sm:$0xf] }
 0x249   : > { %11425 = vmatpush3.bf16.msra.mxu0 %v12447_v29  ;;  %v2886_v8 = vsel %vm13817_vm11, %v9982_v31, %v2885_v7  ;;  %v4027_v7 = vrot.slane %v4025_v16, 5  ;;  %v2901_v44 = vshrl.u32 %v2804_v23, 16  ;;  %v9983_v4 = vrot.slane %v2888_v47, 11  ;;  %v10084_v31 = vld [vmem:[%s12969_s26 + $0xb0] sm:$0x1] }
 0x24a   : > { %11426 = vmatprep.subr.bf16.mxu0 %v12449_v17  ;;  %v9999_v29 = vcombine.low %v2873_v62, %v2886_v8  ;;  %v4009_v36 = vrot.slane %v4008_v37, 4  ;;  %v4023_v39 = vrot.slane %v4022_v19, 4  ;;  %v4044_v57 = vshrl.u32 %v10083_v2, 16  ;;  %v3213_v37 = vld [vmem:[%s12969_s26 + $0x10] sm:$0xf] }
 0x24b   : > { %11331 = vmatpush3.bf16.msra.mxu1 %v12448_v1  ;;  %v4013_v1 = vrot.slane %v4011_v51, 5  ;;  %v9984_v24 = vrot.slane %v2901_v44, 11  ;;  %v4039_v51 = vshll.u32 %v10082_v42, 16  ;;  %v2899_v35 = vsel %vm13817_vm11, %v9983_v4, %v2898_v43  ;;  %v3214_v44 = vld [vmem:[%s12969_s26 + $0x14] sm:$0x1] }
 0x24c   : > { %11332 = vmatprep.subr.bf16.mxu1 %v12450_v10  ;;  %11324 = vmatprep.mubr.bf16.mxu1 %v9999_v29  ;;  %v4035_v21 = vrot.slane %v4033_v52, 5  ;;  %v12456_v29 = vld [vmem:[%s15594_s1 + $0xa8] sm:$0xff]   ;;  %v4028_v53 = vsel %vm13850_vm14, %v4023_v39, %v4027_v7  ;;  %v4046_v12 = vrot.slane %v4044_v57, 4  ;;  %v4047_v43 = vshll.u32 %v10083_v2, 16  ;;  %v13964_v57 = vld [vmem:[%s12969_s26 + $0x1c] sm:$0xf] }
 0x24d   : > { %11427 = vmatpush3.bf16.msra.mxu0 %v12449_v17  ;;  %v4032_v17 = vrot.slane %v4030_v61, 4  ;;  %v4014_v62 = vsel %vm13850_vm14, %v4009_v36, %v4013_v1  ;;  %v2912_v8 = vsel %vm13817_vm11, %v9984_v24, %v2911_v32  ;;  %v4041_v16 = vrot.slane %v4039_v51, 5  ;;  %v3212_v1 = vld [vmem:[%s12969_s26 + $0x8] sm:$0x1]  ;;  %v10099_v51 = vld [vmem:[%s12969_s26 + $0x18] sm:$0x8] }
 0x24e   : > { %11428 = vmatprep.subr.bf16.mxu0 %v12451_v41  ;;  %v10000_v59 = vcombine.low %v2899_v35, %v2912_v8  ;;  %v10087_v55 = vcombine.low %v4014_v62, %v4028_v53  ;;  %v4053_v47 = vshll.u32 %v10084_v31, 16  ;;  %v4049_v32 = vrot.slane %v4047_v43, 5  ;;  %v12457_v31 = vld [vmem:[%s15594_s1 + $0x1a8] sm:$0xff]   ;;  %v12458_v62 = vld [vmem:[%s15594_s1 + $0xb0] sm:$0xff]  }
 0x24f   : > { %11333 = vmatpush3.bf16.msra.mxu1 %v12450_v10  ;;  %v12455_v10 = vld [vmem:[%s15594_s1 + $0x1a0] sm:$0xff]   ;;  %v4036_v23 = vor.u32 %v4035_v21, %v4032_v17  ;;  %v3234_v58 = vshll.u32 %v3211_v38, 16  ;;  %v3240_v42 = vshll.u32 %v3212_v1, 16  ;;  %v3245_v7 = vshrl.u32 %v3213_v37, 16  ;;  %v13971_v53 = vld [vmem:[%s12969_s26 + $0x28] sm:$0xf] }
 0x250   : > { %11334 = vmatprep.subr.bf16.mxu1 %v12452_v33  ;;  %11325 = vmatmul.mubr.bf16.gmra.mrb[4].mxu1 %v10000_v59  ;;  %v4055_v4 = vrot.slane %v4053_v47, 5  ;;  %v4050_v61 = vor.u32 %v4049_v32, %v4046_v12  ;;  %v3254_v17 = vshll.u32 %v3214_v44, 16  ;;  %v4231_v59 = vshrl.u32 %v10099_v51, 16  ;;  %v12459_v1 = vld [vmem:[%s15594_s1 + $0x1b0] sm:$0xff]   ;;  %v3218_v51 = vld [vmem:[%s12969_s26 + $0x2c] sm:$0x1] }
 0x251   : > { %11429 = vmatpush3.bf16.msra.mxu0 %v12451_v41  ;;  %v3231_v41 = vshrl.u32 %v3211_v38, 16  ;;  %11420 = vmatprep.mubr.bf16.mxu0 %v10087_v55  ;;  %v4037_v19 = vrot.slane %v4036_v23, 4  ;;  %v3236_v36 = vrot.slane %v3234_v58, 5  ;;  %v3242_v24 = vrot.slane %v3240_v42, 5  ;;  %v3215_v42 = vld [vmem:[%s12969_s26 + $0x1c] sm:$0xf] }
 0x252   : > { %11430 = vmatprep.subr.bf16.mxu0 %v12453_v25  ;;  %v3247_v52 = vrot.slane %v3245_v7, 4  ;;  %v4051_v8 = vrot.slane %v4050_v61, 4  ;;  %v3256_v43 = vrot.slane %v3254_v17, 5  ;;  %v10115_v47 = vrot.slane %v4231_v59, 11  ;;  %v12461_v61 = vld [vmem:[%s15594_s1 + $0x1b8] sm:$0xff]  }
 0x253   : > { %11335 = vmatpush3.bf16.msra.mxu1 %v12452_v33  ;;  %v3233_v2 = vrot.slane %v3231_v41, 4  ;;  %v3248_v33 = vshll.u32 %v3213_v37, 16  ;;  %v4042_v39 = vsel %vm13850_vm14, %v4037_v19, %v4041_v16  ;;  %v4239_v16 = vshll.u32 %v13964_v57, 16  ;;  %v12460_v41 = vld [vmem:[%s15594_s1 + $0xb8] sm:$0xff]   ;;  %v14000_v59 = vld [vmem:[%s12969_s26 + $0x34] sm:$0xf] }
 0x254   : > { %11336 = vmatprep.subr.bf16.mxu1 %v12454_v54  ;;  %v4056_v55 = vsel %vm13850_vm14, %v4051_v8, %v4055_v4  ;;  %v4249_v58 = vshrl.u32 %v13971_v53, 16  ;;  %v4252_v4 = vshll.u32 %v13971_v53, 16 }
 0x255   : > { %11431 = vmatpush3.bf16.msra.mxu0 %v12453_v25  ;;  %v3250_v35 = vrot.slane %v3248_v33, 5  ;;  %v10101_v25 = vld [vmem:[%s12969_s26 + $0x24] sm:$0x8]  ;;  %v3237_v21 = vor.u32 %v3236_v36, %v3233_v2  ;;  %v10088_v44 = vcombine.low %v4042_v39, %v4056_v55  ;;  %v3217_v2 = vld [vmem:[%s12969_s26 + $0x28] sm:$0xf]  ;;  %v3259_v33 = vshrl.u32 %v3215_v42, 16 }
 0x256   : > { %11432 = vmatprep.subr.bf16.mxu0 %v12455_v10  ;;  %v4244_v38 = vshrl.u32 %v10101_v25, 16  ;;  %v3262_v39 = vshll.u32 %v3215_v42, 16  ;;  %v3273_v8 = vshrl.u32 %v3217_v2, 16  ;;  %v4265_v42 = vshll.u32 %v14000_v59, 16 }
 0x257   : > { %11337 = vmatpush3.bf16.msra.mxu1 %v12454_v54  ;;  %v4236_v54 = vshrl.u32 %v13964_v57, 16  ;;  %v3251_v12 = vor.u32 %v3250_v35, %v3247_v52  ;;  %v3238_v23 = vrot.slane %v3237_v21, 4  ;;  %11421 = vmatmul.mubr.bf16.gmra.mrb[4].mxu0 %v10088_v44  ;;  %v4251_v52 = vrot.slane %v4249_v58, 7  ;;  %v10103_v21 = vld [vmem:[%s12969_s26 + $0x30] sm:$0x8] }
 0x258   : > { %11338 = vmatprep.subr.bf16.mxu1 %v12456_v29  ;;  %v10116_v32 = vrot.slane %v4244_v38, 11  ;;  %v3261_v25 = vrot.slane %v3259_v33, 4  ;;  %v10105_v38 = vld [vmem:[%s12969_s26 + $0x3c] sm:$0x8]  ;;  %v3275_v55 = vrot.slane %v3273_v8, 4  ;;  %v4262_v44 = vshrl.u32 %v14000_v59, 16 }
 0x259   : > { %11433 = vmatpush3.bf16.msra.mxu0 %v12455_v10  ;;  %v4238_v37 = vrot.slane %v4236_v54, 7  ;;  %v3252_v10 = vrot.slane %v3251_v12, 4  ;;  %v3243_v7 = vsel %vm13850_vm14, %v3238_v23, %v3242_v24  ;;  %v12462_v54 = vld [vmem:[%s15594_s1 + $0xc0] sm:$0xff]   ;;  %v4254_v12 = vor.u32 %v4252_v4, %v4251_v52 }
 0x25a   : > { %11434 = vmatprep.subr.bf16.mxu0 %v12457_v31  ;;  %v3282_v23 = vshll.u32 %v3218_v51, 16  ;;  %v4270_v52 = vshrl.u32 %v10105_v38, 16  ;;  %v14019_v51 = vrot.slane %v3608_v27, 7  ;;  %v12464_v27 = vld [vmem:[%s15594_s1 + $0xc8] sm:$0xff]   ;;  %v3219_v38 = vld [vmem:[%s12969_s26 + $0x7c] sm:$0xf] }
 0x25b   : > { %11339 = vmatpush3.bf16.msra.mxu1 %v12456_v29  ;;  %v4241_v19 = vor.u32 %v4239_v16, %v4238_v37  ;;  %v3216_v29 = vld [vmem:[%s12969_s26 + $0x20] sm:$0x1]  ;;  %v3257_v36 = vsel %vm13850_vm14, %v3252_v10, %v3256_v43  ;;  %v3264_v43 = vrot.slane %v3262_v39, 5  ;;  %v4257_v37 = vshrl.u32 %v10103_v21, 16 }
 0x25c   : > { %11340 = vmatprep.subr.bf16.mxu1 %v12458_v62  ;;  %v3268_v24 = vshll.u32 %v3216_v29, 16  ;;  %v10009_v35 = vcombine.low %v3243_v7, %v3257_v36  ;;  %v4264_v29 = vrot.slane %v4262_v44, 7  ;;  %v3287_v44 = vshrl.u32 %v3219_v38, 16 }
 0x25d   : > { %11435 = vmatpush3.bf16.msra.mxu0 %v12457_v31  ;;  %v4242_v17 = vsel %vm13817_vm11, %v10115_v47, %v4241_v19  ;;  %v3276_v31 = vshll.u32 %v3217_v2, 16  ;;  %v14007_v47 = vld [vmem:[%s12969_s26 + $0x40] sm:$0xf]  ;;  %v3265_v10 = vor.u32 %v3264_v43, %v3261_v25  ;;  %v3284_v19 = vrot.slane %v3282_v23, 5  ;;  %v12465_v43 = vld [vmem:[%s15594_s1 + $0x1c8] sm:$0xff]  }
 0x25e   : > { %11436 = vmatprep.subr.bf16.mxu0 %v12459_v1  ;;  %v3270_v16 = vrot.slane %v3268_v24, 5  ;;  %11344 = vmatprep.mubr.bf16.mxu1 %v10009_v35  ;;  %v10117_v4 = vrot.slane %v4257_v37, 11  ;;  %v12463_v2 = vld [vmem:[%s15594_s1 + $0x1c0] sm:$0xff]   ;;  %v4278_v39 = vshll.u32 %v14007_v47, 16  ;;  %v10118_v35 = vrot.slane %v4270_v52, 11 }
 0x25f   : > { %11341 = vmatpush3.bf16.msra.mxu1 %v12458_v62  ;;  %v4255_v62 = vsel %vm13817_vm11, %v10116_v32, %v4254_v12  ;;  %v3278_v58 = vrot.slane %v3276_v31, 5  ;;  %v3266_v33 = vrot.slane %v3265_v10, 4  ;;  %v4275_v32 = vshrl.u32 %v14007_v47, 16  ;;  %v12466_v31 = vld [vmem:[%s15594_s1 + $0xd0] sm:$0xff]   ;;  %v3221_v23 = vld [vmem:[%s12969_s26 + $0x88] sm:$0xf] }
 0x260   : > { %11342 = vmatprep.subr.bf16.mxu1 %v12460_v41  ;;  %v10123_v7 = vcombine.low %v4242_v17, %v4255_v62  ;;  %v3222_v37 = vld [vmem:[%s12969_s26 + $0x8c] sm:$0x1]  ;;  %v3290_v62 = vshll.u32 %v3219_v38, 16  ;;  %v12467_v10 = vld [vmem:[%s15594_s1 + $0x1d0] sm:$0xff]   ;;  %v3225_v38 = vld [vmem:[%s12969_s26 + $0xa0] sm:$0xf] }
 0x261   : > { %11437 = vmatpush3.bf16.msra.mxu0 %v12459_v1  ;;  %v3279_v36 = vor.u32 %v3278_v58, %v3275_v55  ;;  %v4267_v1 = vor.u32 %v4265_v42, %v4264_v29  ;;  %v4277_v17 = vrot.slane %v4275_v32, 7  ;;  %v3220_v55 = vld [vmem:[%s12969_s26 + $0x80] sm:$0x1]  ;;  %v3301_v42 = vshrl.u32 %v3221_v23, 16  ;;  %v14058_v52 = vld [vmem:[%s12969_s26 + $0x94] sm:$0xf] }
 0x262   : > { %11438 = vmatprep.subr.bf16.mxu0 %v12461_v61  ;;  %11440 = vmatprep.mubr.bf16.mxu0 %v10123_v7  ;;  %v3296_v58 = vshll.u32 %v3220_v55, 16  ;;  %v3304_v7 = vshll.u32 %v3221_v23, 16  ;;  %v14055_v29 = vor.u32 %v3533_v46, %v13718_v28  ;;  %v10109_v32 = vld [vmem:[%s12969_s26 + $0x9c] sm:$0x8]  ;;  %v4288_v28 = vshrl.u32 %v14058_v52, 16  ;;  %v12470_v23 = vld [vmem:[%s15594_s1 + $0xe0] sm:$0xff]  }
 0x263   : > { %11343 = vmatpush3.bf16.msra.mxu1 %v12460_v41  ;;  %v3271_v41 = vsel %vm13850_vm14, %v3266_v33, %v3270_v16  ;;  %v3280_v24 = vrot.slane %v3279_v36, 4  ;;  %v4268_v8 = vsel %vm13817_vm11, %v10117_v4, %v4267_v1  ;;  %v4280_v21 = vor.u32 %v4278_v39, %v4277_v17  ;;  %v10107_v4 = vld [vmem:[%s12969_s26 + $0x90] sm:$0x8] }
 0x264   : > { %11352 = vmatprep.subr.bf16.mxu1 %v12462_v54  ;;  %v3289_v33 = vrot.slane %v3287_v44, 4  ;;  %v3292_v36 = vrot.slane %v3290_v62, 5  ;;  %v3298_v1 = vrot.slane %v3296_v58, 5  ;;  %v3303_v39 = vrot.slane %v3301_v42, 4  ;;  %v3226_v58 = vld [vmem:[%s12969_s26 + $0xa4] sm:$0x1] }
 0x265   : > { %11439 = vmatpush3.bf16.msra.mxu0 %v12461_v61  ;;  %v3285_v25 = vsel %vm13850_vm14, %v3280_v24, %v3284_v19  ;;  %v4281_v61 = vsel %vm13817_vm11, %v10118_v35, %v4280_v21  ;;  %v3310_v19 = vshll.u32 %v3222_v37, 16  ;;  %v3223_v24 = vld [vmem:[%s12969_s26 + $0x94] sm:$0xf]  ;;  %v12469_v35 = vld [vmem:[%s15594_s1 + $0x1d8] sm:$0xff]  }
 0x266   : > { %11448 = vmatprep.subr.bf16.mxu0 %v12463_v2  ;;  %v10010_v12 = vcombine.low %v3271_v41, %v3285_v25  ;;  %v10124_v16 = vcombine.low %v4268_v8, %v4281_v61  ;;  %v3306_v41 = vrot.slane %v3304_v7, 5  ;;  %v3293_v46 = vor.u32 %v3292_v36, %v3289_v33  ;;  %v3224_v21 = vld [vmem:[%s12969_s26 + $0x98] sm:$0x1]  ;;  %v12471_v33 = vld [vmem:[%s15594_s1 + $0x1e0] sm:$0xff]  }
 0x267   : > { %v3312_v60 = vrot.slane %v3310_v19, 5  ;;  %v3315_v55 = vshrl.u32 %v3223_v24, 16  ;;  %v3318_v42 = vshll.u32 %v3223_v24, 16  ;;  %v10113_v24 = vld [vmem:[%s12969_s26 + $0xb4] sm:$0x8] }
 0x268   : > { %11345 = vmatmul.mubr.bf16.vlgmr.msra.gmra.mrb[0].mxu1 %v10010_v12  ;;  %11441 = vmatmul.mubr.bf16.vlgmr.msra.gmra.mrb[0].mxu0 %v10124_v16  ;;  %v3307_v17 = vor.u32 %v3306_v41, %v3303_v39  ;;  %v3294_v12 = vrot.slane %v3293_v46, 4  ;;  %v4290_v16 = vrot.slane %v4288_v28, 7  ;;  %v3329_v41 = vshrl.u32 %v3225_v38, 16  ;;  %v14090_v46 = vld [vmem:[%s12969_s26 + $0xac] sm:$0xf] }
 0x269   : > { %11353 = vmatpush3.bf16.msra.mxu1 %v12462_v54  ;;  %v14050_v54 = vor.u32 %v3520_v45, %v13715_v0  ;;  %11449 = vmatpush3.bf16.msra.mxu0 %v12463_v2  ;;  %v14062_v45 = vld [vmem:[%s12969_s26 + $0xa0] sm:$0xf]  ;;  %v4283_v0 = vshrl.u32 %v10107_v4, 16  ;;  %v4291_v2 = vshll.u32 %v14058_v52, 16  ;;  %v3317_v19 = vrot.slane %v3315_v55, 4 }
 0x26a   : > { %11354 = vmatprep.subr.bf16.mxu1 %v12464_v27  ;;  %11450 = vmatprep.subr.bf16.mxu0 %v12465_v43  ;;  %v4301_v25 = vshrl.u32 %v14062_v45, 16  ;;  %v4304_v8 = vshll.u32 %v14062_v45, 16  ;;  %v3308_v37 = vrot.slane %v3307_v17, 4  ;;  %v3324_v4 = vshll.u32 %v3224_v21, 16  ;;  %v14096_v17 = vld [vmem:[%s12969_s26 + $0xb8] sm:$0xf] }
 0x26b   : > { %v10119_v61 = vrot.slane %v4283_v0, 11  ;;  %v4293_v7 = vor.u32 %v4291_v2, %v4290_v16  ;;  %v3320_v39 = vrot.slane %v3318_v42, 5  ;;  %v3332_v2 = vshll.u32 %v3225_v38, 16 }
 0x26c   : > { %v4303_v62 = vrot.slane %v4301_v25, 7  ;;  %v3313_v36 = vsel %vm13850_vm14, %v3308_v37, %v3312_v60  ;;  %v3326_v28 = vrot.slane %v3324_v4, 5  ;;  %v3331_v25 = vrot.slane %v3329_v41, 4 }
 0x26d   : > { %11355 = vmatpush3.bf16.msra.mxu1 %v12464_v27  ;;  %v4296_v27 = vshrl.u32 %v10109_v32, 16  ;;  %11451 = vmatpush3.bf16.msra.mxu0 %v12465_v43  ;;  %v3299_v43 = vsel %vm13850_vm14, %v3294_v12, %v3298_v1  ;;  %v4294_v0 = vsel %vm13817_vm11, %v10119_v61, %v4293_v7  ;;  %v3334_v12 = vrot.slane %v3332_v2, 5 }
 0x26e   : > { %11356 = vmatprep.subr.bf16.mxu1 %v12466_v31  ;;  %11452 = vmatprep.subr.bf16.mxu0 %v12467_v10  ;;  %v4306_v32 = vor.u32 %v4304_v8, %v4303_v62  ;;  %v10011_v1 = vcombine.low %v3299_v43, %v3313_v36  ;;  %v3338_v8 = vshll.u32 %v3226_v58, 16  ;;  %v4314_v16 = vshrl.u32 %v14090_v46, 16  ;;  %v10021_v36 = vld [vmem:[%s12969_s26 + $0xc] sm:$0x8] }
 0x26f   : > { %v10120_v44 = vrot.slane %v4296_v27, 11  ;;  %v3321_v27 = vor.u32 %v3320_v39, %v3317_v19  ;;  %v4317_v37 = vshll.u32 %v14090_v46, 16  ;;  %v3335_v62 = vor.u32 %v3334_v12, %v3331_v25  ;;  %v10029_v25 = vld [vmem:[%s12969_s26 + $0x84] sm:$0x8] }
 0x270   : > { %11348 = vmatprep.mubr.bf16.mxu1 %v10011_v1  ;;  %v3340_v55 = vrot.slane %v3338_v8, 5  ;;  %v4316_v42 = vrot.slane %v4314_v16, 7  ;;  %v4327_v43 = vshrl.u32 %v14096_v17, 16  ;;  %v3548_v7 = vor.u32 %v3546_v49, %v13754_v5  ;;  %v12474_v49 = vld [vmem:[%s15594_s1 + $0xf0] sm:$0xff]  }
 0x271   : > { %11357 = vmatpush3.bf16.msra.mxu1 %v12466_v31  ;;  %v10111_v31 = vld [vmem:[%s12969_s26 + $0xa8] sm:$0x8]  ;;  %11453 = vmatpush3.bf16.msra.mxu0 %v12467_v10  ;;  %v4307_v60 = vsel %vm13817_vm11, %v10120_v44, %v4306_v32  ;;  %v3322_v38 = vrot.slane %v3321_v27, 4  ;;  %v4322_v44 = vshrl.u32 %v10113_v24, 16  ;;  %v4330_v4 = vshll.u32 %v14096_v17, 16  ;;  %v12475_v24 = vld [vmem:[%s15594_s1 + $0x1f0] sm:$0xff]  }
 0x272   : > { %11358 = vmatprep.subr.bf16.mxu1 %v12468_v18  ;;  %11454 = vmatprep.subr.bf16.mxu0 %v12469_v35  ;;  %v12472_v10 = vld [vmem:[%s15594_s1 + $0xe8] sm:$0xff]   ;;  %v10125_v21 = vcombine.low %v4294_v0, %v4307_v60  ;;  %v4309_v61 = vshrl.u32 %v10111_v31, 16  ;;  %v3336_v32 = vrot.slane %v3335_v62, 4  ;;  %v4319_v39 = vor.u32 %v4317_v37, %v4316_v42  ;;  %v10023_v31 = vld [vmem:[%s12969_s26 + $0x18] sm:$0x8] }
 0x273   : > { %v10122_v19 = vrot.slane %v4322_v44, 11  ;;  %v4329_v41 = vrot.slane %v4327_v43, 7  ;;  %v3512_v1 = vshrl.u32 %v10021_v36, 16  ;;  %v3525_v5 = vshrl.u32 %v10023_v31, 16  ;;  %v10025_v0 = vld [vmem:[%s12969_s26 + $0x24] sm:$0x8] }
 0x274   : > { %11444 = vmatprep.mubr.bf16.mxu0 %v10125_v21  ;;  %v10121_v58 = vrot.slane %v4309_v61, 11  ;;  %v3587_v2 = vor.u32 %v3585_v6, %v13801_v9  ;;  %v3341_v30 = vsel %vm13850_vm14, %v3336_v32, %v3340_v55  ;;  %v3538_v6 = vshrl.u32 %v10025_v0, 16  ;;  %v10031_v8 = vld [vmem:[%s12969_s26 + $0x90] sm:$0x8]  ;;  %v12480_v43 = vld [vmem:[%s15594_s1 + $0x200] sm:$0xff]  }
 0x275   : > { %11359 = vmatpush3.bf16.msra.mxu1 %v12468_v18  ;;  %11455 = vmatpush3.bf16.msra.mxu0 %v12469_v35  ;;  %v12473_v18 = vld [vmem:[%s15594_s1 + $0x1e8] sm:$0xff]   ;;  %v3327_v35 = vsel %vm13850_vm14, %v3322_v38, %v3326_v28  ;;  %v10027_v28 = vld [vmem:[%s12969_s26 + $0x30] sm:$0x8]  ;;  %v4332_v63 = vor.u32 %v4330_v4, %v4329_v41  ;;  %v10037_v48 = vrot.slane %v3512_v1, 11  ;;  %v10135_v27 = vcombine.low %v13964_v57, %v13971_v53  ;;  %v10033_v38 = vld [vmem:[%s12969_s26 + $0x9c] sm:$0x8] }
 0x276   : > { %11360 = vmatprep.subr.bf16.mxu1 %v12470_v23  ;;  %11456 = vmatprep.subr.bf16.mxu0 %v12471_v33  ;;  %v4320_v26 = vsel %vm13817_vm11, %v10121_v58, %v4319_v39  ;;  %v3551_v9 = vshrl.u32 %v10027_v28, 16  ;;  %v3600_v21 = vor.u32 %v3598_v15, %v13903_v14  ;;  %v10039_v61 = vrot.slane %v3538_v6, 11  ;;  %v10147_v39 = vld [vmem:[%s12969_s26 + $0x1c] sm:$0xf]  ;;  %v10148_v41 = vld [vmem:[%s12969_s26 + $0x20] sm:$0x1] }
 0x277   : > { %v3523_v60 = vsel %vm13817_vm11, %v10037_v48, %v14050_v54  ;;  %v10035_v54 = vld [vmem:[%s12969_s26 + $0xa8] sm:$0x8]  ;;  %v3564_v57 = vshrl.u32 %v10029_v25, 16  ;;  %v3577_v53 = vshrl.u32 %v10031_v8, 16  ;;  %v3590_v37 = vshrl.u32 %v10033_v38, 16 }
 0x278   : > { %v10040_v16 = vrot.slane %v3551_v9, 11  ;;  %v3549_v15 = vsel %vm13817_vm11, %v10039_v61, %v3548_v7  ;;  %v3613_v44 = vor.u32 %v3611_v11, %v14019_v51  ;;  %v10136_v36 = vcombine.low %v14000_v59, %v14007_v47  ;;  %v10149_v31 = vld [vmem:[%s12969_s26 + $0x28] sm:$0xf]  ;;  %v10150_v1 = vld [vmem:[%s12969_s26 + $0x2c] sm:$0x1] }
 0x279   : > { %11361 = vmatpush3.bf16.msra.mxu1 %v12470_v23  ;;  %v3574_v23 = vor.u32 %v3572_v20, %v13793_v34  ;;  %11457 = vmatpush3.bf16.msra.mxu0 %v12471_v33  ;;  %v10012_v20 = vcombine.low %v3327_v35, %v3341_v30  ;;  %v10038_v34 = vrot.slane %v3525_v5, 11  ;;  %v4333_v33 = vsel %vm13817_vm11, %v10122_v19, %v4332_v63  ;;  %v12481_v35 = vld [vmem:[%s15594_s1 + $0x208] sm:$0xff]   ;;  %v10155_v59 = vld [vmem:[%s12969_s26 + $0x94] sm:$0xf]  ;;  %v10156_v47 = vld [vmem:[%s12969_s26 + $0x98] sm:$0x1] }
 0x27a   : > { %11362 = vmatprep.subr.bf16.mxu1 %v12472_v10  ;;  %11458 = vmatprep.subr.bf16.mxu0 %v12473_v18  ;;  %v10126_v12 = vcombine.low %v4320_v26, %v4333_v33  ;;  %v3562_v14 = vsel %vm13817_vm11, %v10040_v16, %v3561_v50  ;;  %v10041_v62 = vrot.slane %v3564_v57, 11  ;;  %v10042_v58 = vrot.slane %v3577_v53, 11  ;;  %v12485_v57 = vld [vmem:[%s15594_s1 + $0x218] sm:$0xff]  }
 0x27b   : > { %11349 = vmatmul.mubr.bf16.gmra.mrb[4].mxu1 %v10012_v20  ;;  %v10043_v42 = vrot.slane %v3590_v37, 11  ;;  %v4665_v50 = vshrl.u32 %v10147_v39, 16  ;;  %v4674_v5 = vshll.u32 %v10148_v41, 16  ;;  %v4679_v0 = vshrl.u32 %v10149_v31, 16 }
 0x27c   : > { %11445 = vmatmul.mubr.bf16.gmra.mrb[4].mxu0 %v10126_v12  ;;  %v3575_v56 = vsel %vm13817_vm11, %v10041_v62, %v3574_v23  ;;  %v3588_v11 = vsel %vm13817_vm11, %v10042_v58, %v3587_v2  ;;  %v10137_v22 = vcombine.low %v14058_v52, %v14062_v45  ;;  %v4682_v28 = vshll.u32 %v10149_v31, 16  ;;  %v12484_v52 = vld [vmem:[%s15594_s1 + $0x210] sm:$0xff]   ;;  %v10161_v58 = vld [vmem:[%s12969_s26 + $0xb8] sm:$0xf] }
 0x27d   : > { %11363 = vmatpush3.bf16.msra.mxu1 %v12472_v10  ;;  %v3536_v10 = vsel %vm13817_vm11, %v10038_v34, %v14055_v29  ;;  %11459 = vmatpush3.bf16.msra.mxu0 %v12473_v18  ;;  %v3603_v29 = vshrl.u32 %v10035_v54, 16  ;;  %v10046_v18 = vcombine.low %v3549_v15, %v3562_v14  ;;  %v3601_v51 = vsel %vm13817_vm11, %v10043_v42, %v3600_v21  ;;  %v12486_v42 = vld [vmem:[%s15594_s1 + $0x220] sm:$0xff]  }
 0x27e   : > { %11364 = vmatprep.subr.bf16.mxu1 %v12474_v49  ;;  %v10045_v55 = vcombine.low %v3523_v60, %v3536_v10  ;;  %11460 = vmatprep.subr.bf16.mxu0 %v12475_v24  ;;  %v10047_v19 = vcombine.low %v3575_v56, %v3588_v11  ;;  %v4688_v23 = vshll.u32 %v10150_v1, 16  ;;  %v4667_v2 = vrot.slane %v4665_v50, 4  ;;  %v10160_v50 = vld [vmem:[%s12969_s26 + $0xb0] sm:$0x1] }
 0x27f   : > { %11464 = vmatprep.mubr.bf16.mxu0 %v10135_v27  ;;  %v10044_v7 = vrot.slane %v3603_v29, 11  ;;  %v4676_v26 = vrot.slane %v4674_v5, 5  ;;  %v4681_v63 = vrot.slane %v4679_v0, 4  ;;  %v4684_v48 = vrot.slane %v4682_v28, 5  ;;  %v10151_v29 = vld [vmem:[%s12969_s26 + $0x34] sm:$0xf] }
 0x280   : > { %11368 = vmatprep.mubr.bf16.mxu1 %v10045_v55  ;;  %v4690_v20 = vrot.slane %v4688_v23, 5  ;;  %v4721_v34 = vshrl.u32 %v10155_v59, 16  ;;  %v4724_v6 = vshll.u32 %v10155_v59, 16  ;;  %v4730_v9 = vshll.u32 %v10156_v47, 16  ;;  %v10152_v59 = vld [vmem:[%s12969_s26 + $0x38] sm:$0x1] }
 0x281   : > { %11365 = vmatpush3.bf16.msra.mxu1 %v12474_v49  ;;  %11461 = vmatpush3.bf16.msra.mxu0 %v12475_v24  ;;  %v3614_v4 = vsel %vm13817_vm11, %v10044_v7, %v3613_v44  ;;  %v4668_v49 = vshll.u32 %v10147_v39, 16  ;;  %v10157_v24 = vld [vmem:[%s12969_s26 + $0xa0] sm:$0xf]  ;;  %v4685_v27 = vor.u32 %v4684_v48, %v4681_v63  ;;  %v10138_v55 = vcombine.low %v14090_v46, %v14096_v17  ;;  %v10159_v44 = vld [vmem:[%s12969_s26 + $0xac] sm:$0xf] }
 0x282   : > { %11366 = vmatprep.subr.bf16.mxu1 %v12476_v13  ;;  %11462 = vmatprep.subr.bf16.mxu0 %v12477_v40  ;;  %v10048_v32 = vcombine.low %v3601_v51, %v3614_v4  ;;  %v4735_v33 = vshrl.u32 %v10157_v24, 16  ;;  %v4738_v60 = vshll.u32 %v10157_v24, 16  ;;  %v4723_v25 = vrot.slane %v4721_v34, 4  ;;  %v10154_v47 = vld [vmem:[%s12969_s26 + $0x44] sm:$0x1]  ;;  %v12488_v24 = vld [vmem:[%s15594_s1 + $0x230] sm:$0xff]  }
 0x283   : > { %v4670_v30 = vrot.slane %v4668_v49, 5  ;;  %v4726_v8 = vrot.slane %v4724_v6, 5  ;;  %v4686_v16 = vrot.slane %v4685_v27, 4  ;;  %v4732_v54 = vrot.slane %v4730_v9, 5  ;;  %v10162_v49 = vld [vmem:[%s12969_s26 + $0xbc] sm:$0x1] }
 0x284   : > { %v4737_v10 = vrot.slane %v4735_v33, 4  ;;  %v4740_v61 = vrot.slane %v4738_v60, 5  ;;  %v4693_v7 = vshrl.u32 %v10151_v29, 16  ;;  %v4749_v56 = vshrl.u32 %v10159_v44, 16  ;;  %v12489_v33 = vld [vmem:[%s15594_s1 + $0x238] sm:$0xff]  }
 0x285   : > { %11367 = vmatpush3.bf16.msra.mxu1 %v12476_v13  ;;  %11463 = vmatpush3.bf16.msra.mxu0 %v12477_v40  ;;  %v10158_v13 = vld [vmem:[%s12969_s26 + $0xa4] sm:$0x1]  ;;  %v4671_v45 = vor.u32 %v4670_v30, %v4667_v2  ;;  %v4727_v38 = vor.u32 %v4726_v8, %v4723_v25  ;;  %v4691_v15 = vsel %vm13850_vm14, %v4686_v16, %v4690_v20  ;;  %v4752_v11 = vshll.u32 %v10159_v44, 16 }
 0x286   : > { %12008 = vmatprep.subr.bf16.mxu1 %v12480_v43  ;;  %11472 = vmatprep.subr.bf16.mxu0 %v12480_v43  ;;  %v4744_v21 = vshll.u32 %v10158_v13, 16  ;;  %v4741_v37 = vor.u32 %v4740_v61, %v4737_v10  ;;  %v4751_v39 = vrot.slane %v4749_v56, 4  ;;  %v4766_v31 = vshll.u32 %v10161_v58, 16 }
 0x287   : > { %v4672_v12 = vrot.slane %v4671_v45, 4  ;;  %v4728_v14 = vrot.slane %v4727_v38, 4  ;;  %v4754_v41 = vrot.slane %v4752_v11, 5  ;;  %v4695_v1 = vrot.slane %v4693_v7, 4 }
 0x288   : > { %11369 = vmatmul.mubr.bf16.vlgmr.msra.gmra.mrb[0].mxu1 %v10046_v18  ;;  %11465 = vmatmul.mubr.bf16.vlgmr.msra.gmra.mrb[0].mxu0 %v10136_v36  ;;  %v4746_v40 = vrot.slane %v4744_v21, 5  ;;  %v4742_v17 = vrot.slane %v4741_v37, 4  ;;  %v10153_v18 = vld [vmem:[%s12969_s26 + $0x40] sm:$0xf]  ;;  %v4763_v36 = vshrl.u32 %v10161_v58, 16  ;;  %v4768_v23 = vrot.slane %v4766_v31, 5 }
 0x289   : > { %12016 = vmatpush3.bf16.msra.mxu1 %v12480_v43  ;;  %11372 = vmatprep.mubr.bf16.mxu1 %v10047_v19  ;;  %v4677_v53 = vsel %vm13850_vm14, %v4672_v12, %v4676_v26  ;;  %v4733_v62 = vsel %vm13850_vm14, %v4728_v14, %v4732_v54  ;;  %v4707_v19 = vshrl.u32 %v10153_v18, 16  ;;  %v4710_v4 = vshll.u32 %v10153_v18, 16 }
 0x28a   : > { %12009 = vmatprep.subr.bf16.mxu1 %v12481_v35  ;;  %11473 = vmatpush3.bf16.msra.mxu0 %v12480_v43  ;;  %v10163_v46 = vcombine.low %v4677_v53, %v4691_v15  ;;  %v4747_v43 = vsel %vm13850_vm14, %v4742_v17, %v4746_v40  ;;  %v4765_v5 = vrot.slane %v4763_v36, 4  ;;  %v4755_v2 = vor.u32 %v4754_v41, %v4751_v39 }
 0x28b   : > { %11468 = vmatprep.mubr.bf16.mxu0 %v10137_v22  ;;  %11474 = vmatprep.subr.bf16.mxu0 %v12481_v35  ;;  %v10165_v51 = vcombine.low %v4733_v62, %v4747_v43  ;;  %v4709_v22 = vrot.slane %v4707_v19, 4  ;;  %v4712_v28 = vrot.slane %v4710_v4, 5  ;;  %v4758_v30 = vshll.u32 %v10160_v50, 16 }
 0x28c   : > { %v4769_v26 = vor.u32 %v4768_v23, %v4765_v5  ;;  %v4772_v63 = vshll.u32 %v10162_v49, 16  ;;  %v4702_v20 = vshll.u32 %v10152_v59, 16  ;;  %v4716_v34 = vshll.u32 %v10154_v47, 16 }
 0x28d   : > { %12017 = vmatpush3.bf16.msra.mxu1 %v12481_v35  ;;  %v4713_v13 = vor.u32 %v4712_v28, %v4709_v22  ;;  %v4756_v6 = vrot.slane %v4755_v2, 4 }
 0x28e   : > { %12010 = vmatprep.subr.bf16.mxu1 %v12484_v52  ;;  %11475 = vmatpush3.bf16.msra.mxu0 %v12481_v35  ;;  %v4696_v35 = vshll.u32 %v10151_v29, 16  ;;  %v4770_v45 = vrot.slane %v4769_v26, 4  ;;  %v4774_v9 = vrot.slane %v4772_v63, 5  ;;  %v4704_v27 = vrot.slane %v4702_v20, 5 }
 0x28f   : > { %11476 = vmatprep.subr.bf16.mxu0 %v12484_v52  ;;  %v4714_v25 = vrot.slane %v4713_v13, 4  ;;  %v4718_v8 = vrot.slane %v4716_v34, 5 }
 0x290   : > { %11373 = vmatmul.mubr.bf16.gmra.mrb[4].mxu1 %v10048_v32  ;;  %11469 = vmatmul.mubr.bf16.gmra.mrb[4].mxu0 %v10138_v55  ;;  %v12487_v32 = vld [vmem:[%s15594_s1 + $0x228] sm:$0xff]   ;;  %v4698_v0 = vrot.slane %v4696_v35, 5  ;;  %v4775_v12 = vsel %vm13850_vm14, %v4770_v45, %v4774_v9 }
 0x291   : > { %12018 = vmatpush3.bf16.msra.mxu1 %v12484_v52  ;;  %11488 = vmatprep.mubr.bf16.mxu0 %v10163_v46  ;;  %v4719_v61 = vsel %vm13850_vm14, %v4714_v25, %v4718_v8 }
 0x292   : > { %12011 = vmatprep.subr.bf16.mxu1 %v12485_v57  ;;  %11477 = vmatpush3.bf16.msra.mxu0 %v12484_v52  ;;  %v4699_v48 = vor.u32 %v4698_v0, %v4695_v1  ;;  %v4760_v52 = vrot.slane %v4758_v30, 5 }
 0x293   : > { %11478 = vmatprep.subr.bf16.mxu0 %v12485_v57  ;;  %11492 = vmatprep.mubr.bf16.mxu1 %v10165_v51 }
 0x294   : > { %v4700_v60 = vrot.slane %v4699_v48, 4  ;;  %v4761_v21 = vsel %vm13850_vm14, %v4756_v6, %v4760_v52 }
 0x295   : > { %12019 = vmatpush3.bf16.msra.mxu1 %v12485_v57  ;;  %v10166_v16 = vcombine.low %v4761_v21, %v4775_v12 }
 0x296   : > { %12012 = vmatprep.subr.bf16.mxu1 %v12486_v42  ;;  %11479 = vmatpush3.bf16.msra.mxu0 %v12485_v57  ;;  %v4705_v10 = vsel %vm13850_vm14, %v4700_v60, %v4704_v27 }
 0x297   : > { %11480 = vmatprep.subr.bf16.mxu0 %v12486_v42  ;;  %v10164_v38 = vcombine.low %v4705_v10, %v4719_v61 }
 0x299   : > { %12020 = vmatpush3.bf16.msra.mxu1 %v12486_v42 }
 0x29a   : > { %12013 = vmatprep.subr.bf16.mxu1 %v12487_v32  ;;  %11481 = vmatpush3.bf16.msra.mxu0 %v12486_v42 }
 0x29b   : > { %11482 = vmatprep.subr.bf16.mxu0 %v12487_v32 }
 0x29d   : > { %12021 = vmatpush3.bf16.msra.mxu1 %v12487_v32 }
 0x29e   : > { %12014 = vmatprep.subr.bf16.mxu1 %v12488_v24  ;;  %11483 = vmatpush3.bf16.msra.mxu0 %v12487_v32 }
 0x29f   : > { %11484 = vmatprep.subr.bf16.mxu0 %v12488_v24 }
 0x2a1   : > { %12022 = vmatpush3.bf16.msra.mxu1 %v12488_v24 }
 0x2a2   : > { %12015 = vmatprep.subr.bf16.mxu1 %v12489_v33  ;;  %11485 = vmatpush3.bf16.msra.mxu0 %v12488_v24 }
 0x2a3   : > { %11486 = vmatprep.subr.bf16.mxu0 %v12489_v33 }
 0x2a5   : > { %12023 = vmatpush3.bf16.msra.mxu1 %v12489_v33 }
 0x2a6   : > { %11487 = vmatpush3.bf16.msra.mxu0 %v12489_v33 }
 0x2a8   : > { %11493 = vmatmul.mubr.bf16.vlgmr.msra.gmra.mrb[8].mxu1 %v10166_v16 }
 0x2a9   : > { %11489 = vmatmul.mubr.bf16.vlgmr.msra.gmra.mrb[0].mxu0 %v10164_v38  ;;  %v4939_v38 = vld [vmem:[#allocation4] sm:$0x1] }
 0x35b   : > { %v11370_v54 = vpop.f32.mrb[0].mxu1 }
 0x35c   : > { %v3729_v55 = vpop.f32.mrb[1].mxu1 }
 0x35d   : > { %v11371_v57 = vpop.f32.mrb[2].mxu1 }
 0x35e   : > { %v3732_v53 = vpop.f32.mrb[3].mxu1 }
 0x363   : > { %v11374_v37 = vpop.f32.mrb[4].mxu1  ;;  %v11470_v15 = vpop.f32.mrb[4].mxu0 }
 0x364   : > { %v3745_v40 = vpop.f32.mrb[5].mxu1  ;;  %v12028_v29 = vadd.f32 %v11470_v15, %v11374_v37  ;;  %v4625_v44 = vpop.f32.mrb[5].mxu0 }
 0x365   : > { %v11375_v14 = vpop.f32.mrb[6].mxu1  ;;  %v12030_v46 = vadd.f32 %v4625_v44, %v3745_v40  ;;  %v11471_v17 = vpop.f32.mrb[6].mxu0 }
 0x366   : > { %v3748_v3 = vpop.f32.mrb[7].mxu1  ;;  %v12032_v18 = vadd.f32 %v11471_v17, %v11375_v14  ;;  %v4628_v62 = vpop.f32.mrb[7].mxu0 }
 0x367   : > { %v12034_v58 = vadd.f32 %v4628_v62, %v3748_v3 }
 0x37b   : > { %v11494_v42 = vpop.f32.mrb[8].mxu1 }
 0x37c   : > { %v12029_v43 = vadd.f32 %v12028_v29, %v11494_v42  ;;  %v4906_v7 = vpop.f32.mrb[9].mxu1  ;;  %v11490_v56 = vpop.f32.mrb[0].mxu0 }
 0x37d   : > { %v12031_v11 = vadd.f32 %v12030_v46, %v4906_v7  ;;  %v11495_v51 = vpop.f32.mrb[10].mxu1  ;;  %v12024_v35 = vadd.f32 %v11490_v56, %v11370_v54  ;;  %v4890_v19 = vpop.f32.mrb[1].mxu0 }
 0x37e   : > { %4937 = vst [vmem:[%s4930_s15 + $0x50] sm:$0xff] %v12029_v43  ;;  %v12033_v4 = vadd.f32 %v12032_v18, %v11495_v51  ;;  %v4909_v36 = vpop.f32.mrb[11].mxu1  ;;  %v12025_v32 = vadd.f32 %v4890_v19, %v3729_v55  ;;  %v11491_v39 = vpop.f32.mrb[2].mxu0  ;;  %v4962_v13 = vmul.f32 %v12029_v43, %v12029_v43 }
 0x37f   : > { %4935 = vst [vmem:[%s4930_s15 + $0x40] sm:$0xff] %v12031_v11  ;;  %v12035_v41 = vadd.f32 %v12034_v58, %v4909_v36  ;;  %4933 = vst [vmem:[%s4930_s15 + $0x10] sm:$0xff] %v12024_v35  ;;  %v12026_v31 = vadd.f32 %v11491_v39, %v11371_v57  ;;  %v4893_v1 = vpop.f32.mrb[3].mxu0  ;;  %v4958_v22 = vmul.f32 %v12024_v35, %v12024_v35  ;;  %v4955_v57 = vld [vmem:[#allocation4 + $0x1] sm:$0x1] }
 0x380   : > { %4938 = vst [vmem:[%s4930_s15 + $0x58] sm:$0xff] %v12033_v4  ;;  %4931 = vst [vmem:[%s4930_s15] sm:$0xff] %v12025_v32  ;;  %v12027_v50 = vadd.f32 %v4893_v1, %v3732_v53  ;;  %v4956_v49 = vmul.f32 %v12025_v32, %v12025_v32  ;;  %v4960_v30 = vmul.f32 %v12031_v11, %v12031_v11 }
 0x381   : > { %4936 = vst [vmem:[%s4930_s15 + $0x48] sm:$0xff] %v12035_v41  ;;  %4934 = vst [vmem:[%s4930_s15 + $0x18] sm:$0xff] %v12026_v31  ;;  %v4959_v59 = vmul.f32 %v12026_v31, %v12026_v31  ;;  %v4961_v48 = vmul.f32 %v12035_v41, %v12035_v41  ;;  %v4963_v52 = vmul.f32 %v12033_v4, %v12033_v4 }
 0x382   : > { %4932 = vst [vmem:[%s4930_s15 + $0x8] sm:$0xff] %v12027_v50  ;;  %v4940_v5 = vadd.f32 %v12027_v50, %v12025_v32  ;;  %v4957_v0 = vmul.f32 %v12027_v50, %v12027_v50 }
 0x384   : > { %v4941_v28 = vadd.f32 %v12024_v35, %v4940_v5  ;;  %v4964_v23 = vadd.f32 %v4957_v0, %v4956_v49 }
 0x386   : > { %v4965_v47 = vadd.f32 %v4964_v23, %v4958_v22  ;;  %v4942_v2 = vadd.f32 %v12026_v31, %v4941_v28 }
 0x388   : > { %v4943_v26 = vadd.f32 %v12031_v11, %v4942_v2  ;;  %v4966_v63 = vadd.f32 %v4965_v47, %v4959_v59 }
 0x38a   : > { %v4944_v24 = vadd.f32 %v12035_v41, %v4943_v26  ;;  %v4967_v20 = vadd.f32 %v4966_v63, %v4960_v30 }
 0x38c   : > { %v4945_v34 = vadd.f32 %v12029_v43, %v4944_v24  ;;  %v4968_v6 = vadd.f32 %v4967_v20, %v4961_v48 }
 0x38e   : > { %v4946_v45 = vadd.f32 %v12033_v4, %v4945_v34  ;;  %v4969_v9 = vadd.f32 %v4968_v6, %v4962_v13 }
 0x390   : > { %v4947_v33 = vrot.slane %v4946_v45, 4  ;;  %v4970_v60 = vadd.f32 %v4969_v9, %v4963_v52 }
 0x392   : > { %v4948_v27 = vadd.f32 %v4947_v33, %v4946_v45  ;;  %v4971_v25 = vrot.slane %v4970_v60, 4 }
 0x394   : > { %v4949_v8 = vrot.slane %v4948_v27, 2  ;;  %v4972_v21 = vadd.f32 %v4971_v25, %v4970_v60 }
 0x396   : > { %v4950_v12 = vadd.f32 %v4949_v8, %v4948_v27  ;;  %v4973_v10 = vrot.slane %v4972_v21, 2 }
 0x398   : > { %v4951_v61 = vrot.slane %v4950_v12, 1  ;;  %v4974_v16 = vadd.f32 %v4973_v10, %v4972_v21 }
 0x39a   : > { %v4952_v54 = vadd.f32 %v4951_v61, %v4950_v12  ;;  %v4975_v55 = vrot.slane %v4974_v16, 1 }
 0x39c   : > { %v4953_v53 = vadd.f32 %v4952_v54, %v4939_v38  ;;  %v4976_v37 = vadd.f32 %v4975_v55, %v4974_v16 }
 0x39e   : > { %4954 = vst [vmem:[#allocation4] sm:$0x1] %v4953_v53  ;;  %v4977_v40 = vadd.f32 %v4976_v37, %v4955_v57 }
 0x3a0   : > { %4978 = vst [vmem:[#allocation4 + $0x1] sm:$0x1] %v4977_v40 }
 0x3a1 PF: > { %p10176_p10 = scmp.ne.s32.totalorder %s12720_s29, 1 }
 0x3a2   : > { %v5008_v18 = vlaneseq (!%p10176_p10)  ;;  %s10618_s14 = sshll.u32 (!%p10176_p10), %s12716_s28, 5  ;;  %v4989_v58 = vld [vmem:[%s15595_s2] sm:$0x1] (!%p10176_p10)  ;;  %s10188_s24 = smul.u32 (!%p10176_p10), 48, %s12716_s28 }
 0x3a3   : > { %4982 = sbr.rel (%p10176_p10) target bundleno = 1774 (0x6ee), region = 106  ;;  %v4993_v56 = vld [vmem:[%s15596_s3] sm:$0x1] (!%p10176_p10)  ;;  %s14247_s16 = scalar_lea.vmem (!%p10176_p10), [#allocation3], %s10618_s14 }
 0x3a4   : > { %v5009_v62 = vshrl.u32 (!%p10176_p10), %v5008_v18, 7  ;;  %v4999_v11 = vld [vmem:[%s14247_s16] sm:$0xff] (!%p10176_p10)  ;;  %v5000_v51 = vld [vmem:[%s14247_s16 + $0x8] sm:$0xff] (!%p10176_p10)  ;;  %v5001_v35 = vld [vmem:[%s14247_s16 + $0x10] sm:$0xff] (!%p10176_p10)  ;;  %s14258_s26 = scalar_lea.vmem (!%p10176_p10), [#allocation2], %s10188_s24  ;;  %p10197_p11 = scmp.lt.s32.totalorder (!%p10176_p10), %s12716_s28, 1 }
 0x3a5   : > { %v4983_v15 = vld [vmem:[#allocation4] sm:$0x1] (!%p10176_p10)  ;;  %v5002_v19 = vld [vmem:[%s14247_s16 + $0x18] sm:$0xff] (!%p10176_p10)  ;;  %v5003_v32 = vld [vmem:[%s14247_s16 + $0x40] sm:$0xff] (!%p10176_p10) }
 0x3a6   : > { %v4984_v29 = vmul.f32 (!%p10176_p10), 0.0078125, %v4983_v15  ;;  %v5010_v42 = vsub.s32 (!%p10176_p10), 0, %v5009_v62  ;;  %v5004_v39 = vld [vmem:[%s14247_s16 + $0x48] sm:$0xff] (!%p10176_p10)  ;;  %v5005_v41 = vld [vmem:[%s14247_s16 + $0x50] sm:$0xff] (!%p10176_p10)  ;;  %v5006_v31 = vld [vmem:[%s14247_s16 + $0x58] sm:$0xff] (!%p10176_p10) }
 0x3a7   : > { %v4985_v14 = vld [vmem:[#allocation4 + $0x1] sm:$0x1] (!%p10176_p10) }
 0x3a8   : > { %v4986_v44 = vmul.f32 (!%p10176_p10), 0.0078125, %v4985_v14  ;;  %v4987_v3 = vmul.f32 (!%p10176_p10), %v4984_v29, %v4984_v29 }
 0x3aa   : > { %v4988_v46 = vsub.f32 %v4986_v44, %v4987_v3  ;;  %v12492_v54 = vld [vmem:[%s15597_s4 + $0x40] sm:$0xff] (!%p10197_p11)   ;;  %v12494_v57 = vld [vmem:[%s15597_s4 + $0x48] sm:$0xff] (!%p10197_p11)   ;;  %v12496_v37 = vld [vmem:[%s15597_s4 + $0x50] sm:$0xff] (!%p10197_p11)   ;;  %s10198_s14 = sadd.s32 (!%p10197_p11), 4294967295, %s12716_s28  ;;  %vm5112_vm15 = vsmask.f32 (!%p10197_p11), 256 }
 0x3ab   : > { %v12493_v55 = vld [vmem:[%s15597_s4 + $0x100] sm:$0xff] (!%p10197_p11)   ;;  %11496 = vmatprep.subr.bf16.mxu1 (!%p10197_p11), %v12492_v54  ;;  %v12495_v53 = vld [vmem:[%s15597_s4 + $0x108] sm:$0xff] (!%p10197_p11)   ;;  %v12497_v40 = vld [vmem:[%s15597_s4 + $0x110] sm:$0xff] (!%p10197_p11)   ;;  %s10627_s24 = smul.u32 (!%p10197_p11), 48, %s10198_s14  ;;  %vm5113_vm0 = vsmask.f32 (!%p10197_p11), 4368 }
 0x3ac   : > { %v4990_v17 = vadd.f32 1e-05, %v4988_v46  ;;  %11592 = vmatprep.subr.bf16.mxu0 (!%p10197_p11), %v12493_v55  ;;  %11497 = vmatpush3.bf16.msra.mxu1 (!%p10197_p11), %v12492_v54  ;;  %v12498_v15 = vld [vmem:[%s15597_s4 + $0x58] sm:$0xff] (!%p10197_p11)   ;;  %v12501_v44 = vld [vmem:[%s15597_s4 + $0x120] sm:$0xff] (!%p10197_p11)   ;;  %v12502_v3 = vld [vmem:[%s15597_s4 + $0x68] sm:$0xff] (!%p10197_p11)   ;;  %s10628_s18 = sshll.u32 (!%p10197_p11), %s10198_s14, 5 }
 0x3ad   : > { %11593 = vmatpush3.bf16.msra.mxu0 (!%p10197_p11), %v12493_v55  ;;  %11498 = vmatprep.subr.bf16.mxu1 (!%p10197_p11), %v12494_v57  ;;  %v12499_v14 = vld [vmem:[%s15597_s4 + $0x118] sm:$0xff] (!%p10197_p11)   ;;  %s14305_s17 = scalar_lea.vmem (!%p10197_p11), [#allocation2], %s10627_s24  ;;  %v12503_v18 = vld [vmem:[%s15597_s4 + $0x128] sm:$0xff] (!%p10197_p11)   ;;  %vm14478_vm1 = vmor (!%p10197_p11), %vm5112_vm15, %vm5113_vm0  ;;  %vm5533_vm2 = vsmask.f32 (!%p10197_p11), 3328  ;;  %s7240_s24 = scalar_lea.vmem (!%p10197_p11), [#allocation3], %s10628_s18 }
 0x3ae   : > { %12490 = vrsqrt.f32 %v4990_v17  ;;  %11594 = vmatprep.subr.bf16.mxu0 (!%p10197_p11), %v12495_v53  ;;  %vm5534_vm3 = vsmask.f32 (!%p10197_p11), 7440 }
 0x3af   : > { %vm14511_vm4 = vmor (!%p10197_p11), %vm5533_vm2, %vm5534_vm3 }
 0x3b0   : > { %11499 = vmatpush3.bf16.msra.mxu1 (!%p10197_p11), %v12494_v57 }
 0x3b1   : > { %11595 = vmatpush3.bf16.msra.mxu0 (!%p10197_p11), %v12495_v53  ;;  %11500 = vmatprep.subr.bf16.mxu1 (!%p10197_p11), %v12496_v37 }
 0x3b2   : > { %11596 = vmatprep.subr.bf16.mxu0 (!%p10197_p11), %v12497_v40 }
 0x3b4   : > { %11501 = vmatpush3.bf16.msra.mxu1 (!%p10197_p11), %v12496_v37  ;;  %v12518_v37 = vld [vmem:[%s15597_s4 + $0x18] sm:$0xff] (!%p10197_p11)  }
 0x3b5   : > { %11597 = vmatpush3.bf16.msra.mxu0 (!%p10197_p11), %v12497_v40  ;;  %11502 = vmatprep.subr.bf16.mxu1 (!%p10197_p11), %v12498_v15 }
 0x3b6   : > { %11598 = vmatprep.subr.bf16.mxu0 (!%p10197_p11), %v12499_v14 }
 0x3b8   : > { %v12491_v43 = vpop.eup %12490  ;;  %11503 = vmatpush3.bf16.msra.mxu1 (!%p10197_p11), %v12498_v15 }
 0x3b9   : > { %v4992_v7 = vmul.f32 %v12491_v43, %v4989_v58  ;;  %11599 = vmatpush3.bf16.msra.mxu0 (!%p10197_p11), %v12499_v14  ;;  %v12504_v43 = vld [vmem:[%s15597_s4 + $0x70] sm:$0xff] (!%p10197_p11)   ;;  %v12519_v14 = vld [vmem:[%s15597_s4 + $0x158] sm:$0xff] (!%p10197_p11)  }
 0x3ba   : > { %11600 = vmatprep.subr.bf16.mxu0 (!%p10197_p11), %v12501_v44 }
 0x3bb   : > { %v4994_v4 = vmul.f32 %v4992_v7, %v4984_v29  ;;  %v5011_v36 = vrot.slane %v4992_v7, %v5010_v42  ;;  %v12500_v29 = vld [vmem:[%s15597_s4 + $0x60] sm:$0xff] (!%p10197_p11)  }
 0x3bc   : > { %11504 = vmatprep.subr.bf16.mxu1 (!%p10197_p11), %v12500_v29 }
 0x3bd   : > { %v4995_v1 = vsub.f32 %v4993_v56, %v4994_v4  ;;  %v5013_v50 = vmul.f32 %v5011_v36, %v4999_v11  ;;  %v5014_v49 = vmul.f32 %v5011_v36, %v5000_v51  ;;  %v5015_v5 = vmul.f32 %v5011_v36, %v5001_v35  ;;  %11505 = vmatpush3.bf16.msra.mxu1 (!%p10197_p11), %v12500_v29  ;;  %v12505_v51 = vld [vmem:[%s15597_s4 + $0x130] sm:$0xff] (!%p10197_p11)   ;;  %v12506_v35 = vld [vmem:[%s15597_s4 + $0x78] sm:$0xff] (!%p10197_p11)  }
 0x3be   : > { %v5016_v0 = vmul.f32 %v5011_v36, %v5002_v19  ;;  %v5017_v22 = vmul.f32 %v5011_v36, %v5003_v32  ;;  %v5018_v28 = vmul.f32 %v5011_v36, %v5004_v39  ;;  %v5019_v23 = vmul.f32 %v5011_v36, %v5005_v41  ;;  %11601 = vmatpush3.bf16.msra.mxu0 (!%p10197_p11), %v12501_v44  ;;  %v12507_v19 = vld [vmem:[%s15597_s4 + $0x138] sm:$0xff] (!%p10197_p11)  }
 0x3bf   : > { %v5025_v59 = vrot.slane %v4995_v1, %v5010_v42  ;;  %v5020_v47 = vmul.f32 %v5011_v36, %v5006_v31  ;;  %11506 = vmatprep.subr.bf16.mxu1 (!%p10197_p11), %v12502_v3  ;;  %11602 = vmatprep.subr.bf16.mxu0 (!%p10197_p11), %v12503_v18 }
 0x3c1   : > { %v5027_v2 = vadd.f32 %v5025_v59, %v5013_v50  ;;  %v5028_v30 = vadd.f32 %v5025_v59, %v5014_v49  ;;  %v5029_v26 = vadd.f32 %v5025_v59, %v5015_v5  ;;  %v5030_v63 = vadd.f32 %v5025_v59, %v5016_v0  ;;  %11507 = vmatpush3.bf16.msra.mxu1 (!%p10197_p11), %v12502_v3  ;;  %v12509_v50 = vld [vmem:[%s15597_s4] sm:$0xff] (!%p10197_p11)  }
 0x3c2   : > { %v5031_v24 = vadd.f32 %v5025_v59, %v5017_v22  ;;  %v5032_v48 = vadd.f32 %v5025_v59, %v5018_v28  ;;  %v5033_v20 = vadd.f32 %v5025_v59, %v5019_v23  ;;  %v5034_v13 = vadd.f32 %v5025_v59, %v5020_v47  ;;  %11603 = vmatpush3.bf16.msra.mxu0 (!%p10197_p11), %v12503_v18  ;;  %v12511_v22 = vld [vmem:[%s15597_s4 + $0x140] sm:$0xff] (!%p10197_p11)  }
 0x3c3   : > { %v5035_v34 = vmax.f32 %v5027_v2, 0.0  ;;  %v5036_v6 = vmax.f32 %v5028_v30, 0.0  ;;  %v5037_v52 = vmax.f32 %v5029_v26, 0.0  ;;  %v5038_v45 = vmax.f32 %v5030_v63, 0.0  ;;  %11508 = vmatprep.subr.bf16.mxu1 (!%p10197_p11), %v12504_v43  ;;  %11604 = vmatprep.subr.bf16.mxu0 (!%p10197_p11), %v12505_v51  ;;  %v12514_v30 = vld [vmem:[%s15597_s4 + $0x8] sm:$0xff] (!%p10197_p11)  }
 0x3c4   : > { %v5039_v9 = vmax.f32 %v5031_v24, 0.0  ;;  %v5040_v33 = vmax.f32 %v5032_v48, 0.0  ;;  %v5041_v60 = vmax.f32 %v5033_v20, 0.0  ;;  %v5042_v27 = vmax.f32 %v5034_v13, 0.0  ;;  %5090 = sbr.rel (%p10197_p11) target bundleno = 1361 (0x551), region = 110  ;;  %v12515_v48 = vld [vmem:[%s15597_s4 + $0x148] sm:$0xff] (!%p10197_p11)  }
 0x3c5   : > { %v10619_v25 = vpack.c.bf16 %v5035_v34, %v5035_v34  ;;  %v10620_v8 = vpack.c.bf16 %v5036_v6, %v5036_v6  ;;  %v10621_v21 = vpack.c.bf16 %v5037_v52, %v5037_v52  ;;  %v10622_v12 = vpack.c.bf16 %v5038_v45, %v5038_v45  ;;  %11509 = vmatpush3.bf16.msra.mxu1 (!%p10197_p11), %v12504_v43 }
 0x3c6   : > { %v10623_v10 = vpack.c.bf16 %v5039_v9, %v5039_v9  ;;  %v10624_v61 = vpack.c.bf16 %v5040_v33, %v5040_v33  ;;  %v10625_v16 = vpack.c.bf16 %v5041_v60, %v5041_v60  ;;  %v10626_v38 = vpack.c.bf16 %v5042_v27, %v5042_v27  ;;  %11605 = vmatpush3.bf16.msra.mxu0 (!%p10197_p11), %v12505_v51  ;;  %v12516_v27 = vld [vmem:[%s15597_s4 + $0x10] sm:$0xff] (!%p10197_p11)  }
 0x3c7   : > { %10189 = vst [vmem:[%s14258_s26 + $0x10] sm:$0xf] %v10619_v25  ;;  %10190 = vst [vmem:[%s14258_s26 + $0x1c] sm:$0xf] %v10620_v8  ;;  %11510 = vmatprep.subr.bf16.mxu1 (!%p10197_p11), %v12506_v35  ;;  %11606 = vmatprep.subr.bf16.mxu0 (!%p10197_p11), %v12507_v19 }
 0x3c8   : > { %10191 = vst [vmem:[%s14258_s26 + $0x28] sm:$0xf] %v10621_v21  ;;  %10192 = vst [vmem:[%s14258_s26 + $0x34] sm:$0xf] %v10622_v12  ;;  %v12517_v12 = vld [vmem:[%s15597_s4 + $0x150] sm:$0xff] (!%p10197_p11)  }
 0x3c9   : > { %10193 = vst [vmem:[%s14258_s26 + $0x88] sm:$0xf] %v10623_v10  ;;  %10194 = vst [vmem:[%s14258_s26 + $0x94] sm:$0xf] %v10624_v61  ;;  %11511 = vmatpush3.bf16.msra.mxu1 (!%p10197_p11), %v12506_v35 }
 0x3ca   : > { %10195 = vst [vmem:[%s14258_s26 + $0xa0] sm:$0xf] %v10625_v16  ;;  %10196 = vst [vmem:[%s14258_s26 + $0xac] sm:$0xf] %v10626_v38  ;;  %11607 = vmatpush3.bf16.msra.mxu0 (!%p10197_p11), %v12507_v19  ;;  %11520 = vmatprep.subr.bf16.mxu1 (!%p10197_p11), %v12509_v50 }
 0x3cb   : > { %11616 = vmatprep.subr.bf16.mxu0 %v12511_v22 }
 0x3d1   : > { %v14308_v46 = vld [vmem:[%s14305_s17 + $0x4] sm:$0xf]  ;;  %v14311_v17 = vld [vmem:[%s14305_s17 + $0x10] sm:$0xf]  ;;  %v14322_v42 = vld [vmem:[%s14305_s17 + $0x1c] sm:$0xf] }
 0x3d2   : > { %v10210_v62 = vcombine.low %v14308_v46, %v14311_v17  ;;  %v14319_v58 = vld [vmem:[%s14305_s17 + $0x10] sm:$0xf]  ;;  %v5121_v7 = vshrl.u32 %v14308_v46, 16  ;;  %v5134_v56 = vshrl.u32 %v14311_v17, 16  ;;  %v5124_v4 = vshll.u32 %v14308_v46, 16 }
 0x3d3   : > { %v10284_v11 = vcombine.low %v14319_v58, %v14322_v42  ;;  %v5137_v39 = vshll.u32 %v14311_v17, 16  ;;  %v5827_v41 = vshrl.u32 %v14319_v58, 16  ;;  %v14348_v31 = vld [vmem:[%s14305_s17 + $0x1c] sm:$0xf]  ;;  %v14351_v1 = vld [vmem:[%s14305_s17 + $0x28] sm:$0xf] }
 0x3d4   : > { %11512 = vmatprep.mubr.bf16.mxu1 %v10210_v62  ;;  %v14341_v36 = vrot.slane %v5121_v7, 7  ;;  %v14343_v32 = vrot.slane %v5134_v56, 7  ;;  %v14357_v49 = vld [vmem:[%s14305_s17 + $0x28] sm:$0xf]  ;;  %v14360_v5 = vld [vmem:[%s14305_s17 + $0x34] sm:$0xf]  ;;  %v10211_v59 = vcombine.low %v14348_v31, %v14351_v1 }
 0x3d5   : > { %11608 = vmatprep.mubr.bf16.mxu0 %v10284_v11  ;;  %v5840_v0 = vshrl.u32 %v14322_v42, 16  ;;  %v5830_v28 = vshll.u32 %v14319_v58, 16  ;;  %v5843_v23 = vshll.u32 %v14322_v42, 16  ;;  %v5147_v47 = vshrl.u32 %v14348_v31, 16  ;;  %v14385_v20 = vld [vmem:[%s14305_s17 + $0x7c] sm:$0xf] }
 0x3d6   : > { %v10285_v2 = vcombine.low %v14357_v49, %v14360_v5  ;;  %v14376_v26 = vrot.slane %v5827_v41, 7  ;;  %v5160_v63 = vshrl.u32 %v14351_v1, 16  ;;  %v5150_v13 = vshll.u32 %v14348_v31, 16  ;;  %11513 = vmatmul.mubr.bf16.vlgmr.msra.gmra.mrb[0].mxu1 %v10211_v59  ;;  %v14390_v6 = vld [vmem:[%s14305_s17 + $0x88] sm:$0xf]  ;;  %v12520_v11 = vld [vmem:[%s15597_s4 + $0x20] sm:$0xff]  }
 0x3d7   : > { %v14379_v24 = vrot.slane %v5840_v0, 7  ;;  %v5853_v34 = vshrl.u32 %v14357_v49, 16  ;;  %v14392_v52 = vrot.slane %v5147_v47, 7  ;;  %v5163_v45 = vshll.u32 %v14351_v1, 16  ;;  %11521 = vmatpush3.bf16.msra.mxu1 %v12509_v50  ;;  %v14404_v25 = vld [vmem:[%s14305_s17 + $0x88] sm:$0xf] }
 0x3d8   : > { %v5866_v9 = vshrl.u32 %v14360_v5, 16  ;;  %11609 = vmatmul.mubr.bf16.vlgmr.msra.gmra.mrb[0].mxu0 %v10285_v2  ;;  %v10212_v33 = vcombine.low %v14385_v20, %v14390_v6  ;;  %v14398_v60 = vrot.slane %v5160_v63, 7  ;;  %11522 = vmatprep.subr.bf16.mxu1 %v12514_v30  ;;  %v14407_v8 = vld [vmem:[%s14305_s17 + $0x94] sm:$0xf]  ;;  %v5856_v21 = vshll.u32 %v14357_v49, 16  ;;  %v12521_v41 = vld [vmem:[%s15597_s4 + $0x160] sm:$0xff]  }
 0x3d9   : > { %11617 = vmatpush3.bf16.msra.mxu0 %v12511_v22  ;;  %v5173_v10 = vshrl.u32 %v14385_v20, 16  ;;  %v5186_v61 = vshrl.u32 %v14390_v6, 16  ;;  %v14415_v16 = vrot.slane %v5853_v34, 7  ;;  %v5879_v38 = vshrl.u32 %v14404_v25, 16  ;;  %v14421_v55 = vld [vmem:[%s14305_s17 + $0x94] sm:$0xf] }
 0x3da   : > { %11618 = vmatprep.subr.bf16.mxu0 %v12515_v48  ;;  %11516 = vmatprep.mubr.bf16.mxu1 %v10212_v33  ;;  %v10286_v54 = vcombine.low %v14404_v25, %v14407_v8  ;;  %v14423_v57 = vrot.slane %v5866_v9, 7  ;;  %v5869_v53 = vshll.u32 %v14360_v5, 16  ;;  %v5892_v40 = vshrl.u32 %v14407_v8, 16  ;;  %v14431_v15 = vld [vmem:[%s14305_s17 + $0xa0] sm:$0xf]  ;;  %v12523_v17 = vld [vmem:[%s15597_s4 + $0x168] sm:$0xff]  }
 0x3db   : > { %11523 = vmatpush3.bf16.msra.mxu1 %v12514_v30  ;;  %v5176_v29 = vshll.u32 %v14385_v20, 16  ;;  %v10213_v44 = vcombine.low %v14421_v55, %v14431_v15  ;;  %v14440_v3 = vld [vmem:[%s14305_s17 + $0xa0] sm:$0xf]  ;;  %v14443_v18 = vld [vmem:[%s14305_s17 + $0xac] sm:$0xf]  ;;  %v14445_v62 = vrot.slane %v5173_v10, 7  ;;  %v5126_v47 = vor.u32 %v5124_v4, %v14341_v36 }
 0x3dc   : > { %11524 = vmatprep.subr.bf16.mxu1 %v12516_v27  ;;  %v14447_v43 = vrot.slane %v5186_v61, 7  ;;  %v5189_v7 = vshll.u32 %v14390_v6, 16  ;;  %v5882_v56 = vshll.u32 %v14404_v25, 16  ;;  %11612 = vmatprep.mubr.bf16.mxu0 %v10286_v54  ;;  %v14454_v51 = vrot.slane %v5879_v38, 7  ;;  %v5096_v22 = vld [vmem:[%s14305_s17] sm:$0x8] }
 0x3dd   : > { %11619 = vmatpush3.bf16.msra.mxu0 %v12515_v48  ;;  %v5895_v35 = vshll.u32 %v14407_v8, 16  ;;  %v10287_v19 = vcombine.low %v14440_v3, %v14443_v18  ;;  %v14462_v50 = vrot.slane %v5892_v40, 7  ;;  %v5199_v0 = vshrl.u32 %v14421_v55, 16  ;;  %v5098_v59 = vld [vmem:[%s14305_s17 + $0xc] sm:$0x8]  ;;  %v12525_v40 = vld [vmem:[%s15597_s4 + $0x30] sm:$0xff]  }
 0x3de   : > { %11620 = vmatprep.subr.bf16.mxu0 %v12517_v12  ;;  %11517 = vmatmul.mubr.bf16.gmra.mrb[4].mxu1 %v10213_v44  ;;  %v5139_v2 = vor.u32 %v5137_v39, %v14343_v32  ;;  %v5116_v30 = vshrl.u32 %v5096_v22, 16  ;;  %v5129_v63 = vshrl.u32 %v5098_v59, 16  ;;  %v12522_v48 = vld [vmem:[%s15597_s4 + $0x28] sm:$0xff]   ;;  %v5202_v34 = vshll.u32 %v14421_v55, 16  ;;  %v10296_v39 = vld [vmem:[%s14305_s17 + $0x10] sm:$0xf] }
 0x3df   : > { %11525 = vmatpush3.bf16.msra.mxu1 %v12516_v27  ;;  %v5212_v46 = vshrl.u32 %v14431_v15, 16  ;;  %v10297_v9 = vld [vmem:[%s14305_s17 + $0x14] sm:$0x1]  ;;  %v10298_v33 = vld [vmem:[%s14305_s17 + $0x1c] sm:$0xf]  ;;  %v6259_v10 = vshll.u32 %v10296_v39, 16  ;;  %v5871_v49 = vor.u32 %v5869_v53, %v14423_v57 }
 0x3e0   : > { %11526 = vmatprep.subr.bf16.mxu1 %v12518_v37  ;;  %11613 = vmatmul.mubr.bf16.gmra.mrb[4].mxu0 %v10287_v19  ;;  %v10202_v36 = vrot.slane %v5116_v30, 11  ;;  %v10203_v32 = vrot.slane %v5129_v63, 11  ;;  %v10299_v27 = vld [vmem:[%s14305_s17 + $0x20] sm:$0x1]  ;;  %v6265_v54 = vshll.u32 %v10297_v9, 16  ;;  %v6273_v22 = vshll.u32 %v10298_v33, 16 }
 0x3e1   : > { %11621 = vmatpush3.bf16.msra.mxu0 %v12517_v12  ;;  %v6256_v12 = vshrl.u32 %v10296_v39, 16  ;;  %v6261_v19 = vrot.slane %v6259_v10, 5  ;;  %v5100_v59 = vld [vmem:[%s14305_s17 + $0x18] sm:$0x8]  ;;  %v6279_v63 = vshll.u32 %v10299_v27, 16  ;;  %v5152_v39 = vor.u32 %v5150_v13, %v14392_v52  ;;  %v12536_v20 = vld [vmem:[%s15597_s4 + $0x90] sm:$0xff]  }
 0x3e2   : > { %11622 = vmatprep.subr.bf16.mxu0 %v12519_v14  ;;  %v5127_v61 = vsel %vm14478_vm1, %v10202_v36, %v5126_v47  ;;  %v5140_v38 = vsel %vm14478_vm1, %v10203_v32, %v5139_v2  ;;  %v12527_v47 = vld [vmem:[%s15597_s4 + $0x170] sm:$0xff]   ;;  %v6267_v30 = vrot.slane %v6265_v54, 5  ;;  %v5102_v36 = vld [vmem:[%s14305_s17 + $0x24] sm:$0x8]  ;;  %v5142_v32 = vshrl.u32 %v5100_v59, 16  ;;  %v12554_v42 = vld [vmem:[%s15597_s4 + $0xd8] sm:$0xff]  }
 0x3e3   : > { %11527 = vmatpush3.bf16.msra.mxu1 %v12518_v37  ;;  %v6270_v37 = vshrl.u32 %v10298_v33, 16  ;;  %v6258_v44 = vrot.slane %v6256_v12, 4  ;;  %v6275_v33 = vrot.slane %v6273_v22, 5  ;;  %v10300_v12 = vld [vmem:[%s14305_s17 + $0x28] sm:$0xf]  ;;  %v5215_v27 = vshll.u32 %v14431_v15, 16 }
 0x3e4   : > { %11528 = vmatprep.subr.bf16.mxu1 %v12520_v11  ;;  %v10301_v10 = vld [vmem:[%s14305_s17 + $0x2c] sm:$0x1]  ;;  %v6281_v13 = vrot.slane %v6279_v63, 5  ;;  %v10204_v52 = vrot.slane %v5142_v32, 11  ;;  %v6287_v59 = vshll.u32 %v10300_v12, 16  ;;  %v12540_v15 = vld [vmem:[%s15597_s4 + $0xa0] sm:$0xff]  }
 0x3e5   : > { %11623 = vmatpush3.bf16.msra.mxu0 %v12519_v14  ;;  %v10222_v14 = vcombine.low %v5127_v61, %v5140_v38  ;;  %v6272_v2 = vrot.slane %v6270_v37, 4  ;;  %v6262_v9 = vor.u32 %v6261_v19, %v6258_v44  ;;  %v14506_v61 = vrot.slane %v5199_v0, 7  ;;  %v12530_v0 = vld [vmem:[%s15597_s4 + $0x38] sm:$0xff]  }
 0x3e6   : > { %11624 = vmatprep.subr.bf16.mxu0 %v12521_v41  ;;  %v5165_v38 = vor.u32 %v5163_v45, %v14398_v60  ;;  %v6284_v44 = vshrl.u32 %v10300_v12, 16  ;;  %v12531_v19 = vld [vmem:[%s15597_s4 + $0x178] sm:$0xff]   ;;  %v6293_v63 = vshll.u32 %v10301_v10, 16  ;;  %v6289_v32 = vrot.slane %v6287_v59, 5 }
 0x3e7   : > { %11529 = vmatpush3.bf16.msra.mxu1 %v12520_v11  ;;  %v5155_v11 = vshrl.u32 %v5102_v36, 16  ;;  %11536 = vmatprep.mubr.bf16.mxu1 %v10222_v14  ;;  %v6263_v54 = vrot.slane %v6262_v9, 4  ;;  %v6276_v37 = vor.u32 %v6275_v33, %v6272_v2  ;;  %v10303_v14 = vld [vmem:[%s14305_s17 + $0x38] sm:$0x1]  ;;  %v5905_v2 = vshrl.u32 %v14440_v3, 16 }
 0x3e8   : > { %11530 = vmatprep.subr.bf16.mxu1 %v12522_v48  ;;  %v6286_v60 = vrot.slane %v6284_v44, 4  ;;  %v6307_v12 = vshll.u32 %v10303_v14, 16  ;;  %v5153_v10 = vsel %vm14478_vm1, %v10204_v52, %v5152_v39  ;;  %v5918_v44 = vshrl.u32 %v14443_v18, 16  ;;  %v12562_v8 = vld [vmem:[%s15597_s4 + $0xf8] sm:$0xff]  }
 0x3e9   : > { %11625 = vmatpush3.bf16.msra.mxu0 %v12521_v41  ;;  %v10302_v41 = vld [vmem:[%s14305_s17 + $0x34] sm:$0xf]  ;;  %v10205_v22 = vrot.slane %v5155_v11, 11  ;;  %v6268_v1 = vsel %vm14511_vm4, %v6263_v54, %v6267_v30  ;;  %v6277_v45 = vrot.slane %v6276_v37, 4  ;;  %v12532_v37 = vld [vmem:[%s15597_s4 + $0x80] sm:$0xff]  }
 0x3ea   : > { %11626 = vmatprep.subr.bf16.mxu0 %v12523_v17  ;;  %v6298_v36 = vshrl.u32 %v10302_v41, 16  ;;  %v6301_v11 = vshll.u32 %v10302_v41, 16  ;;  %v6290_v54 = vor.u32 %v6289_v32, %v6286_v60  ;;  %v6295_v41 = vrot.slane %v6293_v63, 5  ;;  %v12534_v63 = vld [vmem:[%s15597_s4 + $0x88] sm:$0xff]  }
 0x3eb   : > { %11531 = vmatpush3.bf16.msra.mxu1 %v12522_v48  ;;  %v5908_v48 = vshll.u32 %v14440_v3, 16  ;;  %v6282_v33 = vsel %vm14511_vm4, %v6277_v45, %v6281_v13  ;;  %v5166_v30 = vsel %vm14478_vm1, %v10205_v22, %v5165_v38  ;;  %v12533_v13 = vld [vmem:[%s15597_s4 + $0x180] sm:$0xff]   ;;  %v6309_v52 = vrot.slane %v6307_v12, 5  ;;  %v12563_v3 = vld [vmem:[%s15597_s4 + $0x1f8] sm:$0xff]  }
 0x3ec   : > { %11532 = vmatprep.subr.bf16.mxu1 %v12525_v40  ;;  %v6300_v9 = vrot.slane %v6298_v36, 4  ;;  %v6291_v39 = vrot.slane %v6290_v54, 4  ;;  %v10223_v38 = vcombine.low %v5153_v10, %v5166_v30  ;;  %v5921_v36 = vshll.u32 %v14443_v18, 16  ;;  %v10306_v10 = vld [vmem:[%s14305_s17 + $0x94] sm:$0xf] }
 0x3ed   : > { %11627 = vmatpush3.bf16.msra.mxu0 %v12523_v17  ;;  %v10312_v17 = vcombine.low %v6268_v1, %v6282_v33  ;;  %v5178_v1 = vor.u32 %v5176_v29, %v14445_v62  ;;  %v14564_v33 = vrot.slane %v5905_v2, 7  ;;  %v10304_v29 = vld [vmem:[%s14305_s17 + $0x88] sm:$0xf]  ;;  %v10305_v62 = vld [vmem:[%s14305_s17 + $0x8c] sm:$0x1] }
 0x3ee   : > { %11628 = vmatprep.subr.bf16.mxu0 %v12527_v47  ;;  %v6296_v22 = vsel %vm14511_vm4, %v6291_v39, %v6295_v41  ;;  %v10307_v30 = vld [vmem:[%s14305_s17 + $0x98] sm:$0x1]  ;;  %v6312_v54 = vshrl.u32 %v10304_v29, 16  ;;  %v6315_v6 = vshll.u32 %v10304_v29, 16  ;;  %v6329_v41 = vshll.u32 %v10306_v10, 16  ;;  %v12537_v39 = vld [vmem:[%s15597_s4 + $0x190] sm:$0xff]  }
 0x3ef   : > { %11533 = vmatpush3.bf16.msra.mxu1 %v12525_v40  ;;  %v6303_v40 = vrot.slane %v6301_v11, 5  ;;  %11632 = vmatprep.mubr.bf16.mxu0 %v10312_v17 }
 0x3f0   : > { %11534 = vmatprep.subr.bf16.mxu1 %v12530_v0 }
 0x3f1   : > { %11629 = vmatpush3.bf16.msra.mxu0 %v12527_v47  ;;  %v6304_v14 = vor.u32 %v6303_v40, %v6300_v9  ;;  %v5214_v47 = vrot.slane %v5212_v46, 7  ;;  %v12535_v46 = vld [vmem:[%s15597_s4 + $0x188] sm:$0xff]   ;;  %v5191_v9 = vor.u32 %v5189_v7, %v14447_v43  ;;  %v6321_v43 = vshll.u32 %v10305_v62, 16 }
 0x3f2   : > { %11630 = vmatprep.subr.bf16.mxu0 %v12531_v19  ;;  %v6326_v7 = vshrl.u32 %v10306_v10, 16  ;;  %v6335_v40 = vshll.u32 %v10307_v30, 16 }
 0x3f3   : > { %11535 = vmatpush3.bf16.msra.mxu1 %v12530_v0  ;;  %v6305_v59 = vrot.slane %v6304_v14, 4  ;;  %v5104_v0 = vld [vmem:[%s14305_s17 + $0x78] sm:$0x8]  ;;  %v6317_v14 = vrot.slane %v6315_v6, 5  ;;  %v5217_v55 = vor.u32 %v5215_v27, %v5214_v47 }
 0x3f4   : > { %11544 = vmatprep.subr.bf16.mxu1 %v12532_v37  ;;  %v5168_v60 = vshrl.u32 %v5104_v0, 16  ;;  %v6328_v0 = vrot.slane %v6326_v7, 4 }
 0x3f5   : > { %11631 = vmatpush3.bf16.msra.mxu0 %v12531_v19  ;;  %v5106_v19 = vld [vmem:[%s14305_s17 + $0x84] sm:$0x8]  ;;  %v6310_v45 = vsel %vm14511_vm4, %v6305_v59, %v6309_v52  ;;  %v12538_v52 = vld [vmem:[%s15597_s4 + $0x98] sm:$0xff]   ;;  %v5204_v59 = vor.u32 %v5202_v34, %v14506_v61  ;;  %v10308_v34 = vld [vmem:[%s14305_s17 + $0xa0] sm:$0xf] }
 0x3f6   : > { %11640 = vmatprep.subr.bf16.mxu0 %v12533_v13  ;;  %11537 = vmatmul.mubr.bf16.vlgmr.msra.gmra.mrb[0].mxu1 %v10223_v38  ;;  %v5181_v32 = vshrl.u32 %v5106_v19, 16  ;;  %v10313_v11 = vcombine.low %v6296_v22, %v6310_v45  ;;  %v10206_v12 = vrot.slane %v5168_v60, 11  ;;  %v6314_v38 = vrot.slane %v6312_v54, 4  ;;  %v5108_v22 = vld [vmem:[%s14305_s17 + $0x90] sm:$0x8]  ;;  %v12539_v60 = vld [vmem:[%s15597_s4 + $0x198] sm:$0xff]  }
 0x3f7   : > { %11545 = vmatpush3.bf16.msra.mxu1 %v12532_v37  ;;  %v6331_v19 = vrot.slane %v6329_v41, 5  ;;  %v5194_v45 = vshrl.u32 %v5108_v22, 16  ;;  %v10309_v61 = vld [vmem:[%s14305_s17 + $0xa4] sm:$0x1]  ;;  %v6340_v10 = vshrl.u32 %v10308_v34, 16  ;;  %v6343_v6 = vshll.u32 %v10308_v34, 16 }
 0x3f8   : > { %11546 = vmatprep.subr.bf16.mxu1 %v12534_v63  ;;  %v10207_v17 = vrot.slane %v5181_v32, 11  ;;  %11633 = vmatmul.mubr.bf16.vlgmr.msra.gmra.mrb[0].mxu0 %v10313_v11  ;;  %v5179_v2 = vsel %vm14478_vm1, %v10206_v12, %v5178_v1  ;;  %v5110_v1 = vld [vmem:[%s14305_s17 + $0x9c] sm:$0x8]  ;;  %v6318_v32 = vor.u32 %v6317_v14, %v6314_v38  ;;  %v10310_v12 = vld [vmem:[%s14305_s17 + $0xac] sm:$0xf] }
 0x3f9   : > { %11641 = vmatpush3.bf16.msra.mxu0 %v12533_v13  ;;  %v5207_v11 = vshrl.u32 %v5110_v1, 16  ;;  %v6332_v29 = vor.u32 %v6331_v19, %v6328_v0  ;;  %v10208_v62 = vrot.slane %v5194_v45, 11  ;;  %v6354_v7 = vshrl.u32 %v10310_v12, 16  ;;  %v5517_v0 = vld [vmem:[%s14305_s17 + $0x4] sm:$0xf] }
 0x3fa   : > { %v5192_v37 = vsel %vm14478_vm1, %v10207_v17, %v5191_v9  ;;  %11642 = vmatprep.subr.bf16.mxu0 %v12535_v46  ;;  %v6337_v9 = vrot.slane %v6335_v40, 5  ;;  %v10311_v17 = vld [vmem:[%s14305_s17 + $0xb0] sm:$0x1]  ;;  %v6319_v30 = vrot.slane %v6318_v32, 4  ;;  %v6345_v41 = vrot.slane %v6343_v6, 5 }
 0x3fb   : > { %11547 = vmatpush3.bf16.msra.mxu1 %v12534_v63  ;;  %v10224_v13 = vcombine.low %v5179_v2, %v5192_v37  ;;  %v6323_v63 = vrot.slane %v6321_v43, 5  ;;  %v10209_v54 = vrot.slane %v5207_v11, 11  ;;  %v6349_v43 = vshll.u32 %v10309_v61, 16  ;;  %v5519_v32 = vld [vmem:[%s14305_s17 + $0x10] sm:$0xf] }
 0x3fc   : > { %11548 = vmatprep.subr.bf16.mxu1 %v12536_v20  ;;  %v6333_v27 = vrot.slane %v6332_v29, 4  ;;  %v5205_v47 = vsel %vm14478_vm1, %v10208_v62, %v5204_v59  ;;  %v6356_v22 = vrot.slane %v6354_v7, 4  ;;  %v6357_v59 = vshll.u32 %v10310_v12, 16  ;;  %v5520_v11 = vld [vmem:[%s14305_s17 + $0x14] sm:$0x1] }
 0x3fd   : > { %11540 = vmatprep.mubr.bf16.mxu1 %v10224_v13  ;;  %11643 = vmatpush3.bf16.msra.mxu0 %v12535_v46  ;;  %v6342_v46 = vrot.slane %v6340_v10, 4  ;;  %v6324_v2 = vsel %vm14511_vm4, %v6319_v30, %v6323_v63  ;;  %v5218_v37 = vsel %vm14478_vm1, %v10209_v54, %v5217_v55  ;;  %v6351_v40 = vrot.slane %v6349_v43, 5  ;;  %v12542_v13 = vld [vmem:[%s15597_s4 + $0xa8] sm:$0xff]   ;;  %v10326_v43 = vld [vmem:[%s14305_s17 + $0x18] sm:$0x8] }
 0x3fe   : > { %11644 = vmatprep.subr.bf16.mxu0 %v12537_v39  ;;  %v6338_v38 = vsel %vm14511_vm4, %v6333_v27, %v6337_v9  ;;  %v10225_v14 = vcombine.low %v5205_v47, %v5218_v37  ;;  %v5518_v63 = vld [vmem:[%s14305_s17 + $0x8] sm:$0x1]  ;;  %v6363_v45 = vshll.u32 %v10311_v17, 16  ;;  %v6359_v55 = vrot.slane %v6357_v59, 5  ;;  %v14625_v7 = vld [vmem:[%s14305_s17 + $0x1c] sm:$0xf] }
 0x3ff   : > { %11549 = vmatpush3.bf16.msra.mxu1 %v12536_v20  ;;  %v12541_v20 = vld [vmem:[%s15597_s4 + $0x1a0] sm:$0xff]   ;;  %v10314_v19 = vcombine.low %v6324_v2, %v6338_v38  ;;  %v6346_v1 = vor.u32 %v6345_v41, %v6342_v46  ;;  %v5540_v34 = vshll.u32 %v5517_v0, 16  ;;  %v5546_v61 = vshll.u32 %v5518_v63, 16  ;;  %v12543_v17 = vld [vmem:[%s15597_s4 + $0x1a8] sm:$0xff]   ;;  %v12544_v2 = vld [vmem:[%s15597_s4 + $0xb0] sm:$0xff]  }
 0x400   : > { %11550 = vmatprep.subr.bf16.mxu1 %v12538_v52  ;;  %11541 = vmatmul.mubr.bf16.gmra.mrb[4].mxu1 %v10225_v14  ;;  %v5551_v9 = vshrl.u32 %v5519_v32, 16  ;;  %v6365_v62 = vrot.slane %v6363_v45, 5  ;;  %v6360_v10 = vor.u32 %v6359_v55, %v6356_v22  ;;  %v5560_v46 = vshll.u32 %v5520_v11, 16  ;;  %v14632_v38 = vld [vmem:[%s14305_s17 + $0x28] sm:$0xf]  ;;  %v12545_v63 = vld [vmem:[%s15597_s4 + $0x1b0] sm:$0xff]  }
 0x401   : > { %11645 = vmatpush3.bf16.msra.mxu0 %v12537_v39  ;;  %v5537_v39 = vshrl.u32 %v5517_v0, 16  ;;  %11636 = vmatprep.mubr.bf16.mxu0 %v10314_v19  ;;  %v6347_v29 = vrot.slane %v6346_v1, 4  ;;  %v5542_v30 = vrot.slane %v5540_v34, 5  ;;  %v5548_v54 = vrot.slane %v5546_v61, 5  ;;  %v5521_v61 = vld [vmem:[%s14305_s17 + $0x1c] sm:$0xf] }
 0x402   : > { %11646 = vmatprep.subr.bf16.mxu0 %v12539_v60  ;;  %v5553_v6 = vrot.slane %v5551_v9, 4  ;;  %v6361_v37 = vrot.slane %v6360_v10, 4  ;;  %v6541_v14 = vshrl.u32 %v10326_v43, 16  ;;  %v5562_v59 = vrot.slane %v5560_v46, 5  ;;  %v12547_v10 = vld [vmem:[%s15597_s4 + $0x1b8] sm:$0xff]  }
 0x403   : > { %11551 = vmatpush3.bf16.msra.mxu1 %v12538_v52  ;;  %v5539_v12 = vrot.slane %v5537_v39, 4  ;;  %v5554_v52 = vshll.u32 %v5519_v32, 16  ;;  %v6352_v27 = vsel %vm14511_vm4, %v6347_v29, %v6351_v40  ;;  %v6549_v40 = vshll.u32 %v14625_v7, 16  ;;  %v12546_v39 = vld [vmem:[%s15597_s4 + $0xb8] sm:$0xff]   ;;  %v5524_v43 = vld [vmem:[%s14305_s17 + $0x2c] sm:$0x1] }
 0x404   : > { %11552 = vmatprep.subr.bf16.mxu1 %v12540_v15  ;;  %v6366_v19 = vsel %vm14511_vm4, %v6361_v37, %v6365_v62  ;;  %v10342_v45 = vrot.slane %v6541_v14, 11  ;;  %v6559_v34 = vshrl.u32 %v14632_v38, 16  ;;  %v6562_v62 = vshll.u32 %v14632_v38, 16  ;;  %v14661_v14 = vld [vmem:[%s14305_s17 + $0x34] sm:$0xf] }
 0x405   : > { %11647 = vmatpush3.bf16.msra.mxu0 %v12539_v60  ;;  %v5556_v47 = vrot.slane %v5554_v52, 5  ;;  %v10328_v60 = vld [vmem:[%s14305_s17 + $0x24] sm:$0x8]  ;;  %v5543_v41 = vor.u32 %v5542_v30, %v5539_v12  ;;  %v10315_v11 = vcombine.low %v6352_v27, %v6366_v19  ;;  %v5523_v12 = vld [vmem:[%s14305_s17 + $0x28] sm:$0xf]  ;;  %v5565_v52 = vshrl.u32 %v5521_v61, 16 }
 0x406   : > { %11648 = vmatprep.subr.bf16.mxu0 %v12541_v20  ;;  %v6554_v0 = vshrl.u32 %v10328_v60, 16  ;;  %v5568_v27 = vshll.u32 %v5521_v61, 16  ;;  %v5579_v37 = vshrl.u32 %v5523_v12, 16  ;;  %v6575_v61 = vshll.u32 %v14661_v14, 16 }
 0x407   : > { %11553 = vmatpush3.bf16.msra.mxu1 %v12540_v15  ;;  %v6546_v15 = vshrl.u32 %v14625_v7, 16  ;;  %v5557_v22 = vor.u32 %v5556_v47, %v5553_v6  ;;  %v5544_v1 = vrot.slane %v5543_v41, 4  ;;  %11637 = vmatmul.mubr.bf16.gmra.mrb[4].mxu0 %v10315_v11  ;;  %v6561_v6 = vrot.slane %v6559_v34, 7  ;;  %v10330_v41 = vld [vmem:[%s14305_s17 + $0x30] sm:$0x8] }
 0x408   : > { %11554 = vmatprep.subr.bf16.mxu1 %v12542_v13  ;;  %v10343_v55 = vrot.slane %v6554_v0, 11  ;;  %v5567_v60 = vrot.slane %v5565_v52, 4  ;;  %v10332_v0 = vld [vmem:[%s14305_s17 + $0x3c] sm:$0x8]  ;;  %v5581_v19 = vrot.slane %v5579_v37, 4  ;;  %v6572_v11 = vshrl.u32 %v14661_v14, 16 }
 0x409   : > { %11649 = vmatpush3.bf16.msra.mxu0 %v12541_v20  ;;  %v6548_v32 = vrot.slane %v6546_v15, 7  ;;  %v5558_v20 = vrot.slane %v5557_v22, 4  ;;  %v5549_v9 = vsel %vm14511_vm4, %v5544_v1, %v5548_v54  ;;  %v12548_v15 = vld [vmem:[%s15597_s4 + $0xc0] sm:$0xff]   ;;  %v6564_v22 = vor.u32 %v6562_v62, %v6561_v6 }
 0x40a   : > { %11650 = vmatprep.subr.bf16.mxu0 %v12543_v17  ;;  %v5588_v1 = vshll.u32 %v5524_v43, 16  ;;  %v6580_v6 = vshrl.u32 %v10332_v0, 16  ;;  %v14680_v43 = vrot.slane %v5918_v44, 7  ;;  %v12550_v44 = vld [vmem:[%s15597_s4 + $0xc8] sm:$0xff]   ;;  %v5525_v0 = vld [vmem:[%s14305_s17 + $0x7c] sm:$0xf] }
 0x40b   : > { %11555 = vmatpush3.bf16.msra.mxu1 %v12542_v13  ;;  %v6551_v29 = vor.u32 %v6549_v40, %v6548_v32  ;;  %v5522_v13 = vld [vmem:[%s14305_s17 + $0x20] sm:$0x1]  ;;  %v5563_v30 = vsel %vm14511_vm4, %v5558_v20, %v5562_v59  ;;  %v5570_v59 = vrot.slane %v5568_v27, 5  ;;  %v6567_v32 = vshrl.u32 %v10330_v41, 16 }
 0x40c   : > { %11556 = vmatprep.subr.bf16.mxu1 %v12544_v2  ;;  %v5574_v54 = vshll.u32 %v5522_v13, 16  ;;  %v10234_v47 = vcombine.low %v5549_v9, %v5563_v30  ;;  %v6574_v13 = vrot.slane %v6572_v11, 7  ;;  %v5593_v11 = vshrl.u32 %v5525_v0, 16 }
 0x40d   : > { %11651 = vmatpush3.bf16.msra.mxu0 %v12543_v17  ;;  %v6552_v46 = vsel %vm14478_vm1, %v10342_v45, %v6551_v29  ;;  %v5582_v17 = vshll.u32 %v5523_v12, 16  ;;  %v14668_v45 = vld [vmem:[%s14305_s17 + $0x40] sm:$0xf]  ;;  %v5571_v20 = vor.u32 %v5570_v59, %v5567_v60  ;;  %v5590_v29 = vrot.slane %v5588_v1, 5  ;;  %v12551_v59 = vld [vmem:[%s15597_s4 + $0x1c8] sm:$0xff]  }
 0x40e   : > { %11652 = vmatprep.subr.bf16.mxu0 %v12545_v63  ;;  %v5576_v40 = vrot.slane %v5574_v54, 5  ;;  %11560 = vmatprep.mubr.bf16.mxu1 %v10234_v47  ;;  %v10344_v62 = vrot.slane %v6567_v32, 11  ;;  %v12549_v12 = vld [vmem:[%s15597_s4 + $0x1c0] sm:$0xff]   ;;  %v6588_v27 = vshll.u32 %v14668_v45, 16  ;;  %v10345_v47 = vrot.slane %v6580_v6, 11 }
 0x40f   : > { %11557 = vmatpush3.bf16.msra.mxu1 %v12544_v2  ;;  %v6565_v2 = vsel %vm14478_vm1, %v10343_v55, %v6564_v22  ;;  %v5584_v34 = vrot.slane %v5582_v17, 5  ;;  %v5572_v52 = vrot.slane %v5571_v20, 4  ;;  %v6585_v55 = vshrl.u32 %v14668_v45, 16  ;;  %v12552_v17 = vld [vmem:[%s15597_s4 + $0xd0] sm:$0xff]   ;;  %v5527_v1 = vld [vmem:[%s14305_s17 + $0x88] sm:$0xf] }
 0x410   : > { %11558 = vmatprep.subr.bf16.mxu1 %v12546_v39  ;;  %v10350_v9 = vcombine.low %v6552_v46, %v6565_v2  ;;  %v5528_v32 = vld [vmem:[%s14305_s17 + $0x8c] sm:$0x1]  ;;  %v5596_v2 = vshll.u32 %v5525_v0, 16  ;;  %v12553_v20 = vld [vmem:[%s15597_s4 + $0x1d0] sm:$0xff]   ;;  %v5531_v0 = vld [vmem:[%s14305_s17 + $0xa0] sm:$0xf] }
 0x411   : > { %11653 = vmatpush3.bf16.msra.mxu0 %v12545_v63  ;;  %v5585_v30 = vor.u32 %v5584_v34, %v5581_v19  ;;  %v6577_v63 = vor.u32 %v6575_v61, %v6574_v13  ;;  %v6587_v46 = vrot.slane %v6585_v55, 7  ;;  %v5526_v19 = vld [vmem:[%s14305_s17 + $0x80] sm:$0x1]  ;;  %v5607_v61 = vshrl.u32 %v5527_v1, 16  ;;  %v14719_v6 = vld [vmem:[%s14305_s17 + $0x94] sm:$0xf] }
 0x412   : > { %11654 = vmatprep.subr.bf16.mxu0 %v12547_v10  ;;  %11656 = vmatprep.mubr.bf16.mxu0 %v10350_v9  ;;  %v5602_v34 = vshll.u32 %v5526_v19, 16  ;;  %v5610_v9 = vshll.u32 %v5527_v1, 16  ;;  %v14716_v13 = vor.u32 %v5843_v23, %v14379_v24  ;;  %v10336_v55 = vld [vmem:[%s14305_s17 + $0x9c] sm:$0x8]  ;;  %v6598_v24 = vshrl.u32 %v14719_v6, 16  ;;  %v12556_v1 = vld [vmem:[%s15597_s4 + $0xe0] sm:$0xff]  }
 0x413   : > { %11559 = vmatpush3.bf16.msra.mxu1 %v12546_v39  ;;  %v5577_v39 = vsel %vm14511_vm4, %v5572_v52, %v5576_v40  ;;  %v5586_v54 = vrot.slane %v5585_v30, 4  ;;  %v6578_v37 = vsel %vm14478_vm1, %v10344_v62, %v6577_v63  ;;  %v6590_v41 = vor.u32 %v6588_v27, %v6587_v46  ;;  %v10334_v62 = vld [vmem:[%s14305_s17 + $0x90] sm:$0x8] }
 0x414   : > { %11568 = vmatprep.subr.bf16.mxu1 %v12548_v15  ;;  %v5595_v52 = vrot.slane %v5593_v11, 4  ;;  %v5598_v30 = vrot.slane %v5596_v2, 5  ;;  %v5604_v63 = vrot.slane %v5602_v34, 5  ;;  %v5609_v27 = vrot.slane %v5607_v61, 4  ;;  %v5532_v34 = vld [vmem:[%s14305_s17 + $0xa4] sm:$0x1] }
 0x415   : > { %11655 = vmatpush3.bf16.msra.mxu0 %v12547_v10  ;;  %v5591_v60 = vsel %vm14511_vm4, %v5586_v54, %v5590_v29  ;;  %v6591_v10 = vsel %vm14478_vm1, %v10345_v47, %v6590_v41  ;;  %v5616_v29 = vshll.u32 %v5528_v32, 16  ;;  %v5529_v54 = vld [vmem:[%s14305_s17 + $0x94] sm:$0xf]  ;;  %v12555_v47 = vld [vmem:[%s15597_s4 + $0x1d8] sm:$0xff]  }
 0x416   : > { %11664 = vmatprep.subr.bf16.mxu0 %v12549_v12  ;;  %v10235_v22 = vcombine.low %v5577_v39, %v5591_v60  ;;  %v10351_v40 = vcombine.low %v6578_v37, %v6591_v10  ;;  %v5612_v39 = vrot.slane %v5610_v9, 5  ;;  %v5599_v23 = vor.u32 %v5598_v30, %v5595_v52  ;;  %v5530_v41 = vld [vmem:[%s14305_s17 + $0x98] sm:$0x1]  ;;  %v12557_v52 = vld [vmem:[%s15597_s4 + $0x1e0] sm:$0xff]  }
 0x417   : > { %v5618_v58 = vrot.slane %v5616_v29, 5  ;;  %v5621_v19 = vshrl.u32 %v5529_v54, 16  ;;  %v5624_v61 = vshll.u32 %v5529_v54, 16  ;;  %v10340_v54 = vld [vmem:[%s14305_s17 + $0xb4] sm:$0x8] }
 0x418   : > { %11561 = vmatmul.mubr.bf16.vlgmr.msra.gmra.mrb[0].mxu1 %v10235_v22  ;;  %11657 = vmatmul.mubr.bf16.vlgmr.msra.gmra.mrb[0].mxu0 %v10351_v40  ;;  %v5613_v46 = vor.u32 %v5612_v39, %v5609_v27  ;;  %v5600_v22 = vrot.slane %v5599_v23, 4  ;;  %v6600_v40 = vrot.slane %v6598_v24, 7  ;;  %v5635_v39 = vshrl.u32 %v5531_v0, 16  ;;  %v14751_v23 = vld [vmem:[%s14305_s17 + $0xac] sm:$0xf] }
 0x419   : > { %11569 = vmatpush3.bf16.msra.mxu1 %v12548_v15  ;;  %v14711_v15 = vor.u32 %v5830_v28, %v14376_v26  ;;  %11665 = vmatpush3.bf16.msra.mxu0 %v12549_v12  ;;  %v14723_v28 = vld [vmem:[%s14305_s17 + $0xa0] sm:$0xf]  ;;  %v6593_v26 = vshrl.u32 %v10334_v62, 16  ;;  %v6601_v12 = vshll.u32 %v14719_v6, 16  ;;  %v5623_v29 = vrot.slane %v5621_v19, 4 }
 0x41a   : > { %11570 = vmatprep.subr.bf16.mxu1 %v12550_v44  ;;  %11666 = vmatprep.subr.bf16.mxu0 %v12551_v59  ;;  %v6611_v60 = vshrl.u32 %v14723_v28, 16  ;;  %v6614_v37 = vshll.u32 %v14723_v28, 16  ;;  %v5614_v32 = vrot.slane %v5613_v46, 4  ;;  %v5630_v62 = vshll.u32 %v5530_v41, 16  ;;  %v14757_v46 = vld [vmem:[%s14305_s17 + $0xb8] sm:$0xf] }
 0x41b   : > { %v10346_v10 = vrot.slane %v6593_v26, 11  ;;  %v6603_v9 = vor.u32 %v6601_v12, %v6600_v40  ;;  %v5626_v27 = vrot.slane %v5624_v61, 5  ;;  %v5638_v12 = vshll.u32 %v5531_v0, 16 }
 0x41c   : > { %v6613_v2 = vrot.slane %v6611_v60, 7  ;;  %v5619_v30 = vsel %vm14511_vm4, %v5614_v32, %v5618_v58  ;;  %v5632_v24 = vrot.slane %v5630_v62, 5  ;;  %v5637_v60 = vrot.slane %v5635_v39, 4 }
 0x41d   : > { %11571 = vmatpush3.bf16.msra.mxu1 %v12550_v44  ;;  %v6606_v44 = vshrl.u32 %v10336_v55, 16  ;;  %11667 = vmatpush3.bf16.msra.mxu0 %v12551_v59  ;;  %v5605_v59 = vsel %vm14511_vm4, %v5600_v22, %v5604_v63  ;;  %v6604_v26 = vsel %vm14478_vm1, %v10346_v10, %v6603_v9  ;;  %v5640_v22 = vrot.slane %v5638_v12, 5 }
 0x41e   : > { %11572 = vmatprep.subr.bf16.mxu1 %v12552_v17  ;;  %11668 = vmatprep.subr.bf16.mxu0 %v12553_v20  ;;  %v6616_v55 = vor.u32 %v6614_v37, %v6613_v2  ;;  %v10236_v63 = vcombine.low %v5605_v59, %v5619_v30  ;;  %v5644_v37 = vshll.u32 %v5532_v34, 16  ;;  %v6624_v40 = vshrl.u32 %v14751_v23, 16  ;;  %v10248_v30 = vld [vmem:[%s14305_s17 + $0xc] sm:$0x8] }
 0x41f   : > { %v10347_v11 = vrot.slane %v6606_v44, 11  ;;  %v5627_v44 = vor.u32 %v5626_v27, %v5623_v29  ;;  %v6627_v32 = vshll.u32 %v14751_v23, 16  ;;  %v5641_v2 = vor.u32 %v5640_v22, %v5637_v60  ;;  %v10256_v60 = vld [vmem:[%s14305_s17 + $0x84] sm:$0x8] }
 0x420   : > { %11564 = vmatprep.mubr.bf16.mxu1 %v10236_v63  ;;  %v5646_v19 = vrot.slane %v5644_v37, 5  ;;  %v6626_v61 = vrot.slane %v6624_v40, 7  ;;  %v6637_v59 = vshrl.u32 %v14757_v46, 16  ;;  %v5858_v9 = vor.u32 %v5856_v21, %v14415_v16  ;;  %v12560_v21 = vld [vmem:[%s15597_s4 + $0xf0] sm:$0xff]  }
 0x421   : > { %11573 = vmatpush3.bf16.msra.mxu1 %v12552_v17  ;;  %v10338_v17 = vld [vmem:[%s14305_s17 + $0xa8] sm:$0x8]  ;;  %11669 = vmatpush3.bf16.msra.mxu0 %v12553_v20  ;;  %v6617_v58 = vsel %vm14478_vm1, %v10347_v11, %v6616_v55  ;;  %v5628_v0 = vrot.slane %v5627_v44, 4  ;;  %v6632_v11 = vshrl.u32 %v10340_v54, 16  ;;  %v6640_v62 = vshll.u32 %v14757_v46, 16  ;;  %v12561_v54 = vld [vmem:[%s15597_s4 + $0x1f0] sm:$0xff]  }
 0x422   : > { %11574 = vmatprep.subr.bf16.mxu1 %v12554_v42  ;;  %11670 = vmatprep.subr.bf16.mxu0 %v12555_v47  ;;  %v12558_v20 = vld [vmem:[%s15597_s4 + $0xe8] sm:$0xff]   ;;  %v10352_v41 = vcombine.low %v6604_v26, %v6617_v58  ;;  %v6619_v10 = vshrl.u32 %v10338_v17, 16  ;;  %v5642_v55 = vrot.slane %v5641_v2, 4  ;;  %v6629_v27 = vor.u32 %v6627_v32, %v6626_v61  ;;  %v10250_v17 = vld [vmem:[%s14305_s17 + $0x18] sm:$0x8] }
 0x423   : > { %v10349_v29 = vrot.slane %v6632_v11, 11  ;;  %v6639_v39 = vrot.slane %v6637_v59, 7  ;;  %v5822_v63 = vshrl.u32 %v10248_v30, 16  ;;  %v5835_v16 = vshrl.u32 %v10250_v17, 16  ;;  %v10252_v26 = vld [vmem:[%s14305_s17 + $0x24] sm:$0x8] }
 0x424   : > { %11660 = vmatprep.mubr.bf16.mxu0 %v10352_v41  ;;  %v10348_v34 = vrot.slane %v6619_v10, 11  ;;  %v5897_v12 = vor.u32 %v5895_v35, %v14462_v50  ;;  %v5647_v5 = vsel %vm14511_vm4, %v5642_v55, %v5646_v19  ;;  %v5848_v35 = vshrl.u32 %v10252_v26, 16  ;;  %v10258_v37 = vld [vmem:[%s14305_s17 + $0x90] sm:$0x8]  ;;  %v12566_v59 = vld [vmem:[%s15597_s4 + $0x200] sm:$0xff]  }
 0x425   : > { %11575 = vmatpush3.bf16.msra.mxu1 %v12554_v42  ;;  %11671 = vmatpush3.bf16.msra.mxu0 %v12555_v47  ;;  %v12559_v42 = vld [vmem:[%s15597_s4 + $0x1e8] sm:$0xff]   ;;  %v5633_v47 = vsel %vm14511_vm4, %v5628_v0, %v5632_v24  ;;  %v10254_v24 = vld [vmem:[%s14305_s17 + $0x30] sm:$0x8]  ;;  %v6642_v53 = vor.u32 %v6640_v62, %v6639_v39  ;;  %v10264_v25 = vrot.slane %v5822_v63, 11  ;;  %v10362_v44 = vcombine.low %v14625_v7, %v14632_v38  ;;  %v10260_v0 = vld [vmem:[%s14305_s17 + $0x9c] sm:$0x8] }
 0x426   : > { %11576 = vmatprep.subr.bf16.mxu1 %v12556_v1  ;;  %11672 = vmatprep.subr.bf16.mxu0 %v12557_v52  ;;  %v6630_v57 = vsel %vm14478_vm1, %v10348_v34, %v6629_v27  ;;  %v5861_v50 = vshrl.u32 %v10254_v24, 16  ;;  %v5910_v41 = vor.u32 %v5908_v48, %v14564_v33  ;;  %v10266_v10 = vrot.slane %v5848_v35, 11  ;;  %v10374_v27 = vld [vmem:[%s14305_s17 + $0x1c] sm:$0xf]  ;;  %v10375_v39 = vld [vmem:[%s14305_s17 + $0x20] sm:$0x1] }
 0x427   : > { %v5833_v58 = vsel %vm14478_vm1, %v10264_v25, %v14711_v15  ;;  %v10262_v15 = vld [vmem:[%s14305_s17 + $0xa8] sm:$0x8]  ;;  %v5874_v7 = vshrl.u32 %v10256_v60, 16  ;;  %v5887_v38 = vshrl.u32 %v10258_v37, 16  ;;  %v5900_v32 = vshrl.u32 %v10260_v0, 16 }
 0x428   : > { %v10267_v40 = vrot.slane %v5861_v50, 11  ;;  %v5859_v48 = vsel %vm14478_vm1, %v10266_v10, %v5858_v9  ;;  %v5923_v11 = vor.u32 %v5921_v36, %v14680_v43  ;;  %v10363_v30 = vcombine.low %v14661_v14, %v14668_v45  ;;  %v10376_v17 = vld [vmem:[%s14305_s17 + $0x28] sm:$0xf]  ;;  %v10377_v63 = vld [vmem:[%s14305_s17 + $0x2c] sm:$0x1] }
 0x429   : > { %11577 = vmatpush3.bf16.msra.mxu1 %v12556_v1  ;;  %v5884_v1 = vor.u32 %v5882_v56, %v14454_v51  ;;  %11673 = vmatpush3.bf16.msra.mxu0 %v12557_v52  ;;  %v10237_v56 = vcombine.low %v5633_v47, %v5647_v5  ;;  %v10265_v51 = vrot.slane %v5835_v16, 11  ;;  %v6643_v52 = vsel %vm14478_vm1, %v10349_v29, %v6642_v53  ;;  %v12567_v47 = vld [vmem:[%s15597_s4 + $0x208] sm:$0xff]   ;;  %v10382_v14 = vld [vmem:[%s14305_s17 + $0x94] sm:$0xf]  ;;  %v10383_v45 = vld [vmem:[%s14305_s17 + $0x98] sm:$0x1] }
 0x42a   : > { %11578 = vmatprep.subr.bf16.mxu1 %v12558_v20  ;;  %11674 = vmatprep.subr.bf16.mxu0 %v12559_v42  ;;  %v10353_v22 = vcombine.low %v6630_v57, %v6643_v52  ;;  %v5872_v33 = vsel %vm14478_vm1, %v10267_v40, %v5871_v49  ;;  %v10268_v2 = vrot.slane %v5874_v7, 11  ;;  %v10269_v34 = vrot.slane %v5887_v38, 11  ;;  %v12571_v7 = vld [vmem:[%s15597_s4 + $0x218] sm:$0xff]  }
 0x42b   : > { %11565 = vmatmul.mubr.bf16.gmra.mrb[4].mxu1 %v10237_v56  ;;  %v10270_v61 = vrot.slane %v5900_v32, 11  ;;  %v6975_v49 = vshrl.u32 %v10374_v27, 16  ;;  %v6984_v16 = vshll.u32 %v10375_v39, 16  ;;  %v6989_v26 = vshrl.u32 %v10376_v17, 16 }
 0x42c   : > { %11661 = vmatmul.mubr.bf16.gmra.mrb[4].mxu0 %v10353_v22  ;;  %v5885_v18 = vsel %vm14478_vm1, %v10268_v2, %v5884_v1  ;;  %v5898_v36 = vsel %vm14478_vm1, %v10269_v34, %v5897_v12  ;;  %v10364_v4 = vcombine.low %v14719_v6, %v14723_v28  ;;  %v6992_v24 = vshll.u32 %v10376_v17, 16  ;;  %v12570_v6 = vld [vmem:[%s15597_s4 + $0x210] sm:$0xff]   ;;  %v10388_v34 = vld [vmem:[%s14305_s17 + $0xb8] sm:$0xf] }
 0x42d   : > { %11579 = vmatpush3.bf16.msra.mxu1 %v12558_v20  ;;  %v5846_v20 = vsel %vm14478_vm1, %v10265_v51, %v14716_v13  ;;  %11675 = vmatpush3.bf16.msra.mxu0 %v12559_v42  ;;  %v5913_v13 = vshrl.u32 %v10262_v15, 16  ;;  %v10273_v42 = vcombine.low %v5859_v48, %v5872_v33  ;;  %v5911_v43 = vsel %vm14478_vm1, %v10270_v61, %v5910_v41  ;;  %v12572_v61 = vld [vmem:[%s15597_s4 + $0x220] sm:$0xff]  }
 0x42e   : > { %11580 = vmatprep.subr.bf16.mxu1 %v12560_v21  ;;  %v10272_v19 = vcombine.low %v5833_v58, %v5846_v20  ;;  %11676 = vmatprep.subr.bf16.mxu0 %v12561_v54  ;;  %v10274_v29 = vcombine.low %v5885_v18, %v5898_v36  ;;  %v6998_v1 = vshll.u32 %v10377_v63, 16  ;;  %v6977_v12 = vrot.slane %v6975_v49, 4  ;;  %v10387_v49 = vld [vmem:[%s14305_s17 + $0xb0] sm:$0x1] }
 0x42f   : > { %11680 = vmatprep.mubr.bf16.mxu0 %v10362_v44  ;;  %v10271_v9 = vrot.slane %v5913_v13, 11  ;;  %v6986_v57 = vrot.slane %v6984_v16, 5  ;;  %v6991_v53 = vrot.slane %v6989_v26, 4  ;;  %v6994_v25 = vrot.slane %v6992_v24, 5  ;;  %v10378_v13 = vld [vmem:[%s14305_s17 + $0x34] sm:$0xf] }
 0x430   : > { %11584 = vmatprep.mubr.bf16.mxu1 %v10272_v19  ;;  %v7000_v56 = vrot.slane %v6998_v1, 5  ;;  %v7031_v51 = vshrl.u32 %v10382_v14, 16  ;;  %v7034_v35 = vshll.u32 %v10382_v14, 16  ;;  %v7040_v50 = vshll.u32 %v10383_v45, 16  ;;  %v10379_v14 = vld [vmem:[%s14305_s17 + $0x38] sm:$0x1] }
 0x431   : > { %11581 = vmatpush3.bf16.msra.mxu1 %v12560_v21  ;;  %11677 = vmatpush3.bf16.msra.mxu0 %v12561_v54  ;;  %v5924_v62 = vsel %vm14478_vm1, %v10271_v9, %v5923_v11  ;;  %v6978_v21 = vshll.u32 %v10374_v27, 16  ;;  %v10384_v54 = vld [vmem:[%s14305_s17 + $0xa0] sm:$0xf]  ;;  %v6995_v44 = vor.u32 %v6994_v25, %v6991_v53  ;;  %v10365_v19 = vcombine.low %v14751_v23, %v14757_v46  ;;  %v10386_v11 = vld [vmem:[%s14305_s17 + $0xac] sm:$0xf] }
 0x432   : > { %11582 = vmatprep.subr.bf16.mxu1 %v12562_v8  ;;  %11678 = vmatprep.subr.bf16.mxu0 %v12563_v3  ;;  %v10275_v55 = vcombine.low %v5911_v43, %v5924_v62  ;;  %v7045_v52 = vshrl.u32 %v10384_v54, 16  ;;  %v7048_v58 = vshll.u32 %v10384_v54, 16  ;;  %v7033_v60 = vrot.slane %v7031_v51, 4  ;;  %v10381_v45 = vld [vmem:[%s14305_s17 + $0x44] sm:$0x1]  ;;  %v12574_v54 = vld [vmem:[%s15597_s4 + $0x230] sm:$0xff]  }
 0x433   : > { %v6980_v5 = vrot.slane %v6978_v21, 5  ;;  %v7036_v37 = vrot.slane %v7034_v35, 5  ;;  %v6996_v40 = vrot.slane %v6995_v44, 4  ;;  %v7042_v15 = vrot.slane %v7040_v50, 5  ;;  %v10389_v21 = vld [vmem:[%s14305_s17 + $0xbc] sm:$0x1] }
 0x434   : > { %v7047_v20 = vrot.slane %v7045_v52, 4  ;;  %v7050_v10 = vrot.slane %v7048_v58, 5  ;;  %v7003_v9 = vshrl.u32 %v10378_v13, 16  ;;  %v7059_v18 = vshrl.u32 %v10386_v11, 16  ;;  %v12575_v52 = vld [vmem:[%s15597_s4 + $0x238] sm:$0xff]  }
 0x435   : > { %11583 = vmatpush3.bf16.msra.mxu1 %v12562_v8  ;;  %11679 = vmatpush3.bf16.msra.mxu0 %v12563_v3  ;;  %v10385_v8 = vld [vmem:[%s14305_s17 + $0xa4] sm:$0x1]  ;;  %v6981_v28 = vor.u32 %v6980_v5, %v6977_v12  ;;  %v7037_v0 = vor.u32 %v7036_v37, %v7033_v60  ;;  %v7001_v48 = vsel %vm14511_vm4, %v6996_v40, %v7000_v56  ;;  %v7062_v36 = vshll.u32 %v10386_v11, 16 }
 0x436   : > { %12088 = vmatprep.subr.bf16.mxu1 %v12566_v59  ;;  %11688 = vmatprep.subr.bf16.mxu0 %v12566_v59  ;;  %v7054_v41 = vshll.u32 %v10385_v8, 16  ;;  %v7051_v32 = vor.u32 %v7050_v10, %v7047_v20  ;;  %v7061_v27 = vrot.slane %v7059_v18, 4  ;;  %v7076_v17 = vshll.u32 %v10388_v34, 16 }
 0x437   : > { %v6982_v22 = vrot.slane %v6981_v28, 4  ;;  %v7038_v33 = vrot.slane %v7037_v0, 4  ;;  %v7064_v39 = vrot.slane %v7062_v36, 5  ;;  %v7005_v63 = vrot.slane %v7003_v9, 4 }
 0x438   : > { %11585 = vmatmul.mubr.bf16.vlgmr.msra.gmra.mrb[0].mxu1 %v10273_v42  ;;  %11681 = vmatmul.mubr.bf16.vlgmr.msra.gmra.mrb[0].mxu0 %v10363_v30  ;;  %v7056_v3 = vrot.slane %v7054_v41, 5  ;;  %v7052_v46 = vrot.slane %v7051_v32, 4  ;;  %v10380_v42 = vld [vmem:[%s14305_s17 + $0x40] sm:$0xf]  ;;  %v7073_v30 = vshrl.u32 %v10388_v34, 16  ;;  %v7078_v1 = vrot.slane %v7076_v17, 5 }
 0x439   : > { %12096 = vmatpush3.bf16.msra.mxu1 %v12566_v59  ;;  %11588 = vmatprep.mubr.bf16.mxu1 %v10274_v29  ;;  %v6987_v38 = vsel %vm14511_vm4, %v6982_v22, %v6986_v57  ;;  %v7043_v2 = vsel %vm14511_vm4, %v7038_v33, %v7042_v15  ;;  %v7017_v29 = vshrl.u32 %v10380_v42, 16  ;;  %v7020_v62 = vshll.u32 %v10380_v42, 16 }
 0x43a   : > { %12089 = vmatprep.subr.bf16.mxu1 %v12567_v47  ;;  %11689 = vmatpush3.bf16.msra.mxu0 %v12566_v59  ;;  %v10390_v23 = vcombine.low %v6987_v38, %v7001_v48  ;;  %v7057_v59 = vsel %vm14511_vm4, %v7052_v46, %v7056_v3  ;;  %v7075_v16 = vrot.slane %v7073_v30, 4  ;;  %v7065_v12 = vor.u32 %v7064_v39, %v7061_v27 }
 0x43b   : > { %11684 = vmatprep.mubr.bf16.mxu0 %v10364_v4  ;;  %11690 = vmatprep.subr.bf16.mxu0 %v12567_v47  ;;  %v10392_v43 = vcombine.low %v7043_v2, %v7057_v59  ;;  %v7019_v4 = vrot.slane %v7017_v29, 4  ;;  %v7022_v24 = vrot.slane %v7020_v62, 5  ;;  %v7068_v5 = vshll.u32 %v10387_v49, 16 }
 0x43c   : > { %v7079_v57 = vor.u32 %v7078_v1, %v7075_v16  ;;  %v7082_v53 = vshll.u32 %v10389_v21, 16  ;;  %v7012_v56 = vshll.u32 %v10379_v14, 16  ;;  %v7026_v51 = vshll.u32 %v10381_v45, 16 }
 0x43d   : > { %12097 = vmatpush3.bf16.msra.mxu1 %v12567_v47  ;;  %v7023_v8 = vor.u32 %v7022_v24, %v7019_v4  ;;  %v7066_v35 = vrot.slane %v7065_v12, 4 }
 0x43e   : > { %12090 = vmatprep.subr.bf16.mxu1 %v12570_v6  ;;  %11691 = vmatpush3.bf16.msra.mxu0 %v12567_v47  ;;  %v7006_v47 = vshll.u32 %v10378_v13, 16  ;;  %v7080_v28 = vrot.slane %v7079_v57, 4  ;;  %v7084_v50 = vrot.slane %v7082_v53, 5  ;;  %v7014_v44 = vrot.slane %v7012_v56, 5 }
 0x43f   : > { %11692 = vmatprep.subr.bf16.mxu0 %v12570_v6  ;;  %v7024_v60 = vrot.slane %v7023_v8, 4  ;;  %v7028_v37 = vrot.slane %v7026_v51, 5 }
 0x440   : > { %11589 = vmatmul.mubr.bf16.gmra.mrb[4].mxu1 %v10275_v55  ;;  %11685 = vmatmul.mubr.bf16.gmra.mrb[4].mxu0 %v10365_v19  ;;  %v12573_v55 = vld [vmem:[%s15597_s4 + $0x228] sm:$0xff]   ;;  %v7008_v26 = vrot.slane %v7006_v47, 5  ;;  %v7085_v22 = vsel %vm14511_vm4, %v7080_v28, %v7084_v50 }
 0x441   : > { %12098 = vmatpush3.bf16.msra.mxu1 %v12570_v6  ;;  %11704 = vmatprep.mubr.bf16.mxu0 %v10390_v23  ;;  %v7029_v10 = vsel %vm14511_vm4, %v7024_v60, %v7028_v37 }
 0x442   : > { %12091 = vmatprep.subr.bf16.mxu1 %v12571_v7  ;;  %11693 = vmatpush3.bf16.msra.mxu0 %v12570_v6  ;;  %v7009_v25 = vor.u32 %v7008_v26, %v7005_v63  ;;  %v7070_v6 = vrot.slane %v7068_v5, 5 }
 0x443   : > { %11694 = vmatprep.subr.bf16.mxu0 %v12571_v7  ;;  %11708 = vmatprep.mubr.bf16.mxu1 %v10392_v43 }
 0x444   : > { %v7010_v58 = vrot.slane %v7009_v25, 4  ;;  %v7071_v41 = vsel %vm14511_vm4, %v7066_v35, %v7070_v6 }
 0x445   : > { %12099 = vmatpush3.bf16.msra.mxu1 %v12571_v7  ;;  %v10393_v40 = vcombine.low %v7071_v41, %v7085_v22 }
 0x446   : > { %12092 = vmatprep.subr.bf16.mxu1 %v12572_v61  ;;  %11695 = vmatpush3.bf16.msra.mxu0 %v12571_v7  ;;  %v7015_v20 = vsel %vm14511_vm4, %v7010_v58, %v7014_v44 }
 0x447   : > { %11696 = vmatprep.subr.bf16.mxu0 %v12572_v61  ;;  %v10391_v0 = vcombine.low %v7015_v20, %v7029_v10 }
 0x449   : > { %12100 = vmatpush3.bf16.msra.mxu1 %v12572_v61 }
 0x44a   : > { %12093 = vmatprep.subr.bf16.mxu1 %v12573_v55  ;;  %11697 = vmatpush3.bf16.msra.mxu0 %v12572_v61 }
 0x44b   : > { %11698 = vmatprep.subr.bf16.mxu0 %v12573_v55 }
 0x44d   : > { %12101 = vmatpush3.bf16.msra.mxu1 %v12573_v55 }
 0x44e   : > { %12094 = vmatprep.subr.bf16.mxu1 %v12574_v54  ;;  %11699 = vmatpush3.bf16.msra.mxu0 %v12573_v55 }
 0x44f   : > { %11700 = vmatprep.subr.bf16.mxu0 %v12574_v54 }
 0x451   : > { %12102 = vmatpush3.bf16.msra.mxu1 %v12574_v54 }
 0x452   : > { %12095 = vmatprep.subr.bf16.mxu1 %v12575_v52  ;;  %11701 = vmatpush3.bf16.msra.mxu0 %v12574_v54 }
 0x453   : > { %11702 = vmatprep.subr.bf16.mxu0 %v12575_v52 }
 0x455   : > { %12103 = vmatpush3.bf16.msra.mxu1 %v12575_v52 }
 0x456   : > { %11703 = vmatpush3.bf16.msra.mxu0 %v12575_v52 }
 0x458   : > { %11709 = vmatmul.mubr.bf16.vlgmr.msra.gmra.mrb[8].mxu1 %v10393_v40 }
 0x459   : > { %11705 = vmatmul.mubr.bf16.vlgmr.msra.gmra.mrb[0].mxu0 %v10391_v0  ;;  %v7249_v0 = vld [vmem:[#allocation4 + $0x2] sm:$0x1] }
 0x50b   : > { %v11586_v15 = vpop.f32.mrb[0].mxu1 }
 0x50c   : > { %v6039_v19 = vpop.f32.mrb[1].mxu1 }
 0x50d   : > { %v11587_v7 = vpop.f32.mrb[2].mxu1 }
 0x50e   : > { %v6042_v38 = vpop.f32.mrb[3].mxu1 }
 0x513   : > { %v11590_v32 = vpop.f32.mrb[4].mxu1  ;;  %v11686_v48 = vpop.f32.mrb[4].mxu0 }
 0x514   : > { %v6055_v3 = vpop.f32.mrb[5].mxu1  ;;  %v12108_v13 = vadd.f32 %v11686_v48, %v11590_v32  ;;  %v6935_v11 = vpop.f32.mrb[5].mxu0 }
 0x515   : > { %v11591_v33 = vpop.f32.mrb[6].mxu1  ;;  %v12110_v23 = vadd.f32 %v6935_v11, %v6055_v3  ;;  %v11687_v46 = vpop.f32.mrb[6].mxu0 }
 0x516   : > { %v6058_v31 = vpop.f32.mrb[7].mxu1  ;;  %v12112_v42 = vadd.f32 %v11687_v46, %v11591_v33  ;;  %v6938_v2 = vpop.f32.mrb[7].mxu0 }
 0x517   : > { %v12114_v34 = vadd.f32 %v6938_v2, %v6058_v31 }
 0x52b   : > { %v11710_v61 = vpop.f32.mrb[8].mxu1 }
 0x52c   : > { %v12109_v59 = vadd.f32 %v12108_v13, %v11710_v61  ;;  %v7216_v9 = vpop.f32.mrb[9].mxu1  ;;  %v11706_v18 = vpop.f32.mrb[0].mxu0 }
 0x52d   : > { %v12111_v36 = vadd.f32 %v12110_v23, %v7216_v9  ;;  %v11711_v43 = vpop.f32.mrb[10].mxu1  ;;  %v12104_v47 = vadd.f32 %v11706_v18, %v11586_v15  ;;  %v7200_v29 = vpop.f32.mrb[1].mxu0 }
 0x52e   : > { %7247 = vst [vmem:[%s7240_s24 + $0x50] sm:$0xff] %v12109_v59  ;;  %v12113_v62 = vadd.f32 %v12112_v42, %v11711_v43  ;;  %v7219_v30 = vpop.f32.mrb[11].mxu1  ;;  %v12105_v55 = vadd.f32 %v7200_v29, %v6039_v19  ;;  %v11707_v27 = vpop.f32.mrb[2].mxu0  ;;  %v7272_v8 = vmul.f32 %v12109_v59, %v12109_v59 }
 0x52f   : > { %7245 = vst [vmem:[%s7240_s24 + $0x40] sm:$0xff] %v12111_v36  ;;  %v12115_v39 = vadd.f32 %v12114_v34, %v7219_v30  ;;  %7243 = vst [vmem:[%s7240_s24 + $0x10] sm:$0xff] %v12104_v47  ;;  %v12106_v17 = vadd.f32 %v11707_v27, %v11587_v7  ;;  %v7203_v63 = vpop.f32.mrb[3].mxu0  ;;  %v7268_v4 = vmul.f32 %v12104_v47, %v12104_v47  ;;  %v7265_v7 = vld [vmem:[#allocation4 + $0x3] sm:$0x1] }
 0x530   : > { %7248 = vst [vmem:[%s7240_s24 + $0x58] sm:$0xff] %v12113_v62  ;;  %7241 = vst [vmem:[%s7240_s24] sm:$0xff] %v12105_v55  ;;  %v12107_v49 = vadd.f32 %v7203_v63, %v6042_v38  ;;  %v7266_v21 = vmul.f32 %v12105_v55, %v12105_v55  ;;  %v7270_v5 = vmul.f32 %v12111_v36, %v12111_v36 }
 0x531   : > { %7246 = vst [vmem:[%s7240_s24 + $0x48] sm:$0xff] %v12115_v39  ;;  %7244 = vst [vmem:[%s7240_s24 + $0x18] sm:$0xff] %v12106_v17  ;;  %v7269_v14 = vmul.f32 %v12106_v17, %v12106_v17  ;;  %v7271_v25 = vmul.f32 %v12115_v39, %v12115_v39  ;;  %v7273_v6 = vmul.f32 %v12113_v62, %v12113_v62 }
 0x532   : > { %7242 = vst [vmem:[%s7240_s24 + $0x8] sm:$0xff] %v12107_v49  ;;  %v7250_v16 = vadd.f32 %v12107_v49, %v12105_v55  ;;  %v7267_v26 = vmul.f32 %v12107_v49, %v12107_v49 }
 0x534   : > { %v7251_v24 = vadd.f32 %v12104_v47, %v7250_v16  ;;  %v7274_v1 = vadd.f32 %v7267_v26, %v7266_v21 }
 0x536   : > { %v7275_v45 = vadd.f32 %v7274_v1, %v7268_v4  ;;  %v7252_v12 = vadd.f32 %v12106_v17, %v7251_v24 }
 0x538   : > { %v7253_v57 = vadd.f32 %v12111_v36, %v7252_v12  ;;  %v7276_v53 = vadd.f32 %v7275_v45, %v7269_v14 }
 0x53a   : > { %v7254_v54 = vadd.f32 %v12115_v39, %v7253_v57  ;;  %v7277_v56 = vadd.f32 %v7276_v53, %v7270_v5 }
 0x53c   : > { %v7255_v51 = vadd.f32 %v12109_v59, %v7254_v54  ;;  %v7278_v35 = vadd.f32 %v7277_v56, %v7271_v25 }
 0x53e   : > { %v7256_v28 = vadd.f32 %v12113_v62, %v7255_v51  ;;  %v7279_v50 = vadd.f32 %v7278_v35, %v7272_v8 }
 0x540   : > { %v7257_v52 = vrot.slane %v7256_v28, 4  ;;  %v7280_v58 = vadd.f32 %v7279_v50, %v7273_v6 }
 0x542   : > { %v7258_v44 = vadd.f32 %v7257_v52, %v7256_v28  ;;  %v7281_v60 = vrot.slane %v7280_v58, 4 }
 0x544   : > { %v7259_v37 = vrot.slane %v7258_v44, 2  ;;  %v7282_v41 = vadd.f32 %v7281_v60, %v7280_v58 }
 0x546   : > { %v7260_v22 = vadd.f32 %v7259_v37, %v7258_v44  ;;  %v7283_v20 = vrot.slane %v7282_v41, 2 }
 0x548   : > { %v7261_v10 = vrot.slane %v7260_v22, 1  ;;  %v7284_v40 = vadd.f32 %v7283_v20, %v7282_v41 }
 0x54a   : > { %v7262_v15 = vadd.f32 %v7261_v10, %v7260_v22  ;;  %v7285_v19 = vrot.slane %v7284_v40, 1 }
 0x54c   : > { %v7263_v38 = vadd.f32 %v7262_v15, %v7249_v0  ;;  %v7286_v32 = vadd.f32 %v7285_v19, %v7284_v40 }
 0x54e   : > { %7264 = vst [vmem:[#allocation4 + $0x2] sm:$0x1] %v7263_v38  ;;  %v7287_v3 = vadd.f32 %v7286_v32, %v7265_v7 }
 0x550   : > { %7288 = vst [vmem:[#allocation4 + $0x3] sm:$0x1] %v7287_v3 }
 0x551 PF: > { %p10403_p12 = scmp.ne.s32.totalorder %s12716_s28, 1 }
 0x552   : > { %v12576_v48 = vld [vmem:[%s15597_s4 + $0x40] sm:$0xff] (!%p10403_p12)   ;;  %v12578_v13 = vld [vmem:[%s15597_s4 + $0x48] sm:$0xff] (!%p10403_p12)   ;;  %v12580_v31 = vld [vmem:[%s15597_s4 + $0x50] sm:$0xff] (!%p10403_p12)   ;;  %vm7312_vm5 = vsmask.f32 (!%p10403_p12), 256 }
 0x553   : > { %7292 = sbr.rel (%p10403_p12) target bundleno = 1774 (0x6ee), region = 114  ;;  %v12577_v33 = vld [vmem:[%s15597_s4 + $0x100] sm:$0xff] (!%p10403_p12)   ;;  %11712 = vmatprep.subr.bf16.mxu1 (!%p10403_p12), %v12576_v48  ;;  %v12579_v11 = vld [vmem:[%s15597_s4 + $0x108] sm:$0xff] (!%p10403_p12)   ;;  %v12581_v23 = vld [vmem:[%s15597_s4 + $0x110] sm:$0xff] (!%p10403_p12)   ;;  %vm7313_vm6 = vsmask.f32 (!%p10403_p12), 4368 }
 0x554   : > { %11808 = vmatprep.subr.bf16.mxu0 (!%p10403_p12), %v12577_v33  ;;  %11713 = vmatpush3.bf16.msra.mxu1 (!%p10403_p12), %v12576_v48  ;;  %v12582_v46 = vld [vmem:[%s15597_s4 + $0x58] sm:$0xff] (!%p10403_p12)   ;;  %v12584_v2 = vld [vmem:[%s15597_s4 + $0x60] sm:$0xff] (!%p10403_p12)   ;;  %v12586_v61 = vld [vmem:[%s15597_s4 + $0x68] sm:$0xff] (!%p10403_p12)   ;;  %vm7733_vm8 = vsmask.f32 (!%p10403_p12), 3328 }
 0x555   : > { %11809 = vmatpush3.bf16.msra.mxu0 (!%p10403_p12), %v12577_v33  ;;  %11714 = vmatprep.subr.bf16.mxu1 (!%p10403_p12), %v12578_v13  ;;  %v12583_v42 = vld [vmem:[%s15597_s4 + $0x118] sm:$0xff] (!%p10403_p12)   ;;  %v12585_v34 = vld [vmem:[%s15597_s4 + $0x120] sm:$0xff] (!%p10403_p12)   ;;  %v14939_v9 = vld [vmem:[%s14258_s26 + $0x10] sm:$0xf] (!%p10403_p12)  ;;  %vm7734_vm9 = vsmask.f32 (!%p10403_p12), 7440 }
 0x556   : > { %11810 = vmatprep.subr.bf16.mxu0 (!%p10403_p12), %v12579_v11  ;;  %v14936_v59 = vld [vmem:[%s14258_s26 + $0x4] sm:$0xf] (!%p10403_p12)  ;;  %v12587_v18 = vld [vmem:[%s15597_s4 + $0x128] sm:$0xff] (!%p10403_p12)   ;;  %v14947_v43 = vld [vmem:[%s14258_s26 + $0x10] sm:$0xf] (!%p10403_p12)  ;;  %v7334_v30 = vshrl.u32 (!%p10403_p12), %v14939_v9, 16 }
 0x557   : > { %v10414_v36 = vcombine.low (!%p10403_p12), %v14936_v59, %v14939_v9  ;;  %v14950_v47 = vld [vmem:[%s14258_s26 + $0x1c] sm:$0xf] (!%p10403_p12)  ;;  %v12588_v29 = vld [vmem:[%s15597_s4 + $0x70] sm:$0xff] (!%p10403_p12)   ;;  %v7321_v62 = vshrl.u32 (!%p10403_p12), %v14936_v59, 16  ;;  %v7324_v63 = vshll.u32 (!%p10403_p12), %v14936_v59, 16  ;;  %v7337_v16 = vshll.u32 (!%p10403_p12), %v14939_v9, 16  ;;  %vm15106_vm7 = vmor (!%p10403_p12), %vm7312_vm5, %vm7313_vm6 }
 0x558   : > { %11715 = vmatpush3.bf16.msra.mxu1 (!%p10403_p12), %v12578_v13  ;;  %v10486_v55 = vcombine.low (!%p10403_p12), %v14947_v43, %v14950_v47  ;;  %v12589_v27 = vld [vmem:[%s15597_s4 + $0x130] sm:$0xff] (!%p10403_p12)   ;;  %v12590_v39 = vld [vmem:[%s15597_s4 + $0x78] sm:$0xff] (!%p10403_p12)   ;;  %v14971_v21 = vrot.slane (!%p10403_p12), %v7334_v30, 7  ;;  %v8023_v26 = vshrl.u32 (!%p10403_p12), %v14947_v43, 16  ;;  %v14979_v24 = vld [vmem:[%s14258_s26 + $0x28] sm:$0xf] (!%p10403_p12) }
 0x559   : > { %11811 = vmatpush3.bf16.msra.mxu0 (!%p10403_p12), %v12579_v11  ;;  %11716 = vmatprep.subr.bf16.mxu1 (!%p10403_p12), %v12580_v31  ;;  %v12591_v17 = vld [vmem:[%s15597_s4 + $0x138] sm:$0xff] (!%p10403_p12)   ;;  %v14969_v49 = vrot.slane (!%p10403_p12), %v7321_v62, 7  ;;  %v12593_v1 = vld [vmem:[%s15597_s4] sm:$0xff] (!%p10403_p12)   ;;  %v14985_v14 = vld [vmem:[%s14258_s26 + $0x28] sm:$0xf] (!%p10403_p12)  ;;  %v8036_v12 = vshrl.u32 (!%p10403_p12), %v14950_v47, 16 }
 0x55a   : > { %11812 = vmatprep.subr.bf16.mxu0 %v12581_v23  ;;  %11728 = vmatprep.mubr.bf16.mxu1 %v10414_v36  ;;  %v14976_v4 = vld [vmem:[%s14258_s26 + $0x1c] sm:$0xf]  ;;  %v14988_v45 = vld [vmem:[%s14258_s26 + $0x34] sm:$0xf]  ;;  %v12595_v5 = vld [vmem:[%s15597_s4 + $0x140] sm:$0xff]   ;;  %v8026_v57 = vshll.u32 %v14947_v43, 16 }
 0x55b   : > { %11824 = vmatprep.mubr.bf16.mxu0 %v10486_v55  ;;  %v8039_v53 = vshll.u32 %v14950_v47, 16  ;;  %v10415_v54 = vcombine.low %v14976_v4, %v14979_v24  ;;  %v7347_v25 = vshrl.u32 %v14976_v4, 16  ;;  %v10487_v56 = vcombine.low %v14985_v14, %v14988_v45  ;;  %v12598_v8 = vld [vmem:[%s15597_s4 + $0x8] sm:$0xff]   ;;  %v15013_v50 = vld [vmem:[%s14258_s26 + $0x7c] sm:$0xf]  ;;  %v12600_v10 = vld [vmem:[%s15597_s4 + $0x10] sm:$0xff]  }
 0x55c   : > { %11717 = vmatpush3.bf16.msra.mxu1 %v12580_v31  ;;  %v15004_v51 = vrot.slane %v8023_v26, 7  ;;  %v7360_v35 = vshrl.u32 %v14979_v24, 16  ;;  %v15007_v6 = vrot.slane %v8036_v12, 7  ;;  %v12599_v28 = vld [vmem:[%s15597_s4 + $0x148] sm:$0xff]   ;;  %v7350_v52 = vshll.u32 %v14976_v4, 16  ;;  %v12601_v19 = vld [vmem:[%s15597_s4 + $0x150] sm:$0xff]   ;;  %vm15139_vm10 = vmor %vm7733_vm8, %vm7734_vm9 }
 0x55d   : > { %11813 = vmatpush3.bf16.msra.mxu0 %v12581_v23  ;;  %11718 = vmatprep.subr.bf16.mxu1 %v12582_v46  ;;  %v8049_v58 = vshrl.u32 %v14985_v14, 16  ;;  %v15018_v44 = vld [vmem:[%s14258_s26 + $0x88] sm:$0xf]  ;;  %v15020_v60 = vrot.slane %v7347_v25, 7  ;;  %v7363_v37 = vshll.u32 %v14979_v24, 16  ;;  %v8062_v41 = vshrl.u32 %v14988_v45, 16 }
 0x55e   : > { %11814 = vmatprep.subr.bf16.mxu0 %v12583_v42  ;;  %v10416_v22 = vcombine.low %v15013_v50, %v15018_v44  ;;  %v15026_v20 = vrot.slane %v7360_v35, 7  ;;  %v15032_v40 = vld [vmem:[%s14258_s26 + $0x88] sm:$0xf]  ;;  %v15035_v0 = vld [vmem:[%s14258_s26 + $0x94] sm:$0xf]  ;;  %v8052_v15 = vshll.u32 %v14985_v14, 16  ;;  %v7326_v25 = vor.u32 %v7324_v63, %v14969_v49 }
 0x55f   : > { %v7373_v7 = vshrl.u32 %v15013_v50, 16  ;;  %v7386_v38 = vshrl.u32 %v15018_v44, 16  ;;  %v15043_v32 = vrot.slane %v8049_v58, 7  ;;  %v8075_v3 = vshrl.u32 %v15032_v40, 16  ;;  %v15049_v33 = vld [vmem:[%s14258_s26 + $0x94] sm:$0xf] }
 0x560   : > { %11719 = vmatpush3.bf16.msra.mxu1 %v12582_v46  ;;  %v10488_v48 = vcombine.low %v15032_v40, %v15035_v0  ;;  %v15051_v13 = vrot.slane %v8062_v41, 7  ;;  %v8065_v11 = vshll.u32 %v14988_v45, 16  ;;  %v12602_v31 = vld [vmem:[%s15597_s4 + $0x18] sm:$0xff]   ;;  %v8088_v23 = vshrl.u32 %v15035_v0, 16  ;;  %v15059_v46 = vld [vmem:[%s14258_s26 + $0xa0] sm:$0xf] }
 0x561   : > { %11815 = vmatpush3.bf16.msra.mxu0 %v12583_v42  ;;  %11720 = vmatprep.subr.bf16.mxu1 %v12584_v2  ;;  %v12603_v42 = vld [vmem:[%s15597_s4 + $0x158] sm:$0xff]   ;;  %v15073_v36 = vrot.slane %v7373_v7, 7  ;;  %v7389_v62 = vshll.u32 %v15018_v44, 16  ;;  %v8078_v30 = vshll.u32 %v15032_v40, 16  ;;  %v12604_v55 = vld [vmem:[%s15597_s4 + $0x20] sm:$0xff]   ;;  %v7399_v12 = vshrl.u32 %v15049_v33, 16 }
 0x562   : > { %11816 = vmatprep.subr.bf16.mxu0 %v12585_v34  ;;  %v12605_v26 = vld [vmem:[%s15597_s4 + $0x160] sm:$0xff]   ;;  %v7402_v58 = vshll.u32 %v15049_v33, 16  ;;  %v7412_v59 = vshrl.u32 %v15059_v46, 16  ;;  %v12607_v9 = vld [vmem:[%s15597_s4 + $0x168] sm:$0xff]   ;;  %v10499_v41 = vld [vmem:[%s14258_s26 + $0x14] sm:$0x1]  ;;  %v8067_v14 = vor.u32 %v8065_v11, %v15051_v13 }
 0x563   : > { %v12638_v47 = vld [vmem:[%s15597_s4 + $0xd8] sm:$0xff]  }
 0x564   : > { %11721 = vmatpush3.bf16.msra.mxu1 %v12584_v2  ;;  %v7376_v2 = vshll.u32 %v15013_v50, 16  ;;  %v12620_v50 = vld [vmem:[%s15597_s4 + $0x90] sm:$0xff]  }
 0x565   : > { %11817 = vmatpush3.bf16.msra.mxu0 %v12585_v34  ;;  %11722 = vmatprep.subr.bf16.mxu1 %v12586_v61  ;;  %v10417_v34 = vcombine.low %v15049_v33, %v15059_v46 }
 0x566   : > { %11818 = vmatprep.subr.bf16.mxu0 %v12587_v18 }
 0x568   : > { %11723 = vmatpush3.bf16.msra.mxu1 %v12586_v61  ;;  %v15068_v61 = vld [vmem:[%s14258_s26 + $0xa0] sm:$0xf] }
 0x569   : > { %11819 = vmatpush3.bf16.msra.mxu0 %v12587_v18  ;;  %11724 = vmatprep.subr.bf16.mxu1 %v12588_v29  ;;  %v15071_v18 = vld [vmem:[%s14258_s26 + $0xac] sm:$0xf] }
 0x56a   : > { %11820 = vmatprep.subr.bf16.mxu0 %v12589_v27 }
 0x56c   : > { %11725 = vmatpush3.bf16.msra.mxu1 %v12588_v29  ;;  %v15075_v29 = vrot.slane %v7386_v38, 7 }
 0x56d   : > { %11821 = vmatpush3.bf16.msra.mxu0 %v12589_v27  ;;  %11726 = vmatprep.subr.bf16.mxu1 %v12590_v39  ;;  %v15082_v27 = vrot.slane %v8075_v3, 7 }
 0x56e   : > { %11822 = vmatprep.subr.bf16.mxu0 %v12591_v17 }
 0x570   : > { %11727 = vmatpush3.bf16.msra.mxu1 %v12590_v39  ;;  %v8091_v39 = vshll.u32 %v15035_v0, 16  ;;  %v12646_v0 = vld [vmem:[%s15597_s4 + $0xf8] sm:$0xff]  }
 0x571   : > { %11823 = vmatpush3.bf16.msra.mxu0 %v12591_v17  ;;  %11736 = vmatprep.subr.bf16.mxu1 %v12593_v1  ;;  %v10489_v17 = vcombine.low %v15068_v61, %v15071_v18 }
 0x572   : > { %11832 = vmatprep.subr.bf16.mxu0 %v12595_v5 }
 0x573   : > { %11729 = vmatmul.mubr.bf16.vlgmr.msra.gmra.mrb[0].mxu1 %v10415_v54  ;;  %v7298_v54 = vld [vmem:[%s14258_s26 + $0xc] sm:$0x8] }
 0x574   : > { %11737 = vmatpush3.bf16.msra.mxu1 %v12593_v1  ;;  %11825 = vmatmul.mubr.bf16.vlgmr.msra.gmra.mrb[0].mxu0 %v10487_v56  ;;  %v15090_v1 = vrot.slane %v8088_v23, 7  ;;  %v7339_v56 = vor.u32 %v7337_v16, %v14971_v21  ;;  %v7329_v35 = vshrl.u32 %v7298_v54, 16  ;;  %v10498_v16 = vld [vmem:[%s14258_s26 + $0x10] sm:$0xf]  ;;  %v7300_v54 = vld [vmem:[%s14258_s26 + $0x18] sm:$0x8] }
 0x575   : > { %11833 = vmatpush3.bf16.msra.mxu0 %v12595_v5  ;;  %11738 = vmatprep.subr.bf16.mxu1 %v12598_v8  ;;  %v7296_v5 = vld [vmem:[%s14258_s26] sm:$0x8]  ;;  %v8455_v7 = vshll.u32 %v10498_v16, 16  ;;  %v12609_v23 = vld [vmem:[%s15597_s4 + $0x30] sm:$0xff]  }
 0x576   : > { %11834 = vmatprep.subr.bf16.mxu0 %v12599_v28  ;;  %11732 = vmatprep.mubr.bf16.mxu1 %v10416_v22  ;;  %v10407_v21 = vrot.slane %v7329_v35, 11  ;;  %v10500_v22 = vld [vmem:[%s14258_s26 + $0x1c] sm:$0xf] }
 0x577   : > { %11828 = vmatprep.mubr.bf16.mxu0 %v10488_v48  ;;  %v8461_v48 = vshll.u32 %v10499_v41, 16 }
 0x578   : > { %11739 = vmatpush3.bf16.msra.mxu1 %v12598_v8  ;;  %v7316_v8 = vshrl.u32 %v7296_v5, 16  ;;  %v7340_v3 = vsel %vm15106_vm7, %v10407_v21, %v7339_v56  ;;  %v8469_v5 = vshll.u32 %v10500_v22, 16  ;;  %v7342_v21 = vshrl.u32 %v7300_v54, 16 }
 0x579   : > { %11835 = vmatpush3.bf16.msra.mxu0 %v12599_v28  ;;  %11740 = vmatprep.subr.bf16.mxu1 %v12600_v10  ;;  %v12606_v28 = vld [vmem:[%s15597_s4 + $0x28] sm:$0xff]  }
 0x57a   : > { %11836 = vmatprep.subr.bf16.mxu0 %v12601_v19  ;;  %v10406_v49 = vrot.slane %v7316_v8, 11  ;;  %v8463_v8 = vrot.slane %v8461_v48, 5 }
 0x57b   : > { %11733 = vmatmul.mubr.bf16.gmra.mrb[4].mxu1 %v10417_v34 }
 0x57c   : > { %11741 = vmatpush3.bf16.msra.mxu1 %v12600_v10  ;;  %11829 = vmatmul.mubr.bf16.gmra.mrb[4].mxu0 %v10489_v17  ;;  %v10501_v10 = vld [vmem:[%s14258_s26 + $0x20] sm:$0x1]  ;;  %v7327_v38 = vsel %vm15106_vm7, %v10406_v49, %v7326_v25  ;;  %v8457_v17 = vrot.slane %v8455_v7, 5  ;;  %v12611_v25 = vld [vmem:[%s15597_s4 + $0x170] sm:$0xff]   ;;  %v7302_v49 = vld [vmem:[%s14258_s26 + $0x24] sm:$0x8] }
 0x57d   : > { %11837 = vmatpush3.bf16.msra.mxu0 %v12601_v19  ;;  %11742 = vmatprep.subr.bf16.mxu1 %v12602_v31  ;;  %v8452_v19 = vshrl.u32 %v10498_v16, 16  ;;  %v8475_v35 = vshll.u32 %v10501_v10, 16  ;;  %v7352_v16 = vor.u32 %v7350_v52, %v15020_v60  ;;  %v10503_v7 = vld [vmem:[%s14258_s26 + $0x2c] sm:$0x1]  ;;  %v7415_v10 = vshll.u32 %v15059_v46, 16  ;;  %v12624_v46 = vld [vmem:[%s15597_s4 + $0xa0] sm:$0xff]  }
 0x57e   : > { %11838 = vmatprep.subr.bf16.mxu0 %v12603_v42  ;;  %v10408_v60 = vrot.slane %v7342_v21, 11 }
 0x57f   : > { %v8454_v34 = vrot.slane %v8452_v19, 4  ;;  %v10502_v19 = vld [vmem:[%s14258_s26 + $0x28] sm:$0xf]  ;;  %v8477_v52 = vrot.slane %v8475_v35, 5  ;;  %v8489_v35 = vshll.u32 %v10503_v7, 16 }
 0x580   : > { %11743 = vmatpush3.bf16.msra.mxu1 %v12602_v31  ;;  %v8466_v31 = vshrl.u32 %v10500_v22, 16  ;;  %v8471_v22 = vrot.slane %v8469_v5, 5  ;;  %v8483_v54 = vshll.u32 %v10502_v19, 16  ;;  %v7353_v7 = vsel %vm15106_vm7, %v10408_v60, %v7352_v16 }
 0x581   : > { %11839 = vmatpush3.bf16.msra.mxu0 %v12603_v42  ;;  %11744 = vmatprep.subr.bf16.mxu1 %v12604_v55  ;;  %v10426_v42 = vcombine.low %v7327_v38, %v7340_v3  ;;  %v8458_v41 = vor.u32 %v8457_v17, %v8454_v34  ;;  %v15134_v38 = vrot.slane %v7399_v12, 7  ;;  %v7365_v3 = vor.u32 %v7363_v37, %v15026_v20  ;;  %v12614_v12 = vld [vmem:[%s15597_s4 + $0x38] sm:$0xff]  }
 0x582   : > { %11840 = vmatprep.subr.bf16.mxu0 %v12605_v26  ;;  %v8468_v56 = vrot.slane %v8466_v31, 4  ;;  %v8480_v34 = vshrl.u32 %v10502_v19, 16  ;;  %v12615_v17 = vld [vmem:[%s15597_s4 + $0x178] sm:$0xff]   ;;  %v8485_v21 = vrot.slane %v8483_v54, 5 }
 0x583   : > { %11752 = vmatprep.mubr.bf16.mxu1 %v10426_v42  ;;  %v8459_v48 = vrot.slane %v8458_v41, 4  ;;  %v10505_v42 = vld [vmem:[%s14258_s26 + $0x38] sm:$0x1] }
 0x584   : > { %11745 = vmatpush3.bf16.msra.mxu1 %v12604_v55  ;;  %v7355_v55 = vshrl.u32 %v7302_v49, 16  ;;  %v8472_v31 = vor.u32 %v8471_v22, %v8468_v56  ;;  %v8482_v20 = vrot.slane %v8480_v34, 4  ;;  %v8101_v56 = vshrl.u32 %v15068_v61, 16 }
 0x585   : > { %11841 = vmatpush3.bf16.msra.mxu0 %v12605_v26  ;;  %11746 = vmatprep.subr.bf16.mxu1 %v12606_v28  ;;  %v10504_v26 = vld [vmem:[%s14258_s26 + $0x34] sm:$0xf]  ;;  %v8464_v24 = vsel %vm15139_vm10, %v8459_v48, %v8463_v8  ;;  %v8503_v19 = vshll.u32 %v10505_v42, 16  ;;  %v8114_v34 = vshrl.u32 %v15071_v18, 16 }
 0x586   : > { %11842 = vmatprep.subr.bf16.mxu0 %v12607_v9  ;;  %v10409_v5 = vrot.slane %v7355_v55, 11  ;;  %v8494_v49 = vshrl.u32 %v10504_v26, 16  ;;  %v8473_v37 = vrot.slane %v8472_v31, 4  ;;  %v8497_v55 = vshll.u32 %v10504_v26, 16  ;;  %v12616_v31 = vld [vmem:[%s15597_s4 + $0x80] sm:$0xff]  }
 0x587   : > { %v8486_v48 = vor.u32 %v8485_v21, %v8482_v20  ;;  %v8491_v26 = vrot.slane %v8489_v35, 5  ;;  %v8505_v60 = vrot.slane %v8503_v19, 5  ;;  %v12618_v35 = vld [vmem:[%s15597_s4 + $0x88] sm:$0xff]  }
 0x588   : > { %11747 = vmatpush3.bf16.msra.mxu1 %v12606_v28  ;;  %v8104_v28 = vshll.u32 %v15068_v61, 16  ;;  %v8496_v41 = vrot.slane %v8494_v49, 4  ;;  %v8478_v22 = vsel %vm15139_vm10, %v8473_v37, %v8477_v52  ;;  %v7366_v8 = vsel %vm15106_vm7, %v10409_v5, %v7365_v3  ;;  %v12617_v52 = vld [vmem:[%s15597_s4 + $0x180] sm:$0xff]   ;;  %v12647_v61 = vld [vmem:[%s15597_s4 + $0x1f8] sm:$0xff]  }
 0x589   : > { %11843 = vmatpush3.bf16.msra.mxu0 %v12607_v9  ;;  %11748 = vmatprep.subr.bf16.mxu1 %v12609_v23  ;;  %v10514_v9 = vcombine.low %v8464_v24, %v8478_v22  ;;  %v8487_v16 = vrot.slane %v8486_v48, 4  ;;  %v10427_v3 = vcombine.low %v7353_v7, %v7366_v8  ;;  %v8117_v49 = vshll.u32 %v15071_v18, 16  ;;  %v10508_v7 = vld [vmem:[%s14258_s26 + $0x94] sm:$0xf]  ;;  %v10509_v8 = vld [vmem:[%s14258_s26 + $0x98] sm:$0x1] }
 0x58a   : > { %11844 = vmatprep.subr.bf16.mxu0 %v12611_v25  ;;  %v7378_v24 = vor.u32 %v7376_v2, %v15073_v36  ;;  %v15192_v22 = vrot.slane %v8101_v56, 7  ;;  %v10506_v2 = vld [vmem:[%s14258_s26 + $0x88] sm:$0xf]  ;;  %v10507_v36 = vld [vmem:[%s14258_s26 + $0x8c] sm:$0x1] }
 0x58b   : > { %11848 = vmatprep.mubr.bf16.mxu0 %v10514_v9  ;;  %v8492_v5 = vsel %vm15139_vm10, %v8487_v16, %v8491_v26  ;;  %v8508_v48 = vshrl.u32 %v10506_v2, 16  ;;  %v8511_v44 = vshll.u32 %v10506_v2, 16  ;;  %v8525_v26 = vshll.u32 %v10508_v7, 16  ;;  %v12621_v16 = vld [vmem:[%s15597_s4 + $0x190] sm:$0xff]  }
 0x58c   : > { %11749 = vmatpush3.bf16.msra.mxu1 %v12609_v23  ;;  %v8499_v23 = vrot.slane %v8497_v55, 5 }
 0x58d   : > { %11845 = vmatpush3.bf16.msra.mxu0 %v12611_v25  ;;  %11750 = vmatprep.subr.bf16.mxu1 %v12614_v12  ;;  %v7414_v25 = vrot.slane %v7412_v59, 7  ;;  %v12619_v59 = vld [vmem:[%s15597_s4 + $0x188] sm:$0xff]  }
 0x58e   : > { %11846 = vmatprep.subr.bf16.mxu0 %v12615_v17  ;;  %v8500_v42 = vor.u32 %v8499_v23, %v8496_v41  ;;  %v7391_v41 = vor.u32 %v7389_v62, %v15075_v29  ;;  %v8517_v29 = vshll.u32 %v10507_v36, 16  ;;  %v8522_v62 = vshrl.u32 %v10508_v7, 16 }
 0x58f   : > { %v8531_v23 = vshll.u32 %v10509_v8, 16  ;;  %v7417_v33 = vor.u32 %v7415_v10, %v7414_v25 }
 0x590   : > { %11751 = vmatpush3.bf16.msra.mxu1 %v12614_v12  ;;  %v8501_v54 = vrot.slane %v8500_v42, 4  ;;  %v7304_v12 = vld [vmem:[%s14258_s26 + $0x78] sm:$0x8]  ;;  %v8513_v42 = vrot.slane %v8511_v44, 5 }
 0x591   : > { %11847 = vmatpush3.bf16.msra.mxu0 %v12615_v17  ;;  %11760 = vmatprep.subr.bf16.mxu1 %v12616_v31  ;;  %v7306_v17 = vld [vmem:[%s14258_s26 + $0x84] sm:$0x8]  ;;  %v7368_v20 = vshrl.u32 %v7304_v12, 16  ;;  %v8524_v12 = vrot.slane %v8522_v62, 4 }
 0x592   : > { %11856 = vmatprep.subr.bf16.mxu0 %v12617_v52  ;;  %v8506_v37 = vsel %vm15139_vm10, %v8501_v54, %v8505_v60  ;;  %v7381_v21 = vshrl.u32 %v7306_v17, 16  ;;  %v12622_v60 = vld [vmem:[%s15597_s4 + $0x98] sm:$0xff]   ;;  %v7404_v54 = vor.u32 %v7402_v58, %v15134_v38  ;;  %v8527_v17 = vrot.slane %v8525_v26, 5  ;;  %v10510_v58 = vld [vmem:[%s14258_s26 + $0xa0] sm:$0xf] }
 0x593   : > { %11753 = vmatmul.mubr.bf16.vlgmr.msra.gmra.mrb[0].mxu1 %v10427_v3  ;;  %v10515_v55 = vcombine.low %v8492_v5, %v8506_v37  ;;  %v10410_v19 = vrot.slane %v7368_v20, 11  ;;  %v8510_v3 = vrot.slane %v8508_v48, 4  ;;  %v7308_v5 = vld [vmem:[%s14258_s26 + $0x90] sm:$0x8]  ;;  %v12623_v20 = vld [vmem:[%s15597_s4 + $0x198] sm:$0xff]   ;;  %v8536_v7 = vshrl.u32 %v10510_v58, 16 }
 0x594   : > { %11761 = vmatpush3.bf16.msra.mxu1 %v12616_v31  ;;  %v10411_v9 = vrot.slane %v7381_v21, 11  ;;  %v7394_v37 = vshrl.u32 %v7308_v5, 16  ;;  %v10511_v38 = vld [vmem:[%s14258_s26 + $0xa4] sm:$0x1]  ;;  %v8528_v2 = vor.u32 %v8527_v17, %v8524_v12  ;;  %v8539_v44 = vshll.u32 %v10510_v58, 16 }
 0x595   : > { %11762 = vmatprep.subr.bf16.mxu1 %v12618_v35  ;;  %11849 = vmatmul.mubr.bf16.vlgmr.msra.gmra.mrb[0].mxu0 %v10515_v55  ;;  %v7379_v56 = vsel %vm15106_vm7, %v10410_v19, %v7378_v24  ;;  %v7310_v24 = vld [vmem:[%s14258_s26 + $0x9c] sm:$0x8]  ;;  %v8514_v21 = vor.u32 %v8513_v42, %v8510_v3  ;;  %v10512_v19 = vld [vmem:[%s14258_s26 + $0xac] sm:$0xf]  ;;  %v7717_v12 = vld [vmem:[%s14258_s26 + $0x4] sm:$0xf] }
 0x596   : > { %11857 = vmatpush3.bf16.msra.mxu0 %v12617_v52  ;;  %v7392_v31 = vsel %vm15106_vm7, %v10411_v9, %v7391_v41  ;;  %v8533_v41 = vrot.slane %v8531_v23, 5  ;;  %v7407_v55 = vshrl.u32 %v7310_v24, 16  ;;  %v10412_v36 = vrot.slane %v7394_v37, 11  ;;  %v10513_v9 = vld [vmem:[%s14258_s26 + $0xb0] sm:$0x1] }
 0x597   : > { %11858 = vmatprep.subr.bf16.mxu0 %v12619_v59  ;;  %v10428_v52 = vcombine.low %v7379_v56, %v7392_v31  ;;  %v8515_v8 = vrot.slane %v8514_v21, 4  ;;  %v8529_v10 = vrot.slane %v8528_v2, 4  ;;  %v8550_v62 = vshrl.u32 %v10512_v19, 16  ;;  %v7719_v21 = vld [vmem:[%s14258_s26 + $0x10] sm:$0xf] }
 0x598   : > { %11763 = vmatpush3.bf16.msra.mxu1 %v12618_v35  ;;  %v8519_v35 = vrot.slane %v8517_v29, 5  ;;  %v10413_v48 = vrot.slane %v7407_v55, 11  ;;  %v8545_v29 = vshll.u32 %v10511_v38, 16  ;;  %v7405_v25 = vsel %vm15106_vm7, %v10412_v36, %v7404_v54  ;;  %v7720_v55 = vld [vmem:[%s14258_s26 + $0x14] sm:$0x1] }
 0x599   : > { %11764 = vmatprep.subr.bf16.mxu1 %v12620_v50  ;;  %11756 = vmatprep.mubr.bf16.mxu1 %v10428_v52  ;;  %v8541_v26 = vrot.slane %v8539_v44, 5  ;;  %v12626_v52 = vld [vmem:[%s15597_s4 + $0xa8] sm:$0xff]   ;;  %v8534_v3 = vsel %vm15139_vm10, %v8529_v10, %v8533_v41  ;;  %v8552_v5 = vrot.slane %v8550_v62, 4  ;;  %v8553_v54 = vshll.u32 %v10512_v19, 16  ;;  %v15253_v62 = vld [vmem:[%s14258_s26 + $0x1c] sm:$0xf] }
 0x59a   : > { %11859 = vmatpush3.bf16.msra.mxu0 %v12619_v59  ;;  %v8538_v59 = vrot.slane %v8536_v7, 4  ;;  %v8520_v56 = vsel %vm15139_vm10, %v8515_v8, %v8519_v35  ;;  %v7418_v31 = vsel %vm15106_vm7, %v10413_v48, %v7417_v33  ;;  %v8547_v23 = vrot.slane %v8545_v29, 5  ;;  %v7718_v35 = vld [vmem:[%s14258_s26 + $0x8] sm:$0x1]  ;;  %v10528_v29 = vld [vmem:[%s14258_s26 + $0x18] sm:$0x8] }
 0x59b   : > { %11860 = vmatprep.subr.bf16.mxu0 %v12621_v16  ;;  %v10429_v42 = vcombine.low %v7405_v25, %v7418_v31  ;;  %v10516_v17 = vcombine.low %v8520_v56, %v8534_v3  ;;  %v8559_v37 = vshll.u32 %v10513_v9, 16  ;;  %v8555_v33 = vrot.slane %v8553_v54, 5  ;;  %v12627_v9 = vld [vmem:[%s15597_s4 + $0x1a8] sm:$0xff]   ;;  %v12628_v56 = vld [vmem:[%s15597_s4 + $0xb0] sm:$0xff]  }
 0x59c   : > { %11765 = vmatpush3.bf16.msra.mxu1 %v12620_v50  ;;  %v12625_v50 = vld [vmem:[%s15597_s4 + $0x1a0] sm:$0xff]   ;;  %v8542_v24 = vor.u32 %v8541_v26, %v8538_v59  ;;  %v7740_v58 = vshll.u32 %v7717_v12, 16  ;;  %v7746_v38 = vshll.u32 %v7718_v35, 16  ;;  %v7751_v41 = vshrl.u32 %v7719_v21, 16  ;;  %v15260_v3 = vld [vmem:[%s14258_s26 + $0x28] sm:$0xf] }
 0x59d   : > { %11766 = vmatprep.subr.bf16.mxu1 %v12622_v60  ;;  %11757 = vmatmul.mubr.bf16.gmra.mrb[4].mxu1 %v10429_v42  ;;  %v8561_v36 = vrot.slane %v8559_v37, 5  ;;  %v8556_v7 = vor.u32 %v8555_v33, %v8552_v5  ;;  %v7760_v59 = vshll.u32 %v7720_v55, 16  ;;  %v8737_v42 = vshrl.u32 %v10528_v29, 16  ;;  %v12629_v35 = vld [vmem:[%s15597_s4 + $0x1b0] sm:$0xff]   ;;  %v7724_v29 = vld [vmem:[%s14258_s26 + $0x2c] sm:$0x1] }
 0x59e   : > { %11861 = vmatpush3.bf16.msra.mxu0 %v12621_v16  ;;  %v7737_v16 = vshrl.u32 %v7717_v12, 16  ;;  %11852 = vmatprep.mubr.bf16.mxu0 %v10516_v17  ;;  %v8543_v2 = vrot.slane %v8542_v24, 4  ;;  %v7742_v8 = vrot.slane %v7740_v58, 5  ;;  %v7748_v48 = vrot.slane %v7746_v38, 5  ;;  %v7721_v38 = vld [vmem:[%s14258_s26 + $0x1c] sm:$0xf] }
 0x59f   : > { %11862 = vmatprep.subr.bf16.mxu0 %v12623_v20  ;;  %v7753_v44 = vrot.slane %v7751_v41, 4  ;;  %v8557_v31 = vrot.slane %v8556_v7, 4  ;;  %v7762_v54 = vrot.slane %v7760_v59, 5  ;;  %v10544_v37 = vrot.slane %v8737_v42, 11  ;;  %v12631_v7 = vld [vmem:[%s15597_s4 + $0x1b8] sm:$0xff]  }
 0x5a0   : > { %11767 = vmatpush3.bf16.msra.mxu1 %v12622_v60  ;;  %v7739_v19 = vrot.slane %v7737_v16, 4  ;;  %v7754_v60 = vshll.u32 %v7719_v21, 16  ;;  %v8548_v10 = vsel %vm15139_vm10, %v8543_v2, %v8547_v23  ;;  %v8745_v23 = vshll.u32 %v15253_v62, 16  ;;  %v12630_v16 = vld [vmem:[%s15597_s4 + $0xb8] sm:$0xff]   ;;  %v15289_v42 = vld [vmem:[%s14258_s26 + $0x34] sm:$0xf] }
 0x5a1   : > { %11768 = vmatprep.subr.bf16.mxu1 %v12624_v46  ;;  %v8562_v17 = vsel %vm15139_vm10, %v8557_v31, %v8561_v36  ;;  %v8755_v58 = vshrl.u32 %v15260_v3, 16  ;;  %v8758_v36 = vshll.u32 %v15260_v3, 16 }
 0x5a2   : > { %11863 = vmatpush3.bf16.msra.mxu0 %v12623_v20  ;;  %v7756_v25 = vrot.slane %v7754_v60, 5  ;;  %v10530_v20 = vld [vmem:[%s14258_s26 + $0x24] sm:$0x8]  ;;  %v7743_v26 = vor.u32 %v7742_v8, %v7739_v19  ;;  %v10517_v55 = vcombine.low %v8548_v10, %v8562_v17  ;;  %v7723_v19 = vld [vmem:[%s14258_s26 + $0x28] sm:$0xf]  ;;  %v7765_v60 = vshrl.u32 %v7721_v38, 16 }
 0x5a3   : > { %11864 = vmatprep.subr.bf16.mxu0 %v12625_v50  ;;  %v8750_v12 = vshrl.u32 %v10530_v20, 16  ;;  %v7768_v10 = vshll.u32 %v7721_v38, 16  ;;  %v7779_v31 = vshrl.u32 %v7723_v19, 16  ;;  %v8771_v38 = vshll.u32 %v15289_v42, 16 }
 0x5a4   : > { %11769 = vmatpush3.bf16.msra.mxu1 %v12624_v46  ;;  %v8742_v46 = vshrl.u32 %v15253_v62, 16  ;;  %v7757_v5 = vor.u32 %v7756_v25, %v7753_v44  ;;  %v7744_v24 = vrot.slane %v7743_v26, 4  ;;  %11853 = vmatmul.mubr.bf16.gmra.mrb[4].mxu0 %v10517_v55  ;;  %v8757_v44 = vrot.slane %v8755_v58, 7  ;;  %v10532_v26 = vld [vmem:[%s14258_s26 + $0x30] sm:$0x8] }
 0x5a5   : > { %11770 = vmatprep.subr.bf16.mxu1 %v12626_v52  ;;  %v10545_v33 = vrot.slane %v8750_v12, 11  ;;  %v7767_v20 = vrot.slane %v7765_v60, 4  ;;  %v10534_v12 = vld [vmem:[%s14258_s26 + $0x3c] sm:$0x8]  ;;  %v7781_v17 = vrot.slane %v7779_v31, 4  ;;  %v8768_v55 = vshrl.u32 %v15289_v42, 16 }
 0x5a6   : > { %11865 = vmatpush3.bf16.msra.mxu0 %v12625_v50  ;;  %v8744_v21 = vrot.slane %v8742_v46, 7  ;;  %v7758_v50 = vrot.slane %v7757_v5, 4  ;;  %v7749_v41 = vsel %vm15139_vm10, %v7744_v24, %v7748_v48  ;;  %v12632_v46 = vld [vmem:[%s15597_s4 + $0xc0] sm:$0xff]   ;;  %v8760_v5 = vor.u32 %v8758_v36, %v8757_v44 }
 0x5a7   : > { %11866 = vmatprep.subr.bf16.mxu0 %v12627_v9  ;;  %v7788_v24 = vshll.u32 %v7724_v29, 16  ;;  %v8776_v44 = vshrl.u32 %v10534_v12, 16  ;;  %v15308_v29 = vrot.slane %v8114_v34, 7  ;;  %v12634_v34 = vld [vmem:[%s15597_s4 + $0xc8] sm:$0xff]   ;;  %v7725_v12 = vld [vmem:[%s14258_s26 + $0x7c] sm:$0xf] }
 0x5a8   : > { %11771 = vmatpush3.bf16.msra.mxu1 %v12626_v52  ;;  %v8747_v2 = vor.u32 %v8745_v23, %v8744_v21  ;;  %v7722_v52 = vld [vmem:[%s14258_s26 + $0x20] sm:$0x1]  ;;  %v7763_v8 = vsel %vm15139_vm10, %v7758_v50, %v7762_v54  ;;  %v7770_v54 = vrot.slane %v7768_v10, 5  ;;  %v8763_v21 = vshrl.u32 %v10532_v26, 16 }
 0x5a9   : > { %11772 = vmatprep.subr.bf16.mxu1 %v12628_v56  ;;  %v7774_v48 = vshll.u32 %v7722_v52, 16  ;;  %v10438_v25 = vcombine.low %v7749_v41, %v7763_v8  ;;  %v8770_v52 = vrot.slane %v8768_v55, 7  ;;  %v7793_v55 = vshrl.u32 %v7725_v12, 16 }
 0x5aa   : > { %11867 = vmatpush3.bf16.msra.mxu0 %v12627_v9  ;;  %v8748_v59 = vsel %vm15106_vm7, %v10544_v37, %v8747_v2  ;;  %v7782_v9 = vshll.u32 %v7723_v19, 16  ;;  %v15296_v37 = vld [vmem:[%s14258_s26 + $0x40] sm:$0xf]  ;;  %v7771_v50 = vor.u32 %v7770_v54, %v7767_v20  ;;  %v7790_v2 = vrot.slane %v7788_v24, 5  ;;  %v12635_v54 = vld [vmem:[%s15597_s4 + $0x1c8] sm:$0xff]  }
 0x5ab   : > { %11868 = vmatprep.subr.bf16.mxu0 %v12629_v35  ;;  %v7776_v23 = vrot.slane %v7774_v48, 5  ;;  %11776 = vmatprep.mubr.bf16.mxu1 %v10438_v25  ;;  %v10546_v36 = vrot.slane %v8763_v21, 11  ;;  %v12633_v19 = vld [vmem:[%s15597_s4 + $0x1c0] sm:$0xff]   ;;  %v8784_v10 = vshll.u32 %v15296_v37, 16  ;;  %v10547_v25 = vrot.slane %v8776_v44, 11 }
 0x5ac   : > { %11773 = vmatpush3.bf16.msra.mxu1 %v12628_v56  ;;  %v8761_v56 = vsel %vm15106_vm7, %v10545_v33, %v8760_v5  ;;  %v7784_v58 = vrot.slane %v7782_v9, 5  ;;  %v7772_v60 = vrot.slane %v7771_v50, 4  ;;  %v8781_v33 = vshrl.u32 %v15296_v37, 16  ;;  %v12636_v9 = vld [vmem:[%s15597_s4 + $0xd0] sm:$0xff]   ;;  %v7727_v24 = vld [vmem:[%s14258_s26 + $0x88] sm:$0xf] }
 0x5ad   : > { %11774 = vmatprep.subr.bf16.mxu1 %v12630_v16  ;;  %v10552_v41 = vcombine.low %v8748_v59, %v8761_v56  ;;  %v7728_v21 = vld [vmem:[%s14258_s26 + $0x8c] sm:$0x1]  ;;  %v7796_v56 = vshll.u32 %v7725_v12, 16  ;;  %v12637_v50 = vld [vmem:[%s15597_s4 + $0x1d0] sm:$0xff]   ;;  %v7731_v12 = vld [vmem:[%s14258_s26 + $0xa0] sm:$0xf] }
 0x5ae   : > { %11869 = vmatpush3.bf16.msra.mxu0 %v12629_v35  ;;  %v7785_v8 = vor.u32 %v7784_v58, %v7781_v17  ;;  %v8773_v35 = vor.u32 %v8771_v38, %v8770_v52  ;;  %v8783_v59 = vrot.slane %v8781_v33, 7  ;;  %v7726_v17 = vld [vmem:[%s14258_s26 + $0x80] sm:$0x1]  ;;  %v7807_v38 = vshrl.u32 %v7727_v24, 16  ;;  %v15347_v44 = vld [vmem:[%s14258_s26 + $0x94] sm:$0xf] }
 0x5af   : > { %11870 = vmatprep.subr.bf16.mxu0 %v12631_v7  ;;  %11872 = vmatprep.mubr.bf16.mxu0 %v10552_v41  ;;  %v7802_v58 = vshll.u32 %v7726_v17, 16  ;;  %v7810_v41 = vshll.u32 %v7727_v24, 16  ;;  %v15344_v52 = vor.u32 %v8039_v53, %v15007_v6  ;;  %v10538_v33 = vld [vmem:[%s14258_s26 + $0x9c] sm:$0x8]  ;;  %v8794_v6 = vshrl.u32 %v15347_v44, 16  ;;  %v12640_v24 = vld [vmem:[%s15597_s4 + $0xe0] sm:$0xff]  }
 0x5b0   : > { %11775 = vmatpush3.bf16.msra.mxu1 %v12630_v16  ;;  %v7777_v16 = vsel %vm15139_vm10, %v7772_v60, %v7776_v23  ;;  %v7786_v48 = vrot.slane %v7785_v8, 4  ;;  %v8774_v31 = vsel %vm15106_vm7, %v10546_v36, %v8773_v35  ;;  %v8786_v26 = vor.u32 %v8784_v10, %v8783_v59  ;;  %v10536_v36 = vld [vmem:[%s14258_s26 + $0x90] sm:$0x8] }
 0x5b1   : > { %11784 = vmatprep.subr.bf16.mxu1 %v12632_v46  ;;  %v7795_v60 = vrot.slane %v7793_v55, 4  ;;  %v7798_v8 = vrot.slane %v7796_v56, 5  ;;  %v7804_v35 = vrot.slane %v7802_v58, 5  ;;  %v7809_v10 = vrot.slane %v7807_v38, 4  ;;  %v7732_v58 = vld [vmem:[%s14258_s26 + $0xa4] sm:$0x1] }
 0x5b2   : > { %11871 = vmatpush3.bf16.msra.mxu0 %v12631_v7  ;;  %v7791_v20 = vsel %vm15139_vm10, %v7786_v48, %v7790_v2  ;;  %v8787_v7 = vsel %vm15106_vm7, %v10547_v25, %v8786_v26  ;;  %v7816_v2 = vshll.u32 %v7728_v21, 16  ;;  %v7729_v48 = vld [vmem:[%s14258_s26 + $0x94] sm:$0xf]  ;;  %v12639_v25 = vld [vmem:[%s15597_s4 + $0x1d8] sm:$0xff]  }
 0x5b3   : > { %11880 = vmatprep.subr.bf16.mxu0 %v12633_v19  ;;  %v10439_v5 = vcombine.low %v7777_v16, %v7791_v20  ;;  %v10553_v23 = vcombine.low %v8774_v31, %v8787_v7  ;;  %v7812_v16 = vrot.slane %v7810_v41, 5  ;;  %v7799_v53 = vor.u32 %v7798_v8, %v7795_v60  ;;  %v7730_v26 = vld [vmem:[%s14258_s26 + $0x98] sm:$0x1]  ;;  %v12641_v60 = vld [vmem:[%s15597_s4 + $0x1e0] sm:$0xff]  }
 0x5b4   : > { %v7818_v43 = vrot.slane %v7816_v2, 5  ;;  %v7821_v17 = vshrl.u32 %v7729_v48, 16  ;;  %v7824_v38 = vshll.u32 %v7729_v48, 16  ;;  %v10542_v48 = vld [vmem:[%s14258_s26 + $0xb4] sm:$0x8] }
 0x5b5   : > { %11777 = vmatmul.mubr.bf16.vlgmr.msra.gmra.mrb[0].mxu1 %v10439_v5  ;;  %11873 = vmatmul.mubr.bf16.vlgmr.msra.gmra.mrb[0].mxu0 %v10553_v23  ;;  %v7813_v59 = vor.u32 %v7812_v16, %v7809_v10  ;;  %v7800_v5 = vrot.slane %v7799_v53, 4  ;;  %v8796_v23 = vrot.slane %v8794_v6, 7  ;;  %v7835_v16 = vshrl.u32 %v7731_v12, 16  ;;  %v15379_v53 = vld [vmem:[%s14258_s26 + $0xac] sm:$0xf] }
 0x5b6   : > { %11785 = vmatpush3.bf16.msra.mxu1 %v12632_v46  ;;  %v15339_v46 = vor.u32 %v8026_v57, %v15004_v51  ;;  %11881 = vmatpush3.bf16.msra.mxu0 %v12633_v19  ;;  %v15351_v57 = vld [vmem:[%s14258_s26 + $0xa0] sm:$0xf]  ;;  %v8789_v51 = vshrl.u32 %v10536_v36, 16  ;;  %v8797_v19 = vshll.u32 %v15347_v44, 16  ;;  %v7823_v2 = vrot.slane %v7821_v17, 4 }
 0x5b7   : > { %11786 = vmatprep.subr.bf16.mxu1 %v12634_v34  ;;  %11882 = vmatprep.subr.bf16.mxu0 %v12635_v54  ;;  %v8807_v20 = vshrl.u32 %v15351_v57, 16  ;;  %v8810_v31 = vshll.u32 %v15351_v57, 16  ;;  %v7814_v21 = vrot.slane %v7813_v59, 4  ;;  %v7830_v36 = vshll.u32 %v7730_v26, 16  ;;  %v15385_v59 = vld [vmem:[%s14258_s26 + $0xb8] sm:$0xf] }
 0x5b8   : > { %v10548_v7 = vrot.slane %v8789_v51, 11  ;;  %v8799_v41 = vor.u32 %v8797_v19, %v8796_v23  ;;  %v7826_v10 = vrot.slane %v7824_v38, 5  ;;  %v7838_v19 = vshll.u32 %v7731_v12, 16 }
 0x5b9   : > { %v8809_v56 = vrot.slane %v8807_v20, 7  ;;  %v7819_v8 = vsel %vm15139_vm10, %v7814_v21, %v7818_v43  ;;  %v7832_v6 = vrot.slane %v7830_v36, 5  ;;  %v7837_v20 = vrot.slane %v7835_v16, 4 }
 0x5ba   : > { %11787 = vmatpush3.bf16.msra.mxu1 %v12634_v34  ;;  %v8802_v34 = vshrl.u32 %v10538_v33, 16  ;;  %11883 = vmatpush3.bf16.msra.mxu0 %v12635_v54  ;;  %v7805_v54 = vsel %vm15139_vm10, %v7800_v5, %v7804_v35  ;;  %v8800_v51 = vsel %vm15106_vm7, %v10548_v7, %v8799_v41  ;;  %v7840_v5 = vrot.slane %v7838_v19, 5 }
 0x5bb   : > { %11788 = vmatprep.subr.bf16.mxu1 %v12636_v9  ;;  %11884 = vmatprep.subr.bf16.mxu0 %v12637_v50  ;;  %v8812_v33 = vor.u32 %v8810_v31, %v8809_v56  ;;  %v10440_v35 = vcombine.low %v7805_v54, %v7819_v8  ;;  %v7844_v31 = vshll.u32 %v7732_v58, 16  ;;  %v8820_v23 = vshrl.u32 %v15379_v53, 16  ;;  %v10450_v8 = vld [vmem:[%s14258_s26 + $0xc] sm:$0x8] }
 0x5bc   : > { %v10549_v55 = vrot.slane %v8802_v34, 11  ;;  %v7827_v34 = vor.u32 %v7826_v10, %v7823_v2  ;;  %v8823_v21 = vshll.u32 %v15379_v53, 16  ;;  %v7841_v56 = vor.u32 %v7840_v5, %v7837_v20  ;;  %v10458_v20 = vld [vmem:[%s14258_s26 + $0x84] sm:$0x8] }
 0x5bd   : > { %11780 = vmatprep.mubr.bf16.mxu1 %v10440_v35  ;;  %v7846_v17 = vrot.slane %v7844_v31, 5  ;;  %v8822_v38 = vrot.slane %v8820_v23, 7  ;;  %v8833_v54 = vshrl.u32 %v15385_v59, 16  ;;  %v8054_v41 = vor.u32 %v8052_v15, %v15043_v32  ;;  %v12644_v15 = vld [vmem:[%s15597_s4 + $0xf0] sm:$0xff]  }
 0x5be   : > { %11789 = vmatpush3.bf16.msra.mxu1 %v12636_v9  ;;  %v10540_v9 = vld [vmem:[%s14258_s26 + $0xa8] sm:$0x8]  ;;  %11885 = vmatpush3.bf16.msra.mxu0 %v12637_v50  ;;  %v8813_v43 = vsel %vm15106_vm7, %v10549_v55, %v8812_v33  ;;  %v7828_v12 = vrot.slane %v7827_v34, 4  ;;  %v8828_v55 = vshrl.u32 %v10542_v48, 16  ;;  %v8836_v36 = vshll.u32 %v15385_v59, 16  ;;  %v12645_v48 = vld [vmem:[%s15597_s4 + $0x1f0] sm:$0xff]  }
 0x5bf   : > { %11790 = vmatprep.subr.bf16.mxu1 %v12638_v47  ;;  %11886 = vmatprep.subr.bf16.mxu0 %v12639_v25  ;;  %v12642_v50 = vld [vmem:[%s15597_s4 + $0xe8] sm:$0xff]   ;;  %v10554_v26 = vcombine.low %v8800_v51, %v8813_v43  ;;  %v8815_v7 = vshrl.u32 %v10540_v9, 16  ;;  %v7842_v33 = vrot.slane %v7841_v56, 4  ;;  %v8825_v10 = vor.u32 %v8823_v21, %v8822_v38  ;;  %v10452_v9 = vld [vmem:[%s14258_s26 + $0x18] sm:$0x8] }
 0x5c0   : > { %v10551_v2 = vrot.slane %v8828_v55, 11  ;;  %v8835_v16 = vrot.slane %v8833_v54, 7  ;;  %v8018_v35 = vshrl.u32 %v10450_v8, 16  ;;  %v8031_v32 = vshrl.u32 %v10452_v9, 16  ;;  %v10454_v51 = vld [vmem:[%s14258_s26 + $0x24] sm:$0x8] }
 0x5c1   : > { %11876 = vmatprep.mubr.bf16.mxu0 %v10554_v26  ;;  %v10550_v58 = vrot.slane %v8815_v7, 11  ;;  %v8093_v19 = vor.u32 %v8091_v39, %v15090_v1  ;;  %v7847_v45 = vsel %vm15139_vm10, %v7842_v33, %v7846_v17  ;;  %v8044_v39 = vshrl.u32 %v10454_v51, 16  ;;  %v10460_v31 = vld [vmem:[%s14258_s26 + $0x90] sm:$0x8]  ;;  %v12650_v54 = vld [vmem:[%s15597_s4 + $0x200] sm:$0xff]  }
 0x5c2   : > { %11791 = vmatpush3.bf16.msra.mxu1 %v12638_v47  ;;  %11887 = vmatpush3.bf16.msra.mxu0 %v12639_v25  ;;  %v12643_v47 = vld [vmem:[%s15597_s4 + $0x1e8] sm:$0xff]   ;;  %v7833_v25 = vsel %vm15139_vm10, %v7828_v12, %v7832_v6  ;;  %v10456_v6 = vld [vmem:[%s14258_s26 + $0x30] sm:$0x8]  ;;  %v8838_v11 = vor.u32 %v8836_v36, %v8835_v16  ;;  %v10466_v40 = vrot.slane %v8018_v35, 11  ;;  %v10564_v34 = vcombine.low %v15253_v62, %v15260_v3  ;;  %v10462_v12 = vld [vmem:[%s14258_s26 + $0x9c] sm:$0x8] }
 0x5c3   : > { %11792 = vmatprep.subr.bf16.mxu1 %v12640_v24  ;;  %11888 = vmatprep.subr.bf16.mxu0 %v12641_v60  ;;  %v8826_v13 = vsel %vm15106_vm7, %v10550_v58, %v8825_v10  ;;  %v8057_v1 = vshrl.u32 %v10456_v6, 16  ;;  %v8106_v26 = vor.u32 %v8104_v28, %v15192_v22  ;;  %v10468_v7 = vrot.slane %v8044_v39, 11  ;;  %v10576_v10 = vld [vmem:[%s14258_s26 + $0x1c] sm:$0xf]  ;;  %v10577_v16 = vld [vmem:[%s14258_s26 + $0x20] sm:$0x1] }
 0x5c4   : > { %v8029_v43 = vsel %vm15106_vm7, %v10466_v40, %v15339_v46  ;;  %v10464_v46 = vld [vmem:[%s14258_s26 + $0xa8] sm:$0x8]  ;;  %v8070_v62 = vshrl.u32 %v10458_v20, 16  ;;  %v8083_v3 = vshrl.u32 %v10460_v31, 16  ;;  %v8096_v21 = vshrl.u32 %v10462_v12, 16 }
 0x5c5   : > { %v10469_v23 = vrot.slane %v8057_v1, 11  ;;  %v8055_v28 = vsel %vm15106_vm7, %v10468_v7, %v8054_v41  ;;  %v8119_v55 = vor.u32 %v8117_v49, %v15308_v29  ;;  %v10565_v8 = vcombine.low %v15289_v42, %v15296_v37  ;;  %v10578_v9 = vld [vmem:[%s14258_s26 + $0x28] sm:$0xf]  ;;  %v10579_v35 = vld [vmem:[%s14258_s26 + $0x2c] sm:$0x1] }
 0x5c6   : > { %11793 = vmatpush3.bf16.msra.mxu1 %v12640_v24  ;;  %v8080_v24 = vor.u32 %v8078_v30, %v15082_v27  ;;  %11889 = vmatpush3.bf16.msra.mxu0 %v12641_v60  ;;  %v10441_v30 = vcombine.low %v7833_v25, %v7847_v45  ;;  %v10467_v27 = vrot.slane %v8031_v32, 11  ;;  %v8839_v60 = vsel %vm15106_vm7, %v10551_v2, %v8838_v11  ;;  %v12651_v25 = vld [vmem:[%s15597_s4 + $0x208] sm:$0xff]   ;;  %v10584_v42 = vld [vmem:[%s14258_s26 + $0x94] sm:$0xf]  ;;  %v10585_v37 = vld [vmem:[%s14258_s26 + $0x98] sm:$0x1] }
 0x5c7   : > { %11794 = vmatprep.subr.bf16.mxu1 %v12642_v50  ;;  %11890 = vmatprep.subr.bf16.mxu0 %v12643_v47  ;;  %v10555_v5 = vcombine.low %v8826_v13, %v8839_v60  ;;  %v8068_v22 = vsel %vm15106_vm7, %v10469_v23, %v8067_v14  ;;  %v10470_v56 = vrot.slane %v8070_v62, 11  ;;  %v10471_v58 = vrot.slane %v8083_v3, 11  ;;  %v12655_v62 = vld [vmem:[%s15597_s4 + $0x218] sm:$0xff]  }
 0x5c8   : > { %11781 = vmatmul.mubr.bf16.gmra.mrb[4].mxu1 %v10441_v30  ;;  %v10472_v38 = vrot.slane %v8096_v21, 11  ;;  %v9171_v14 = vshrl.u32 %v10576_v10, 16  ;;  %v9180_v32 = vshll.u32 %v10577_v16, 16  ;;  %v9185_v51 = vshrl.u32 %v10578_v9, 16 }
 0x5c9   : > { %11877 = vmatmul.mubr.bf16.gmra.mrb[4].mxu0 %v10555_v5  ;;  %v8081_v18 = vsel %vm15106_vm7, %v10470_v56, %v8080_v24  ;;  %v8094_v49 = vsel %vm15106_vm7, %v10471_v58, %v8093_v19  ;;  %v10566_v63 = vcombine.low %v15347_v44, %v15351_v57  ;;  %v9188_v6 = vshll.u32 %v10578_v9, 16  ;;  %v12654_v44 = vld [vmem:[%s15597_s4 + $0x210] sm:$0xff]   ;;  %v10590_v58 = vld [vmem:[%s14258_s26 + $0xb8] sm:$0xf] }
 0x5ca   : > { %11795 = vmatpush3.bf16.msra.mxu1 %v12642_v50  ;;  %v8042_v50 = vsel %vm15106_vm7, %v10467_v27, %v15344_v52  ;;  %11891 = vmatpush3.bf16.msra.mxu0 %v12643_v47  ;;  %v8109_v52 = vshrl.u32 %v10464_v46, 16  ;;  %v10475_v47 = vcombine.low %v8055_v28, %v8068_v22  ;;  %v8107_v29 = vsel %vm15106_vm7, %v10472_v38, %v8106_v26  ;;  %v12656_v38 = vld [vmem:[%s15597_s4 + $0x220] sm:$0xff]  }
 0x5cb   : > { %11796 = vmatprep.subr.bf16.mxu1 %v12644_v15  ;;  %v10474_v17 = vcombine.low %v8029_v43, %v8042_v50  ;;  %11892 = vmatprep.subr.bf16.mxu0 %v12645_v48  ;;  %v10476_v2 = vcombine.low %v8081_v18, %v8094_v49  ;;  %v9194_v24 = vshll.u32 %v10579_v35, 16  ;;  %v9173_v19 = vrot.slane %v9171_v14, 4  ;;  %v10589_v14 = vld [vmem:[%s14258_s26 + $0xb0] sm:$0x1] }
 0x5cc   : > { %11896 = vmatprep.mubr.bf16.mxu0 %v10564_v34  ;;  %v10473_v41 = vrot.slane %v8109_v52, 11  ;;  %v9182_v13 = vrot.slane %v9180_v32, 5  ;;  %v9187_v11 = vrot.slane %v9185_v51, 4  ;;  %v9190_v40 = vrot.slane %v9188_v6, 5  ;;  %v10580_v52 = vld [vmem:[%s14258_s26 + $0x34] sm:$0xf] }
 0x5cd   : > { %11800 = vmatprep.mubr.bf16.mxu1 %v10474_v17  ;;  %v9196_v30 = vrot.slane %v9194_v24, 5  ;;  %v9227_v27 = vshrl.u32 %v10584_v42, 16  ;;  %v9230_v39 = vshll.u32 %v10584_v42, 16  ;;  %v9236_v1 = vshll.u32 %v10585_v37, 16  ;;  %v10581_v42 = vld [vmem:[%s14258_s26 + $0x38] sm:$0x1] }
 0x5ce   : > { %11797 = vmatpush3.bf16.msra.mxu1 %v12644_v15  ;;  %11893 = vmatpush3.bf16.msra.mxu0 %v12645_v48  ;;  %v8120_v36 = vsel %vm15106_vm7, %v10473_v41, %v8119_v55  ;;  %v9174_v15 = vshll.u32 %v10576_v10, 16  ;;  %v10586_v48 = vld [vmem:[%s14258_s26 + $0xa0] sm:$0xf]  ;;  %v9191_v34 = vor.u32 %v9190_v40, %v9187_v11  ;;  %v10567_v17 = vcombine.low %v15379_v53, %v15385_v59  ;;  %v10588_v55 = vld [vmem:[%s14258_s26 + $0xac] sm:$0xf] }
 0x5cf   : > { %11798 = vmatprep.subr.bf16.mxu1 %v12646_v0  ;;  %11894 = vmatprep.subr.bf16.mxu0 %v12647_v61  ;;  %v10477_v33 = vcombine.low %v8107_v29, %v8120_v36  ;;  %v9241_v60 = vshrl.u32 %v10586_v48, 16  ;;  %v9244_v43 = vshll.u32 %v10586_v48, 16  ;;  %v9229_v20 = vrot.slane %v9227_v27, 4  ;;  %v10583_v37 = vld [vmem:[%s14258_s26 + $0x44] sm:$0x1]  ;;  %v12658_v48 = vld [vmem:[%s15597_s4 + $0x230] sm:$0xff]  }
 0x5d0   : > { %v9176_v45 = vrot.slane %v9174_v15, 5  ;;  %v9232_v31 = vrot.slane %v9230_v39, 5  ;;  %v9192_v23 = vrot.slane %v9191_v34, 4  ;;  %v9238_v46 = vrot.slane %v9236_v1, 5  ;;  %v10591_v15 = vld [vmem:[%s14258_s26 + $0xbc] sm:$0x1] }
 0x5d1   : > { %v9243_v50 = vrot.slane %v9241_v60, 4  ;;  %v9246_v7 = vrot.slane %v9244_v43, 5  ;;  %v9199_v41 = vshrl.u32 %v10580_v52, 16  ;;  %v9255_v18 = vshrl.u32 %v10588_v55, 16  ;;  %v12659_v60 = vld [vmem:[%s15597_s4 + $0x238] sm:$0xff]  }
 0x5d2   : > { %11799 = vmatpush3.bf16.msra.mxu1 %v12646_v0  ;;  %11895 = vmatpush3.bf16.msra.mxu0 %v12647_v61  ;;  %v10587_v0 = vld [vmem:[%s14258_s26 + $0xa4] sm:$0x1]  ;;  %v9177_v57 = vor.u32 %v9176_v45, %v9173_v19  ;;  %v9233_v12 = vor.u32 %v9232_v31, %v9229_v20  ;;  %v9197_v28 = vsel %vm15139_vm10, %v9192_v23, %v9196_v30  ;;  %v9258_v49 = vshll.u32 %v10588_v55, 16 }
 0x5d3   : > { %12168 = vmatprep.subr.bf16.mxu1 %v12650_v54  ;;  %11904 = vmatprep.subr.bf16.mxu0 %v12650_v54  ;;  %v9250_v26 = vshll.u32 %v10587_v0, 16  ;;  %v9247_v21 = vor.u32 %v9246_v7, %v9243_v50  ;;  %v9257_v10 = vrot.slane %v9255_v18, 4  ;;  %v9272_v9 = vshll.u32 %v10590_v58, 16 }
 0x5d4   : > { %v9178_v5 = vrot.slane %v9177_v57, 4  ;;  %v9234_v22 = vrot.slane %v9233_v12, 4  ;;  %v9260_v16 = vrot.slane %v9258_v49, 5  ;;  %v9201_v35 = vrot.slane %v9199_v41, 4 }
 0x5d5   : > { %11801 = vmatmul.mubr.bf16.vlgmr.msra.gmra.mrb[0].mxu1 %v10475_v47  ;;  %11897 = vmatmul.mubr.bf16.vlgmr.msra.gmra.mrb[0].mxu0 %v10565_v8  ;;  %v9252_v61 = vrot.slane %v9250_v26, 5  ;;  %v9248_v59 = vrot.slane %v9247_v21, 4  ;;  %v10582_v47 = vld [vmem:[%s14258_s26 + $0x40] sm:$0xf]  ;;  %v9269_v8 = vshrl.u32 %v10590_v58, 16  ;;  %v9274_v24 = vrot.slane %v9272_v9, 5 }
 0x5d6   : > { %12176 = vmatpush3.bf16.msra.mxu1 %v12650_v54  ;;  %11804 = vmatprep.mubr.bf16.mxu1 %v10476_v2  ;;  %v9183_v3 = vsel %vm15139_vm10, %v9178_v5, %v9182_v13  ;;  %v9239_v56 = vsel %vm15139_vm10, %v9234_v22, %v9238_v46  ;;  %v9213_v2 = vshrl.u32 %v10582_v47, 16  ;;  %v9216_v36 = vshll.u32 %v10582_v47, 16 }
 0x5d7   : > { %12169 = vmatprep.subr.bf16.mxu1 %v12651_v25  ;;  %11905 = vmatpush3.bf16.msra.mxu0 %v12650_v54  ;;  %v10592_v53 = vcombine.low %v9183_v3, %v9197_v28  ;;  %v9253_v54 = vsel %vm15139_vm10, %v9248_v59, %v9252_v61  ;;  %v9271_v32 = vrot.slane %v9269_v8, 4  ;;  %v9261_v19 = vor.u32 %v9260_v16, %v9257_v10 }
 0x5d8   : > { %11900 = vmatprep.mubr.bf16.mxu0 %v10566_v63  ;;  %11906 = vmatprep.subr.bf16.mxu0 %v12651_v25  ;;  %v10594_v29 = vcombine.low %v9239_v56, %v9253_v54  ;;  %v9215_v63 = vrot.slane %v9213_v2, 4  ;;  %v9218_v6 = vrot.slane %v9216_v36, 5  ;;  %v9264_v45 = vshll.u32 %v10589_v14, 16 }
 0x5d9   : > { %v9275_v13 = vor.u32 %v9274_v24, %v9271_v32  ;;  %v9278_v11 = vshll.u32 %v10591_v15, 16  ;;  %v9208_v30 = vshll.u32 %v10581_v42, 16  ;;  %v9222_v27 = vshll.u32 %v10583_v37, 16 }
 0x5da   : > { %12177 = vmatpush3.bf16.msra.mxu1 %v12651_v25  ;;  %v9219_v0 = vor.u32 %v9218_v6, %v9215_v63  ;;  %v9262_v39 = vrot.slane %v9261_v19, 4 }
 0x5db   : > { %12170 = vmatprep.subr.bf16.mxu1 %v12654_v44  ;;  %11907 = vmatpush3.bf16.msra.mxu0 %v12651_v25  ;;  %v9202_v25 = vshll.u32 %v10580_v52, 16  ;;  %v9276_v57 = vrot.slane %v9275_v13, 4  ;;  %v9280_v1 = vrot.slane %v9278_v11, 5  ;;  %v9210_v34 = vrot.slane %v9208_v30, 5 }
 0x5dc   : > { %11908 = vmatprep.subr.bf16.mxu0 %v12654_v44  ;;  %v9220_v20 = vrot.slane %v9219_v0, 4  ;;  %v9224_v31 = vrot.slane %v9222_v27, 5 }
 0x5dd   : > { %11805 = vmatmul.mubr.bf16.gmra.mrb[4].mxu1 %v10477_v33  ;;  %11901 = vmatmul.mubr.bf16.gmra.mrb[4].mxu0 %v10567_v17  ;;  %v12657_v33 = vld [vmem:[%s15597_s4 + $0x228] sm:$0xff]   ;;  %v9204_v51 = vrot.slane %v9202_v25, 5  ;;  %v9281_v5 = vsel %vm15139_vm10, %v9276_v57, %v9280_v1 }
 0x5de   : > { %12178 = vmatpush3.bf16.msra.mxu1 %v12654_v44  ;;  %11920 = vmatprep.mubr.bf16.mxu0 %v10592_v53  ;;  %v9225_v7 = vsel %vm15139_vm10, %v9220_v20, %v9224_v31 }
 0x5df   : > { %12171 = vmatprep.subr.bf16.mxu1 %v12655_v62  ;;  %11909 = vmatpush3.bf16.msra.mxu0 %v12654_v44  ;;  %v9205_v40 = vor.u32 %v9204_v51, %v9201_v35  ;;  %v9266_v44 = vrot.slane %v9264_v45, 5 }
 0x5e0   : > { %11910 = vmatprep.subr.bf16.mxu0 %v12655_v62  ;;  %11924 = vmatprep.mubr.bf16.mxu1 %v10594_v29 }
 0x5e1   : > { %v9206_v43 = vrot.slane %v9205_v40, 4  ;;  %v9267_v26 = vsel %vm15139_vm10, %v9262_v39, %v9266_v44 }
 0x5e2   : > { %12179 = vmatpush3.bf16.msra.mxu1 %v12655_v62  ;;  %v10595_v23 = vcombine.low %v9267_v26, %v9281_v5 }
 0x5e3   : > { %12172 = vmatprep.subr.bf16.mxu1 %v12656_v38  ;;  %11911 = vmatpush3.bf16.msra.mxu0 %v12655_v62  ;;  %v9211_v50 = vsel %vm15139_vm10, %v9206_v43, %v9210_v34 }
 0x5e4   : > { %11912 = vmatprep.subr.bf16.mxu0 %v12656_v38  ;;  %v10593_v12 = vcombine.low %v9211_v50, %v9225_v7 }
 0x5e6   : > { %12180 = vmatpush3.bf16.msra.mxu1 %v12656_v38 }
 0x5e7   : > { %12173 = vmatprep.subr.bf16.mxu1 %v12657_v33  ;;  %11913 = vmatpush3.bf16.msra.mxu0 %v12656_v38 }
 0x5e8   : > { %11914 = vmatprep.subr.bf16.mxu0 %v12657_v33 }
 0x5ea   : > { %12181 = vmatpush3.bf16.msra.mxu1 %v12657_v33 }
 0x5eb   : > { %12174 = vmatprep.subr.bf16.mxu1 %v12658_v48  ;;  %11915 = vmatpush3.bf16.msra.mxu0 %v12657_v33 }
 0x5ec   : > { %11916 = vmatprep.subr.bf16.mxu0 %v12658_v48 }
 0x5ee   : > { %12182 = vmatpush3.bf16.msra.mxu1 %v12658_v48 }
 0x5ef   : > { %12175 = vmatprep.subr.bf16.mxu1 %v12659_v60  ;;  %11917 = vmatpush3.bf16.msra.mxu0 %v12658_v48 }
 0x5f0   : > { %11918 = vmatprep.subr.bf16.mxu0 %v12659_v60 }
 0x5f2   : > { %12183 = vmatpush3.bf16.msra.mxu1 %v12659_v60 }
 0x5f3   : > { %11919 = vmatpush3.bf16.msra.mxu0 %v12659_v60 }
 0x5f5   : > { %11925 = vmatmul.mubr.bf16.vlgmr.msra.gmra.mrb[8].mxu1 %v10595_v23 }
 0x5f6   : > { %11921 = vmatmul.mubr.bf16.vlgmr.msra.gmra.mrb[0].mxu0 %v10593_v12  ;;  %v9443_v12 = vld [vmem:[#allocation4 + $0x2] sm:$0x1] }
 0x6a8   : > { %v11802_v46 = vpop.f32.mrb[0].mxu1 }
 0x6a9   : > { %v8235_v17 = vpop.f32.mrb[1].mxu1 }
 0x6aa   : > { %v11803_v62 = vpop.f32.mrb[2].mxu1 }
 0x6ab   : > { %v8238_v3 = vpop.f32.mrb[3].mxu1 }
 0x6b0   : > { %v11806_v21 = vpop.f32.mrb[4].mxu1  ;;  %v11902_v28 = vpop.f32.mrb[4].mxu0 }
 0x6b1   : > { %v8251_v61 = vpop.f32.mrb[5].mxu1  ;;  %v12188_v52 = vadd.f32 %v11902_v28, %v11806_v21  ;;  %v9131_v55 = vpop.f32.mrb[5].mxu0 }
 0x6b2   : > { %v11807_v22 = vpop.f32.mrb[6].mxu1  ;;  %v12190_v53 = vadd.f32 %v9131_v55, %v8251_v61  ;;  %v11903_v59 = vpop.f32.mrb[6].mxu0 }
 0x6b3   : > { %v8254_v4 = vpop.f32.mrb[7].mxu1  ;;  %v12192_v47 = vadd.f32 %v11903_v59, %v11807_v22  ;;  %v9134_v56 = vpop.f32.mrb[7].mxu0 }
 0x6b4   : > { %v12194_v58 = vadd.f32 %v9134_v56, %v8254_v4 }
 0x6c8   : > { %v11926_v38 = vpop.f32.mrb[8].mxu1 }
 0x6c9   : > { %v12189_v54 = vadd.f32 %v12188_v52, %v11926_v38  ;;  %v9412_v41 = vpop.f32.mrb[9].mxu1  ;;  %v11922_v18 = vpop.f32.mrb[0].mxu0 }
 0x6ca   : > { %v12191_v49 = vadd.f32 %v12190_v53, %v9412_v41  ;;  %v11927_v29 = vpop.f32.mrb[10].mxu1  ;;  %v12184_v25 = vadd.f32 %v11922_v18, %v11802_v46  ;;  %v9396_v2 = vpop.f32.mrb[1].mxu0 }
 0x6cb   : > { %9441 = vst [vmem:[%s14247_s16 + $0x50] sm:$0xff] %v12189_v54  ;;  %v12193_v36 = vadd.f32 %v12192_v47, %v11927_v29  ;;  %v9415_v8 = vpop.f32.mrb[11].mxu1  ;;  %v12185_v33 = vadd.f32 %v9396_v2, %v8235_v17  ;;  %v11923_v10 = vpop.f32.mrb[2].mxu0  ;;  %v9466_v0 = vmul.f32 %v12189_v54, %v12189_v54 }
 0x6cc   : > { %9439 = vst [vmem:[%s14247_s16 + $0x40] sm:$0xff] %v12191_v49  ;;  %v12195_v16 = vadd.f32 %v12194_v58, %v9415_v8  ;;  %9437 = vst [vmem:[%s14247_s16 + $0x10] sm:$0xff] %v12184_v25  ;;  %v12186_v9 = vadd.f32 %v11923_v10, %v11803_v62  ;;  %v9399_v35 = vpop.f32.mrb[3].mxu0  ;;  %v9462_v63 = vmul.f32 %v12184_v25, %v12184_v25  ;;  %v9459_v62 = vld [vmem:[#allocation4 + $0x3] sm:$0x1] }
 0x6cd   : > { %9442 = vst [vmem:[%s14247_s16 + $0x58] sm:$0xff] %v12193_v36  ;;  %9435 = vst [vmem:[%s14247_s16] sm:$0xff] %v12185_v33  ;;  %v12187_v14 = vadd.f32 %v9399_v35, %v8238_v3  ;;  %v9460_v15 = vmul.f32 %v12185_v33, %v12185_v33  ;;  %v9464_v45 = vmul.f32 %v12191_v49, %v12191_v49 }
 0x6ce   : > { %9440 = vst [vmem:[%s14247_s16 + $0x48] sm:$0xff] %v12195_v16  ;;  %9438 = vst [vmem:[%s14247_s16 + $0x18] sm:$0xff] %v12186_v9  ;;  %v9463_v42 = vmul.f32 %v12186_v9, %v12186_v9  ;;  %v9465_v40 = vmul.f32 %v12195_v16, %v12195_v16  ;;  %v9467_v44 = vmul.f32 %v12193_v36, %v12193_v36 }
 0x6cf   : > { %9436 = vst [vmem:[%s14247_s16 + $0x8] sm:$0xff] %v12187_v14  ;;  %v9444_v32 = vadd.f32 %v12187_v14, %v12185_v33  ;;  %v9461_v51 = vmul.f32 %v12187_v14, %v12187_v14 }
 0x6d1   : > { %v9445_v6 = vadd.f32 %v12184_v25, %v9444_v32  ;;  %v9468_v24 = vadd.f32 %v9461_v51, %v9460_v15 }
 0x6d3   : > { %v9469_v37 = vadd.f32 %v9468_v24, %v9462_v63  ;;  %v9446_v19 = vadd.f32 %v12186_v9, %v9445_v6 }
 0x6d5   : > { %v9447_v13 = vadd.f32 %v12191_v49, %v9446_v19  ;;  %v9470_v11 = vadd.f32 %v9469_v37, %v9463_v42 }
 0x6d7   : > { %v9448_v48 = vadd.f32 %v12195_v16, %v9447_v13  ;;  %v9471_v30 = vadd.f32 %v9470_v11, %v9464_v45 }
 0x6d9   : > { %v9449_v27 = vadd.f32 %v12189_v54, %v9448_v48  ;;  %v9472_v39 = vadd.f32 %v9471_v30, %v9465_v40 }
 0x6db   : > { %v9450_v57 = vadd.f32 %v12193_v36, %v9449_v27  ;;  %v9473_v1 = vadd.f32 %v9472_v39, %v9466_v0 }
 0x6dd   : > { %v9451_v60 = vrot.slane %v9450_v57, 4  ;;  %v9474_v43 = vadd.f32 %v9473_v1, %v9467_v44 }
 0x6df   : > { %v9452_v34 = vadd.f32 %v9451_v60, %v9450_v57  ;;  %v9475_v20 = vrot.slane %v9474_v43, 4 }
 0x6e1   : > { %v9453_v31 = vrot.slane %v9452_v34, 2  ;;  %v9476_v26 = vadd.f32 %v9475_v20, %v9474_v43 }
 0x6e3   : > { %v9454_v5 = vadd.f32 %v9453_v31, %v9452_v34  ;;  %v9477_v50 = vrot.slane %v9476_v26, 2 }
 0x6e5   : > { %v9455_v7 = vrot.slane %v9454_v5, 1  ;;  %v9478_v23 = vadd.f32 %v9477_v50, %v9476_v26 }
 0x6e7   : > { %v9456_v46 = vadd.f32 %v9455_v7, %v9454_v5  ;;  %v9479_v17 = vrot.slane %v9478_v23, 1 }
 0x6e9   : > { %v9457_v3 = vadd.f32 %v9456_v46, %v9443_v12  ;;  %v9480_v21 = vadd.f32 %v9479_v17, %v9478_v23 }
 0x6eb   : > { %9458 = vst [vmem:[#allocation4 + $0x2] sm:$0x1] %v9457_v3  ;;  %v9481_v61 = vadd.f32 %v9480_v21, %v9459_v62 }
 0x6ed   : > { %9482 = vst [vmem:[#allocation4 + $0x3] sm:$0x1] %v9481_v61 }
 0x6ee PF: > { %p10604_p0 = scmp.ne.s32.totalorder %s12720_s29, 2 }
 0x6ef   : > { %v9512_v47 = vlaneseq (!%p10604_p0)  ;;  %s10630_s16 = sshll.u32 (!%p10604_p0), %s12716_s28, 5  ;;  %v9493_v58 = vld [vmem:[%s15598_s5] sm:$0x1] (!%p10604_p0) }
 0x6f0   : > { %9486 = sbr.rel (%p10604_p0) target bundleno = 1814 (0x716), region = 118  ;;  %v9497_v18 = vld [vmem:[%s15599_s6] sm:$0x1] (!%p10604_p0)  ;;  %s9502_s0 = scalar_lea.vmem (!%p10604_p0), [#allocation3], %s10630_s16 }
 0x6f1   : > { %v9513_v56 = vshrl.u32 (!%p10604_p0), %v9512_v47, 7  ;;  %v9503_v49 = vld [vmem:[%s9502_s0] sm:$0xff] (!%p10604_p0)  ;;  %v9504_v29 = vld [vmem:[%s9502_s0 + $0x8] sm:$0xff] (!%p10604_p0)  ;;  %v9505_v25 = vld [vmem:[%s9502_s0 + $0x10] sm:$0xff] (!%p10604_p0) }
 0x6f2   : > { %v9487_v28 = vld [vmem:[#allocation4 + $0x2] sm:$0x1] (!%p10604_p0)  ;;  %v9506_v2 = vld [vmem:[%s9502_s0 + $0x18] sm:$0xff] (!%p10604_p0)  ;;  %v9507_v33 = vld [vmem:[%s9502_s0 + $0x40] sm:$0xff] (!%p10604_p0) }
 0x6f3   : > { %v9488_v52 = vmul.f32 (!%p10604_p0), 0.0078125, %v9487_v28  ;;  %v9514_v38 = vsub.s32 (!%p10604_p0), 0, %v9513_v56  ;;  %v9508_v10 = vld [vmem:[%s9502_s0 + $0x48] sm:$0xff] (!%p10604_p0)  ;;  %v9509_v16 = vld [vmem:[%s9502_s0 + $0x50] sm:$0xff] (!%p10604_p0)  ;;  %v9510_v9 = vld [vmem:[%s9502_s0 + $0x58] sm:$0xff] (!%p10604_p0) }
 0x6f4   : > { %v9489_v22 = vld [vmem:[#allocation4 + $0x3] sm:$0x1] (!%p10604_p0) }
 0x6f5   : > { %v9490_v55 = vmul.f32 (!%p10604_p0), 0.0078125, %v9489_v22  ;;  %v9491_v4 = vmul.f32 (!%p10604_p0), %v9488_v52, %v9488_v52 }
 0x6f7   : > { %v9492_v53 = vsub.f32 %v9490_v55, %v9491_v4 }
 0x6f9   : > { %v9494_v59 = vadd.f32 1e-05, %v9492_v53 }
 0x6fb   : > { %12660 = vrsqrt.f32 %v9494_v59 }
 0x705   : > { %v12661_v54 = vpop.eup %12660 }
 0x706   : > { %v9496_v41 = vmul.f32 %v12661_v54, %v9493_v58 }
 0x708   : > { %v9498_v36 = vmul.f32 %v9496_v41, %v9488_v52  ;;  %v9515_v8 = vrot.slane %v9496_v41, %v9514_v38 }
 0x70a   : > { %v9499_v35 = vsub.f32 %v9497_v18, %v9498_v36  ;;  %v9517_v14 = vmul.f32 %v9515_v8, %v9503_v49  ;;  %v9518_v15 = vmul.f32 %v9515_v8, %v9504_v29  ;;  %v9519_v32 = vmul.f32 %v9515_v8, %v9505_v25 }
 0x70b   : > { %v9520_v51 = vmul.f32 %v9515_v8, %v9506_v2  ;;  %v9521_v63 = vmul.f32 %v9515_v8, %v9507_v33  ;;  %v9522_v6 = vmul.f32 %v9515_v8, %v9508_v10  ;;  %v9523_v24 = vmul.f32 %v9515_v8, %v9509_v16 }
 0x70c   : > { %v9529_v42 = vrot.slane %v9499_v35, %v9514_v38  ;;  %v9524_v37 = vmul.f32 %v9515_v8, %v9510_v9 }
 0x70e   : > { %v9531_v19 = vadd.f32 %v9529_v42, %v9517_v14  ;;  %v9532_v45 = vadd.f32 %v9529_v42, %v9518_v15  ;;  %v9533_v13 = vadd.f32 %v9529_v42, %v9519_v32  ;;  %v9534_v11 = vadd.f32 %v9529_v42, %v9520_v51 }
 0x70f   : > { %v9535_v48 = vadd.f32 %v9529_v42, %v9521_v63  ;;  %v9536_v40 = vadd.f32 %v9529_v42, %v9522_v6  ;;  %v9537_v30 = vadd.f32 %v9529_v42, %v9523_v24  ;;  %v9538_v0 = vadd.f32 %v9529_v42, %v9524_v37 }
 0x710   : > { %v9539_v27 = vmax.f32 %v9531_v19, 0.0  ;;  %v9540_v39 = vmax.f32 %v9532_v45, 0.0  ;;  %v9541_v44 = vmax.f32 %v9533_v13, 0.0  ;;  %v9542_v57 = vmax.f32 %v9534_v11, 0.0 }
 0x711   : > { %v9543_v1 = vmax.f32 %v9535_v48, 0.0  ;;  %v9544_v60 = vmax.f32 %v9536_v40, 0.0  ;;  %v9545_v43 = vmax.f32 %v9537_v30, 0.0  ;;  %v9546_v34 = vmax.f32 %v9538_v0, 0.0 }
 0x712   : > { %9547 = vst [vmem:[%s12895_s19] sm:$0xff] %v9539_v27  ;;  %9548 = vst [vmem:[%s12895_s19 + $0x8] sm:$0xff] %v9540_v39 }
 0x713   : > { %9549 = vst [vmem:[%s12895_s19 + $0x10] sm:$0xff] %v9541_v44  ;;  %9550 = vst [vmem:[%s12895_s19 + $0x18] sm:$0xff] %v9542_v57 }
 0x714   : > { %9551 = vst [vmem:[%s12895_s19 + $0x20] sm:$0xff] %v9543_v1  ;;  %9552 = vst [vmem:[%s12895_s19 + $0x28] sm:$0xff] %v9544_v60 }
 0x715   : > { %9553 = vst [vmem:[%s12895_s19 + $0x30] sm:$0xff] %v9545_v43  ;;  %9554 = vst [vmem:[%s12895_s19 + $0x38] sm:$0xff] %v9546_v34 }
 0x716 PF: > { %9561 = sbr.rel (!%p12857_p13) target bundleno = 1828 (0x724), region = 122  ;;  %p9562_p1 = scmp.eq.s32.totalorder (%p12857_p13), %s12720_s29, 2 }
 0x719   : > { %v9608_v20 = vld [vmem:[%s12895_s19] sm:$0xff] (%p12857_p13)  ;;  %v9610_v31 = vld [vmem:[%s12895_s19 + $0x8] sm:$0xff] (%p12857_p13) }
 0x71a   : > { %v9612_v26 = vld [vmem:[%s12895_s19 + $0x10] sm:$0xff] (%p12857_p13)  ;;  %v9614_v5 = vld [vmem:[%s12895_s19 + $0x18] sm:$0xff] (%p12857_p13) }
 0x71b   : > { %v9616_v50 = vld [vmem:[%s12895_s19 + $0x20] sm:$0xff] (%p12857_p13)  ;;  %v9618_v7 = vld [vmem:[%s12895_s19 + $0x28] sm:$0xff] (%p12857_p13) }
 0x71c   : > { %v9620_v23 = vld [vmem:[%s12895_s19 + $0x30] sm:$0xff] (%p12857_p13)  ;;  %v9622_v12 = vld [vmem:[%s12895_s19 + $0x38] sm:$0xff] (%p12857_p13) }
 0x71d   : > { %s15640_s28 = smov (!%p9562_p1, %s12716_s28), 0 }
 0x71e   : > { %s10631_s8 = sshll.u32 %s15640_s28, 5 }
 0x71f   : > { %s9566_s14 = scalar_lea.vmem %s15600_s7, %s10631_s8 }
 0x720   : > { %9609 = vst [vmem:[%s9566_s14] sm:$0xff] %v9608_v20  ;;  %9611 = vst [vmem:[%s9566_s14 + $0x8] sm:$0xff] %v9610_v31 }
 0x721   : > { %9613 = vst [vmem:[%s9566_s14 + $0x10] sm:$0xff] %v9612_v26  ;;  %9615 = vst [vmem:[%s9566_s14 + $0x18] sm:$0xff] %v9614_v5 }
 0x722   : > { %9617 = vst [vmem:[%s9566_s14 + $0x40] sm:$0xff] %v9616_v50  ;;  %9619 = vst [vmem:[%s9566_s14 + $0x48] sm:$0xff] %v9618_v7 }
 0x723   : > { %9621 = vst [vmem:[%s9566_s14 + $0x50] sm:$0xff] %v9620_v23  ;;  %9623 = vst [vmem:[%s9566_s14 + $0x58] sm:$0xff] %v9622_v12 }
 0x724 PF: > { %s17_s9 = sadd.s32 1, %s12732_s9   ;;  %s15625_s29 = sld [smem:[#allocation7_spill]] }
 0x725   : > { %p14_p13 = scmp.ge.s32.totalorder %s17_s9, 8   ;;  %s15626_s24 = smov %s12704_s25 }
 0x726   : > { %s15627_s25 = smov %s12855_s23  ;;  %s15628_s26 = smov %s12712_s27 }
 0x727   : > { %s15629_s27 = smov %s12852_s22  ;;  %s15630_s28 = smov %s12724_s30 }
 0x728   : > { %s15631_s30 = smov %s15634_s11  ;;  %s15632_s8 = smov %s15638_s12 }
 0x729   :  { %16 = sbr.rel (!%p14_p13) target bundleno = 7 (0x7), region = 209 }

</bundles_post_ra>
